<compile_context>
chip_gen: v6e
topology: v6e:2x2x1
jax: 0.10.0
libtpu: 0.0.40
codegen_flags: <defaults>
</compile_context>

<pallas_src>
import functools

import jax
import jax.numpy as jnp
from jax.experimental import pallas as pl
from jax.experimental.pallas import tpu as pltpu


# ------------------------------ fused kernel -------------------------------- #

def _basic_conv_kernel(*refs, Nb, Ho, Wo, Cin, Coutp, kh, kw, stride, dilation,
                       eps, use_bn, use_relu):
    it = iter(refs)
    x_ref = next(it)                     # (s*s, Nb, Hps, Wps, Cin)  compute dtype
    w_ref = next(it)                     # (kh*kw*Cin, Coutp)        compute dtype
    if use_bn:
        gamma_ref = next(it)             # (1, Coutp) f32
        beta_ref = next(it)              # (1, Coutp) f32
    else:
        shift_ref = next(it)             # (1, Coutp) f32 (conv bias, or zeros)
    o_ref = next(it)                     # (Mb, Coutp) f32
    patch_ref = next(it)                 # (Mb, kh*kw*Cin) VMEM scratch
    acc_ref = next(it) if use_bn else None  # (Mb, Coutp) f32 VMEM scratch

    s = stride
    Mb = Nb * Ho * Wo

    # One in-VMEM im2col patch build (the only relayout), then a single MXU
    # matmul carrying the whole K = kh*kw*Cin contraction.
    for ky in range(kh):
        for kx in range(kw):
            rh, rw = ky * dilation, kx * dilation
            phase = (rh % s) * s + (rw % s)
            tap = ky * kw + kx
            win = x_ref[phase, :, pl.ds(rh // s, Ho), pl.ds(rw // s, Wo), :]
            patch_ref[:, tap * Cin:(tap + 1) * Cin] = win.reshape(Mb, Cin)

    if use_bn:
        acc_ref[...] = jnp.dot(patch_ref[...], w_ref[...],
                               preferred_element_type=jnp.float32)
        # Pass 1: per-channel sum / sum-of-squares (one sweep of the conv result).
        a = acc_ref[...]
        ssum = jnp.sum(a, axis=0, keepdims=True)
        ssq = jnp.sum(a * a, axis=0, keepdims=True)
        inv_m = 1.0 / Mb
        mean = ssum * inv_m
        var = jnp.maximum(ssq * inv_m - mean * mean, 0.0)   # clamp f32 cancellation
        scale = gamma_ref[...] * jax.lax.rsqrt(var + eps)
        shift = beta_ref[...] - mean * scale
        # Pass 2: fused normalize + affine (+ ReLU) + store.
        y = acc_ref[...] * scale + shift
    else:
        # Bias (or zeros) folded into the single epilogue vector op.
        y = jnp.dot(patch_ref[...], w_ref[...],
                    preferred_element_type=jnp.float32) + shift_ref[...]

    if use_relu:
        y = jnp.maximum(y, 0.0)
    o_ref[...] = y.astype(o_ref.dtype)


# ------------------------------ python wrapper ------------------------------ #

def _ceil_to(v, m):
    return -(-v // m) * m


def _vmem_bytes(shape, dtype):
    """Conservative VMEM footprint estimate with (8,128) tile padding."""
    dims = list(shape)
    dims[-1] = _ceil_to(dims[-1], 128)
    if len(dims) >= 2:
        dims[-2] = _ceil_to(dims[-2], 8)
    n = 1
    for d in dims:
        n *= int(d)
    return n * jnp.dtype(dtype).itemsize


def basic_conv(x, params, *, kernel_size, stride=1, padding=0, dilation=1,
               groups=1, relu=True, bn=True, eps=1e-5,
               compute_dtype=jnp.bfloat16):
    """Fused BasicConv forward. x is NCHW, params['w'] is PyTorch (O, I/g, kh, kw)."""
    w = params["w"]
    N, Cin, H, W = x.shape
    Cout = int(w.shape[0])
    if isinstance(kernel_size, int):
        kh, kw = kernel_size, kernel_size
    else:
        kh, kw = kernel_size
    s, d, p = int(stride), int(dilation), int(padding)

    Ho = (H + 2 * p - d * (kh - 1) - 1) // s + 1
    Wo = (W + 2 * p - d * (kw - 1) - 1) // s + 1
    M = N * Ho * Wo
    K = kh * kw * Cin
    Coutp = _ceil_to(Cout, 128)            # lane-dense output

    # --- layout glue (one pass): NCHW -> NHWC, pad, stride-phase decompose ---
    xh = jnp.transpose(x, (0, 2, 3, 1))
    Hp, Wp = H + 2 * p, W + 2 * p
    Hp_r, Wp_r = _ceil_to(Hp, s), _ceil_to(Wp, s)
    xh = jnp.pad(xh, ((0, 0), (p, p + Hp_r - Hp), (p, p + Wp_r - Wp), (0, 0)))
    if s == 1:
        xph = xh[None]
    else:
        xph = jnp.stack([xh[:, ph::s, pw::s, :]
                         for ph in range(s) for pw in range(s)], axis=0)
    xph = xph.astype(compute_dtype)
    Hps, Wps = Hp_r // s, Wp_r // s

    # --- weights: one (kh*kw*Cin, Coutp) matrix; groups -> block-diagonal ---
    cin_g, cout_g = Cin // groups, Cout // groups
    if groups == 1:
        wmat = jnp.transpose(w, (2, 3, 1, 0)).reshape(K, Cout)
    else:
        wtap = jnp.zeros((kh * kw, Cin, Cout), jnp.float32)
        for g in range(groups):
            wg = jnp.transpose(w[g * cout_g:(g + 1) * cout_g],
                               (2, 3, 1, 0)).reshape(kh * kw, cin_g, cout_g)
            wtap = wtap.at[:, g * cin_g:(g + 1) * cin_g,
                           g * cout_g:(g + 1) * cout_g].set(wg)
        wmat = wtap.reshape(K, Cout)
    wmat = jnp.pad(wmat, ((0, 0), (0, Coutp - Cout))).astype(compute_dtype)

    # Conv bias immediately before training-mode (batch-stat) BN is cancelled
    # by the batch-mean subtraction -> drop it (dead compute).
    use_bias = (params.get("b") is not None) and (not bn)

    if bn:
        gamma = jnp.pad(params["gamma"].astype(jnp.float32),
                        (0, Coutp - Cout), constant_values=1.0).reshape(1, Coutp)
        beta = jnp.pad(params["beta"].astype(jnp.float32),
                       (0, Coutp - Cout)).reshape(1, Coutp)
        vecs = [gamma, beta]
    else:
        b = (params["b"].astype(jnp.float32) if use_bias
             else jnp.zeros((Cout,), jnp.float32))
        vecs = [jnp.pad(b, (0, Coutp - Cout)).reshape(1, Coutp)]

    # Grid choice: BN needs global batch statistics -> one fused block.
    # No-BN has no cross-image coupling -> tile over the batch ("parallel").
    tile_batch = (not bn) and (N > 1) and ((Ho * Wo) % 8 == 0)
    if tile_batch:
        grid = (N,)
        Nb = 1
        x_spec = pl.BlockSpec((s * s, 1, Hps, Wps, Cin),
                              lambda n: (0, n, 0, 0, 0))
        out_spec = pl.BlockSpec((Ho * Wo, Coutp), lambda n: (n, 0))
        dims = ("parallel",)
    else:
        grid = (1,)
        Nb = N
        x_spec = pl.BlockSpec(xph.shape, lambda i: (0, 0, 0, 0, 0))
        out_spec = pl.BlockSpec((M, Coutp), lambda i: (0, 0))
        dims = ("arbitrary",)
    Mb = Nb * Ho * Wo

    in_specs = [x_spec, pl.BlockSpec(wmat.shape, lambda i: (0, 0))]
    in_specs += [pl.BlockSpec((1, Coutp), lambda i: (0, 0)) for _ in vecs]

    scratch = [pltpu.VMEM((Mb, K), compute_dtype)]
    if bn:
        scratch.append(pltpu.VMEM((Mb, Coutp), jnp.float32))

    # Explicit VMEM budget (double-buffered I/O + scratches + headroom).
    est = 2 * (_vmem_bytes((s * s, Nb, Hps, Wps, Cin), compute_dtype)
               + _vmem_bytes((K, Coutp), compute_dtype)
               + len(vecs) * _vmem_bytes((1, Coutp), jnp.float32)
               + _vmem_bytes((Mb, Coutp), jnp.float32))
    est += _vmem_bytes((Mb, K), compute_dtype)
    if bn:
        est += _vmem_bytes((Mb, Coutp), jnp.float32)
    vmem_limit = int(min(max(est + (4 << 20), 16 << 20), 64 << 20))

    kernel = functools.partial(
        _basic_conv_kernel, Nb=Nb, Ho=Ho, Wo=Wo, Cin=Cin, Coutp=Coutp,
        kh=kh, kw=kw, stride=s, dilation=d, eps=eps, use_bn=bn, use_relu=relu)

    out = pl.pallas_call(
        kernel,
        out_shape=jax.ShapeDtypeStruct((M, Coutp), jnp.float32),
        grid=grid,
        in_specs=in_specs,
        out_specs=out_spec,
        scratch_shapes=scratch,
        compiler_params=pltpu.CompilerParams(
            dimension_semantics=dims,
            vmem_limit_bytes=vmem_limit),
    )(xph, wmat, *vecs)

    # Drop lane padding; (N*Ho*Wo, Cout) row-major NHWC -> NCHW at the boundary.
    out = out[:, :Cout]
    return jnp.transpose(out.reshape(N, Ho, Wo, Cout), (0, 3, 1, 2))


# ------------------------------ params & reference -------------------------- #

def init_basic_conv_params(key, in_planes, out_planes, kernel_size, *,
                           groups=1, bias=False, bn=True):
    if isinstance(kernel_size, int):
        kh, kw = kernel_size, kernel_size
    else:
        kh, kw = kernel_size
    fan_in = (in_planes // groups) * kh * kw
    bound = 1.0 / float(fan_in) ** 0.5
    k_w, k_b, k_g, k_bt = jax.random.split(key, 4)
    params = {
        "w": jax.random.uniform(k_w, (out_planes, in_planes // groups, kh, kw),
                                jnp.float32, -bound, bound),
        "b": (jax.random.uniform(k_b, (out_planes,), jnp.float32, -bound, bound)
              if bias else None),
    }
    if bn:
        params["gamma"] = jax.random.uniform(k_g, (out_planes,), jnp.float32, 0.5, 1.5)
        params["beta"] = jax.random.uniform(k_bt, (out_planes,), jnp.float32, -0.5, 0.5)
    return params


def basic_conv_ref(x, params, *, kernel_size, stride=1, padding=0, dilation=1,
                   groups=1, relu=True, bn=True, eps=1e-5):
    del kernel_size
    y = jax.lax.conv_general_dilated(
        x, params["w"], window_strides=(stride, stride),
        padding=[(padding, padding), (padding, padding)],
        rhs_dilation=(dilation, dilation),
        dimension_numbers=("NCHW", "OIHW", "NCHW"),
        feature_group_count=groups)
    if params.get("b") is not None:
        y = y + params["b"][None, :, None, None]
    if bn:
        mean = jnp.mean(y, axis=(0, 2, 3), keepdims=True)
        var = jnp.mean((y - mean) ** 2, axis=(0, 2, 3), keepdims=True)
        y = (y - mean) * jax.lax.rsqrt(var + eps)
        y = y * params["gamma"][None, :, None, None] + params["beta"][None, :, None, None]
    if relu:
        y = jnp.maximum(y, 0.0)
    return y


# --------------------------------- entry point ------------------------------ #

if __name__ == "__main__":
    key = jax.random.PRNGKey(0)
    k_x1, k_x2, k_p1, k_p2 = jax.random.split(key, 4)

    # Config A: BasicConv(4, 128, kernel_size=3, padding=1), module defaults
    # (bn=True, relu=True, bias=False). bf16 MXU operands, f32 stats/epilogue.
    x1 = jax.random.normal(k_x1, (2, 4, 16, 16), jnp.float32)
    p1 = init_basic_conv_params(k_p1, 4, 128, 3, groups=1, bias=False, bn=True)
    conv1 = jax.jit(functools.partial(basic_conv, kernel_size=3, stride=1,
                                      padding=1, groups=1, relu=True, bn=True))
    y1 = jax.block_until_ready(conv1(x1, p1))
    r1 = basic_conv_ref(x1, p1, kernel_size=3, stride=1, padding=1,
                        groups=1, relu=True, bn=True)
    assert y1.shape == (2, 128, 16, 16), y1.shape
    assert bool(jnp.all(jnp.isfinite(y1)))
    assert bool(jnp.allclose(y1, r1, atol=5e-2, rtol=5e-2)), \
        float(jnp.max(jnp.abs(y1 - r1)))

    # Config B: grouped conv (block-diagonal dense lowering) + bias, no BN
    # (bias observable), ReLU. Cout=64 is lane-padded to 128 inside the kernel;
    # batch-tiled "parallel" grid.
    x2 = jax.random.normal(k_x2, (2, 8, 16, 16), jnp.float32)
    p2 = init_basic_conv_params(k_p2, 8, 64, 3, groups=4, bias=True, bn=False)
    conv2 = jax.jit(functools.partial(basic_conv, kernel_size=3, stride=1,
                                      padding=1, groups=4, relu=True, bn=False))
    y2 = jax.block_until_ready(conv2(x2, p2))
    r2 = basic_conv_ref(x2, p2, kernel_size=3, stride=1, padding=1,
                        groups=4, relu=True, bn=False)
    assert y2.shape == (2, 64, 16, 16), y2.shape
    assert bool(jnp.all(jnp.isfinite(y2)))
    assert bool(jnp.allclose(y2, r2, atol=5e-2, rtol=5e-2)), \
        float(jnp.max(jnp.abs(y2 - r2)))

    print("KERNEL_OK")
</pallas_src>

<mosaic_0001>
module attributes {stable_mosaic.version = 11 : i64} {
  func.func @_basic_conv_kernel(%arg0: i32, %arg1: memref<1x2x18x18x4xbf16, #tpu.memory_space<vmem>>, %arg2: memref<36x128xbf16, #tpu.memory_space<vmem>>, %arg3: memref<1x128xf32, #tpu.memory_space<vmem>>, %arg4: memref<1x128xf32, #tpu.memory_space<vmem>>, %arg5: memref<512x128xf32, #tpu.memory_space<vmem>>, %arg6: memref<512x36xbf16, #tpu.memory_space<vmem>>, %arg7: memref<512x128xf32, #tpu.memory_space<vmem>>) attributes {dimension_semantics = [#tpu.dimension_semantics<arbitrary>], iteration_bounds = array<i64: 1>, scalar_prefetch = 0 : i64, scratch_operands = 2 : i64, tpu.core_type = #tpu.core_type<tc>, window_params = [{pipeline_mode = #tpu.pipeline_mode<synchronous>, transform_indices = @transform_0, window_bounds = array<i64: 1, 2, 18, 18, 4>}, {pipeline_mode = #tpu.pipeline_mode<synchronous>, transform_indices = @transform_1, window_bounds = array<i64: 36, 128>}, {pipeline_mode = #tpu.pipeline_mode<synchronous>, transform_indices = @transform_2, window_bounds = array<i64: 1, 128>}, {pipeline_mode = #tpu.pipeline_mode<synchronous>, transform_indices = @transform_3, window_bounds = array<i64: 1, 128>}, {pipeline_mode = #tpu.pipeline_mode<synchronous>, transform_indices = @transform_4, window_bounds = array<i64: 512, 128>}]} {
    %c0 = arith.constant 0 : index
    %c0_0 = arith.constant 0 : index
    %c0_1 = arith.constant 0 : index
    %c0_2 = arith.constant 0 : index
    %c0_3 = arith.constant 0 : index
    %0 = vector.load %arg1[%c0, %c0_0, %c0_1, %c0_2, %c0_3] : memref<1x2x18x18x4xbf16, #tpu.memory_space<vmem>>, vector<1x2x16x16x4xbf16>
    %1 = vector.shape_cast %0 : vector<1x2x16x16x4xbf16> to vector<2x16x16x4xbf16>
    %2 = vector.shape_cast %1 : vector<2x16x16x4xbf16> to vector<512x4xbf16>
    %c0_4 = arith.constant 0 : index
    %c0_5 = arith.constant 0 : index
    %3 = vector.load %arg6[%c0_4, %c0_5] : memref<512x36xbf16, #tpu.memory_space<vmem>>, vector<512x4xbf16>
    tpu.vector_store %arg6[%c0_4, %c0_5], %2 {strides = array<i32>} : memref<512x36xbf16, #tpu.memory_space<vmem>>, vector<512x4xbf16>,
    %c0_6 = arith.constant 0 : index
    %c0_7 = arith.constant 0 : index
    %c0_8 = arith.constant 0 : index
    %c1 = arith.constant 1 : index
    %c0_9 = arith.constant 0 : index
    %4 = vector.load %arg1[%c0_6, %c0_7, %c0_8, %c1, %c0_9] : memref<1x2x18x18x4xbf16, #tpu.memory_space<vmem>>, vector<1x2x16x16x4xbf16>
    %5 = vector.shape_cast %4 : vector<1x2x16x16x4xbf16> to vector<2x16x16x4xbf16>
    %6 = vector.shape_cast %5 : vector<2x16x16x4xbf16> to vector<512x4xbf16>
    %c0_10 = arith.constant 0 : index
    %c4 = arith.constant 4 : index
    %7 = vector.load %arg6[%c0_10, %c4] : memref<512x36xbf16, #tpu.memory_space<vmem>>, vector<512x4xbf16>
    tpu.vector_store %arg6[%c0_10, %c4], %6 {strides = array<i32>} : memref<512x36xbf16, #tpu.memory_space<vmem>>, vector<512x4xbf16>,
    %c0_11 = arith.constant 0 : index
    %c0_12 = arith.constant 0 : index
    %c0_13 = arith.constant 0 : index
    %c2 = arith.constant 2 : index
    %c0_14 = arith.constant 0 : index
    %8 = vector.load %arg1[%c0_11, %c0_12, %c0_13, %c2, %c0_14] : memref<1x2x18x18x4xbf16, #tpu.memory_space<vmem>>, vector<1x2x16x16x4xbf16>
    %9 = vector.shape_cast %8 : vector<1x2x16x16x4xbf16> to vector<2x16x16x4xbf16>
    %10 = vector.shape_cast %9 : vector<2x16x16x4xbf16> to vector<512x4xbf16>
    %c0_15 = arith.constant 0 : index
    %c8 = arith.constant 8 : index
    %11 = vector.load %arg6[%c0_15, %c8] : memref<512x36xbf16, #tpu.memory_space<vmem>>, vector<512x4xbf16>
    tpu.vector_store %arg6[%c0_15, %c8], %10 {strides = array<i32>} : memref<512x36xbf16, #tpu.memory_space<vmem>>, vector<512x4xbf16>,
    %c0_16 = arith.constant 0 : index
    %c0_17 = arith.constant 0 : index
    %c1_18 = arith.constant 1 : index
    %c0_19 = arith.constant 0 : index
    %c0_20 = arith.constant 0 : index
    %12 = vector.load %arg1[%c0_16, %c0_17, %c1_18, %c0_19, %c0_20] : memref<1x2x18x18x4xbf16, #tpu.memory_space<vmem>>, vector<1x2x16x16x4xbf16>
    %13 = vector.shape_cast %12 : vector<1x2x16x16x4xbf16> to vector<2x16x16x4xbf16>
    %14 = vector.shape_cast %13 : vector<2x16x16x4xbf16> to vector<512x4xbf16>
    %c0_21 = arith.constant 0 : index
    %c12 = arith.constant 12 : index
    %15 = vector.load %arg6[%c0_21, %c12] : memref<512x36xbf16, #tpu.memory_space<vmem>>, vector<512x4xbf16>
    tpu.vector_store %arg6[%c0_21, %c12], %14 {strides = array<i32>} : memref<512x36xbf16, #tpu.memory_space<vmem>>, vector<512x4xbf16>,
    %c0_22 = arith.constant 0 : index
    %c0_23 = arith.constant 0 : index
    %c1_24 = arith.constant 1 : index
    %c1_25 = arith.constant 1 : index
    %c0_26 = arith.constant 0 : index
    %16 = vector.load %arg1[%c0_22, %c0_23, %c1_24, %c1_25, %c0_26] : memref<1x2x18x18x4xbf16, #tpu.memory_space<vmem>>, vector<1x2x16x16x4xbf16>
    %17 = vector.shape_cast %16 : vector<1x2x16x16x4xbf16> to vector<2x16x16x4xbf16>
    %18 = vector.shape_cast %17 : vector<2x16x16x4xbf16> to vector<512x4xbf16>
    %c0_27 = arith.constant 0 : index
    %c16 = arith.constant 16 : index
    %19 = vector.load %arg6[%c0_27, %c16] : memref<512x36xbf16, #tpu.memory_space<vmem>>, vector<512x4xbf16>
    tpu.vector_store %arg6[%c0_27, %c16], %18 {strides = array<i32>} : memref<512x36xbf16, #tpu.memory_space<vmem>>, vector<512x4xbf16>,
    %c0_28 = arith.constant 0 : index
    %c0_29 = arith.constant 0 : index
    %c1_30 = arith.constant 1 : index
    %c2_31 = arith.constant 2 : index
    %c0_32 = arith.constant 0 : index
    %20 = vector.load %arg1[%c0_28, %c0_29, %c1_30, %c2_31, %c0_32] : memref<1x2x18x18x4xbf16, #tpu.memory_space<vmem>>, vector<1x2x16x16x4xbf16>
    %21 = vector.shape_cast %20 : vector<1x2x16x16x4xbf16> to vector<2x16x16x4xbf16>
    %22 = vector.shape_cast %21 : vector<2x16x16x4xbf16> to vector<512x4xbf16>
    %c0_33 = arith.constant 0 : index
    %c20 = arith.constant 20 : index
    %23 = vector.load %arg6[%c0_33, %c20] : memref<512x36xbf16, #tpu.memory_space<vmem>>, vector<512x4xbf16>
    tpu.vector_store %arg6[%c0_33, %c20], %22 {strides = array<i32>} : memref<512x36xbf16, #tpu.memory_space<vmem>>, vector<512x4xbf16>,
    %c0_34 = arith.constant 0 : index
    %c0_35 = arith.constant 0 : index
    %c2_36 = arith.constant 2 : index
    %c0_37 = arith.constant 0 : index
    %c0_38 = arith.constant 0 : index
    %24 = vector.load %arg1[%c0_34, %c0_35, %c2_36, %c0_37, %c0_38] : memref<1x2x18x18x4xbf16, #tpu.memory_space<vmem>>, vector<1x2x16x16x4xbf16>
    %25 = vector.shape_cast %24 : vector<1x2x16x16x4xbf16> to vector<2x16x16x4xbf16>
    %26 = vector.shape_cast %25 : vector<2x16x16x4xbf16> to vector<512x4xbf16>
    %c0_39 = arith.constant 0 : index
    %c24 = arith.constant 24 : index
    %27 = vector.load %arg6[%c0_39, %c24] : memref<512x36xbf16, #tpu.memory_space<vmem>>, vector<512x4xbf16>
    tpu.vector_store %arg6[%c0_39, %c24], %26 {strides = array<i32>} : memref<512x36xbf16, #tpu.memory_space<vmem>>, vector<512x4xbf16>,
    %c0_40 = arith.constant 0 : index
    %c0_41 = arith.constant 0 : index
    %c2_42 = arith.constant 2 : index
    %c1_43 = arith.constant 1 : index
    %c0_44 = arith.constant 0 : index
    %28 = vector.load %arg1[%c0_40, %c0_41, %c2_42, %c1_43, %c0_44] : memref<1x2x18x18x4xbf16, #tpu.memory_space<vmem>>, vector<1x2x16x16x4xbf16>
    %29 = vector.shape_cast %28 : vector<1x2x16x16x4xbf16> to vector<2x16x16x4xbf16>
    %30 = vector.shape_cast %29 : vector<2x16x16x4xbf16> to vector<512x4xbf16>
    %c0_45 = arith.constant 0 : index
    %c28 = arith.constant 28 : index
    %31 = vector.load %arg6[%c0_45, %c28] : memref<512x36xbf16, #tpu.memory_space<vmem>>, vector<512x4xbf16>
    tpu.vector_store %arg6[%c0_45, %c28], %30 {strides = array<i32>} : memref<512x36xbf16, #tpu.memory_space<vmem>>, vector<512x4xbf16>,
    %c0_46 = arith.constant 0 : index
    %c0_47 = arith.constant 0 : index
    %c2_48 = arith.constant 2 : index
    %c2_49 = arith.constant 2 : index
    %c0_50 = arith.constant 0 : index
    %32 = vector.load %arg1[%c0_46, %c0_47, %c2_48, %c2_49, %c0_50] : memref<1x2x18x18x4xbf16, #tpu.memory_space<vmem>>, vector<1x2x16x16x4xbf16>
    %33 = vector.shape_cast %32 : vector<1x2x16x16x4xbf16> to vector<2x16x16x4xbf16>
    %34 = vector.shape_cast %33 : vector<2x16x16x4xbf16> to vector<512x4xbf16>
    %c0_51 = arith.constant 0 : index
    %c32 = arith.constant 32 : index
    %35 = vector.load %arg6[%c0_51, %c32] : memref<512x36xbf16, #tpu.memory_space<vmem>>, vector<512x4xbf16>
    tpu.vector_store %arg6[%c0_51, %c32], %34 {strides = array<i32>} : memref<512x36xbf16, #tpu.memory_space<vmem>>, vector<512x4xbf16>,
    %c0_52 = arith.constant 0 : index
    %c0_53 = arith.constant 0 : index
    %36 = vector.load %arg6[%c0_52, %c0_53] : memref<512x36xbf16, #tpu.memory_space<vmem>>, vector<512x36xbf16>
    %c0_54 = arith.constant 0 : index
    %c0_55 = arith.constant 0 : index
    %37 = vector.load %arg2[%c0_54, %c0_55] : memref<36x128xbf16, #tpu.memory_space<vmem>>, vector<36x128xbf16>
    %cst = arith.constant dense<0.000000e+00> : vector<512x128xf32>
    %38 = tpu.matmul %36, %37, %cst {dimension_numbers = #tpu.dot_dimension_numbers<[1], [0], [0], [1], [0, 0, 1, 1], [], []>} : vector<512x36xbf16>, vector<36x128xbf16>, vector<512x128xf32> -> vector<512x128xf32>
    %c0_56 = arith.constant 0 : index
    %c0_57 = arith.constant 0 : index
    %39 = vector.load %arg7[%c0_56, %c0_57] : memref<512x128xf32, #tpu.memory_space<vmem>>, vector<512x128xf32>
    tpu.vector_store %arg7[%c0_56, %c0_57], %38 {strides = array<i32>} : memref<512x128xf32, #tpu.memory_space<vmem>>, vector<512x128xf32>,
    %c0_58 = arith.constant 0 : index
    %c0_59 = arith.constant 0 : index
    %40 = vector.load %arg7[%c0_58, %c0_59] : memref<512x128xf32, #tpu.memory_space<vmem>>, vector<512x128xf32>
    %cst_60 = arith.constant dense<0.000000e+00> : vector<128xf32>
    %41 = vector.multi_reduction <add>, %40, %cst_60 [0] : vector<512x128xf32> to vector<128xf32>
    %42 = vector.shape_cast %41 : vector<128xf32> to vector<1x128xf32>
    %43 = arith.mulf %40, %40 : vector<512x128xf32>
    %cst_61 = arith.constant dense<0.000000e+00> : vector<128xf32>
    %44 = vector.multi_reduction <add>, %43, %cst_61 [0] : vector<512x128xf32> to vector<128xf32>
    %45 = vector.shape_cast %44 : vector<128xf32> to vector<1x128xf32>
    %cst_62 = arith.constant 0.001953125 : f32
    %46 = vector.broadcast %cst_62 : f32 to vector<1x128xf32>
    %47 = arith.mulf %42, %46 : vector<1x128xf32>
    %cst_63 = arith.constant 0.001953125 : f32
    %48 = vector.broadcast %cst_63 : f32 to vector<1x128xf32>
    %49 = arith.mulf %45, %48 : vector<1x128xf32>
    %50 = arith.mulf %47, %47 : vector<1x128xf32>
    %51 = arith.subf %49, %50 : vector<1x128xf32>
    %cst_64 = arith.constant 0.000000e+00 : f32
    %52 = vector.broadcast %cst_64 : f32 to vector<1x128xf32>
    %53 = arith.maximumf %51, %52 : vector<1x128xf32>
    %c0_65 = arith.constant 0 : index
    %c0_66 = arith.constant 0 : index
    %54 = vector.load %arg3[%c0_65, %c0_66] : memref<1x128xf32, #tpu.memory_space<vmem>>, vector<1x128xf32>
    %cst_67 = arith.constant 9.99999974E-6 : f32
    %55 = vector.broadcast %cst_67 : f32 to vector<1x128xf32>
    %56 = arith.addf %53, %55 : vector<1x128xf32>
    %57 = math.rsqrt %56 : vector<1x128xf32>
    %58 = arith.mulf %54, %57 : vector<1x128xf32>
    %c0_68 = arith.constant 0 : index
    %c0_69 = arith.constant 0 : index
    %59 = vector.load %arg4[%c0_68, %c0_69] : memref<1x128xf32, #tpu.memory_space<vmem>>, vector<1x128xf32>
    %60 = arith.mulf %47, %58 : vector<1x128xf32>
    %61 = arith.subf %59, %60 : vector<1x128xf32>
    %c0_70 = arith.constant 0 : index
    %c0_71 = arith.constant 0 : index
    %62 = vector.load %arg7[%c0_70, %c0_71] : memref<512x128xf32, #tpu.memory_space<vmem>>, vector<512x128xf32>
    %63 = vector.broadcast %58 : vector<1x128xf32> to vector<512x128xf32>
    %64 = arith.mulf %62, %63 : vector<512x128xf32>
    %65 = vector.broadcast %61 : vector<1x128xf32> to vector<512x128xf32>
    %66 = arith.addf %64, %65 : vector<512x128xf32>
    %cst_72 = arith.constant 0.000000e+00 : f32
    %67 = vector.broadcast %cst_72 : f32 to vector<512x128xf32>
    %68 = arith.maximumf %66, %67 : vector<512x128xf32>
    %c0_73 = arith.constant 0 : index
    %c0_74 = arith.constant 0 : index
    %69 = vector.load %arg5[%c0_73, %c0_74] : memref<512x128xf32, #tpu.memory_space<vmem>>, vector<512x128xf32>
    tpu.vector_store %arg5[%c0_73, %c0_74], %68 {strides = array<i32>} : memref<512x128xf32, #tpu.memory_space<vmem>>, vector<512x128xf32>,
    return
  }
  func.func @transform_0(%arg0: i32) -> (i32, i32, i32, i32, i32) {
    %c0_i32 = arith.constant 0 : i32
    %c0_i32_0 = arith.constant 0 : i32
    %c0_i32_1 = arith.constant 0 : i32
    %c0_i32_2 = arith.constant 0 : i32
    %c0_i32_3 = arith.constant 0 : i32
    %c0_i32_4 = arith.constant 0 : i32
    return %c0_i32, %c0_i32_0, %c0_i32_1, %c0_i32_2, %c0_i32_3 : i32, i32, i32, i32, i32
  }
  func.func @transform_1(%arg0: i32) -> (i32, i32) {
    %c0_i32 = arith.constant 0 : i32
    %c0_i32_0 = arith.constant 0 : i32
    %c0_i32_1 = arith.constant 0 : i32
    return %c0_i32, %c0_i32_0 : i32, i32
  }
  func.func @transform_2(%arg0: i32) -> (i32, i32) {
    %c0_i32 = arith.constant 0 : i32
    %c0_i32_0 = arith.constant 0 : i32
    %c0_i32_1 = arith.constant 0 : i32
    return %c0_i32, %c0_i32_0 : i32, i32
  }
  func.func @transform_3(%arg0: i32) -> (i32, i32) {
    %c0_i32 = arith.constant 0 : i32
    %c0_i32_0 = arith.constant 0 : i32
    %c0_i32_1 = arith.constant 0 : i32
    return %c0_i32, %c0_i32_0 : i32, i32
  }
  func.func @transform_4(%arg0: i32) -> (i32, i32) {
    %c0_i32 = arith.constant 0 : i32
    %c0_i32_0 = arith.constant 0 : i32
    %c0_i32_1 = arith.constant 0 : i32
    return %c0_i32, %c0_i32_0 : i32, i32
  }
}

</mosaic_0001>

<bundles_post_ra>
// kernel: basic_conv.1
= control target key start
LH: loop header
LB: loop body
LE: loop exit
PB: predicated region body
PF: predicated region fallthrough
CT: control target
= control target key end

     0   :  { %vm244_vm0 = vsmask.f32 3328  ;;  %vm245_vm1 = vsmask.f32 7440  ;;  %s8425_s11 = smov 4   ;;  %vm1207_vm3 = vcmask 60448   ;;  %s14048_s0 = inlined_call_operand.vmem [shape: bf16[1,2,18,18,4], index: 0, kind: input, shape index: {}]   ;;  %s14049_s1 = inlined_call_operand.vmem [shape: bf16[36,128], index: 1, kind: input, shape index: {}]   ;;  %s14050_s2 = inlined_call_operand.vmem [shape: f32[1,128], index: 2, kind: input, shape index: {}]   ;;  %s14051_s3 = inlined_call_operand.vmem [shape: f32[1,128], index: 3, kind: input, shape index: {}]   ;;  %s14052_s4 = inlined_call_operand.hbm [shape: f32[512,128], index: 4, kind: output, shape index: {}]  }
   0x1   :  { %v151_v0 = vld [vmem:[%s14048_s0 + $0xc] sm:$0xf]  ;;  %v152_v1 = vld [vmem:[%s14048_s0 + $0x10] sm:$0xf]  ;;  %v148_v6 = vld [vmem:[%s14048_s0] sm:$0xf] }
   0x2   :  { %v272_v2 = vshrl.u32 %v151_v0, 16  ;;  %v275_v3 = vshll.u32 %v151_v0, 16  ;;  %v281_v4 = vshll.u32 %v152_v1, 16  ;;  %v285_v5 = vshrl.u32 %v152_v1, 16  ;;  %v149_v7 = vld [vmem:[%s14048_s0 + $0x4] sm:$0xf]  ;;  %vm8483_vm2 = vmor %vm244_vm0, %vm245_vm1 }
   0x3   :  { %v248_v11 = vshrl.u32 %v148_v6, 16  ;;  %v153_v12 = vld [vmem:[%s14048_s0 + $0x14] sm:$0x1]  ;;  %v251_v14 = vshll.u32 %v148_v6, 16  ;;  %v257_v15 = vshll.u32 %v149_v7, 16  ;;  %v261_v16 = vshrl.u32 %v149_v7, 16 }
   0x4   :  { %v274_v8 = vrot.slane %v272_v2, 4  ;;  %v277_v9 = vrot.slane %v275_v3, 5  ;;  %v283_v10 = vrot.slane %v281_v4, 5  ;;  %v287_v13 = vrot.slane %v285_v5, 4  ;;  %v150_v17 = vld [vmem:[%s14048_s0 + $0x8] sm:$0x1] }
   0x5   :  { %v250_v19 = vrot.slane %v248_v11, 4  ;;  %v291_v20 = vshll.u32 %v153_v12, 16  ;;  %v267_v21 = vshll.u32 %v150_v17, 16  ;;  %v155_v22 = vld [vmem:[%s14048_s0 + $0x1c] sm:$0xf]  ;;  %v253_v24 = vrot.slane %v251_v14, 5 }
   0x6   :  { %v278_v18 = vor.u32 %v277_v9, %v274_v8  ;;  %v259_v25 = vrot.slane %v257_v15, 5  ;;  %v263_v26 = vrot.slane %v261_v16, 4  ;;  %v288_v27 = vor.u32 %v287_v13, %v283_v10  ;;  %v156_v28 = vld [vmem:[%s14048_s0 + $0x20] sm:$0x1]  ;;  %v154_v33 = vld [vmem:[%s14048_s0 + $0x18] sm:$0xf] }
   0x7   :  { %v293_v30 = vrot.slane %v291_v20, 5  ;;  %v269_v31 = vrot.slane %v267_v21, 5  ;;  %v305_v32 = vshll.u32 %v155_v22, 16  ;;  %v254_v34 = vor.u32 %v253_v24, %v250_v19  ;;  %v158_v38 = vld [vmem:[%s14048_s0 + $0x28] sm:$0xf]  ;;  %s8426_s26 = smov 8  }
   0x8   :  { %v279_v29 = vrot.slane %v278_v18, 4  ;;  %v289_v35 = vrot.slane %v288_v27, 4  ;;  %v264_v36 = vor.u32 %v263_v26, %v259_v25  ;;  %v309_v37 = vshrl.u32 %v155_v22, 16  ;;  %v159_v43 = vld [vmem:[%s14048_s0 + $0x2c] sm:$0x1] }
   0x9   :  { %v307_v40 = vrot.slane %v305_v32, 5  ;;  %v315_v41 = vshll.u32 %v156_v28, 16  ;;  %v296_v42 = vshrl.u32 %v154_v33, 16  ;;  %v255_v44 = vrot.slane %v254_v34, 4  ;;  %v157_v48 = vld [vmem:[%s14048_s0 + $0x24] sm:$0xf] }
   0xa   :  { %v284_v39 = vsel %vm8483_vm2, %v279_v29, %v283_v10  ;;  %v294_v45 = vsel %vm8483_vm2, %v289_v35, %v293_v30  ;;  %v265_v46 = vrot.slane %v264_v36, 4  ;;  %v311_v47 = vrot.slane %v309_v37, 4  ;;  %v161_v53 = vld [vmem:[%s14048_s0 + $0x34] sm:$0xf]  ;;  %v162_v62 = vld [vmem:[%s14048_s0 + $0x38] sm:$0x1] }
   0xb   :  { %1019 = vrot.lane.b32.xlu1 %v284_v39, %s8425_s11  ;;  %v317_v49 = vrot.slane %v315_v41, 5  ;;  %v298_v50 = vrot.slane %v296_v42, 4  ;;  %v299_v51 = vshll.u32 %v154_v33, 16  ;;  %v329_v52 = vshll.u32 %v158_v38, 16  ;;  %v160_v3 = vld [vmem:[%s14048_s0 + $0x30] sm:$0xf] }
   0xc   :  { %v260_v54 = vsel %vm8483_vm2, %v255_v44, %v259_v25  ;;  %v270_v55 = vsel %vm8483_vm2, %v265_v46, %v269_v31  ;;  %v312_v56 = vor.u32 %v311_v47, %v307_v40  ;;  %v333_v57 = vshrl.u32 %v158_v38, 16  ;;  %v164_v8 = vld [vmem:[%s14048_s0 + $0x40] sm:$0xf]  ;;  %v165_v17 = vld [vmem:[%s14048_s0 + $0x44] sm:$0x1] }
   0xd   :  { %1015 = vrot.lane.b32.xlu0 %v260_v54, %s8425_s11  ;;  %v301_v58 = vrot.slane %v299_v51, 5  ;;  %v331_v59 = vrot.slane %v329_v52, 5  ;;  %v339_v60 = vshll.u32 %v159_v43, 16  ;;  %v320_v61 = vshrl.u32 %v157_v48, 16  ;;  %v163_v22 = vld [vmem:[%s14048_s0 + $0x3c] sm:$0xf] }
   0xe   :  { %v313_v63 = vrot.slane %v312_v56, 4  ;;  %v335_v0 = vrot.slane %v333_v57, 4  ;;  %v323_v1 = vshll.u32 %v157_v48, 16  ;;  %v353_v2 = vshll.u32 %v161_v53, 16  ;;  %v167_v28 = vld [vmem:[%s14048_s0 + $0x4c] sm:$0xf] }
   0xf   :  { %1021 = vrot.lane.b32.xlu1 %v294_v45, %s8425_s11  ;;  %v302_v4 = vor.u32 %v301_v58, %v298_v50  ;;  %v341_v5 = vrot.slane %v339_v60, 5  ;;  %v322_v6 = vrot.slane %v320_v61, 4  ;;  %v357_v7 = vshrl.u32 %v161_v53, 16  ;;  %v166_v42 = vld [vmem:[%s14048_s0 + $0x48] sm:$0xf] }
  0x10   :  { %v318_v9 = vsel %vm8483_vm2, %v313_v63, %v317_v49  ;;  %v336_v10 = vor.u32 %v335_v0, %v331_v59  ;;  %v325_v11 = vrot.slane %v323_v1, 5  ;;  %v8527_v12 = vrot.slane %v353_v2, 5  ;;  %v170_v47 = vld [vmem:[%s14048_s0 + $0x58] sm:$0xf]  ;;  %v169_v61 = vld [vmem:[%s14048_s0 + $0x54] sm:$0xf] }
  0x11   :  { %1017 = vrot.lane.b32.xlu0 %v270_v55, %s8425_s11  ;;  %v303_v13 = vrot.slane %v302_v4, 4  ;;  %v359_v14 = vrot.slane %v357_v7, 4  ;;  %v363_v15 = vshll.u32 %v162_v62, 16  ;;  %v344_v16 = vshrl.u32 %v160_v3, 16 }
  0x12   :  { %v337_v18 = vrot.slane %v336_v10, 4  ;;  %v326_v19 = vor.u32 %v325_v11, %v322_v6  ;;  %v347_v20 = vshll.u32 %v160_v3, 16  ;;  %v377_v21 = vshll.u32 %v164_v8, 16  ;;  %v173_v6 = vld [vmem:[%s14048_s0 + $0x64] sm:$0xf] }
  0x13   :  { %1025 = vrot.lane.b32.xlu1 %v318_v9, %s8425_s11  ;;  %v308_v24 = vsel %vm8483_vm2, %v303_v13, %v307_v40  ;;  %v360_v25 = vor.u32 %v359_v14, %v8527_v12  ;;  %v365_v26 = vrot.slane %v363_v15, 5  ;;  %v346_v27 = vrot.slane %v344_v16, 4  ;;  %v168_v40 = vld [vmem:[%s14048_s0 + $0x50] sm:$0x1]  ;;  %v174_v11 = vld [vmem:[%s14048_s0 + $0x68] sm:$0x1] }
  0x14   :  { %v342_v29 = vsel %vm8483_vm2, %v337_v18, %v341_v5  ;;  %v327_v30 = vrot.slane %v326_v19, 4  ;;  %v349_v31 = vrot.slane %v347_v20, 5  ;;  %v8545_v32 = vrot.slane %v377_v21, 5  ;;  %v172_v16 = vld [vmem:[%s14048_s0 + $0x60] sm:$0xf] }
  0x15   :  { %1023 = vrot.lane.b32.xlu0 %v308_v24, %s8425_s11  ;;  %v361_v33 = vrot.slane %v360_v25, 4  ;;  %v381_v34 = vshrl.u32 %v164_v8, 16  ;;  %v387_v35 = vshll.u32 %v165_v17, 16  ;;  %v368_v36 = vshrl.u32 %v163_v22, 16 }
  0x16   :  { %v332_v37 = vsel %vm8483_vm2, %v327_v30, %v331_v59  ;;  %v350_v38 = vor.u32 %v349_v31, %v346_v27  ;;  %v371_v39 = vshll.u32 %v163_v22, 16  ;;  %v401_v41 = vshll.u32 %v167_v28, 16  ;;  %v171_v59 = vld [vmem:[%s14048_s0 + $0x5c] sm:$0x1]  ;;  %v177_v31 = vld [vmem:[%s14048_s0 + $0x74] sm:$0x1] }
  0x17   :  { %1029 = vrot.lane.b32.xlu1 %v342_v29, %s8425_s11  ;;  %v366_v43 = vsel %vm8483_vm2, %v361_v33, %v365_v26  ;;  %v383_v44 = vrot.slane %v381_v34, 4  ;;  %v389_v45 = vrot.slane %v387_v35, 5  ;;  %v370_v46 = vrot.slane %v368_v36, 4  ;;  %v176_v26 = vld [vmem:[%s14048_s0 + $0x70] sm:$0xf] }
  0x18   :  { %v351_v48 = vrot.slane %v350_v38, 4  ;;  %v373_v49 = vrot.slane %v371_v39, 5  ;;  %v8562_v50 = vrot.slane %v401_v41, 5  ;;  %v405_v51 = vshrl.u32 %v167_v28, 16  ;;  %v175_v36 = vld [vmem:[%s14048_s0 + $0x6c] sm:$0xf] }
  0x19   :  { %1027 = vrot.lane.b32.xlu0 %v332_v37, %s8425_s11  ;;  %v384_v52 = vor.u32 %v383_v44, %v8545_v32  ;;  %v411_v53 = vshll.u32 %v168_v40, 16  ;;  %v392_v54 = vshrl.u32 %v166_v42, 16  ;;  %v395_v55 = vshll.u32 %v166_v42, 16 }
  0x1a   :  { %v356_v56 = vsel %vm8483_vm2, %v351_v48, %v8527_v12  ;;  %v374_v57 = vor.u32 %v373_v49, %v370_v46  ;;  %v407_v58 = vrot.slane %v405_v51, 4  ;;  %v425_v60 = vshll.u32 %v170_v47, 16 }
  0x1b   :  { %1033 = vrot.lane.b32.xlu1 %v366_v43, %s8425_s11  ;;  %v385_v62 = vrot.slane %v384_v52, 4  ;;  %v413_v63 = vrot.slane %v411_v53, 5  ;;  %v394_v0 = vrot.slane %v392_v54, 4  ;;  %v397_v1 = vrot.slane %v395_v55, 5  ;;  %v180_v54 = vld [vmem:[%s14048_s0 + $0x80] sm:$0x1] }
  0x1c   :  { %v375_v2 = vrot.slane %v374_v57, 4  ;;  %v408_v3 = vor.u32 %v407_v58, %v8562_v50  ;;  %v8577_v4 = vrot.slane %v425_v60, 5  ;;  %v429_v5 = vshrl.u32 %v170_v47, 16  ;;  %v178_v55 = vld [vmem:[%s14048_s0 + $0x78] sm:$0xf] }
  0x1d   :  { %1031 = vrot.lane.b32.xlu0 %v356_v56, %s8425_s11  ;;  %v390_v7 = vsel %vm8483_vm2, %v385_v62, %v389_v45  ;;  %v398_v8 = vor.u32 %v397_v1, %v394_v0  ;;  %v435_v9 = vshll.u32 %v171_v59, 16  ;;  %v416_v10 = vshrl.u32 %v169_v61, 16  ;;  %v179_v45 = vld [vmem:[%s14048_s0 + $0x7c] sm:$0xf]  ;;  %v182_v0 = vld [vmem:[%s14048_s0 + $0x88] sm:$0xf] }
  0x1e   :  { %v380_v12 = vsel %vm8483_vm2, %v375_v2, %v8545_v32  ;;  %v409_v13 = vrot.slane %v408_v3, 4  ;;  %v431_v14 = vrot.slane %v429_v5, 4  ;;  %v419_v15 = vshll.u32 %v169_v61, 16 }
  0x1f   :  { %1037 = vrot.lane.b32.xlu1 %v390_v7, %s8425_s11  ;;  %v399_v17 = vrot.slane %v398_v8, 4  ;;  %v437_v18 = vrot.slane %v435_v9, 5  ;;  %v418_v19 = vrot.slane %v416_v10, 4  ;;  %v449_v20 = vshll.u32 %v173_v6, 16  ;;  %v183_v9 = vld [vmem:[%s14048_s0 + $0x8c] sm:$0x1] }
  0x20   :  { %v414_v21 = vsel %vm8483_vm2, %v409_v13, %v413_v63  ;;  %v432_v22 = vor.u32 %v431_v14, %v8577_v4  ;;  %v421_v24 = vrot.slane %v419_v15, 5  ;;  %v453_v25 = vshrl.u32 %v173_v6, 16  ;;  %v181_v10 = vld [vmem:[%s14048_s0 + $0x84] sm:$0xf] }
  0x21   :  { %1035 = vrot.lane.b32.xlu0 %v380_v12, %s8425_s11  ;;  %v404_v27 = vsel %vm8483_vm2, %v399_v17, %v8562_v50  ;;  %v451_v28 = vrot.slane %v449_v20, 5  ;;  %v459_v29 = vshll.u32 %v174_v11, 16  ;;  %v440_v30 = vshrl.u32 %v172_v16, 16 }
  0x22   :  { %v433_v32 = vrot.slane %v432_v22, 4  ;;  %v422_v33 = vor.u32 %v421_v24, %v418_v19  ;;  %v455_v34 = vrot.slane %v453_v25, 4  ;;  %v443_v35 = vshll.u32 %v172_v16, 16  ;;  %v185_v19 = vld [vmem:[%s14048_s0 + $0x94] sm:$0xf] }
  0x23   :  { %1041 = vrot.lane.b32.xlu1 %v414_v21, %s8425_s11  ;;  %v461_v37 = vrot.slane %v459_v29, 5  ;;  %v442_v38 = vrot.slane %v440_v30, 4  ;;  %v473_v39 = vshll.u32 %v176_v26, 16  ;;  %v477_v40 = vshrl.u32 %v176_v26, 16  ;;  %v186_v29 = vld [vmem:[%s14048_s0 + $0x98] sm:$0x1] }
  0x24   :  { %v438_v41 = vsel %vm8483_vm2, %v433_v32, %v437_v18  ;;  %v423_v42 = vrot.slane %v422_v33, 4  ;;  %v456_v43 = vor.u32 %v455_v34, %v451_v28  ;;  %v445_v44 = vrot.slane %v443_v35, 5  ;;  %v184_v30 = vld [vmem:[%s14048_s0 + $0x90] sm:$0xf] }
  0x25   :  { %1039 = vrot.lane.b32.xlu0 %v404_v27, %s8425_s11  ;;  %v475_v46 = vrot.slane %v473_v39, 5  ;;  %v479_v47 = vrot.slane %v477_v40, 4  ;;  %v483_v48 = vshll.u32 %v177_v31, 16  ;;  %v464_v49 = vshrl.u32 %v175_v36, 16  ;;  %v188_v39 = vld [vmem:[%s14048_s0 + $0xa0] sm:$0xf] }
  0x26   :  { %v428_v50 = vsel %vm8483_vm2, %v423_v42, %v8577_v4  ;;  %v457_v51 = vrot.slane %v456_v43, 4  ;;  %v446_v52 = vor.u32 %v445_v44, %v442_v38  ;;  %v467_v53 = vshll.u32 %v175_v36, 16  ;;  %v189_v44 = vld [vmem:[%s14048_s0 + $0xa4] sm:$0x1] }
  0x27   :  { %1045 = vrot.lane.b32.xlu1 %v438_v41, %s8425_s11  ;;  %v480_v56 = vor.u32 %v479_v47, %v475_v46  ;;  %v485_v57 = vrot.slane %v483_v48, 5  ;;  %v466_v58 = vrot.slane %v464_v49, 4  ;;  %v497_v59 = vshll.u32 %v179_v45, 16  ;;  %v187_v49 = vld [vmem:[%s14048_s0 + $0x9c] sm:$0xf] }
  0x28   :  { %v462_v60 = vsel %vm8483_vm2, %v457_v51, %v461_v37  ;;  %v447_v61 = vrot.slane %v446_v52, 4  ;;  %v469_v62 = vrot.slane %v467_v53, 5  ;;  %v501_v63 = vshrl.u32 %v179_v45, 16 }
  0x29   :  { %1043 = vrot.lane.b32.xlu0 %v428_v50, %s8425_s11  ;;  %v481_v1 = vrot.slane %v480_v56, 4  ;;  %v499_v2 = vrot.slane %v497_v59, 5  ;;  %v507_v3 = vshll.u32 %v180_v54, 16  ;;  %v488_v4 = vshrl.u32 %v178_v55, 16 }
  0x2a   :  { %v452_v5 = vsel %vm8483_vm2, %v447_v61, %v451_v28  ;;  %v470_v6 = vor.u32 %v469_v62, %v466_v58  ;;  %v503_v7 = vrot.slane %v501_v63, 4  ;;  %v491_v8 = vshll.u32 %v178_v55, 16  ;;  %v191_v58 = vld [vmem:[%s14048_s0 + $0xac] sm:$0xf]  ;;  %v192_v63 = vld [vmem:[%s14048_s0 + $0xb0] sm:$0x1] }
  0x2b   :  { %1049 = vrot.lane.b32.xlu1 %v462_v60, %s8425_s11  ;;  %v486_v11 = vsel %vm8483_vm2, %v481_v1, %v485_v57  ;;  %v509_v12 = vrot.slane %v507_v3, 5  ;;  %v490_v13 = vrot.slane %v488_v4, 4  ;;  %v521_v14 = vshll.u32 %v182_v0, 16  ;;  %v190_v4 = vld [vmem:[%s14048_s0 + $0xa8] sm:$0xf] }
  0x2c   :  { %v471_v15 = vrot.slane %v470_v6, 4  ;;  %v504_v16 = vor.u32 %v503_v7, %v499_v2  ;;  %v493_v17 = vrot.slane %v491_v8, 5  ;;  %v525_v18 = vshrl.u32 %v182_v0, 16 }
  0x2d   :  { %1047 = vrot.lane.b32.xlu0 %v452_v5, %s8425_s11  ;;  %v523_v20 = vrot.slane %v521_v14, 5  ;;  %v531_v21 = vshll.u32 %v183_v9, 16  ;;  %v512_v22 = vshrl.u32 %v181_v10, 16  ;;  %v515_v24 = vshll.u32 %v181_v10, 16 }
  0x2e   :  { %v476_v25 = vsel %vm8483_vm2, %v471_v15, %v475_v46  ;;  %v505_v26 = vrot.slane %v504_v16, 4  ;;  %v494_v27 = vor.u32 %v493_v17, %v490_v13  ;;  %v527_v28 = vrot.slane %v525_v18, 4  ;;  %v194_v13 = vld [vmem:[%s14048_s0 + $0xb8] sm:$0xf] }
  0x2f   :  { %1053 = vrot.lane.b32.xlu1 %v486_v11, %s8425_s11  ;;  %v533_v31 = vrot.slane %v531_v21, 5  ;;  %v514_v32 = vrot.slane %v512_v22, 4  ;;  %v517_v33 = vrot.slane %v515_v24, 5  ;;  %v545_v34 = vshll.u32 %v185_v19, 16  ;;  %v195_v22 = vld [vmem:[%s14048_s0 + $0xbc] sm:$0x1] }
  0x30   :  { %v510_v35 = vsel %vm8483_vm2, %v505_v26, %v509_v12  ;;  %v495_v36 = vrot.slane %v494_v27, 4  ;;  %v528_v37 = vor.u32 %v527_v28, %v523_v20  ;;  %v549_v38 = vshrl.u32 %v185_v19, 16  ;;  %v193_v24 = vld [vmem:[%s14048_s0 + $0xb4] sm:$0xf] }
  0x31   :  { %1051 = vrot.lane.b32.xlu0 %v476_v25, %s8425_s11  ;;  %v518_v40 = vor.u32 %v517_v33, %v514_v32  ;;  %v547_v41 = vrot.slane %v545_v34, 5  ;;  %v555_v42 = vshll.u32 %v186_v29, 16  ;;  %v536_v43 = vshrl.u32 %v184_v30, 16  ;;  %v197_v33 = vld [vmem:[%s14048_s0 + $0xdc] sm:$0xf] }
  0x32   :  { %v500_v45 = vsel %vm8483_vm2, %v495_v36, %v499_v2  ;;  %v529_v46 = vrot.slane %v528_v37, 4  ;;  %v551_v47 = vrot.slane %v549_v38, 4  ;;  %v539_v48 = vshll.u32 %v184_v30, 16 }
  0x33   :  { %1057 = vrot.lane.b32.xlu1 %v510_v35, %s8425_s11  ;;  %v519_v50 = vrot.slane %v518_v40, 4  ;;  %v557_v51 = vrot.slane %v555_v42, 5  ;;  %v538_v52 = vrot.slane %v536_v43, 4  ;;  %v569_v53 = vshll.u32 %v188_v39, 16  ;;  %v198_v42 = vld [vmem:[%s14048_s0 + $0xe0] sm:$0x1] }
  0x34   :  { %v534_v54 = vsel %vm8483_vm2, %v529_v46, %v533_v31  ;;  %v552_v55 = vor.u32 %v551_v47, %v547_v41  ;;  %v541_v56 = vrot.slane %v539_v48, 5  ;;  %v573_v57 = vshrl.u32 %v188_v39, 16  ;;  %v196_v43 = vld [vmem:[%s14048_s0 + $0xd8] sm:$0xf] }
  0x35   :  { %1055 = vrot.lane.b32.xlu0 %v500_v45, %s8425_s11  ;;  %v524_v59 = vsel %vm8483_vm2, %v519_v50, %v523_v20  ;;  %v571_v60 = vrot.slane %v569_v53, 5  ;;  %v579_v61 = vshll.u32 %v189_v44, 16  ;;  %v560_v62 = vshrl.u32 %v187_v49, 16 }
  0x36   :  { %v553_v0 = vrot.slane %v552_v55, 4  ;;  %v542_v1 = vor.u32 %v541_v56, %v538_v52  ;;  %v575_v2 = vrot.slane %v573_v57, 4  ;;  %v563_v3 = vshll.u32 %v187_v49, 16  ;;  %v200_v52 = vld [vmem:[%s14048_s0 + $0xe8] sm:$0xf] }
  0x37   :  { %1061 = vrot.lane.b32.xlu1 %v534_v54, %s8425_s11  ;;  %v581_v5 = vrot.slane %v579_v61, 5  ;;  %v562_v6 = vrot.slane %v560_v62, 4  ;;  %v593_v7 = vshll.u32 %v191_v58, 16  ;;  %v597_v8 = vshrl.u32 %v191_v58, 16  ;;  %v201_v61 = vld [vmem:[%s14048_s0 + $0xec] sm:$0x1] }
  0x38   :  { %v558_v9 = vsel %vm8483_vm2, %v553_v0, %v557_v51  ;;  %v543_v10 = vrot.slane %v542_v1, 4  ;;  %v576_v11 = vor.u32 %v575_v2, %v571_v60  ;;  %v565_v12 = vrot.slane %v563_v3, 5  ;;  %v199_v62 = vld [vmem:[%s14048_s0 + $0xe4] sm:$0xf] }
  0x39   :  { %1059 = vrot.lane.b32.xlu0 %v524_v59, %s8425_s11  ;;  %v595_v14 = vrot.slane %v593_v7, 5  ;;  %v599_v15 = vrot.slane %v597_v8, 4  ;;  %v603_v16 = vshll.u32 %v192_v63, 16  ;;  %v584_v17 = vshrl.u32 %v190_v4, 16  ;;  %v203_v7 = vld [vmem:[%s14048_s0 + $0xf4] sm:$0xf] }
  0x3a   :  { %v548_v18 = vsel %vm8483_vm2, %v543_v10, %v547_v41  ;;  %v577_v19 = vrot.slane %v576_v11, 4  ;;  %v566_v20 = vor.u32 %v565_v12, %v562_v6  ;;  %v587_v21 = vshll.u32 %v190_v4, 16  ;;  %v204_v12 = vld [vmem:[%s14048_s0 + $0xf8] sm:$0x1] }
  0x3b   :  { %1065 = vrot.lane.b32.xlu1 %v558_v9, %s8425_s11  ;;  %v600_v25 = vor.u32 %v599_v15, %v595_v14  ;;  %v605_v26 = vrot.slane %v603_v16, 5  ;;  %v586_v27 = vrot.slane %v584_v17, 4  ;;  %v617_v28 = vshll.u32 %v194_v13, 16  ;;  %v202_v17 = vld [vmem:[%s14048_s0 + $0xf0] sm:$0xf] }
  0x3c   :  { %v582_v29 = vsel %vm8483_vm2, %v577_v19, %v581_v5  ;;  %v567_v30 = vrot.slane %v566_v20, 4  ;;  %v589_v31 = vrot.slane %v587_v21, 5  ;;  %v621_v32 = vshrl.u32 %v194_v13, 16 }
  0x3d   :  { %1063 = vrot.lane.b32.xlu0 %v548_v18, %s8425_s11  ;;  %v601_v34 = vrot.slane %v600_v25, 4  ;;  %v619_v35 = vrot.slane %v617_v28, 5  ;;  %v627_v36 = vshll.u32 %v195_v22, 16  ;;  %v608_v37 = vshrl.u32 %v193_v24, 16 }
  0x3e   :  { %v572_v38 = vsel %vm8483_vm2, %v567_v30, %v571_v60  ;;  %v590_v39 = vor.u32 %v589_v31, %v586_v27  ;;  %v623_v40 = vrot.slane %v621_v32, 4  ;;  %v611_v41 = vshll.u32 %v193_v24, 16  ;;  %v206_v27 = vld [vmem:[%s14048_s0 + $0x100] sm:$0xf]  ;;  %v207_v32 = vld [vmem:[%s14048_s0 + $0x104] sm:$0x1] }
  0x3f   :  { %1069 = vrot.lane.b32.xlu1 %v582_v29, %s8425_s11  ;;  %v606_v44 = vsel %vm8483_vm2, %v601_v34, %v605_v26  ;;  %v629_v45 = vrot.slane %v627_v36, 5  ;;  %v610_v46 = vrot.slane %v608_v37, 4  ;;  %v641_v47 = vshll.u32 %v197_v33, 16  ;;  %v205_v37 = vld [vmem:[%s14048_s0 + $0xfc] sm:$0xf] }
  0x40   :  { %v591_v48 = vrot.slane %v590_v39, 4  ;;  %v624_v49 = vor.u32 %v623_v40, %v619_v35  ;;  %v613_v50 = vrot.slane %v611_v41, 5  ;;  %v645_v51 = vshrl.u32 %v197_v33, 16 }
  0x41   :  { %1067 = vrot.lane.b32.xlu0 %v572_v38, %s8425_s11  ;;  %v643_v53 = vrot.slane %v641_v47, 5  ;;  %v651_v54 = vshll.u32 %v198_v42, 16  ;;  %v632_v55 = vshrl.u32 %v196_v43, 16  ;;  %v635_v56 = vshll.u32 %v196_v43, 16 }
  0x42   :  { %v596_v57 = vsel %vm8483_vm2, %v591_v48, %v595_v14  ;;  %v625_v58 = vrot.slane %v624_v49, 4  ;;  %v614_v59 = vor.u32 %v613_v50, %v610_v46  ;;  %v647_v60 = vrot.slane %v645_v51, 4  ;;  %v209_v46 = vld [vmem:[%s14048_s0 + $0x10c] sm:$0xf] }
  0x43   :  { %1073 = vrot.lane.b32.xlu1 %v606_v44, %s8425_s11  ;;  %v653_v63 = vrot.slane %v651_v54, 5  ;;  %v634_v0 = vrot.slane %v632_v55, 4  ;;  %v637_v1 = vrot.slane %v635_v56, 5  ;;  %v665_v2 = vshll.u32 %v200_v52, 16  ;;  %v210_v55 = vld [vmem:[%s14048_s0 + $0x110] sm:$0x1] }
  0x44   :  { %v630_v3 = vsel %vm8483_vm2, %v625_v58, %v629_v45  ;;  %v615_v4 = vrot.slane %v614_v59, 4  ;;  %v648_v5 = vor.u32 %v647_v60, %v643_v53  ;;  %v669_v6 = vshrl.u32 %v200_v52, 16  ;;  %v208_v56 = vld [vmem:[%s14048_s0 + $0x108] sm:$0xf] }
  0x45   :  { %1071 = vrot.lane.b32.xlu0 %v596_v57, %s8425_s11  ;;  %v638_v8 = vor.u32 %v637_v1, %v634_v0  ;;  %v667_v9 = vrot.slane %v665_v2, 5  ;;  %v675_v10 = vshll.u32 %v201_v61, 16  ;;  %v656_v11 = vshrl.u32 %v199_v62, 16  ;;  %v212_v1 = vld [vmem:[%s14048_s0 + $0x118] sm:$0xf] }
  0x46   :  { %v620_v13 = vsel %vm8483_vm2, %v615_v4, %v619_v35  ;;  %v649_v14 = vrot.slane %v648_v5, 4  ;;  %v671_v15 = vrot.slane %v669_v6, 4  ;;  %v659_v16 = vshll.u32 %v199_v62, 16 }
  0x47   :  { %1077 = vrot.lane.b32.xlu1 %v630_v3, %s8425_s11  ;;  %v639_v18 = vrot.slane %v638_v8, 4  ;;  %v677_v19 = vrot.slane %v675_v10, 5  ;;  %v658_v20 = vrot.slane %v656_v11, 4  ;;  %v689_v21 = vshll.u32 %v203_v7, 16  ;;  %v213_v10 = vld [vmem:[%s14048_s0 + $0x11c] sm:$0x1] }
  0x48   :  { %v654_v22 = vsel %vm8483_vm2, %v649_v14, %v653_v63  ;;  %v672_v24 = vor.u32 %v671_v15, %v667_v9  ;;  %v661_v25 = vrot.slane %v659_v16, 5  ;;  %v693_v26 = vshrl.u32 %v203_v7, 16  ;;  %v211_v11 = vld [vmem:[%s14048_s0 + $0x114] sm:$0xf] }
  0x49   :  { %1075 = vrot.lane.b32.xlu0 %v620_v13, %s8425_s11  ;;  %v644_v28 = vsel %vm8483_vm2, %v639_v18, %v643_v53  ;;  %v691_v29 = vrot.slane %v689_v21, 5  ;;  %v699_v30 = vshll.u32 %v204_v12, 16  ;;  %v680_v31 = vshrl.u32 %v202_v17, 16 }
  0x4a   :  { %v673_v33 = vrot.slane %v672_v24, 4  ;;  %v662_v34 = vor.u32 %v661_v25, %v658_v20  ;;  %v695_v35 = vrot.slane %v693_v26, 4  ;;  %v683_v36 = vshll.u32 %v202_v17, 16  ;;  %v215_v20 = vld [vmem:[%s14048_s0 + $0x124] sm:$0xf] }
  0x4b   :  { %1081 = vrot.lane.b32.xlu1 %v654_v22, %s8425_s11  ;;  %v701_v38 = vrot.slane %v699_v30, 5  ;;  %v682_v39 = vrot.slane %v680_v31, 4  ;;  %v713_v40 = vshll.u32 %v206_v27, 16  ;;  %v717_v41 = vshrl.u32 %v206_v27, 16  ;;  %v216_v30 = vld [vmem:[%s14048_s0 + $0x128] sm:$0x1] }
  0x4c   :  { %v678_v42 = vsel %vm8483_vm2, %v673_v33, %v677_v19  ;;  %v663_v43 = vrot.slane %v662_v34, 4  ;;  %v696_v44 = vor.u32 %v695_v35, %v691_v29  ;;  %v685_v45 = vrot.slane %v683_v36, 5  ;;  %v214_v31 = vld [vmem:[%s14048_s0 + $0x120] sm:$0xf] }
  0x4d   :  { %1079 = vrot.lane.b32.xlu0 %v644_v28, %s8425_s11  ;;  %v715_v47 = vrot.slane %v713_v40, 5  ;;  %v719_v48 = vrot.slane %v717_v41, 4  ;;  %v723_v49 = vshll.u32 %v207_v32, 16  ;;  %v704_v50 = vshrl.u32 %v205_v37, 16  ;;  %v218_v40 = vld [vmem:[%s14048_s0 + $0x130] sm:$0xf] }
  0x4e   :  { %v668_v51 = vsel %vm8483_vm2, %v663_v43, %v667_v9  ;;  %v697_v52 = vrot.slane %v696_v44, 4  ;;  %v686_v53 = vor.u32 %v685_v45, %v682_v39  ;;  %v707_v54 = vshll.u32 %v205_v37, 16  ;;  %v219_v45 = vld [vmem:[%s14048_s0 + $0x134] sm:$0x1] }
  0x4f   :  { %1085 = vrot.lane.b32.xlu1 %v678_v42, %s8425_s11  ;;  %v720_v57 = vor.u32 %v719_v48, %v715_v47  ;;  %v725_v58 = vrot.slane %v723_v49, 5  ;;  %v706_v59 = vrot.slane %v704_v50, 4  ;;  %v737_v60 = vshll.u32 %v209_v46, 16  ;;  %v217_v50 = vld [vmem:[%s14048_s0 + $0x12c] sm:$0xf] }
  0x50   :  { %v702_v61 = vsel %vm8483_vm2, %v697_v52, %v701_v38  ;;  %v687_v62 = vrot.slane %v686_v53, 4  ;;  %v709_v63 = vrot.slane %v707_v54, 5  ;;  %v741_v0 = vshrl.u32 %v209_v46, 16 }
  0x51   :  { %1083 = vrot.lane.b32.xlu0 %v668_v51, %s8425_s11  ;;  %v721_v2 = vrot.slane %v720_v57, 4  ;;  %v739_v3 = vrot.slane %v737_v60, 5  ;;  %v747_v4 = vshll.u32 %v210_v55, 16  ;;  %v728_v5 = vshrl.u32 %v208_v56, 16 }
  0x52   :  { %v692_v6 = vsel %vm8483_vm2, %v687_v62, %v691_v29  ;;  %v710_v7 = vor.u32 %v709_v63, %v706_v59  ;;  %v743_v8 = vrot.slane %v741_v0, 4  ;;  %v731_v9 = vshll.u32 %v208_v56, 16  ;;  %v221_v59 = vld [vmem:[%s14048_s0 + $0x13c] sm:$0xf]  ;;  %v222_v0 = vld [vmem:[%s14048_s0 + $0x140] sm:$0x1] }
  0x53   :  { %1089 = vrot.lane.b32.xlu1 %v702_v61, %s8425_s11  ;;  %v726_v12 = vsel %vm8483_vm2, %v721_v2, %v725_v58  ;;  %v749_v13 = vrot.slane %v747_v4, 5  ;;  %v730_v14 = vrot.slane %v728_v5, 4  ;;  %v761_v15 = vshll.u32 %v212_v1, 16  ;;  %v220_v5 = vld [vmem:[%s14048_s0 + $0x138] sm:$0xf] }
  0x54   :  { %v711_v16 = vrot.slane %v710_v7, 4  ;;  %v744_v17 = vor.u32 %v743_v8, %v739_v3  ;;  %v733_v18 = vrot.slane %v731_v9, 5  ;;  %v765_v19 = vshrl.u32 %v212_v1, 16 }
  0x55   :  { %1087 = vrot.lane.b32.xlu0 %v692_v6, %s8425_s11  ;;  %v763_v21 = vrot.slane %v761_v15, 5  ;;  %v771_v22 = vshll.u32 %v213_v10, 16  ;;  %v752_v24 = vshrl.u32 %v211_v11, 16  ;;  %v755_v25 = vshll.u32 %v211_v11, 16 }
  0x56   :  { %v716_v26 = vsel %vm8483_vm2, %v711_v16, %v715_v47  ;;  %v745_v27 = vrot.slane %v744_v17, 4  ;;  %v734_v28 = vor.u32 %v733_v18, %v730_v14  ;;  %v767_v29 = vrot.slane %v765_v19, 4  ;;  %v224_v14 = vld [vmem:[%s14048_s0 + $0x148] sm:$0xf] }
  0x57   :  { %1093 = vrot.lane.b32.xlu1 %v726_v12, %s8425_s11  ;;  %v773_v32 = vrot.slane %v771_v22, 5  ;;  %v754_v33 = vrot.slane %v752_v24, 4  ;;  %v757_v34 = vrot.slane %v755_v25, 5  ;;  %v785_v35 = vshll.u32 %v215_v20, 16  ;;  %v225_v24 = vld [vmem:[%s14048_s0 + $0x14c] sm:$0x1] }
  0x58   :  { %v750_v36 = vsel %vm8483_vm2, %v745_v27, %v749_v13  ;;  %v735_v37 = vrot.slane %v734_v28, 4  ;;  %v768_v38 = vor.u32 %v767_v29, %v763_v21  ;;  %v789_v39 = vshrl.u32 %v215_v20, 16  ;;  %v223_v25 = vld [vmem:[%s14048_s0 + $0x144] sm:$0xf] }
  0x59   :  { %1091 = vrot.lane.b32.xlu0 %v716_v26, %s8425_s11  ;;  %v758_v41 = vor.u32 %v757_v34, %v754_v33  ;;  %v787_v42 = vrot.slane %v785_v35, 5  ;;  %v795_v43 = vshll.u32 %v216_v30, 16  ;;  %v776_v44 = vshrl.u32 %v214_v31, 16  ;;  %v227_v34 = vld [vmem:[%s14048_s0 + $0x154] sm:$0xf] }
  0x5a   :  { %v740_v46 = vsel %vm8483_vm2, %v735_v37, %v739_v3  ;;  %v769_v47 = vrot.slane %v768_v38, 4  ;;  %v791_v48 = vrot.slane %v789_v39, 4  ;;  %v779_v49 = vshll.u32 %v214_v31, 16 }
  0x5b   :  { %1097 = vrot.lane.b32.xlu1 %v750_v36, %s8425_s11  ;;  %v759_v51 = vrot.slane %v758_v41, 4  ;;  %v797_v52 = vrot.slane %v795_v43, 5  ;;  %v778_v53 = vrot.slane %v776_v44, 4  ;;  %v809_v54 = vshll.u32 %v218_v40, 16  ;;  %v228_v43 = vld [vmem:[%s14048_s0 + $0x158] sm:$0x1] }
  0x5c   :  { %v774_v55 = vsel %vm8483_vm2, %v769_v47, %v773_v32  ;;  %v792_v56 = vor.u32 %v791_v48, %v787_v42  ;;  %v781_v57 = vrot.slane %v779_v49, 5  ;;  %v813_v58 = vshrl.u32 %v218_v40, 16  ;;  %v226_v44 = vld [vmem:[%s14048_s0 + $0x150] sm:$0xf] }
  0x5d   :  { %1095 = vrot.lane.b32.xlu0 %v740_v46, %s8425_s11  ;;  %v764_v60 = vsel %vm8483_vm2, %v759_v51, %v763_v21  ;;  %v811_v61 = vrot.slane %v809_v54, 5  ;;  %v819_v62 = vshll.u32 %v219_v45, 16  ;;  %v800_v63 = vshrl.u32 %v217_v50, 16 }
  0x5e   :  { %v793_v1 = vrot.slane %v792_v56, 4  ;;  %v782_v2 = vor.u32 %v781_v57, %v778_v53  ;;  %v815_v3 = vrot.slane %v813_v58, 4  ;;  %v803_v4 = vshll.u32 %v217_v50, 16  ;;  %v230_v53 = vld [vmem:[%s14048_s0 + $0x160] sm:$0xf] }
  0x5f   :  { %1101 = vrot.lane.b32.xlu1 %v774_v55, %s8425_s11  ;;  %v821_v6 = vrot.slane %v819_v62, 5  ;;  %v802_v7 = vrot.slane %v800_v63, 4  ;;  %v833_v8 = vshll.u32 %v221_v59, 16  ;;  %v837_v9 = vshrl.u32 %v221_v59, 16  ;;  %v231_v62 = vld [vmem:[%s14048_s0 + $0x164] sm:$0x1] }
  0x60   :  { %v798_v10 = vsel %vm8483_vm2, %v793_v1, %v797_v52  ;;  %v783_v11 = vrot.slane %v782_v2, 4  ;;  %v816_v12 = vor.u32 %v815_v3, %v811_v61  ;;  %v805_v13 = vrot.slane %v803_v4, 5  ;;  %v229_v63 = vld [vmem:[%s14048_s0 + $0x15c] sm:$0xf] }
  0x61   :  { %1099 = vrot.lane.b32.xlu0 %v764_v60, %s8425_s11  ;;  %v8844_v15 = vrot.slane %v833_v8, 5  ;;  %v839_v16 = vrot.slane %v837_v9, 4  ;;  %v843_v17 = vshll.u32 %v222_v0, 16  ;;  %v824_v18 = vshrl.u32 %v220_v5, 16  ;;  %v233_v8 = vld [vmem:[%s14048_s0 + $0x16c] sm:$0xf] }
  0x62   :  { %v788_v19 = vsel %vm8483_vm2, %v783_v11, %v787_v42  ;;  %v817_v20 = vrot.slane %v816_v12, 4  ;;  %v806_v21 = vor.u32 %v805_v13, %v802_v7  ;;  %v827_v22 = vshll.u32 %v220_v5, 16  ;;  %v234_v9 = vld [vmem:[%s14048_s0 + $0x170] sm:$0x1] }
  0x63   :  { %1105 = vrot.lane.b32.xlu1 %v798_v10, %s8425_s11  ;;  %v840_v26 = vor.u32 %v839_v16, %v8844_v15  ;;  %v845_v27 = vrot.slane %v843_v17, 5  ;;  %v826_v28 = vrot.slane %v824_v18, 4  ;;  %v857_v29 = vshll.u32 %v224_v14, 16 }
  0x64   :  { %v822_v30 = vsel %vm8483_vm2, %v817_v20, %v821_v6  ;;  %v807_v31 = vrot.slane %v806_v21, 4  ;;  %v829_v32 = vrot.slane %v827_v22, 5  ;;  %v861_v33 = vshrl.u32 %v224_v14, 16  ;;  %v232_v14 = vld [vmem:[%s14048_s0 + $0x168] sm:$0xf] }
  0x65   :  { %1103 = vrot.lane.b32.xlu0 %v788_v19, %s8425_s11  ;;  %v841_v35 = vrot.slane %v840_v26, 4  ;;  %v8862_v36 = vrot.slane %v857_v29, 5  ;;  %v867_v37 = vshll.u32 %v225_v24, 16  ;;  %v848_v38 = vshrl.u32 %v223_v25, 16  ;;  %v8914_v19 = vld [vmem:[%s14048_s0 + $0x178] sm:$0xf] }
  0x66   :  { %v812_v39 = vsel %vm8483_vm2, %v807_v31, %v811_v61  ;;  %v830_v40 = vor.u32 %v829_v32, %v826_v28  ;;  %v863_v41 = vrot.slane %v861_v33, 4  ;;  %v851_v42 = vshll.u32 %v223_v25, 16  ;;  %v21_v25 = vld [vmem:[%s14048_s0 + $0xc] sm:$0xf]  ;;  %v19_v26 = vld [vmem:[%s14048_s0] sm:$0xf] }
  0x67   :  { %1109 = vrot.lane.b32.xlu1 %v822_v30, %s8425_s11  ;;  %v846_v45 = vsel %vm8483_vm2, %v841_v35, %v845_v27  ;;  %v869_v46 = vrot.slane %v867_v37, 5  ;;  %v850_v47 = vrot.slane %v848_v38, 4  ;;  %v881_v48 = vshll.u32 %v227_v34, 16  ;;  %v22_v27 = vld [vmem:[%s14048_s0 + $0x10] sm:$0xf] }
  0x68   :  { %v831_v49 = vrot.slane %v830_v40, 4  ;;  %v864_v50 = vor.u32 %v863_v41, %v8862_v36  ;;  %v853_v51 = vrot.slane %v851_v42, 5  ;;  %v885_v52 = vshrl.u32 %v227_v34, 16  ;;  %v20_v28 = vld [vmem:[%s14048_s0 + $0x4] sm:$0xf] }
  0x69   :  { %1107 = vrot.lane.b32.xlu0 %v812_v39, %s8425_s11  ;;  %v8880_v54 = vrot.slane %v881_v48, 5  ;;  %v891_v55 = vshll.u32 %v228_v43, 16  ;;  %v872_v56 = vshrl.u32 %v226_v44, 16  ;;  %v875_v57 = vshll.u32 %v226_v44, 16  ;;  %v24_v29 = vld [vmem:[%s14048_s0 + $0x1c] sm:$0xf] }
  0x6a   :  { %v836_v58 = vsel %vm8483_vm2, %v831_v49, %v8844_v15  ;;  %v865_v59 = vrot.slane %v864_v50, 4  ;;  %v854_v60 = vor.u32 %v853_v51, %v850_v47  ;;  %v887_v61 = vrot.slane %v885_v52, 4  ;;  %v23_v30 = vld [vmem:[%s14048_s0 + $0x18] sm:$0xf]  ;;  %v26_v31 = vld [vmem:[%s14048_s0 + $0x28] sm:$0xf] }
  0x6b   :  { %1113 = vrot.lane.b32.xlu1 %v846_v45, %s8425_s11  ;;  %v893_v0 = vrot.slane %v891_v55, 5  ;;  %v874_v1 = vrot.slane %v872_v56, 4  ;;  %v877_v2 = vrot.slane %v875_v57, 5  ;;  %v905_v3 = vshll.u32 %v230_v53, 16  ;;  %v25_v32 = vld [vmem:[%s14048_s0 + $0x24] sm:$0xf] }
  0x6c   :  { %v870_v4 = vsel %vm8483_vm2, %v865_v59, %v869_v46  ;;  %v855_v5 = vrot.slane %v854_v60, 4  ;;  %v888_v6 = vor.u32 %v887_v61, %v8880_v54  ;;  %v909_v7 = vshrl.u32 %v230_v53, 16  ;;  %v28_v33 = vld [vmem:[%s14048_s0 + $0x34] sm:$0xf]  ;;  %v27_v34 = vld [vmem:[%s14048_s0 + $0x30] sm:$0xf] }
  0x6d   :  { %1111 = vrot.lane.b32.xlu0 %v836_v58, %s8425_s11  ;;  %v878_v10 = vor.u32 %v877_v2, %v874_v1  ;;  %v8902_v11 = vrot.slane %v905_v3, 5  ;;  %v915_v12 = vshll.u32 %v231_v62, 16  ;;  %v896_v13 = vshrl.u32 %v229_v63, 16  ;;  %v30_v35 = vld [vmem:[%s14048_s0 + $0x40] sm:$0xf] }
  0x6e   :  { %v860_v15 = vsel %vm8483_vm2, %v855_v5, %v8862_v36  ;;  %v889_v16 = vrot.slane %v888_v6, 4  ;;  %v911_v17 = vrot.slane %v909_v7, 4  ;;  %v899_v18 = vshll.u32 %v229_v63, 16  ;;  %v29_v36 = vld [vmem:[%s14048_s0 + $0x3c] sm:$0xf] }
  0x6f   :  { %1117 = vrot.lane.b32.xlu1 %v870_v4, %s8425_s11  ;;  %v8916_v20 = vrot.slane %v878_v10, 4  ;;  %v8918_v21 = vrot.slane %v915_v12, 5  ;;  %v898_v22 = vrot.slane %v896_v13, 4  ;;  %v929_v24 = vshll.u32 %v233_v8, 16  ;;  %v32_v37 = vld [vmem:[%s14048_s0 + $0x4c] sm:$0xf] }
  0x70   :  { %v31_v38 = vld [vmem:[%s14048_s0 + $0x48] sm:$0xf]  ;;  %v34_v39 = vld [vmem:[%s14048_s0 + $0x58] sm:$0xf]  ;;  %v33_v40 = vld [vmem:[%s14048_s0 + $0x54] sm:$0xf]  ;;  %v894_v46 = vsel %vm8483_vm2, %v889_v16, %v893_v0  ;;  %v912_v47 = vor.u32 %v911_v17, %v8902_v11 }
  0x71   :  { %v36_v41 = vld [vmem:[%s14048_s0 + $0x64] sm:$0xf]  ;;  %v35_v42 = vld [vmem:[%s14048_s0 + $0x60] sm:$0xf]  ;;  %v38_v43 = vld [vmem:[%s14048_s0 + $0x70] sm:$0xf]  ;;  %1115 = vrot.lane.b32.xlu0 %v860_v15, %s8425_s11  ;;  %v884_v55 = vsel %vm8483_vm2, %v8916_v20, %v8880_v54 }
  0x72   :  { %v37_v44 = vld [vmem:[%s14048_s0 + $0x6c] sm:$0xf]  ;;  %v40_v45 = vld [vmem:[%s14048_s0 + $0x7c] sm:$0xf]  ;;  %v901_v48 = vrot.slane %v899_v18, 5  ;;  %v933_v49 = vshrl.u32 %v233_v8, 16 }
  0x73   :  { %v8989_v50 = vld [vmem:[%s14048_s0 + $0x17c] sm:$0x1]  ;;  %v8994_v51 = vld [vmem:[%s14048_s0 + $0x174] sm:$0xf]  ;;  %v39_v52 = vld [vmem:[%s14048_s0 + $0x78] sm:$0xf]  ;;  %1121 = vrot.lane.b32.xlu1 %v894_v46, %s8425_s11 }
  0x74   :  { %v42_v53 = vld [vmem:[%s14048_s0 + $0x88] sm:$0xf]  ;;  %v9007_v56 = vrot.slane %v929_v24, 5  ;;  %v939_v57 = vshll.u32 %v234_v9, 16  ;;  %v920_v58 = vshrl.u32 %v232_v14, 16  ;;  %v913_v60 = vrot.slane %v912_v47, 4 }
  0x75   :  { %v41_v59 = vld [vmem:[%s14048_s0 + $0x84] sm:$0xf]  ;;  %v902_v61 = vor.u32 %v901_v48, %v898_v22  ;;  %v935_v62 = vrot.slane %v933_v49, 4  ;;  %v923_v63 = vshll.u32 %v232_v14, 16  ;;  %v44_v0 = vld [vmem:[%s14048_s0 + $0x94] sm:$0xf]  ;;  %1119 = vrot.lane.b32.xlu0 %v884_v55, %s8425_s11 }
  0x76   :  { %v9016_v54 = vrot.slane %v939_v57, 5  ;;  %v922_v1 = vrot.slane %v920_v58, 4  ;;  %vm83_vm4 = vcmask 27648   ;;  %v953_v2 = vshll.u32 %v8914_v19, 16  ;;  %v43_v3 = vld [vmem:[%s14048_s0 + $0x90] sm:$0xf] }
  0x77   :  { %v918_v4 = vsel %vm8483_vm2, %v913_v60, %v8918_v21  ;;  %v903_v5 = vrot.slane %v902_v61, 4  ;;  %v936_v6 = vor.u32 %v935_v62, %v9007_v56  ;;  %v925_v7 = vrot.slane %v923_v63, 5  ;;  %86 = vst.msk [vmem:[#allocation2 + $0x8] sm:$0xf] %vm83_vm4, %v21_v25  ;;  %84 = vst.msk [vmem:[#allocation2] sm:$0xf] %vm83_vm4, %v19_v26 }
  0x78   :  { %87 = vst.msk [vmem:[#allocation2 + $0xc] sm:$0xf] %vm83_vm4, %v22_v27  ;;  %85 = vst.msk [vmem:[#allocation2 + $0x4] sm:$0xf] %vm83_vm4, %v20_v28  ;;  %v239_v8 = vld [vmem:[%s14048_s0 + $0x184] sm:$0xf]  ;;  %1125 = vrot.lane.b32.xlu1 %v918_v4, %s8425_s11 }
  0x79   :  { %v240_v9 = vld [vmem:[%s14048_s0 + $0x188] sm:$0x1]  ;;  %89 = vst.msk [vmem:[#allocation2 + $0x14] sm:$0xf] %vm83_vm4, %v24_v29  ;;  %88 = vst.msk [vmem:[#allocation2 + $0x10] sm:$0xf] %vm83_vm4, %v23_v30  ;;  %v908_v16 = vsel %vm8483_vm2, %v903_v5, %v8902_v11  ;;  %v926_v18 = vor.u32 %v925_v7, %v922_v1 }
  0x7a   :  { %91 = vst.msk [vmem:[#allocation2 + $0x1c] sm:$0xf] %vm83_vm4, %v26_v31  ;;  %90 = vst.msk [vmem:[#allocation2 + $0x18] sm:$0xf] %vm83_vm4, %v25_v32  ;;  %v9059_v10 = vrot.slane %v953_v2, 5  ;;  %v957_v12 = vshrl.u32 %v8914_v19, 16  ;;  %1123 = vrot.lane.b32.xlu0 %v908_v16, %s8425_s11 }
  0x7b   :  { %93 = vst.msk [vmem:[#allocation2 + $0x24] sm:$0xf] %vm83_vm4, %v28_v33  ;;  %92 = vst.msk [vmem:[#allocation2 + $0x20] sm:$0xf] %vm83_vm4, %v27_v34  ;;  %v963_v13 = vshll.u32 %v8989_v50, 16  ;;  %v944_v14 = vshrl.u32 %v8994_v51, 16 }
  0x7c   :  { %95 = vst.msk [vmem:[#allocation2 + $0x2c] sm:$0xf] %vm83_vm4, %v30_v35  ;;  %94 = vst.msk [vmem:[#allocation2 + $0x28] sm:$0xf] %vm83_vm4, %v29_v36  ;;  %v238_v15 = vld [vmem:[%s14048_s0 + $0x180] sm:$0xf] }
  0x7d   :  { %97 = vst.msk [vmem:[#allocation2 + $0x34] sm:$0xf] %vm83_vm4, %v32_v37  ;;  %96 = vst.msk [vmem:[#allocation2 + $0x30] sm:$0xf] %vm83_vm4, %v31_v38  ;;  %v937_v17 = vrot.slane %v936_v6, 4  ;;  %v947_v20 = vshll.u32 %v8994_v51, 16  ;;  %v1020_v47 = vpop.permute.xlu1 %1019 }
  0x7e   :  { %99 = vst.msk [vmem:[#allocation2 + $0x3c] sm:$0xf] %vm83_vm4, %v34_v39  ;;  %98 = vst.msk [vmem:[#allocation2 + $0x38] sm:$0xf] %vm83_vm4, %v33_v40  ;;  %v46_v19 = vld [vmem:[%s14048_s0 + $0xa0] sm:$0xf] }
  0x7f   :  { %101 = vst.msk [vmem:[#allocation2 + $0x44] sm:$0xf] %vm83_vm4, %v36_v41  ;;  %100 = vst.msk [vmem:[#allocation2 + $0x40] sm:$0xf] %vm83_vm4, %v35_v42  ;;  %v45_v21 = vld [vmem:[%s14048_s0 + $0x9c] sm:$0xf]  ;;  %v942_v27 = vsel %vm8483_vm2, %v937_v17, %v9016_v54 }
  0x80   :  { %103 = vst.msk [vmem:[#allocation2 + $0x4c] sm:$0xf] %vm83_vm4, %v38_v43  ;;  %102 = vst.msk [vmem:[#allocation2 + $0x48] sm:$0xf] %vm83_vm4, %v37_v44  ;;  %v959_v22 = vrot.slane %v957_v12, 4  ;;  %v965_v24 = vrot.slane %v963_v13, 5  ;;  %1129 = vrot.lane.b32.xlu1 %v942_v27, %s8425_s11 }
  0x81   :  { %105 = vst.msk [vmem:[#allocation2 + $0x54] sm:$0xf] %vm83_vm4, %v40_v45  ;;  %104 = vst.msk [vmem:[#allocation2 + $0x50] sm:$0xf] %vm83_vm4, %v39_v52  ;;  %v946_v25 = vrot.slane %v944_v14, 4  ;;  %v977_v26 = vshll.u32 %v239_v8, 16  ;;  %v1022_v2 = vpop.permute.xlu1 %1021 }
  0x82   :  { %107 = vst.msk [vmem:[#allocation2 + $0x5c] sm:$0xf] %vm83_vm4, %v42_v53  ;;  %106 = vst.msk [vmem:[#allocation2 + $0x58] sm:$0xf] %vm83_vm4, %v41_v59  ;;  %v242_v11 = vld [vmem:[%s14048_s0 + $0x190] sm:$0xf]  ;;  %v960_v32 = vor.u32 %v959_v22, %v9059_v10 }
  0x83   :  { %109 = vst.msk [vmem:[#allocation2 + $0x64] sm:$0xf] %vm83_vm4, %v44_v0  ;;  %108 = vst.msk [vmem:[#allocation2 + $0x60] sm:$0xf] %vm83_vm4, %v43_v3  ;;  %v927_v28 = vrot.slane %v926_v18, 4  ;;  %v949_v29 = vrot.slane %v947_v20, 5  ;;  %v1016_v0 = vpop.permute.xlu0 %1015 }
  0x84   :  { %111 = vst.msk [vmem:[#allocation2 + $0x6c] sm:$0xf] %vm83_vm4, %v46_v19  ;;  %110 = vst.msk [vmem:[#allocation2 + $0x68] sm:$0xf] %vm83_vm4, %v45_v21  ;;  %v981_v30 = vshrl.u32 %v239_v8, 16  ;;  %v9091_v33 = vrot.slane %v977_v26, 5 }
  0x85   :  { %v243_v31 = vld [vmem:[%s14048_s0 + $0x194] sm:$0x1]  ;;  %v987_v34 = vshll.u32 %v240_v9, 16  ;;  %v968_v35 = vshrl.u32 %v238_v15, 16  ;;  %v241_v36 = vld [vmem:[%s14048_s0 + $0x18c] sm:$0xf]  ;;  %v932_v37 = vsel %vm8483_vm2, %v927_v28, %v9007_v56  ;;  %v950_v38 = vor.u32 %v949_v29, %v946_v25 }
  0x86   :  { %v983_v39 = vrot.slane %v981_v30, 4  ;;  %v971_v40 = vshll.u32 %v238_v15, 16  ;;  %v48_v41 = vld [vmem:[%s14048_s0 + $0xac] sm:$0xf]  ;;  %v47_v42 = vld [vmem:[%s14048_s0 + $0xa8] sm:$0xf]  ;;  %1127 = vrot.lane.b32.xlu0 %v932_v37, %s8425_s11 }
  0x87   :  { %v961_v43 = vrot.slane %v960_v32, 4  ;;  %v989_v44 = vrot.slane %v987_v34, 5  ;;  %v970_v45 = vrot.slane %v968_v35, 4  ;;  %v1001_v46 = vshll.u32 %v242_v11, 16  ;;  %113 = vst.msk [vmem:[#allocation2 + $0x74] sm:$0xf] %vm83_vm4, %v48_v41  ;;  %v1018_v17 = vpop.permute.xlu0 %1017 }
  0x88   :  { %112 = vst.msk [vmem:[#allocation2 + $0x70] sm:$0xf] %vm83_vm4, %v47_v42  ;;  %v951_v48 = vrot.slane %v950_v38, 4  ;;  %v984_v49 = vor.u32 %v983_v39, %v9091_v33  ;;  %v973_v50 = vrot.slane %v971_v40, 5  ;;  %v1005_v51 = vshrl.u32 %v242_v11, 16 }
  0x89   :  { %1210 = vst.msk [vmem:[#allocation2 + $0x8] sm:$0xf] %vm1207_vm3, %v1020_v47  ;;  %v966_v52 = vsel %vm8483_vm2, %v961_v43, %v965_v24  ;;  %v9113_v53 = vrot.slane %v1001_v46, 5  ;;  %v1011_v55 = vshll.u32 %v243_v31, 16  ;;  %v992_v56 = vshrl.u32 %v241_v36, 16  ;;  %v1026_v24 = vpop.permute.xlu1 %1025 }
  0x8a   :  { %v9118_v57 = vld [vmem:[%s14048_s0 + $0x4] sm:$0xf]  ;;  %1133 = vrot.lane.b32.xlu1 %v966_v52, %s8425_s11  ;;  %v956_v58 = vsel %vm8483_vm2, %v951_v48, %v9059_v10  ;;  %v985_v59 = vrot.slane %v984_v49, 4  ;;  %v974_v60 = vor.u32 %v973_v50, %v970_v45  ;;  %v1007_v61 = vrot.slane %v1005_v51, 4  ;;  %v50_v62 = vld [vmem:[%s14048_s0 + $0xb8] sm:$0xf] }
  0x8b   :  { %v49_v63 = vld [vmem:[%s14048_s0 + $0xb4] sm:$0xf]  ;;  %v994_v54 = vrot.slane %v992_v56, 4  ;;  %v995_v1 = vshll.u32 %v241_v36, 16  ;;  %115 = vst.msk [vmem:[#allocation2 + $0x7c] sm:$0xf] %vm83_vm4, %v50_v62  ;;  %1131 = vrot.lane.b32.xlu0 %v956_v58, %s8425_s11  ;;  %v1024_v32 = vpop.permute.xlu0 %1023 }
  0x8c   :  { %114 = vst.msk [vmem:[#allocation2 + $0x78] sm:$0xf] %vm83_vm4, %v49_v63  ;;  %v990_v3 = vsel %vm8483_vm2, %v985_v59, %v989_v44  ;;  %v975_v4 = vrot.slane %v974_v60, 4  ;;  %v1008_v5 = vor.u32 %v1007_v61, %v9113_v53  ;;  %v1013_v6 = vrot.slane %v1011_v55, 5  ;;  %v1274_v7 = vld [vmem:[%s14048_s0 + $0x8] sm:$0x1] }
  0x8d   :  { %1208 = vst.msk [vmem:[#allocation2] sm:$0xf] %vm1207_vm3, %v1016_v0  ;;  %v9142_v8 = vld [vmem:[%s14048_s0 + $0x10] sm:$0xf]  ;;  %1211 = vst.msk [vmem:[#allocation2 + $0xc] sm:$0xf] %vm1207_vm3, %v1022_v2  ;;  %v1030_v38 = vpop.permute.xlu1 %1029 }
  0x8e   :  { %v997_v9 = vrot.slane %v995_v1, 5  ;;  %vm1464_vm5 = vcmask 1042432   ;;  %vm1465_vm6 = vcmask 1046532   ;;  %v1469_v10 = vrot.slane %v9118_v57, 5  ;;  %v52_v12 = vld [vmem:[%s14048_s0 + $0xdc] sm:$0xf]  ;;  %1137 = vrot.lane.b32.xlu1 %v990_v3, %s8425_s11 }
  0x8f   :  { %v980_v13 = vsel %vm8483_vm2, %v975_v4, %v9091_v33  ;;  %v1009_v14 = vrot.slane %v1008_v5, 4  ;;  %v1272_v15 = vld [vmem:[%s14048_s0] sm:$0xe]  ;;  %117 = vst.msk [vmem:[#allocation2 + $0x84] sm:$0xf] %vm83_vm4, %v52_v12  ;;  %v1472_v19 = vrot.slane %v1274_v7, 5  ;;  %vm9171_vm7 = vmor %vm1464_vm5, %vm1465_vm6  ;;  %v1028_v45 = vpop.permute.xlu0 %1027 }
  0x90   :  { %v51_v16 = vld [vmem:[%s14048_s0 + $0xd8] sm:$0xf]  ;;  %v998_v18 = vor.u32 %v997_v9, %v994_v54  ;;  %v1471_v20 = vrot.slane %v1469_v10, 4  ;;  %v1277_v21 = vld [vmem:[%s14048_s0 + $0x14] sm:$0x1]  ;;  %v1476_v22 = vrot.slane %v9142_v8, 5  ;;  %1135 = vrot.lane.b32.xlu0 %v980_v13, %s8425_s11 }
  0x91   :  { %116 = vst.msk [vmem:[#allocation2 + $0x80] sm:$0xf] %vm83_vm4, %v51_v16  ;;  %v1014_v25 = vsel %vm8483_vm2, %v1009_v14, %v1013_v6  ;;  %v9178_v11 = vld [vmem:[%s14048_s0 + $0x1c] sm:$0xf]  ;;  %v54_v28 = vld [vmem:[%s14048_s0 + $0xe8] sm:$0xf]  ;;  %v1034_v51 = vpop.permute.xlu1 %1033 }
  0x92   :  { %1209 = vst.msk [vmem:[#allocation2 + $0x4] sm:$0xf] %vm1207_vm3, %v1018_v17  ;;  %1213 = vst.msk [vmem:[#allocation2 + $0x14] sm:$0xf] %vm1207_vm3, %v1026_v24  ;;  %v999_v27 = vrot.slane %v998_v18, 4  ;;  %1141 = vrot.lane.b32.xlu1 %v1014_v25, %s8425_s11  ;;  %v7568_v30 = vrot.slane %v1272_v15, 9  ;;  %v1473_v34 = vsel %vm9171_vm7, %v1471_v20, %v1472_v19 }
  0x93   :  { %v53_v29 = vld [vmem:[%s14048_s0 + $0xe4] sm:$0xf]  ;;  %v1479_v31 = vrot.slane %v1277_v21, 5  ;;  %119 = vst.msk [vmem:[#allocation2 + $0x8c] sm:$0xf] %vm83_vm4, %v54_v28  ;;  %v1478_v35 = vrot.slane %v1476_v22, 4  ;;  %v1032_v60 = vpop.permute.xlu0 %1031 }
  0x94   :  { %118 = vst.msk [vmem:[#allocation2 + $0x88] sm:$0xf] %vm83_vm4, %v53_v29  ;;  %v1004_v33 = vsel %vm8483_vm2, %v999_v27, %v9113_v53  ;;  %v1275_v36 = vld [vmem:[%s14048_s0 + $0xc] sm:$0xe]  ;;  %v1483_v37 = vrot.slane %v9178_v11, 5  ;;  %v1470_v43 = vsel %vm9171_vm7, %v7568_v30, %v1469_v10 }
  0x95   :  { %1212 = vst.msk [vmem:[#allocation2 + $0x10] sm:$0xf] %vm1207_vm3, %v1024_v32  ;;  %v1280_v39 = vld [vmem:[%s14048_s0 + $0x20] sm:$0x1]  ;;  %v9207_v40 = vld [vmem:[%s14048_s0 + $0x28] sm:$0xf]  ;;  %1139 = vrot.lane.b32.xlu0 %v1004_v33, %s8425_s11  ;;  %v1480_v46 = vsel %vm9171_vm7, %v1478_v35, %v1479_v31  ;;  %v1038_v1 = vpop.permute.xlu1 %1037 }
  0x96   :  { %v56_v41 = vld [vmem:[%s14048_s0 + $0xf4] sm:$0xf]  ;;  %1215 = vst.msk [vmem:[#allocation2 + $0x1c] sm:$0xf] %vm1207_vm3, %v1030_v38  ;;  %v55_v42 = vld [vmem:[%s14048_s0 + $0xf0] sm:$0xf]  ;;  %1693 = vrot.lane.b32.xlu1 %v1473_v34, %s8426_s26 }
  0x97   :  { %121 = vst.msk [vmem:[#allocation2 + $0x94] sm:$0xf] %vm83_vm4, %v56_v41  ;;  %v7569_v44 = vrot.slane %v1275_v36, 9  ;;  %120 = vst.msk [vmem:[#allocation2 + $0x90] sm:$0xf] %vm83_vm4, %v55_v42  ;;  %v1485_v47 = vrot.slane %v1483_v37, 4  ;;  %v1036_v8 = vpop.permute.xlu0 %1035 }
  0x98   :  { %v1486_v48 = vrot.slane %v1280_v39, 5  ;;  %v1278_v49 = vld [vmem:[%s14048_s0 + $0x18] sm:$0xe]  ;;  %v1490_v50 = vrot.slane %v9207_v40, 5  ;;  %1214 = vst.msk [vmem:[#allocation2 + $0x18] sm:$0xf] %vm1207_vm3, %v1028_v45 }
  0x99   :  { %v1283_v52 = vld [vmem:[%s14048_s0 + $0x2c] sm:$0x1]  ;;  %v9235_v53 = vld [vmem:[%s14048_s0 + $0x34] sm:$0xf]  ;;  %v58_v55 = vld [vmem:[%s14048_s0 + $0x100] sm:$0xf]  ;;  %1691 = vrot.lane.b32.xlu0 %v1470_v43, %s8426_s26  ;;  %v1477_v57 = vsel %vm9171_vm7, %v7569_v44, %v1476_v22  ;;  %v1042_v15 = vpop.permute.xlu1 %1041 }
  0x9a   :  { %1217 = vst.msk [vmem:[#allocation2 + $0x24] sm:$0xf] %vm1207_vm3, %v1034_v51  ;;  %v57_v56 = vld [vmem:[%s14048_s0 + $0xfc] sm:$0xf]  ;;  %1697 = vrot.lane.b32.xlu1 %v1480_v46, %s8426_s26  ;;  %v7570_v58 = vrot.slane %v1278_v49, 9  ;;  %v1487_v61 = vsel %vm9171_vm7, %v1485_v47, %v1486_v48  ;;  %v1492_v62 = vrot.slane %v1490_v50, 4 }
  0x9b   :  { %123 = vst.msk [vmem:[#allocation2 + $0x9c] sm:$0xf] %vm83_vm4, %v58_v55  ;;  %v1281_v59 = vld [vmem:[%s14048_s0 + $0x24] sm:$0xe]  ;;  %122 = vst.msk [vmem:[#allocation2 + $0x98] sm:$0xf] %vm83_vm4, %v57_v56  ;;  %v1040_v22 = vpop.permute.xlu0 %1039 }
  0x9c   :  { %v1493_v63 = vrot.slane %v1283_v52, 5  ;;  %v1286_v0 = vld [vmem:[%s14048_s0 + $0x38] sm:$0x1]  ;;  %v1497_v54 = vrot.slane %v9235_v53, 5  ;;  %1216 = vst.msk [vmem:[#allocation2 + $0x20] sm:$0xf] %vm1207_vm3, %v1032_v60  ;;  %v1484_v5 = vsel %vm9171_vm7, %v7570_v58, %v1483_v37 }
  0x9d   :  { %v9263_v2 = vld [vmem:[%s14048_s0 + $0x40] sm:$0xf]  ;;  %v60_v3 = vld [vmem:[%s14048_s0 + $0x10c] sm:$0xf]  ;;  %v59_v4 = vld [vmem:[%s14048_s0 + $0x108] sm:$0xf]  ;;  %1695 = vrot.lane.b32.xlu0 %v1477_v57, %s8426_s26  ;;  %v1046_v29 = vpop.permute.xlu1 %1045 }
  0x9e   :  { %1219 = vst.msk [vmem:[#allocation2 + $0x2c] sm:$0xf] %vm1207_vm3, %v1038_v1  ;;  %1701 = vrot.lane.b32.xlu1 %v1487_v61, %s8426_s26  ;;  %v7571_v6 = vrot.slane %v1281_v59, 9  ;;  %v1284_v7 = vld [vmem:[%s14048_s0 + $0x30] sm:$0xe]  ;;  %v1494_v9 = vsel %vm9171_vm7, %v1492_v62, %v1493_v63  ;;  %v1499_v10 = vrot.slane %v1497_v54, 4 }
  0x9f   :  { %125 = vst.msk [vmem:[#allocation2 + $0xa4] sm:$0xf] %vm83_vm4, %v60_v3  ;;  %124 = vst.msk [vmem:[#allocation2 + $0xa0] sm:$0xf] %vm83_vm4, %v59_v4  ;;  %v1500_v12 = vrot.slane %v1286_v0, 5  ;;  %v1504_v13 = vrot.slane %v9263_v2, 5  ;;  %v1044_v37 = vpop.permute.xlu0 %1043 }
  0xa0   :  { %v62_v14 = vld [vmem:[%s14048_s0 + $0x118] sm:$0xf]  ;;  %1218 = vst.msk [vmem:[#allocation2 + $0x28] sm:$0xf] %vm1207_vm3, %v1036_v8  ;;  %v1289_v16 = vld [vmem:[%s14048_s0 + $0x44] sm:$0x1]  ;;  %v1491_v20 = vsel %vm9171_vm7, %v7571_v6, %v1490_v50 }
  0xa1   :  { %v9294_v17 = vld [vmem:[%s14048_s0 + $0x4c] sm:$0xf]  ;;  %127 = vst.msk [vmem:[#allocation2 + $0xac] sm:$0xf] %vm83_vm4, %v62_v14  ;;  %v61_v18 = vld [vmem:[%s14048_s0 + $0x114] sm:$0xf]  ;;  %1699 = vrot.lane.b32.xlu0 %v1484_v5, %s8426_s26  ;;  %v1501_v24 = vsel %vm9171_vm7, %v1499_v10, %v1500_v12  ;;  %v1050_v43 = vpop.permute.xlu1 %1049 }
  0xa2   :  { %1221 = vst.msk [vmem:[#allocation2 + $0x34] sm:$0xf] %vm1207_vm3, %v1042_v15  ;;  %1705 = vrot.lane.b32.xlu1 %v1494_v9, %s8426_s26  ;;  %v7572_v19 = vrot.slane %v1284_v7, 9  ;;  %v1287_v21 = vld [vmem:[%s14048_s0 + $0x3c] sm:$0xe]  ;;  %v1506_v25 = vrot.slane %v1504_v13, 4 }
  0xa3   :  { %126 = vst.msk [vmem:[#allocation2 + $0xa8] sm:$0xf] %vm83_vm4, %v61_v18  ;;  %v1507_v11 = vrot.slane %v1289_v16, 5  ;;  %v1511_v27 = vrot.slane %v9294_v17, 5  ;;  %v64_v28 = vld [vmem:[%s14048_s0 + $0x124] sm:$0xf]  ;;  %v1048_v50 = vpop.permute.xlu0 %1047 }
  0xa4   :  { %1220 = vst.msk [vmem:[#allocation2 + $0x30] sm:$0xf] %vm1207_vm3, %v1040_v22  ;;  %v1292_v30 = vld [vmem:[%s14048_s0 + $0x50] sm:$0x1]  ;;  %v9322_v31 = vld [vmem:[%s14048_s0 + $0x58] sm:$0xf]  ;;  %v1498_v33 = vsel %vm9171_vm7, %v7572_v19, %v1497_v54 }
  0xa5   :  { %129 = vst.msk [vmem:[#allocation2 + $0xb4] sm:$0xf] %vm83_vm4, %v64_v28  ;;  %v63_v32 = vld [vmem:[%s14048_s0 + $0x120] sm:$0xf]  ;;  %1703 = vrot.lane.b32.xlu0 %v1491_v20, %s8426_s26  ;;  %v7573_v34 = vrot.slane %v1287_v21, 9  ;;  %v1508_v38 = vsel %vm9171_vm7, %v1506_v25, %v1507_v11  ;;  %v1513_v39 = vrot.slane %v1511_v27, 4  ;;  %v1054_v57 = vpop.permute.xlu1 %1053 }
  0xa6   :  { %1223 = vst.msk [vmem:[#allocation2 + $0x3c] sm:$0xf] %vm1207_vm3, %v1046_v29  ;;  %1709 = vrot.lane.b32.xlu1 %v1501_v24, %s8426_s26  ;;  %v1290_v35 = vld [vmem:[%s14048_s0 + $0x48] sm:$0xe]  ;;  %v1295_v36 = vld [vmem:[%s14048_s0 + $0x5c] sm:$0x1] }
  0xa7   :  { %128 = vst.msk [vmem:[#allocation2 + $0xb0] sm:$0xf] %vm83_vm4, %v63_v32  ;;  %v1514_v40 = vrot.slane %v1292_v30, 5  ;;  %v1518_v41 = vrot.slane %v9322_v31, 5  ;;  %v66_v42 = vld [vmem:[%s14048_s0 + $0x130] sm:$0xf]  ;;  %v1505_v46 = vsel %vm9171_vm7, %v7573_v34, %v1504_v13  ;;  %v1052_v54 = vpop.permute.xlu0 %1051 }
  0xa8   :  { %1222 = vst.msk [vmem:[#allocation2 + $0x38] sm:$0xf] %vm1207_vm3, %v1044_v37  ;;  %v9350_v44 = vld [vmem:[%s14048_s0 + $0x64] sm:$0xf]  ;;  %v65_v45 = vld [vmem:[%s14048_s0 + $0x12c] sm:$0xf] }
  0xa9   :  { %131 = vst.msk [vmem:[#allocation2 + $0xbc] sm:$0xf] %vm83_vm4, %v66_v42  ;;  %1707 = vrot.lane.b32.xlu0 %v1498_v33, %s8426_s26  ;;  %130 = vst.msk [vmem:[#allocation2 + $0xb8] sm:$0xf] %vm83_vm4, %v65_v45  ;;  %v7574_v47 = vrot.slane %v1290_v35, 9  ;;  %v1521_v48 = vrot.slane %v1295_v36, 5  ;;  %v1515_v51 = vsel %vm9171_vm7, %v1513_v39, %v1514_v40  ;;  %v1058_v6 = vpop.permute.xlu1 %1057 }
  0xaa   :  { %1225 = vst.msk [vmem:[#allocation2 + $0x44] sm:$0xf] %vm1207_vm3, %v1050_v43  ;;  %1713 = vrot.lane.b32.xlu1 %v1508_v38, %s8426_s26  ;;  %v1293_v49 = vld [vmem:[%s14048_s0 + $0x54] sm:$0xe]  ;;  %v1520_v52 = vrot.slane %v1518_v41, 4  ;;  %v1525_v53 = vrot.slane %v9350_v44, 5 }
  0xab   :  { %v68_v55 = vld [vmem:[%s14048_s0 + $0x13c] sm:$0xf]  ;;  %v67_v56 = vld [vmem:[%s14048_s0 + $0x138] sm:$0xf]  ;;  %1224 = vst.msk [vmem:[#allocation2 + $0x40] sm:$0xf] %vm1207_vm3, %v1048_v50  ;;  %v1512_v61 = vsel %vm9171_vm7, %v7574_v47, %v1511_v27  ;;  %v1056_v15 = vpop.permute.xlu0 %1055 }
  0xac   :  { %v1298_v58 = vld [vmem:[%s14048_s0 + $0x68] sm:$0x1]  ;;  %v9381_v59 = vld [vmem:[%s14048_s0 + $0x70] sm:$0xf]  ;;  %133 = vst.msk [vmem:[#allocation2 + $0xc4] sm:$0xf] %vm83_vm4, %v68_v55  ;;  %v1522_v1 = vsel %vm9171_vm7, %v1520_v52, %v1521_v48 }
  0xad   :  { %132 = vst.msk [vmem:[#allocation2 + $0xc0] sm:$0xf] %vm83_vm4, %v67_v56  ;;  %1711 = vrot.lane.b32.xlu0 %v1505_v46, %s8426_s26  ;;  %v1296_v60 = vld [vmem:[%s14048_s0 + $0x60] sm:$0xe]  ;;  %v7575_v62 = vrot.slane %v1293_v49, 9  ;;  %v1527_v2 = vrot.slane %v1525_v53, 4  ;;  %v1062_v21 = vpop.permute.xlu1 %1061 }
  0xae   :  { %1227 = vst.msk [vmem:[#allocation2 + $0x4c] sm:$0xf] %vm1207_vm3, %v1054_v57  ;;  %1717 = vrot.lane.b32.xlu1 %v1515_v51, %s8426_s26  ;;  %v70_v63 = vld [vmem:[%s14048_s0 + $0x148] sm:$0xf]  ;;  %v69_v0 = vld [vmem:[%s14048_s0 + $0x144] sm:$0xf] }
  0xaf   :  { %v1528_v3 = vrot.slane %v1298_v58, 5  ;;  %v1301_v4 = vld [vmem:[%s14048_s0 + $0x74] sm:$0x1]  ;;  %v1532_v5 = vrot.slane %v9381_v59, 5  ;;  %135 = vst.msk [vmem:[#allocation2 + $0xcc] sm:$0xf] %vm83_vm4, %v70_v63  ;;  %v1519_v10 = vsel %vm9171_vm7, %v7575_v62, %v1518_v41  ;;  %v1060_v30 = vpop.permute.xlu0 %1059 }
  0xb0   :  { %134 = vst.msk [vmem:[#allocation2 + $0xc8] sm:$0xf] %vm83_vm4, %v69_v0  ;;  %v9411_v7 = vld [vmem:[%s14048_s0 + $0x7c] sm:$0xf]  ;;  %v72_v8 = vld [vmem:[%s14048_s0 + $0x154] sm:$0xf] }
  0xb1   :  { %1226 = vst.msk [vmem:[#allocation2 + $0x48] sm:$0xf] %vm1207_vm3, %v1052_v54  ;;  %1715 = vrot.lane.b32.xlu0 %v1512_v61, %s8426_s26  ;;  %1229 = vst.msk [vmem:[#allocation2 + $0x54] sm:$0xf] %vm1207_vm3, %v1058_v6  ;;  %v71_v9 = vld [vmem:[%s14048_s0 + $0x150] sm:$0xf]  ;;  %v1529_v16 = vsel %vm9171_vm7, %v1527_v2, %v1528_v3  ;;  %v1066_v36 = vpop.permute.xlu1 %1065 }
  0xb2   :  { %137 = vst.msk [vmem:[#allocation2 + $0xd4] sm:$0xf] %vm83_vm4, %v72_v8  ;;  %1721 = vrot.lane.b32.xlu1 %v1522_v1, %s8426_s26  ;;  %v7576_v12 = vrot.slane %v1296_v60, 9  ;;  %v1535_v13 = vrot.slane %v1301_v4, 5  ;;  %v1299_v14 = vld [vmem:[%s14048_s0 + $0x6c] sm:$0xe] }
  0xb3   :  { %136 = vst.msk [vmem:[#allocation2 + $0xd0] sm:$0xf] %vm83_vm4, %v71_v9  ;;  %v1534_v17 = vrot.slane %v1532_v5, 4  ;;  %v1539_v18 = vrot.slane %v9411_v7, 5  ;;  %v74_v20 = vld [vmem:[%s14048_s0 + $0x160] sm:$0xf]  ;;  %v1064_v44 = vpop.permute.xlu0 %1063 }
  0xb4   :  { %v73_v19 = vld [vmem:[%s14048_s0 + $0x15c] sm:$0xf]  ;;  %1228 = vst.msk [vmem:[#allocation2 + $0x50] sm:$0xf] %vm1207_vm3, %v1056_v15  ;;  %v1304_v22 = vld [vmem:[%s14048_s0 + $0x80] sm:$0x1]  ;;  %v1526_v11 = vsel %vm9171_vm7, %v7576_v12, %v1525_v53 }
  0xb5   :  { %v9445_v24 = vld [vmem:[%s14048_s0 + $0x88] sm:$0xf]  ;;  %139 = vst.msk [vmem:[#allocation2 + $0xdc] sm:$0xf] %vm83_vm4, %v74_v20  ;;  %138 = vst.msk [vmem:[#allocation2 + $0xd8] sm:$0xf] %vm83_vm4, %v73_v19  ;;  %1719 = vrot.lane.b32.xlu0 %v1519_v10, %s8426_s26  ;;  %v1536_v31 = vsel %vm9171_vm7, %v1534_v17, %v1535_v13  ;;  %v1070_v50 = vpop.permute.xlu1 %1069 }
  0xb6   :  { %1231 = vst.msk [vmem:[#allocation2 + $0x5c] sm:$0xf] %vm1207_vm3, %v1062_v21  ;;  %v76_v25 = vld [vmem:[%s14048_s0 + $0x16c] sm:$0xf]  ;;  %1725 = vrot.lane.b32.xlu1 %v1529_v16, %s8426_s26  ;;  %v7577_v27 = vrot.slane %v1299_v14, 9  ;;  %v1541_v32 = vrot.slane %v1539_v18, 4 }
  0xb7   :  { %v1302_v28 = vld [vmem:[%s14048_s0 + $0x78] sm:$0xe]  ;;  %141 = vst.msk [vmem:[#allocation2 + $0xe4] sm:$0xf] %vm83_vm4, %v76_v25  ;;  %v75_v29 = vld [vmem:[%s14048_s0 + $0x168] sm:$0xf]  ;;  %v1068_v58 = vpop.permute.xlu0 %1067 }
  0xb8   :  { %v1542_v33 = vrot.slane %v1304_v22, 5  ;;  %v1307_v34 = vld [vmem:[%s14048_s0 + $0x8c] sm:$0x1]  ;;  %v1546_v35 = vrot.slane %v9445_v24, 5  ;;  %140 = vst.msk [vmem:[#allocation2 + $0xe0] sm:$0xf] %vm83_vm4, %v75_v29  ;;  %v1533_v40 = vsel %vm9171_vm7, %v7577_v27, %v1532_v5 }
  0xb9   :  { %1230 = vst.msk [vmem:[#allocation2 + $0x58] sm:$0xf] %vm1207_vm3, %v1060_v30  ;;  %v9475_v37 = vld [vmem:[%s14048_s0 + $0x94] sm:$0xf]  ;;  %v78_v38 = vld [vmem:[%s14048_s0 + $0x178] sm:$0xf]  ;;  %1723 = vrot.lane.b32.xlu0 %v1526_v11, %s8426_s26  ;;  %v1074_v0 = vpop.permute.xlu1 %1073 }
  0xba   :  { %v77_v39 = vld [vmem:[%s14048_s0 + $0x174] sm:$0xf]  ;;  %1233 = vst.msk [vmem:[#allocation2 + $0x64] sm:$0xf] %vm1207_vm3, %v1066_v36  ;;  %1729 = vrot.lane.b32.xlu1 %v1536_v31, %s8426_s26  ;;  %v7578_v41 = vrot.slane %v1302_v28, 9  ;;  %v1543_v45 = vsel %vm9171_vm7, %v1541_v32, %v1542_v33  ;;  %v1548_v46 = vrot.slane %v1546_v35, 4 }
  0xbb   :  { %143 = vst.msk [vmem:[#allocation2 + $0xec] sm:$0xf] %vm83_vm4, %v78_v38  ;;  %142 = vst.msk [vmem:[#allocation2 + $0xe8] sm:$0xf] %vm83_vm4, %v77_v39  ;;  %v1305_v42 = vld [vmem:[%s14048_s0 + $0x84] sm:$0xe]  ;;  %v1072_v4 = vpop.permute.xlu0 %1071 }
  0xbc   :  { %v80_v43 = vld [vmem:[%s14048_s0 + $0x184] sm:$0xf]  ;;  %v1549_v47 = vrot.slane %v1307_v34, 5  ;;  %v1553_v48 = vrot.slane %v9475_v37, 5  ;;  %v79_v49 = vld [vmem:[%s14048_s0 + $0x180] sm:$0xf]  ;;  %v1540_v56 = vsel %vm9171_vm7, %v7578_v41, %v1539_v18 }
  0xbd   :  { %145 = vst.msk [vmem:[#allocation2 + $0xf4] sm:$0xf] %vm83_vm4, %v80_v43  ;;  %v1310_v51 = vld [vmem:[%s14048_s0 + $0x98] sm:$0x1]  ;;  %v1312_v52 = vld [vmem:[%s14048_s0 + $0xa0] sm:$0xf]  ;;  %1727 = vrot.lane.b32.xlu0 %v1533_v40, %s8426_s26  ;;  %v1078_v10 = vpop.permute.xlu1 %1077 }
  0xbe   :  { %1232 = vst.msk [vmem:[#allocation2 + $0x60] sm:$0xf] %vm1207_vm3, %v1064_v44  ;;  %1235 = vst.msk [vmem:[#allocation2 + $0x6c] sm:$0xf] %vm1207_vm3, %v1070_v50  ;;  %v82_v53 = vld [vmem:[%s14048_s0 + $0x190] sm:$0xf]  ;;  %1733 = vrot.lane.b32.xlu1 %v1543_v45, %s8426_s26  ;;  %v1550_v59 = vsel %vm9171_vm7, %v1548_v46, %v1549_v47 }
  0xbf   :  { %144 = vst.msk [vmem:[#allocation2 + $0xf0] sm:$0xf] %vm83_vm4, %v79_v49  ;;  %v81_v55 = vld [vmem:[%s14048_s0 + $0x18c] sm:$0xf]  ;;  %v7579_v57 = vrot.slane %v1305_v42, 9  ;;  %v1555_v60 = vrot.slane %v1553_v48, 4  ;;  %v1076_v17 = vpop.permute.xlu0 %1075 }
  0xc0   :  { %147 = vst.msk [vmem:[#allocation2 + $0xfc] sm:$0xf] %vm83_vm4, %v82_v53  ;;  %146 = vst.msk [vmem:[#allocation2 + $0xf8] sm:$0xf] %vm83_vm4, %v81_v55  ;;  %v1556_v61 = vrot.slane %v1310_v51, 5  ;;  %v1560_v63 = vrot.slane %v1312_v52, 5 }
  0xc1   :  { %v1308_v62 = vld [vmem:[%s14048_s0 + $0x90] sm:$0xe]  ;;  %1234 = vst.msk [vmem:[#allocation2 + $0x68] sm:$0xf] %vm1207_vm3, %v1068_v58  ;;  %v1313_v54 = vld [vmem:[%s14048_s0 + $0xa4] sm:$0x1]  ;;  %1731 = vrot.lane.b32.xlu0 %v1540_v56, %s8426_s26  ;;  %v1547_v2 = vsel %vm9171_vm7, %v7579_v57, %v1546_v35  ;;  %v1082_v24 = vpop.permute.xlu1 %1081 }
  0xc2   :  { %v1315_v1 = vld [vmem:[%s14048_s0 + $0xac] sm:$0xf]  ;;  %1237 = vst.msk [vmem:[#allocation2 + $0x74] sm:$0xf] %vm1207_vm3, %v1074_v0  ;;  %1737 = vrot.lane.b32.xlu1 %v1550_v59, %s8426_s26  ;;  %v7580_v3 = vrot.slane %v1308_v62, 9  ;;  %v1557_v5 = vsel %vm9171_vm7, %v1555_v60, %v1556_v61  ;;  %v1562_v6 = vrot.slane %v1560_v63, 4 }
  0xc3   :  { %v1563_v7 = vrot.slane %v1313_v54, 5  ;;  %v1311_v8 = vld [vmem:[%s14048_s0 + $0x9c] sm:$0xe]  ;;  %v1567_v9 = vrot.slane %v1315_v1, 5  ;;  %1236 = vst.msk [vmem:[#allocation2 + $0x70] sm:$0xf] %vm1207_vm3, %v1072_v4  ;;  %v1080_v30 = vpop.permute.xlu0 %1079 }
  0xc4   :  { %v1316_v12 = vld [vmem:[%s14048_s0 + $0xb0] sm:$0x1]  ;;  %v1318_v13 = vld [vmem:[%s14048_s0 + $0xb8] sm:$0xf]  ;;  %1239 = vst.msk [vmem:[#allocation2 + $0x7c] sm:$0xf] %vm1207_vm3, %v1078_v10  ;;  %v1554_v14 = vsel %vm9171_vm7, %v7580_v3, %v1553_v48 }
  0xc5   :  { %1735 = vrot.lane.b32.xlu0 %v1547_v2, %s8426_s26  ;;  %v7581_v15 = vrot.slane %v1311_v8, 9  ;;  %v1314_v16 = vld [vmem:[%s14048_s0 + $0xa8] sm:$0xe]  ;;  %v1564_v18 = vsel %vm9171_vm7, %v1562_v6, %v1563_v7  ;;  %v1569_v20 = vrot.slane %v1567_v9, 4  ;;  %v1570_v19 = vrot.slane %v1316_v12, 5  ;;  %v1086_v36 = vpop.permute.xlu1 %1085 }
  0xc6   :  { %1741 = vrot.lane.b32.xlu1 %v1557_v5, %s8426_s26  ;;  %v1574_v21 = vrot.slane %v1318_v13, 5  ;;  %v1321_v22 = vld [vmem:[%s14048_s0 + $0xdc] sm:$0xf]  ;;  %1238 = vst.msk [vmem:[#allocation2 + $0x78] sm:$0xf] %vm1207_vm3, %v1076_v17  ;;  %v7582_v11 = vrot.slane %v1314_v16, 9 }
  0xc7   :  { %v1319_v25 = vld [vmem:[%s14048_s0 + $0xbc] sm:$0x1]  ;;  %1241 = vst.msk [vmem:[#allocation2 + $0x84] sm:$0xf] %vm1207_vm3, %v1082_v24  ;;  %v1561_v27 = vsel %vm9171_vm7, %v7581_v15, %v1560_v63  ;;  %v1317_v28 = vld [vmem:[%s14048_s0 + $0xb4] sm:$0xe]  ;;  %v1571_v31 = vsel %vm9171_vm7, %v1569_v20, %v1570_v19  ;;  %v1084_v43 = vpop.permute.xlu0 %1083 }
  0xc8   :  { %v1581_v29 = vrot.slane %v1321_v22, 5  ;;  %v1576_v32 = vrot.slane %v1574_v21, 4  ;;  %v1577_v33 = vrot.slane %v1319_v25, 5  ;;  %v1322_v34 = vld [vmem:[%s14048_s0 + $0xe0] sm:$0x1]  ;;  %v1568_v37 = vsel %vm9171_vm7, %v7582_v11, %v1567_v9 }
  0xc9   :  { %1739 = vrot.lane.b32.xlu0 %v1554_v14, %s8426_s26  ;;  %v1324_v35 = vld [vmem:[%s14048_s0 + $0xe8] sm:$0xf]  ;;  %1240 = vst.msk [vmem:[#allocation2 + $0x80] sm:$0xf] %vm1207_vm3, %v1080_v30  ;;  %1243 = vst.msk [vmem:[#allocation2 + $0x8c] sm:$0xf] %vm1207_vm3, %v1086_v36  ;;  %v1090_v45 = vpop.permute.xlu1 %1089 }
  0xca   :  { %1745 = vrot.lane.b32.xlu1 %v1564_v18, %s8426_s26  ;;  %v7583_v38 = vrot.slane %v1317_v28, 9  ;;  %v1583_v39 = vrot.slane %v1581_v29, 4  ;;  %v1584_v40 = vrot.slane %v1322_v34, 5  ;;  %v1320_v41 = vld [vmem:[%s14048_s0 + $0xd8] sm:$0xe]  ;;  %v1588_v42 = vrot.slane %v1324_v35, 5 }
  0xcb   :  { %v1578_v44 = vsel %vm9171_vm7, %v1576_v32, %v1577_v33  ;;  %1242 = vst.msk [vmem:[#allocation2 + $0x88] sm:$0xf] %vm1207_vm3, %v1084_v43  ;;  %v1325_v46 = vld [vmem:[%s14048_s0 + $0xec] sm:$0x1]  ;;  %v1327_v47 = vld [vmem:[%s14048_s0 + $0xf4] sm:$0xf] }
  0xcc   :  { %1245 = vst.msk [vmem:[#allocation2 + $0x94] sm:$0xf] %vm1207_vm3, %v1090_v45 }
  0xcd   :  { %1743 = vrot.lane.b32.xlu0 %v1561_v27, %s8426_s26 }
  0xce   :  { %1749 = vrot.lane.b32.xlu1 %v1571_v31, %s8426_s26 }
  0xd1   :  { %1747 = vrot.lane.b32.xlu0 %v1568_v37, %s8426_s26 }
  0xd2   :  { %9 = vsyncpa [#allocation5], 0  ;;  %1753 = vrot.lane.b32.xlu1 %v1578_v44, %s8426_s26  ;;  %v1575_v48 = vsel %vm9171_vm7, %v7583_v38, %v1574_v21  ;;  %v7584_v49 = vrot.slane %v1320_v41, 9  ;;  %v1088_v50 = vpop.permute.xlu0 %1087  ;;  %v1585_v51 = vsel %vm9171_vm7, %v1583_v39, %v1584_v40  ;;  %v1590_v52 = vrot.slane %v1588_v42, 4  ;;  %v1323_v55 = vld [vmem:[%s14048_s0 + $0xe4] sm:$0xe]  ;;  %v1094_v57 = vpop.permute.xlu1 %1093 }
  0xd3   :  { %v1591_v53 = vrot.slane %v1325_v46, 5  ;;  %v1595_v56 = vrot.slane %v1327_v47, 5  ;;  %1244 = vst.msk [vmem:[#allocation2 + $0x90] sm:$0xf] %vm1207_vm3, %v1088_v50  ;;  %v1328_v58 = vld [vmem:[%s14048_s0 + $0xf8] sm:$0x1] }
  0xd4   :  { %v1330_v59 = vld [vmem:[%s14048_s0 + $0x100] sm:$0xf]  ;;  %1247 = vst.msk [vmem:[#allocation2 + $0x9c] sm:$0xf] %vm1207_vm3, %v1094_v57  ;;  %v1582_v60 = vsel %vm9171_vm7, %v7584_v49, %v1581_v29  ;;  %v7585_v61 = vrot.slane %v1323_v55, 9  ;;  %v1598_v54 = vrot.slane %v1328_v58, 5 }
  0xd5   :  { %1751 = vrot.lane.b32.xlu0 %v1575_v48, %s8426_s26  ;;  %v1592_v63 = vsel %vm9171_vm7, %v1590_v52, %v1591_v53  ;;  %v1597_v0 = vrot.slane %v1595_v56, 4  ;;  %v1326_v1 = vld [vmem:[%s14048_s0 + $0xf0] sm:$0xe]  ;;  %v1602_v2 = vrot.slane %v1330_v59, 5  ;;  %v1331_v4 = vld [vmem:[%s14048_s0 + $0x104] sm:$0x1] }
  0xd6   :  { %1757 = vrot.lane.b32.xlu1 %v1585_v51, %s8426_s26  ;;  %v1092_v62 = vpop.permute.xlu0 %1091  ;;  %v1098_v3 = vpop.permute.xlu1 %1097  ;;  %v1333_v5 = vld [vmem:[%s14048_s0 + $0x10c] sm:$0xf]  ;;  %v1589_v6 = vsel %vm9171_vm7, %v7585_v61, %v1588_v42  ;;  %v7586_v7 = vrot.slane %v1326_v1, 9  ;;  %v1605_v12 = vrot.slane %v1331_v4, 5  ;;  %v1329_v13 = vld [vmem:[%s14048_s0 + $0xfc] sm:$0xe] }
  0xd7   :  { %1246 = vst.msk [vmem:[#allocation2 + $0x98] sm:$0xf] %vm1207_vm3, %v1092_v62  ;;  %1249 = vst.msk [vmem:[#allocation2 + $0xa4] sm:$0xf] %vm1207_vm3, %v1098_v3  ;;  %v1599_v9 = vsel %vm9171_vm7, %v1597_v0, %v1598_v54  ;;  %v1604_v10 = vrot.slane %v1602_v2, 4  ;;  %v1609_v14 = vrot.slane %v1333_v5, 5 }
  0xd8   :  { %v1334_v16 = vld [vmem:[%s14048_s0 + $0x110] sm:$0x1]  ;;  %v1336_v17 = vld [vmem:[%s14048_s0 + $0x118] sm:$0xf]  ;;  %v1596_v18 = vsel %vm9171_vm7, %v7586_v7, %v1595_v56  ;;  %v7587_v20 = vrot.slane %v1329_v13, 9  ;;  %vm1883_vm8 = vcmask 93248  }
  0xd9   :  { %1755 = vrot.lane.b32.xlu0 %v1582_v60, %s8426_s26  ;;  %v1606_v21 = vsel %vm9171_vm7, %v1604_v10, %v1605_v12  ;;  %v1611_v22 = vrot.slane %v1609_v14, 4  ;;  %v1612_v24 = vrot.slane %v1334_v16, 5  ;;  %v1332_v25 = vld [vmem:[%s14048_s0 + $0x108] sm:$0xe]  ;;  %v1616_v11 = vrot.slane %v1336_v17, 5  ;;  %s8427_s29 = smov 12  }
  0xda   :  { %1761 = vrot.lane.b32.xlu1 %v1592_v63, %s8426_s26  ;;  %v1096_v8 = vpop.permute.xlu0 %1095  ;;  %v1102_v15 = vpop.permute.xlu1 %1101  ;;  %v1337_v28 = vld [vmem:[%s14048_s0 + $0x11c] sm:$0x1]  ;;  %v1339_v29 = vld [vmem:[%s14048_s0 + $0x124] sm:$0xf]  ;;  %v1603_v30 = vsel %vm9171_vm7, %v7587_v20, %v1602_v2  ;;  %v7588_v31 = vrot.slane %v1332_v25, 9  ;;  %vm2269_vm9 = vcmask 126048  }
  0xdb   :  { %1248 = vst.msk [vmem:[#allocation2 + $0xa0] sm:$0xf] %vm1207_vm3, %v1096_v8  ;;  %1251 = vst.msk [vmem:[#allocation2 + $0xac] sm:$0xf] %vm1207_vm3, %v1102_v15  ;;  %v1613_v33 = vsel %vm9171_vm7, %v1611_v22, %v1612_v24  ;;  %v1618_v34 = vrot.slane %v1616_v11, 4  ;;  %v1619_v35 = vrot.slane %v1337_v28, 5 }
  0xdc   :  { %v1335_v36 = vld [vmem:[%s14048_s0 + $0x114] sm:$0xe]  ;;  %v1623_v37 = vrot.slane %v1339_v29, 5  ;;  %v1340_v39 = vld [vmem:[%s14048_s0 + $0x128] sm:$0x1]  ;;  %v1610_v41 = vsel %vm9171_vm7, %v7588_v31, %v1609_v14  ;;  %s8428_s21 = smov 16  }
  0xdd   :  { %1759 = vrot.lane.b32.xlu0 %v1589_v6, %s8426_s26  ;;  %v1342_v40 = vld [vmem:[%s14048_s0 + $0x130] sm:$0xf]  ;;  %v7589_v42 = vrot.slane %v1335_v36, 9  ;;  %v1620_v44 = vsel %vm9171_vm7, %v1618_v34, %v1619_v35  ;;  %v1626_v46 = vrot.slane %v1340_v39, 5  ;;  %v1338_v47 = vld [vmem:[%s14048_s0 + $0x120] sm:$0xe] }
  0xde   :  { %1765 = vrot.lane.b32.xlu1 %v1599_v9, %s8426_s26  ;;  %v1100_v19 = vpop.permute.xlu0 %1099  ;;  %v1106_v27 = vpop.permute.xlu1 %1105  ;;  %v1625_v45 = vrot.slane %v1623_v37, 4  ;;  %v1630_v48 = vrot.slane %v1342_v40, 5  ;;  %v1343_v50 = vld [vmem:[%s14048_s0 + $0x134] sm:$0x1]  ;;  %v1345_v51 = vld [vmem:[%s14048_s0 + $0x13c] sm:$0xf] }
  0xdf   :  { %1250 = vst.msk [vmem:[#allocation2 + $0xa8] sm:$0xf] %vm1207_vm3, %v1100_v19  ;;  %1253 = vst.msk [vmem:[#allocation2 + $0xb4] sm:$0xf] %vm1207_vm3, %v1106_v27  ;;  %v1617_v52 = vsel %vm9171_vm7, %v7589_v42, %v1616_v11  ;;  %v7590_v53 = vrot.slane %v1338_v47, 9  ;;  %v1633_v58 = vrot.slane %v1343_v50, 5 }
  0xe0   :  { %v1627_v56 = vsel %vm9171_vm7, %v1625_v45, %v1626_v46  ;;  %v1632_v57 = vrot.slane %v1630_v48, 4  ;;  %v1341_v59 = vld [vmem:[%s14048_s0 + $0x12c] sm:$0xe]  ;;  %v1637_v60 = vrot.slane %v1345_v51, 5  ;;  %v1346_v62 = vld [vmem:[%s14048_s0 + $0x140] sm:$0x1] }
  0xe1   :  { %1763 = vrot.lane.b32.xlu0 %v1596_v18, %s8426_s26  ;;  %v1348_v63 = vld [vmem:[%s14048_s0 + $0x148] sm:$0xf]  ;;  %v1624_v0 = vsel %vm9171_vm7, %v7590_v53, %v1623_v37  ;;  %v7591_v54 = vrot.slane %v1341_v59, 9  ;;  %v1640_v4 = vrot.slane %v1346_v62, 5  ;;  %v1344_v5 = vld [vmem:[%s14048_s0 + $0x138] sm:$0xe] }
  0xe2   :  { %1769 = vrot.lane.b32.xlu1 %v1606_v21, %s8426_s26  ;;  %v1104_v32 = vpop.permute.xlu0 %1103  ;;  %v1110_v38 = vpop.permute.xlu1 %1109  ;;  %v1634_v2 = vsel %vm9171_vm7, %v1632_v57, %v1633_v58  ;;  %v1639_v3 = vrot.slane %v1637_v60, 4  ;;  %v1644_v6 = vrot.slane %v1348_v63, 5  ;;  %v1349_v8 = vld [vmem:[%s14048_s0 + $0x14c] sm:$0x1]  ;;  %v1351_v9 = vld [vmem:[%s14048_s0 + $0x154] sm:$0xf] }
  0xe3   :  { %1252 = vst.msk [vmem:[#allocation2 + $0xb0] sm:$0xf] %vm1207_vm3, %v1104_v32  ;;  %1255 = vst.msk [vmem:[#allocation2 + $0xbc] sm:$0xf] %vm1207_vm3, %v1110_v38  ;;  %v1631_v10 = vsel %vm9171_vm7, %v7591_v54, %v1630_v48  ;;  %v7592_v12 = vrot.slane %v1344_v5, 9  ;;  %v1647_v16 = vrot.slane %v1349_v8, 5 }
  0xe4   :  { %v1641_v14 = vsel %vm9171_vm7, %v1639_v3, %v1640_v4  ;;  %v1646_v15 = vrot.slane %v1644_v6, 4  ;;  %v1347_v17 = vld [vmem:[%s14048_s0 + $0x144] sm:$0xe]  ;;  %v1651_v18 = vrot.slane %v1351_v9, 5  ;;  %v1352_v19 = vld [vmem:[%s14048_s0 + $0x158] sm:$0x1] }
  0xe5   :  { %1767 = vrot.lane.b32.xlu0 %v1603_v30, %s8426_s26  ;;  %v1354_v21 = vld [vmem:[%s14048_s0 + $0x160] sm:$0xf]  ;;  %v1638_v22 = vsel %vm9171_vm7, %v7592_v12, %v1637_v60  ;;  %v7593_v24 = vrot.slane %v1347_v17, 9  ;;  %v1654_v28 = vrot.slane %v1352_v19, 5  ;;  %v1350_v29 = vld [vmem:[%s14048_s0 + $0x150] sm:$0xe] }
  0xe6   :  { %1773 = vrot.lane.b32.xlu1 %v1613_v33, %s8426_s26  ;;  %v1108_v43 = vpop.permute.xlu0 %1107  ;;  %v1114_v49 = vpop.permute.xlu1 %1113  ;;  %v1648_v11 = vsel %vm9171_vm7, %v1646_v15, %v1647_v16  ;;  %v1653_v27 = vrot.slane %v1651_v18, 4  ;;  %v1658_v30 = vrot.slane %v1354_v21, 5  ;;  %v1355_v32 = vld [vmem:[%s14048_s0 + $0x164] sm:$0x1]  ;;  %v1357_v33 = vld [vmem:[%s14048_s0 + $0x16c] sm:$0xf] }
  0xe7   :  { %1254 = vst.msk [vmem:[#allocation2 + $0xb8] sm:$0xf] %vm1207_vm3, %v1108_v43  ;;  %1257 = vst.msk [vmem:[#allocation2 + $0xc4] sm:$0xf] %vm1207_vm3, %v1114_v49  ;;  %v1645_v34 = vsel %vm9171_vm7, %v7593_v24, %v1644_v6  ;;  %v7594_v35 = vrot.slane %v1350_v29, 9  ;;  %v1661_v39 = vrot.slane %v1355_v32, 5 }
  0xe8   :  { %v1655_v37 = vsel %vm9171_vm7, %v1653_v27, %v1654_v28  ;;  %v1660_v38 = vrot.slane %v1658_v30, 4  ;;  %v1353_v40 = vld [vmem:[%s14048_s0 + $0x15c] sm:$0xe]  ;;  %v1358_v43 = vld [vmem:[%s14048_s0 + $0x170] sm:$0x1]  ;;  %vm3390_vm10 = vcmask 158848  }
  0xe9   :  { %1771 = vrot.lane.b32.xlu0 %v1610_v41, %s8426_s26  ;;  %v1665_v41 = vrot.slane %v1357_v33, 5  ;;  %v1652_v45 = vsel %vm9171_vm7, %v7594_v35, %v1651_v18  ;;  %v7595_v46 = vrot.slane %v1353_v40, 9  ;;  %v1668_v50 = vrot.slane %v1358_v43, 5  ;;  %v1356_v51 = vld [vmem:[%s14048_s0 + $0x168] sm:$0xe]  ;;  %s8429_s30 = smov 20  }
  0xea   :  { %1777 = vrot.lane.b32.xlu1 %v1620_v44, %s8426_s26  ;;  %v1112_v55 = vpop.permute.xlu0 %1111  ;;  %v1118_v61 = vpop.permute.xlu1 %1117  ;;  %v1360_v44 = vld [vmem:[%s14048_s0 + $0x178] sm:$0xf]  ;;  %v1662_v48 = vsel %vm9171_vm7, %v1660_v38, %v1661_v39  ;;  %v7596_v58 = vrot.slane %v1356_v51, 9  ;;  %v1359_v63 = vld [vmem:[%s14048_s0 + $0x174] sm:$0xe]  ;;  %vm6649_vm11 = vcmask 1041408  }
  0xeb   :  { %1256 = vst.msk [vmem:[#allocation2 + $0xc0] sm:$0xf] %vm1207_vm3, %v1112_v55  ;;  %1259 = vst.msk [vmem:[#allocation2 + $0xcc] sm:$0xf] %vm1207_vm3, %v1118_v61  ;;  %v1667_v49 = vrot.slane %v1665_v41, 4  ;;  %v1659_v57 = vsel %vm9171_vm7, %v7595_v46, %v1658_v30  ;;  %v7597_v4 = vrot.slane %v1359_v63, 9 }
  0xec   :  { %v1361_v55 = vld [vmem:[%s14048_s0 + $0x17c] sm:$0x1]  ;;  %v1666_v3 = vsel %vm9171_vm7, %v7596_v58, %v1665_v41  ;;  %v1362_v9 = vld [vmem:[%s14048_s0 + $0x180] sm:$0xe]  ;;  %v1365_v19 = vld [vmem:[%s14048_s0 + $0x18c] sm:$0xe] }
  0xed   :  { %1775 = vrot.lane.b32.xlu0 %v1617_v52, %s8426_s26  ;;  %v1672_v52 = vrot.slane %v1360_v44, 5  ;;  %v1669_v60 = vsel %vm9171_vm7, %v1667_v49, %v1668_v50  ;;  %v1675_v62 = vrot.slane %v1361_v55, 5  ;;  %v7598_v15 = vrot.slane %v1362_v9, 9  ;;  %v7601_v30 = vld [vmem:[%s14048_s0 + $0x10] sm:$0xf]  ;;  %s8431_s22 = smov 28  }
  0xee   :  { %1781 = vrot.lane.b32.xlu1 %v1627_v56, %s8426_s26  ;;  %v1116_v1 = vpop.permute.xlu0 %1115  ;;  %v1122_v7 = vpop.permute.xlu1 %1121  ;;  %v1363_v56 = vld [vmem:[%s14048_s0 + $0x184] sm:$0xf]  ;;  %v7599_v24 = vrot.slane %v1365_v19, 9  ;;  %v7600_v32 = vld [vmem:[%s14048_s0 + $0xc] sm:$0xf]  ;;  %s8432_s16 = smov 32  }
  0xef   :  { %1258 = vst.msk [vmem:[#allocation2 + $0xc8] sm:$0xf] %vm1207_vm3, %v1116_v1  ;;  %1261 = vst.msk [vmem:[#allocation2 + $0xd4] sm:$0xf] %vm1207_vm3, %v1122_v7  ;;  %v1674_v61 = vrot.slane %v1672_v52, 4  ;;  %vm4063_vm12 = vcmask 191648  }
  0xf0   :  { %v1364_v1 = vld [vmem:[%s14048_s0 + $0x188] sm:$0x1]  ;;  %v7604_v40 = vld [vmem:[%s14048_s0 + $0x24] sm:$0xf]  ;;  %v7606_v44 = vld [vmem:[%s14048_s0 + $0x30] sm:$0xf] }
  0xf1   :  { %1779 = vrot.lane.b32.xlu0 %v1624_v0, %s8426_s26  ;;  %v1679_v0 = vrot.slane %v1363_v56, 5  ;;  %v1676_v6 = vsel %vm9171_vm7, %v1674_v61, %v1675_v62  ;;  %v1682_v8 = vrot.slane %v1364_v1, 5  ;;  %v7605_v38 = vld [vmem:[%s14048_s0 + $0x28] sm:$0xf]  ;;  %v7609_v46 = vld [vmem:[%s14048_s0 + $0x40] sm:$0xf] }
  0xf2   :  { %1785 = vrot.lane.b32.xlu1 %v1634_v2, %s8426_s26  ;;  %v1120_v13 = vpop.permute.xlu0 %1119  ;;  %v1126_v20 = vpop.permute.xlu1 %1125  ;;  %v1366_v2 = vld [vmem:[%s14048_s0 + $0x190] sm:$0xf]  ;;  %v7611_v50 = vld [vmem:[%s14048_s0 + $0x4c] sm:$0xf]  ;;  %v7613_v55 = vld [vmem:[%s14048_s0 + $0x58] sm:$0xf] }
  0xf3   :  { %1260 = vst.msk [vmem:[#allocation2 + $0xd0] sm:$0xf] %vm1207_vm3, %v1120_v13  ;;  %1263 = vst.msk [vmem:[#allocation2 + $0xdc] sm:$0xf] %vm1207_vm3, %v1126_v20  ;;  %v1681_v7 = vrot.slane %v1679_v0, 4  ;;  %vm4449_vm13 = vcmask 224448  }
  0xf4   :  { %v1367_v13 = vld [vmem:[%s14048_s0 + $0x194] sm:$0x1]  ;;  %v7614_v61 = vld [vmem:[%s14048_s0 + $0x60] sm:$0xf]  ;;  %v7617_v63 = vld [vmem:[%s14048_s0 + $0x70] sm:$0xf] }
  0xf5   :  { %1783 = vrot.lane.b32.xlu0 %v1631_v10, %s8426_s26  ;;  %v1686_v10 = vrot.slane %v1366_v2, 5  ;;  %v1683_v17 = vsel %vm9171_vm7, %v1681_v7, %v1682_v8  ;;  %v1689_v20 = vrot.slane %v1367_v13, 5  ;;  %v7619_v2 = vld [vmem:[%s14048_s0 + $0x7c] sm:$0xf]  ;;  %v7620_v8 = vld [vmem:[%s14048_s0 + $0x84] sm:$0xf] }
  0xf6   :  { %1789 = vrot.lane.b32.xlu1 %v1641_v14, %s8426_s26  ;;  %v1124_v25 = vpop.permute.xlu0 %1123  ;;  %v1130_v31 = vpop.permute.xlu1 %1129  ;;  %v1673_v14 = vsel %vm9171_vm7, %v7597_v4, %v1672_v52  ;;  %v7610_v52 = vld [vmem:[%s14048_s0 + $0x48] sm:$0xf]  ;;  %v7618_v4 = vld [vmem:[%s14048_s0 + $0x78] sm:$0xf]  ;;  %v7622_v13 = vld [vmem:[%s14048_s0 + $0x90] sm:$0xf] }
  0xf7   :  { %1262 = vst.msk [vmem:[#allocation2 + $0xd8] sm:$0xf] %vm1207_vm3, %v1124_v25  ;;  %1265 = vst.msk [vmem:[#allocation2 + $0xe4] sm:$0xf] %vm1207_vm3, %v1130_v31  ;;  %v1688_v18 = vrot.slane %v1686_v10, 4  ;;  %v1687_v28 = vsel %vm9171_vm7, %v7599_v24, %v1686_v10  ;;  %vm5570_vm14 = vcmask 257248  }
  0xf8   :  { %v7623_v10 = vld [vmem:[%s14048_s0 + $0x94] sm:$0xf]  ;;  %v7629_v24 = vld [vmem:[%s14048_s0 + $0xb8] sm:$0xf]  ;;  %vm6243_vm15 = vcmask 290048   ;;  %vm6552_vm0 = vcmask 293888  }
  0xf9   :  { %1787 = vrot.lane.b32.xlu0 %v1638_v22, %s8426_s26  ;;  %v1680_v22 = vsel %vm9171_vm7, %v7598_v15, %v1679_v0  ;;  %v7625_v15 = vld [vmem:[%s14048_s0 + $0xa0] sm:$0xf] }
  0xfa   :  { %1793 = vrot.lane.b32.xlu1 %v1648_v11, %s8426_s26  ;;  %v1128_v36 = vpop.permute.xlu0 %1127  ;;  %v1690_v11 = vsel %vm9171_vm7, %v1688_v18, %v1689_v20  ;;  %v7627_v20 = vld [vmem:[%s14048_s0 + $0xac] sm:$0xf] }
  0xfb   :  { %1264 = vst.msk [vmem:[#allocation2 + $0xe0] sm:$0xf] %vm1207_vm3, %v1128_v36  ;;  %v7602_v36 = vld [vmem:[%s14048_s0 + $0x18] sm:$0xf] }
  0xfc   :  { %v1134_v42 = vpop.permute.xlu1 %1133 }
  0xfd   :  { %1791 = vrot.lane.b32.xlu0 %v1645_v34, %s8426_s26  ;;  %1267 = vst.msk [vmem:[#allocation2 + $0xec] sm:$0xf] %vm1207_vm3, %v1134_v42  ;;  %v7603_v34 = vld [vmem:[%s14048_s0 + $0x1c] sm:$0xf]  ;;  %v7607_v42 = vld [vmem:[%s14048_s0 + $0x34] sm:$0xf] }
  0xfe   :  { %1797 = vrot.lane.b32.xlu1 %v1655_v37, %s8426_s26  ;;  %v1132_v47 = vpop.permute.xlu0 %1131 }
  0xff   :  { %1266 = vst.msk [vmem:[#allocation2 + $0xe8] sm:$0xf] %vm1207_vm3, %v1132_v47 }
 0x100   :  { %v1138_v53 = vpop.permute.xlu1 %1137 }
 0x101   :  { %1795 = vrot.lane.b32.xlu0 %v1652_v45, %s8426_s26  ;;  %1269 = vst.msk [vmem:[#allocation2 + $0xf4] sm:$0xf] %vm1207_vm3, %v1138_v53 }
 0x102   :  { %1801 = vrot.lane.b32.xlu1 %v1662_v48, %s8426_s26  ;;  %v1136_v59 = vpop.permute.xlu0 %1135  ;;  %v7608_v48 = vld [vmem:[%s14048_s0 + $0x3c] sm:$0xf] }
 0x103   :  { %1268 = vst.msk [vmem:[#allocation2 + $0xf0] sm:$0xf] %vm1207_vm3, %v1136_v59  ;;  %v7615_v59 = vld [vmem:[%s14048_s0 + $0x64] sm:$0xf] }
 0x104   :  { %v1142_v54 = vpop.permute.xlu1 %1141 }
 0x105   :  { %1799 = vrot.lane.b32.xlu0 %v1659_v57, %s8426_s26  ;;  %1271 = vst.msk [vmem:[#allocation2 + $0xfc] sm:$0xf] %vm1207_vm3, %v1142_v54  ;;  %v7612_v57 = vld [vmem:[%s14048_s0 + $0x54] sm:$0xf]  ;;  %v7616_v54 = vld [vmem:[%s14048_s0 + $0x6c] sm:$0xf] }
 0x106   :  { %1805 = vrot.lane.b32.xlu1 %v1669_v60, %s8426_s26 }
 0x107   :  { %v1140_v5 = vpop.permute.xlu0 %1139 }
 0x108   :  { %1270 = vst.msk [vmem:[#allocation2 + $0xf8] sm:$0xf] %vm1207_vm3, %v1140_v5  ;;  %v1694_v12 = vpop.permute.xlu1 %1693 }
 0x109   :  { %1803 = vrot.lane.b32.xlu0 %v1666_v3, %s8426_s26  ;;  %1885 = vst.msk [vmem:[#allocation2 + $0x4] sm:$0xf] %vm1883_vm8, %v1694_v12 }
 0x10a   :  { %1809 = vrot.lane.b32.xlu1 %v1676_v6, %s8426_s26  ;;  %v7621_v6 = vld [vmem:[%s14048_s0 + $0x88] sm:$0xf] }
 0x10b   :  { %v1692_v16 = vpop.permute.xlu0 %1691 }
 0x10c   :  { %1884 = vst.msk [vmem:[#allocation2] sm:$0xf] %vm1883_vm8, %v1692_v16  ;;  %v1698_v21 = vpop.permute.xlu1 %1697 }
 0x10d   :  { %1807 = vrot.lane.b32.xlu0 %v1673_v14, %s8426_s26  ;;  %1887 = vst.msk [vmem:[#allocation2 + $0xc] sm:$0xf] %vm1883_vm8, %v1698_v21  ;;  %v7626_v21 = vld [vmem:[%s14048_s0 + $0xa8] sm:$0xf] }
 0x10e   :  { %1813 = vrot.lane.b32.xlu1 %v1683_v17, %s8426_s26  ;;  %v7624_v17 = vld [vmem:[%s14048_s0 + $0x9c] sm:$0xf] }
 0x10f   :  { %v1696_v25 = vpop.permute.xlu0 %1695 }
 0x110   :  { %1886 = vst.msk [vmem:[#allocation2 + $0x8] sm:$0xf] %vm1883_vm8, %v1696_v25  ;;  %v1702_v27 = vpop.permute.xlu1 %1701 }
 0x111   :  { %1811 = vrot.lane.b32.xlu0 %v1680_v22, %s8426_s26  ;;  %1889 = vst.msk [vmem:[#allocation2 + $0x14] sm:$0xf] %vm1883_vm8, %v1702_v27 }
 0x112   :  { %1817 = vrot.lane.b32.xlu1 %v1690_v11, %s8426_s26  ;;  %v7628_v11 = vld [vmem:[%s14048_s0 + $0xb4] sm:$0xf] }
 0x113   :  { %v1700_v29 = vpop.permute.xlu0 %1699 }
 0x114   :  { %1888 = vst.msk [vmem:[#allocation2 + $0x10] sm:$0xf] %vm1883_vm8, %v1700_v29  ;;  %v1706_v31 = vpop.permute.xlu1 %1705 }
 0x115   :  { %1815 = vrot.lane.b32.xlu0 %v1687_v28, %s8426_s26  ;;  %1891 = vst.msk [vmem:[#allocation2 + $0x1c] sm:$0xf] %vm1883_vm8, %v1706_v31  ;;  %v7631_v28 = vld [vmem:[%s14048_s0 + $0xc4] sm:$0xf] }
 0x116   :  { %2079 = vrot.lane.b32.xlu1 %v7601_v30, %s8427_s29  ;;  %v7630_v30 = vld [vmem:[%s14048_s0 + $0xc0] sm:$0xf] }
 0x117   :  { %v1704_v33 = vpop.permute.xlu0 %1703 }
 0x118   :  { %1890 = vst.msk [vmem:[#allocation2 + $0x18] sm:$0xf] %vm1883_vm8, %v1704_v33  ;;  %v1710_v35 = vpop.permute.xlu1 %1709 }
 0x119   :  { %2077 = vrot.lane.b32.xlu0 %v7600_v32, %s8427_s29  ;;  %1893 = vst.msk [vmem:[#allocation2 + $0x24] sm:$0xf] %vm1883_vm8, %v1710_v35  ;;  %v7633_v32 = vld [vmem:[%s14048_s0 + $0xe8] sm:$0xf] }
 0x11a   :  { %2083 = vrot.lane.b32.xlu1 %v7603_v34, %s8427_s29  ;;  %v7632_v34 = vld [vmem:[%s14048_s0 + $0xe4] sm:$0xf] }
 0x11b   :  { %v1708_v37 = vpop.permute.xlu0 %1707 }
 0x11c   :  { %1892 = vst.msk [vmem:[#allocation2 + $0x20] sm:$0xf] %vm1883_vm8, %v1708_v37  ;;  %v1714_v39 = vpop.permute.xlu1 %1713 }
 0x11d   :  { %2081 = vrot.lane.b32.xlu0 %v7602_v36, %s8427_s29  ;;  %1895 = vst.msk [vmem:[#allocation2 + $0x2c] sm:$0xf] %vm1883_vm8, %v1714_v39  ;;  %v7635_v36 = vld [vmem:[%s14048_s0 + $0xf4] sm:$0xf] }
 0x11e   :  { %2087 = vrot.lane.b32.xlu1 %v7605_v38, %s8427_s29  ;;  %v7634_v38 = vld [vmem:[%s14048_s0 + $0xf0] sm:$0xf] }
 0x11f   :  { %v1712_v41 = vpop.permute.xlu0 %1711 }
 0x120   :  { %1894 = vst.msk [vmem:[#allocation2 + $0x28] sm:$0xf] %vm1883_vm8, %v1712_v41  ;;  %v1718_v43 = vpop.permute.xlu1 %1717 }
 0x121   :  { %2085 = vrot.lane.b32.xlu0 %v7604_v40, %s8427_s29  ;;  %1897 = vst.msk [vmem:[#allocation2 + $0x34] sm:$0xf] %vm1883_vm8, %v1718_v43  ;;  %v7637_v40 = vld [vmem:[%s14048_s0 + $0x100] sm:$0xf] }
 0x122   :  { %2091 = vrot.lane.b32.xlu1 %v7607_v42, %s8427_s29  ;;  %v7636_v42 = vld [vmem:[%s14048_s0 + $0xfc] sm:$0xf] }
 0x123   :  { %v1716_v45 = vpop.permute.xlu0 %1715 }
 0x124   :  { %1896 = vst.msk [vmem:[#allocation2 + $0x30] sm:$0xf] %vm1883_vm8, %v1716_v45  ;;  %v1722_v47 = vpop.permute.xlu1 %1721 }
 0x125   :  { %2089 = vrot.lane.b32.xlu0 %v7606_v44, %s8427_s29  ;;  %1899 = vst.msk [vmem:[#allocation2 + $0x3c] sm:$0xf] %vm1883_vm8, %v1722_v47  ;;  %v7639_v44 = vld [vmem:[%s14048_s0 + $0x10c] sm:$0xf] }
 0x126   :  { %2095 = vrot.lane.b32.xlu1 %v7609_v46, %s8427_s29  ;;  %v7638_v46 = vld [vmem:[%s14048_s0 + $0x108] sm:$0xf] }
 0x127   :  { %v1720_v49 = vpop.permute.xlu0 %1719 }
 0x128   :  { %1898 = vst.msk [vmem:[#allocation2 + $0x38] sm:$0xf] %vm1883_vm8, %v1720_v49  ;;  %v1726_v51 = vpop.permute.xlu1 %1725 }
 0x129   :  { %2093 = vrot.lane.b32.xlu0 %v7608_v48, %s8427_s29  ;;  %1901 = vst.msk [vmem:[#allocation2 + $0x44] sm:$0xf] %vm1883_vm8, %v1726_v51  ;;  %v7641_v48 = vld [vmem:[%s14048_s0 + $0x118] sm:$0xf] }
 0x12a   :  { %2099 = vrot.lane.b32.xlu1 %v7611_v50, %s8427_s29  ;;  %v7640_v50 = vld [vmem:[%s14048_s0 + $0x114] sm:$0xf] }
 0x12b   :  { %v1724_v53 = vpop.permute.xlu0 %1723 }
 0x12c   :  { %1900 = vst.msk [vmem:[#allocation2 + $0x40] sm:$0xf] %vm1883_vm8, %v1724_v53  ;;  %v1730_v56 = vpop.permute.xlu1 %1729 }
 0x12d   :  { %2097 = vrot.lane.b32.xlu0 %v7610_v52, %s8427_s29  ;;  %1903 = vst.msk [vmem:[#allocation2 + $0x4c] sm:$0xf] %vm1883_vm8, %v1730_v56  ;;  %v7643_v52 = vld [vmem:[%s14048_s0 + $0x124] sm:$0xf] }
 0x12e   :  { %2103 = vrot.lane.b32.xlu1 %v7613_v55, %s8427_s29  ;;  %v7642_v55 = vld [vmem:[%s14048_s0 + $0x120] sm:$0xf] }
 0x12f   :  { %v1728_v58 = vpop.permute.xlu0 %1727 }
 0x130   :  { %1902 = vst.msk [vmem:[#allocation2 + $0x48] sm:$0xf] %vm1883_vm8, %v1728_v58  ;;  %v1734_v60 = vpop.permute.xlu1 %1733 }
 0x131   :  { %2101 = vrot.lane.b32.xlu0 %v7612_v57, %s8427_s29  ;;  %1905 = vst.msk [vmem:[#allocation2 + $0x54] sm:$0xf] %vm1883_vm8, %v1734_v60  ;;  %v7645_v57 = vld [vmem:[%s14048_s0 + $0x130] sm:$0xf] }
 0x132   :  { %2107 = vrot.lane.b32.xlu1 %v7615_v59, %s8427_s29  ;;  %v7644_v59 = vld [vmem:[%s14048_s0 + $0x12c] sm:$0xf] }
 0x133   :  { %v1732_v62 = vpop.permute.xlu0 %1731 }
 0x134   :  { %1904 = vst.msk [vmem:[#allocation2 + $0x50] sm:$0xf] %vm1883_vm8, %v1732_v62  ;;  %v1738_v0 = vpop.permute.xlu1 %1737 }
 0x135   :  { %2105 = vrot.lane.b32.xlu0 %v7614_v61, %s8427_s29  ;;  %1907 = vst.msk [vmem:[#allocation2 + $0x5c] sm:$0xf] %vm1883_vm8, %v1738_v0  ;;  %v7647_v61 = vld [vmem:[%s14048_s0 + $0x13c] sm:$0xf] }
 0x136   :  { %2111 = vrot.lane.b32.xlu1 %v7617_v63, %s8427_s29  ;;  %v7646_v63 = vld [vmem:[%s14048_s0 + $0x138] sm:$0xf] }
 0x137   :  { %v1736_v1 = vpop.permute.xlu0 %1735 }
 0x138   :  { %1906 = vst.msk [vmem:[#allocation2 + $0x58] sm:$0xf] %vm1883_vm8, %v1736_v1  ;;  %v1742_v3 = vpop.permute.xlu1 %1741 }
 0x139   :  { %2109 = vrot.lane.b32.xlu0 %v7616_v54, %s8427_s29  ;;  %1909 = vst.msk [vmem:[#allocation2 + $0x64] sm:$0xf] %vm1883_vm8, %v1742_v3  ;;  %v7649_v54 = vld [vmem:[%s14048_s0 + $0x148] sm:$0xf] }
 0x13a   :  { %2115 = vrot.lane.b32.xlu1 %v7619_v2, %s8427_s29  ;;  %v7648_v2 = vld [vmem:[%s14048_s0 + $0x144] sm:$0xf] }
 0x13b   :  { %v1740_v5 = vpop.permute.xlu0 %1739 }
 0x13c   :  { %1908 = vst.msk [vmem:[#allocation2 + $0x60] sm:$0xf] %vm1883_vm8, %v1740_v5  ;;  %v1746_v7 = vpop.permute.xlu1 %1745 }
 0x13d   :  { %2113 = vrot.lane.b32.xlu0 %v7618_v4, %s8427_s29  ;;  %1911 = vst.msk [vmem:[#allocation2 + $0x6c] sm:$0xf] %vm1883_vm8, %v1746_v7  ;;  %v7651_v4 = vld [vmem:[%s14048_s0 + $0x154] sm:$0xf] }
 0x13e   :  { %2119 = vrot.lane.b32.xlu1 %v7621_v6, %s8427_s29  ;;  %v7650_v6 = vld [vmem:[%s14048_s0 + $0x150] sm:$0xf] }
 0x13f   :  { %v1744_v9 = vpop.permute.xlu0 %1743 }
 0x140   :  { %1910 = vst.msk [vmem:[#allocation2 + $0x68] sm:$0xf] %vm1883_vm8, %v1744_v9  ;;  %v1750_v12 = vpop.permute.xlu1 %1749 }
 0x141   :  { %2117 = vrot.lane.b32.xlu0 %v7620_v8, %s8427_s29  ;;  %1913 = vst.msk [vmem:[#allocation2 + $0x74] sm:$0xf] %vm1883_vm8, %v1750_v12  ;;  %v7653_v8 = vld [vmem:[%s14048_s0 + $0x160] sm:$0xf]  ;;  %v7652_v12 = vld [vmem:[%s14048_s0 + $0x15c] sm:$0xf] }
 0x142   :  { %2123 = vrot.lane.b32.xlu1 %v7623_v10, %s8427_s29  ;;  %v7665_v10 = vld [vmem:[%s14048_s0 + $0x10] sm:$0xf] }
 0x143   :  { %v1748_v14 = vpop.permute.xlu0 %1747 }
 0x144   :  { %1912 = vst.msk [vmem:[#allocation2 + $0x70] sm:$0xf] %vm1883_vm8, %v1748_v14  ;;  %v1754_v16 = vpop.permute.xlu1 %1753  ;;  %v7655_v14 = vld [vmem:[%s14048_s0 + $0x16c] sm:$0xf] }
 0x145   :  { %2121 = vrot.lane.b32.xlu0 %v7622_v13, %s8427_s29  ;;  %1915 = vst.msk [vmem:[#allocation2 + $0x7c] sm:$0xf] %vm1883_vm8, %v1754_v16  ;;  %v2440_v16 = vshll.u32 %v7665_v10, 16 }
 0x146   :  { %2127 = vrot.lane.b32.xlu1 %v7625_v15, %s8427_s29 }
 0x147   :  { %v1752_v18 = vpop.permute.xlu0 %1751 }
 0x148   :  { %1914 = vst.msk [vmem:[#allocation2 + $0x78] sm:$0xf] %vm1883_vm8, %v1752_v18  ;;  %v1758_v19 = vpop.permute.xlu1 %1757  ;;  %v7654_v18 = vld [vmem:[%s14048_s0 + $0x168] sm:$0xf] }
 0x149   :  { %2125 = vrot.lane.b32.xlu0 %v7624_v17, %s8427_s29  ;;  %1917 = vst.msk [vmem:[#allocation2 + $0x84] sm:$0xf] %vm1883_vm8, %v1758_v19  ;;  %v2444_v17 = vshrl.u32 %v7665_v10, 16  ;;  %v7657_v19 = vld [vmem:[%s14048_s0 + $0x178] sm:$0xf] }
 0x14a   :  { %2131 = vrot.lane.b32.xlu1 %v7627_v20, %s8427_s29  ;;  %v7664_v20 = vld [vmem:[%s14048_s0 + $0xc] sm:$0xf] }
 0x14b   :  { %v1756_v22 = vpop.permute.xlu0 %1755 }
 0x14c   :  { %1916 = vst.msk [vmem:[#allocation2 + $0x80] sm:$0xf] %vm1883_vm8, %v1756_v22  ;;  %v1762_v25 = vpop.permute.xlu1 %1761  ;;  %v7667_v22 = vld [vmem:[%s14048_s0 + $0x18] sm:$0xf] }
 0x14d   :  { %2129 = vrot.lane.b32.xlu0 %v7626_v21, %s8427_s29  ;;  %1919 = vst.msk [vmem:[#allocation2 + $0x8c] sm:$0xf] %vm1883_vm8, %v1762_v25  ;;  %v7668_v21 = vld [vmem:[%s14048_s0 + $0x1c] sm:$0xf]  ;;  %v7671_v25 = vld [vmem:[%s14048_s0 + $0x28] sm:$0xf] }
 0x14e   :  { %2135 = vrot.lane.b32.xlu1 %v7629_v24, %s8427_s29 }
 0x14f   :  { %v1760_v27 = vpop.permute.xlu0 %1759 }
 0x150   :  { %1918 = vst.msk [vmem:[#allocation2 + $0x88] sm:$0xf] %vm1883_vm8, %v1760_v27  ;;  %v1766_v29 = vpop.permute.xlu1 %1765 }
 0x151   :  { %2133 = vrot.lane.b32.xlu0 %v7628_v11, %s8427_s29  ;;  %1921 = vst.msk [vmem:[#allocation2 + $0x94] sm:$0xf] %vm1883_vm8, %v1766_v29  ;;  %v7670_v11 = vld [vmem:[%s14048_s0 + $0x24] sm:$0xf]  ;;  %v2446_v29 = vrot.slane %v2444_v17, 4 }
 0x152   :  { %2139 = vrot.lane.b32.xlu1 %v7631_v28, %s8427_s29  ;;  %v10165_v28 = vrot.slane %v2440_v16, 5 }
 0x153   :  { %v1764_v31 = vpop.permute.xlu0 %1763 }
 0x154   :  { %1920 = vst.msk [vmem:[#allocation2 + $0x90] sm:$0xf] %vm1883_vm8, %v1764_v31  ;;  %v1770_v33 = vpop.permute.xlu1 %1769  ;;  %v2434_v31 = vshll.u32 %v7664_v20, 16 }
 0x155   :  { %2137 = vrot.lane.b32.xlu0 %v7630_v30, %s8427_s29  ;;  %1923 = vst.msk [vmem:[#allocation2 + $0x9c] sm:$0xf] %vm1883_vm8, %v1770_v33  ;;  %v2431_v30 = vshrl.u32 %v7664_v20, 16  ;;  %v7666_v33 = vld [vmem:[%s14048_s0 + $0x14] sm:$0x1] }
 0x156   :  { %2143 = vrot.lane.b32.xlu1 %v7633_v32, %s8427_s29  ;;  %v7674_v32 = vld [vmem:[%s14048_s0 + $0x34] sm:$0xf] }
 0x157   :  { %v1768_v35 = vpop.permute.xlu0 %1767 }
 0x158   :  { %1922 = vst.msk [vmem:[#allocation2 + $0x98] sm:$0xf] %vm1883_vm8, %v1768_v35  ;;  %v1774_v37 = vpop.permute.xlu1 %1773  ;;  %v2468_v35 = vshrl.u32 %v7668_v21, 16 }
 0x159   :  { %2141 = vrot.lane.b32.xlu0 %v7632_v34, %s8427_s29  ;;  %1925 = vst.msk [vmem:[#allocation2 + $0xa4] sm:$0xf] %vm1883_vm8, %v1774_v37  ;;  %v2464_v34 = vshll.u32 %v7668_v21, 16  ;;  %v2458_v37 = vshll.u32 %v7667_v22, 16  ;;  %v7663_v21 = vld [vmem:[%s14048_s0 + $0x19c] sm:$0xf] }
 0x15a   :  { %2147 = vrot.lane.b32.xlu1 %v7635_v36, %s8427_s29  ;;  %v2455_v36 = vshrl.u32 %v7667_v22, 16 }
 0x15b   :  { %v1772_v39 = vpop.permute.xlu0 %1771 }
 0x15c   :  { %1924 = vst.msk [vmem:[#allocation2 + $0xa0] sm:$0xf] %vm1883_vm8, %v1772_v39  ;;  %v1778_v41 = vpop.permute.xlu1 %1777  ;;  %v2488_v39 = vshll.u32 %v7671_v25, 16 }
 0x15d   :  { %2145 = vrot.lane.b32.xlu0 %v7634_v38, %s8427_s29  ;;  %1927 = vst.msk [vmem:[#allocation2 + $0xac] sm:$0xf] %vm1883_vm8, %v1778_v41  ;;  %v7656_v38 = vld [vmem:[%s14048_s0 + $0x174] sm:$0xf]  ;;  %v2479_v41 = vshrl.u32 %v7670_v11, 16 }
 0x15e   :  { %2151 = vrot.lane.b32.xlu1 %v7637_v40, %s8427_s29  ;;  %v2492_v40 = vshrl.u32 %v7671_v25, 16 }
 0x15f   :  { %v1776_v43 = vpop.permute.xlu0 %1775 }
 0x160   :  { %1926 = vst.msk [vmem:[#allocation2 + $0xa8] sm:$0xf] %vm1883_vm8, %v1776_v43  ;;  %v1782_v45 = vpop.permute.xlu1 %1781 }
 0x161   :  { %2149 = vrot.lane.b32.xlu0 %v7636_v42, %s8427_s29  ;;  %1929 = vst.msk [vmem:[#allocation2 + $0xb4] sm:$0xf] %vm1883_vm8, %v1782_v45  ;;  %v2482_v42 = vshll.u32 %v7670_v11, 16  ;;  %v2512_v45 = vshll.u32 %v7674_v32, 16 }
 0x162   :  { %2155 = vrot.lane.b32.xlu1 %v7639_v44, %s8427_s29  ;;  %v7659_v44 = vld [vmem:[%s14048_s0 + $0x184] sm:$0xf] }
 0x163   :  { %v1780_v47 = vpop.permute.xlu0 %1779 }
 0x164   :  { %1928 = vst.msk [vmem:[#allocation2 + $0xb0] sm:$0xf] %vm1883_vm8, %v1780_v47  ;;  %v1786_v49 = vpop.permute.xlu1 %1785 }
 0x165   :  { %2153 = vrot.lane.b32.xlu0 %v7638_v46, %s8427_s29  ;;  %1931 = vst.msk [vmem:[#allocation2 + $0xbc] sm:$0xf] %vm1883_vm8, %v1786_v49  ;;  %v2516_v46 = vshrl.u32 %v7674_v32, 16  ;;  %v2447_v49 = vor.u32 %v2446_v29, %v10165_v28  ;;  %v7662_v29 = vld [vmem:[%s14048_s0 + $0x198] sm:$0xf] }
 0x166   :  { %2159 = vrot.lane.b32.xlu1 %v7641_v48, %s8427_s29  ;;  %v7658_v48 = vld [vmem:[%s14048_s0 + $0x180] sm:$0xf] }
 0x167   :  { %v1784_v51 = vpop.permute.xlu0 %1783  ;;  %v2448_v16 = vrot.slane %v2447_v49, 4 }
 0x168   :  { %1930 = vst.msk [vmem:[#allocation2 + $0xb8] sm:$0xf] %vm1883_vm8, %v1784_v51  ;;  %v1790_v53 = vpop.permute.xlu1 %1789  ;;  %v2433_v51 = vrot.slane %v2431_v30, 4 }
 0x169   :  { %2157 = vrot.lane.b32.xlu0 %v7640_v50, %s8427_s29  ;;  %1933 = vst.msk [vmem:[#allocation2 + $0xc4] sm:$0xf] %vm1883_vm8, %v1790_v53  ;;  %v2450_v50 = vshll.u32 %v7666_v33, 16  ;;  %v7673_v53 = vld [vmem:[%s14048_s0 + $0x30] sm:$0xf] }
 0x16a   :  { %2163 = vrot.lane.b32.xlu1 %v7643_v52, %s8427_s29  ;;  %v2436_v52 = vrot.slane %v2434_v31, 5  ;;  %v7676_v33 = vld [vmem:[%s14048_s0 + $0x3c] sm:$0xf] }
 0x16b   :  { %v1788_v56 = vpop.permute.xlu0 %1787  ;;  %v2452_v17 = vrot.slane %v2450_v50, 5 }
 0x16c   :  { %1932 = vst.msk [vmem:[#allocation2 + $0xc0] sm:$0xf] %vm1883_vm8, %v1788_v56  ;;  %v1794_v58 = vpop.permute.xlu1 %1793  ;;  %v10195_v56 = vrot.slane %v2464_v34, 5 }
 0x16d   :  { %2161 = vrot.lane.b32.xlu0 %v7642_v55, %s8427_s29  ;;  %1935 = vst.msk [vmem:[#allocation2 + $0xcc] sm:$0xf] %vm1883_vm8, %v1794_v58  ;;  %v7669_v55 = vld [vmem:[%s14048_s0 + $0x20] sm:$0x1]  ;;  %v2457_v58 = vrot.slane %v2455_v36, 4 }
 0x16e   :  { %2167 = vrot.lane.b32.xlu1 %v7645_v57, %s8427_s29  ;;  %v2470_v57 = vrot.slane %v2468_v35, 4  ;;  %v2474_v10 = vshll.u32 %v7669_v55, 16 }
 0x16f   :  { %v1792_v60 = vpop.permute.xlu0 %1791 }
 0x170   :  { %1934 = vst.msk [vmem:[#allocation2 + $0xc8] sm:$0xf] %vm1883_vm8, %v1792_v60  ;;  %v1798_v62 = vpop.permute.xlu1 %1797  ;;  %v7672_v60 = vld [vmem:[%s14048_s0 + $0x2c] sm:$0x1]  ;;  %v2476_v35 = vrot.slane %v2474_v10, 5 }
 0x171   :  { %2165 = vrot.lane.b32.xlu0 %v7644_v59, %s8427_s29  ;;  %1937 = vst.msk [vmem:[#allocation2 + $0xd4] sm:$0xf] %vm1883_vm8, %v1798_v62  ;;  %v2460_v59 = vrot.slane %v2458_v37, 5  ;;  %v2494_v62 = vrot.slane %v2492_v40, 4  ;;  %v7685_v10 = vld [vmem:[%s14048_s0 + $0x60] sm:$0xf] }
 0x172   :  { %2171 = vrot.lane.b32.xlu1 %v7647_v61, %s8427_s29  ;;  %v10201_v61 = vrot.slane %v2488_v39, 5  ;;  %v2453_v39 = vsel %vm8483_vm2, %v2448_v16, %v2452_v17  ;;  %v7689_v16 = vld [vmem:[%s14048_s0 + $0x70] sm:$0xf] }
 0x173   :  { %v1796_v0 = vpop.permute.xlu0 %1795  ;;  %v7681_v17 = vld [vmem:[%s14048_s0 + $0x50] sm:$0x1] }
 0x174   :  { %1936 = vst.msk [vmem:[#allocation2 + $0xd0] sm:$0xf] %vm1883_vm8, %v1796_v0  ;;  %v1802_v1 = vpop.permute.xlu1 %1801  ;;  %v2484_v0 = vrot.slane %v2482_v42, 5  ;;  %v7680_v42 = vld [vmem:[%s14048_s0 + $0x4c] sm:$0xf] }
 0x175   :  { %2169 = vrot.lane.b32.xlu0 %v7646_v63, %s8427_s29  ;;  %1939 = vst.msk [vmem:[#allocation2 + $0xdc] sm:$0xf] %vm1883_vm8, %v1802_v1  ;;  %v2481_v63 = vrot.slane %v2479_v41, 4  ;;  %v7661_v1 = vld [vmem:[%s14048_s0 + $0x190] sm:$0xf]  ;;  %v2560_v55 = vshll.u32 %v7680_v42, 16 }
 0x176   :  { %2175 = vrot.lane.b32.xlu1 %v7649_v54, %s8427_s29 }
 0x177   :  { %v1800_v3 = vpop.permute.xlu0 %1799  ;;  %v2485_v20 = vor.u32 %v2484_v0, %v2481_v63 }
 0x178   :  { %1938 = vst.msk [vmem:[#allocation2 + $0xd8] sm:$0xf] %vm1883_vm8, %v1800_v3  ;;  %v1806_v5 = vpop.permute.xlu1 %1805  ;;  %v2518_v3 = vrot.slane %v2516_v46, 4 }
 0x179   :  { %2173 = vrot.lane.b32.xlu0 %v7648_v2, %s8427_s29  ;;  %1941 = vst.msk [vmem:[#allocation2 + $0xe4] sm:$0xf] %vm1883_vm8, %v1806_v5  ;;  %v10206_v2 = vrot.slane %v2512_v45, 5  ;;  %v2506_v5 = vshll.u32 %v7673_v53, 16  ;;  %v10248_v41 = vrot.slane %v2485_v20, 4 }
 0x17a   :  { %2179 = vrot.lane.b32.xlu1 %v7651_v4, %s8427_s29  ;;  %v2503_v4 = vshrl.u32 %v7673_v53, 16  ;;  %v2530_v53 = vshll.u32 %v7676_v33, 16 }
 0x17b   :  { %v1804_v7 = vpop.permute.xlu0 %1803  ;;  %v2519_v22 = vor.u32 %v2518_v3, %v10206_v2  ;;  %v2508_v11 = vrot.slane %v2506_v5, 5 }
 0x17c   :  { %1940 = vst.msk [vmem:[#allocation2 + $0xe0] sm:$0xf] %vm1883_vm8, %v1804_v7  ;;  %v1810_v9 = vpop.permute.xlu1 %1809  ;;  %v2437_v7 = vor.u32 %v2436_v52, %v2433_v51  ;;  %v2505_v25 = vrot.slane %v2503_v4, 4  ;;  %v7683_v4 = vld [vmem:[%s14048_s0 + $0x58] sm:$0xf] }
 0x17d   :  { %2177 = vrot.lane.b32.xlu0 %v7650_v6, %s8427_s29  ;;  %1943 = vst.msk [vmem:[#allocation2 + $0xec] sm:$0xf] %vm1883_vm8, %v1810_v9  ;;  %v2471_v9 = vor.u32 %v2470_v57, %v10195_v56  ;;  %v10256_v45 = vrot.slane %v2519_v22, 4  ;;  %v2564_v57 = vshrl.u32 %v7680_v42, 16  ;;  %v2588_v20 = vshrl.u32 %v7683_v4, 16 }
 0x17e   :  { %2183 = vrot.lane.b32.xlu1 %v7653_v8, %s8427_s29  ;;  %v7675_v8 = vld [vmem:[%s14048_s0 + $0x38] sm:$0x1]  ;;  %v2438_v30 = vrot.slane %v2437_v7, 4 }
 0x17f   :  { %v1808_v13 = vpop.permute.xlu0 %1807  ;;  %v2472_v34 = vrot.slane %v2471_v9, 4  ;;  %v7686_v9 = vld [vmem:[%s14048_s0 + $0x64] sm:$0xf] }
 0x180   :  { %1942 = vst.msk [vmem:[#allocation2 + $0xe8] sm:$0xf] %vm1883_vm8, %v1808_v13  ;;  %v1814_v15 = vpop.permute.xlu1 %1813  ;;  %v2498_v13 = vshll.u32 %v7672_v60, 16  ;;  %v2443_v60 = vsel %vm8483_vm2, %v2438_v30, %v10165_v28 }
 0x181   :  { %2181 = vrot.lane.b32.xlu0 %v7652_v12, %s8427_s29  ;;  %1945 = vst.msk [vmem:[#allocation2 + $0xf4] sm:$0xf] %vm1883_vm8, %v1814_v15  ;;  %v2461_v12 = vor.u32 %v2460_v59, %v2457_v58  ;;  %v7660_v15 = vld [vmem:[%s14048_s0 + $0x18c] sm:$0xf] }
 0x182   :  { %2187 = vrot.lane.b32.xlu1 %v7655_v14, %s8427_s29  ;;  %v7677_v14 = vld [vmem:[%s14048_s0 + $0x40] sm:$0xf]  ;;  %v10238_v37 = vrot.slane %v2498_v13, 5  ;;  %v2566_v13 = vrot.slane %v2564_v57, 4 }
 0x183   :  { %v1812_v24 = vpop.permute.xlu0 %1811  ;;  %v2536_v31 = vshll.u32 %v7677_v14, 16  ;;  %v2540_v32 = vshrl.u32 %v7677_v14, 16  ;;  %v10236_v36 = vrot.slane %v2461_v12, 4  ;;  %v10309_v12 = vrot.slane %v2560_v55, 5 }
 0x184   :  { %1944 = vst.msk [vmem:[#allocation2 + $0xf0] sm:$0xf] %vm1883_vm8, %v1812_v24  ;;  %v1818_v27 = vpop.permute.xlu1 %1817  ;;  %v2522_v24 = vshll.u32 %v7675_v8, 16  ;;  %v2532_v8 = vrot.slane %v2530_v53, 5 }
 0x185   :  { %2185 = vrot.lane.b32.xlu0 %v7654_v18, %s8427_s29  ;;  %1947 = vst.msk [vmem:[#allocation2 + $0xfc] sm:$0xf] %vm1883_vm8, %v1818_v27  ;;  %v2495_v18 = vor.u32 %v2494_v62, %v10201_v61  ;;  %v10261_v50 = vrot.slane %v2536_v31, 5  ;;  %v2542_v51 = vrot.slane %v2540_v32, 4  ;;  %v2477_v62 = vsel %vm8483_vm2, %v2472_v34, %v2476_v35 }
 0x186   :  { %2191 = vrot.lane.b32.xlu1 %v7657_v19, %s8427_s29  ;;  %v10258_v46 = vrot.slane %v2522_v24, 5  ;;  %v2467_v63 = vsel %vm8483_vm2, %v10236_v36, %v10195_v56  ;;  %v7682_v56 = vld [vmem:[%s14048_s0 + $0x54] sm:$0xf]  ;;  %v2608_v24 = vshll.u32 %v7686_v9, 16  ;;  %v2632_v32 = vshll.u32 %v7689_v16, 16 }
 0x187   :  { %v1816_v43 = vpop.permute.xlu0 %1815  ;;  %v10246_v40 = vrot.slane %v2495_v18, 4  ;;  %v2584_v18 = vshll.u32 %v7683_v4, 16  ;;  %v2567_v35 = vor.u32 %v2566_v13, %v10309_v12  ;;  %v2570_v36 = vshll.u32 %v7681_v17, 16 }
 0x188   :  { %1946 = vst.msk [vmem:[#allocation2 + $0xf8] sm:$0xf] %vm1883_vm8, %v1816_v43  ;;  %v2080_v47 = vpop.permute.xlu1 %2079  ;;  %v7679_v43 = vld [vmem:[%s14048_s0 + $0x48] sm:$0xf] }
 0x189   :  { %2189 = vrot.lane.b32.xlu0 %v7656_v38, %s8427_s29  ;;  %2271 = vst.msk [vmem:[#allocation2 + $0x4] sm:$0xf] %vm2269_vm9, %v2080_v47  ;;  %v7678_v38 = vld [vmem:[%s14048_s0 + $0x44] sm:$0x1]  ;;  %v2509_v47 = vor.u32 %v2508_v11, %v2505_v25  ;;  %v2551_v58 = vshrl.u32 %v7679_v43, 16  ;;  %v2554_v59 = vshll.u32 %v7679_v43, 16 }
 0x18a   :  { %2195 = vrot.lane.b32.xlu1 %v7659_v44, %s8427_s29  ;;  %v2546_v52 = vshll.u32 %v7678_v38, 16  ;;  %v2612_v25 = vshrl.u32 %v7686_v9, 16  ;;  %v2599_v11 = vshrl.u32 %v7685_v10, 16  ;;  %v7688_v38 = vld [vmem:[%s14048_s0 + $0x6c] sm:$0xf] }
 0x18b   :  { %v2078_v54 = vpop.permute.xlu0 %2077  ;;  %v10283_v28 = vrot.slane %v2509_v47, 4  ;;  %v2553_v14 = vrot.slane %v2551_v58, 4  ;;  %v2623_v55 = vshrl.u32 %v7688_v38, 16  ;;  %v2626_v57 = vshll.u32 %v7688_v38, 16 }
 0x18c   :  { %2270 = vst.msk [vmem:[#allocation2] sm:$0xf] %vm2269_vm9, %v2078_v54  ;;  %v2084_v6 = vpop.permute.xlu1 %2083  ;;  %v2501_v54 = vsel %vm8483_vm2, %v10246_v40, %v10238_v37  ;;  %v10299_v7 = vrot.slane %v2546_v52, 5  ;;  %v2590_v40 = vrot.slane %v2588_v20, 4  ;;  %v2601_v47 = vrot.slane %v2599_v11, 4 }
 0x18d   :  { %2193 = vrot.lane.b32.xlu0 %v7658_v48, %s8427_s29  ;;  %2273 = vst.msk [vmem:[#allocation2 + $0xc] sm:$0xf] %vm2269_vm9, %v2084_v6  ;;  %v2527_v48 = vshrl.u32 %v7676_v33, 16  ;;  %v2543_v6 = vor.u32 %v2542_v51, %v10261_v50  ;;  %v2515_v30 = vsel %vm8483_vm2, %v10283_v28, %v10206_v2  ;;  %v2636_v33 = vshrl.u32 %v7689_v16, 16  ;;  %v7684_v2 = vld [vmem:[%s14048_s0 + $0x5c] sm:$0x1] }
 0x18e   :  { %2199 = vrot.lane.b32.xlu1 %v7661_v1, %s8427_s29  ;;  %v2491_v1 = vsel %vm8483_vm2, %v10248_v41, %v10201_v61  ;;  %v2525_v61 = vsel %vm8483_vm2, %v10256_v45, %v10258_v46  ;;  %v10339_v45 = vrot.slane %v2608_v24, 5  ;;  %v2614_v46 = vrot.slane %v2612_v25, 4  ;;  %v7690_v51 = vld [vmem:[%s14048_s0 + $0x74] sm:$0x1] }
 0x18f   :  { %v2082_v19 = vpop.permute.xlu0 %2081  ;;  %v10285_v3 = vrot.slane %v2527_v48, 4  ;;  %v2544_v31 = vrot.slane %v2543_v6, 4  ;;  %v10345_v52 = vrot.slane %v2632_v32, 5  ;;  %v2638_v53 = vrot.slane %v2636_v33, 4 }
 0x190   :  { %2272 = vst.msk [vmem:[#allocation2 + $0x8] sm:$0xf] %vm2269_vm9, %v2082_v19  ;;  %v2088_v27 = vpop.permute.xlu1 %2087  ;;  %v2575_v19 = vshrl.u32 %v7682_v56, 16  ;;  %v2625_v9 = vrot.slane %v2623_v55, 4 }
 0x191   :  { %2197 = vrot.lane.b32.xlu0 %v7660_v15, %s8427_s29  ;;  %2275 = vst.msk [vmem:[#allocation2 + $0x14] sm:$0xf] %vm2269_vm9, %v2088_v27  ;;  %v2556_v15 = vrot.slane %v2554_v59, 5  ;;  %v2602_v27 = vshll.u32 %v7685_v10, 16  ;;  %v2533_v34 = vor.u32 %v2532_v8, %v10285_v3  ;;  %v2549_v58 = vsel %vm8483_vm2, %v2544_v31, %v10299_v7  ;;  %v7691_v3 = vld [vmem:[%s14048_s0 + $0x78] sm:$0xf] }
 0x192   :  { %2203 = vrot.lane.b32.xlu1 %v7663_v21, %s8427_s29  ;;  %v2578_v21 = vshll.u32 %v7682_v56, 16  ;;  %v2577_v41 = vrot.slane %v2575_v19, 4  ;;  %v2615_v56 = vor.u32 %v2614_v46, %v10339_v45  ;;  %v2642_v7 = vshll.u32 %v7690_v51, 16 }
 0x193   :  { %v2086_v44 = vpop.permute.xlu0 %2085  ;;  %v2557_v37 = vor.u32 %v2556_v15, %v2553_v14  ;;  %v2604_v48 = vrot.slane %v2602_v27, 5  ;;  %v2534_v59 = vrot.slane %v2533_v34, 4  ;;  %v2628_v10 = vrot.slane %v2626_v57, 5 }
 0x194   :  { %2274 = vst.msk [vmem:[#allocation2 + $0x10] sm:$0xf] %vm2269_vm9, %v2086_v44  ;;  %v2092_v49 = vpop.permute.xlu1 %2091  ;;  %v2580_v42 = vrot.slane %v2578_v21, 5  ;;  %v7687_v44 = vld [vmem:[%s14048_s0 + $0x68] sm:$0x1]  ;;  %v2647_v17 = vshrl.u32 %v7691_v3, 16 }
 0x195   :  { %2201 = vrot.lane.b32.xlu0 %v7662_v29, %s8427_s29  ;;  %2277 = vst.msk [vmem:[#allocation2 + $0x1c] sm:$0xf] %vm2269_vm9, %v2092_v49  ;;  %v2605_v6 = vor.u32 %v2604_v48, %v2601_v47  ;;  %v2539_v14 = vsel %vm8483_vm2, %v2534_v59, %v10261_v50  ;;  %v7693_v21 = vld [vmem:[%s14048_s0 + $0x80] sm:$0x1]  ;;  %v7695_v50 = vld [vmem:[%s14048_s0 + $0x88] sm:$0xf]  ;;  %v2629_v33 = vor.u32 %v2628_v10, %v2625_v9 }
 0x196   :  { %3200 = vrot.lane.b32.xlu1 %v2453_v39, %s8428_s21  ;;  %v10334_v39 = vrot.slane %v2584_v18, 5  ;;  %v2581_v28 = vor.u32 %v2580_v42, %v2577_v41  ;;  %v10383_v11 = vrot.slane %v2615_v56, 4  ;;  %v10395_v32 = vrot.slane %v2642_v7, 5  ;;  %v7696_v56 = vld [vmem:[%s14048_s0 + $0x8c] sm:$0x1] }
 0x197   :  { %v2090_v0 = vpop.permute.xlu0 %2089  ;;  %v2649_v38 = vrot.slane %v2647_v17, 4  ;;  %v2684_v41 = vshrl.u32 %v7695_v50, 16  ;;  %v10419_v57 = vrot.slane %v2629_v33, 4  ;;  %v7699_v9 = vld [vmem:[%s14048_s0 + $0x98] sm:$0x1] }
 0x198   :  { %2276 = vst.msk [vmem:[#allocation2 + $0x18] sm:$0xf] %vm2269_vm9, %v2090_v0  ;;  %v2096_v5 = vpop.permute.xlu1 %2095  ;;  %v2568_v0 = vrot.slane %v2567_v35, 4  ;;  %v2582_v25 = vrot.slane %v2581_v28, 4  ;;  %v7698_v35 = vld [vmem:[%s14048_s0 + $0x94] sm:$0xf] }
 0x199   :  { %3198 = vrot.lane.b32.xlu0 %v2443_v60, %s8428_s21  ;;  %2279 = vst.msk [vmem:[#allocation2 + $0x24] sm:$0xf] %vm2269_vm9, %v2096_v5  ;;  %v2572_v60 = vrot.slane %v2570_v36, 5  ;;  %v2618_v5 = vshll.u32 %v7687_v44, 16  ;;  %v2704_v47 = vshll.u32 %v7698_v35, 16  ;;  %v2708_v48 = vshrl.u32 %v7698_v35, 16 }
 0x19a   :  { %3204 = vrot.lane.b32.xlu1 %v2477_v62, %s8428_s21  ;;  %v2594_v62 = vshll.u32 %v7684_v2, 16  ;;  %v2680_v2 = vshll.u32 %v7695_v50, 16  ;;  %v2587_v51 = vsel %vm8483_vm2, %v2582_v25, %v10334_v39 }
 0x19b   :  { %v2094_v22 = vpop.permute.xlu0 %2093  ;;  %v2573_v18 = vsel %vm8483_vm2, %v2568_v0, %v2572_v60  ;;  %v10385_v27 = vrot.slane %v2618_v5, 5  ;;  %v10448_v5 = vrot.slane %v2704_v47, 5 }
 0x19c   :  { %2278 = vst.msk [vmem:[#allocation2 + $0x20] sm:$0xf] %vm2269_vm9, %v2094_v22  ;;  %v2100_v29 = vpop.permute.xlu1 %2099  ;;  %v2596_v15 = vrot.slane %v2594_v62, 5  ;;  %v2650_v22 = vshll.u32 %v7691_v3, 16  ;;  %v7701_v62 = vld [vmem:[%s14048_s0 + $0xa0] sm:$0xf] }
 0x19d   :  { %3202 = vrot.lane.b32.xlu0 %v2467_v63, %s8428_s21  ;;  %2281 = vst.msk [vmem:[#allocation2 + $0x2c] sm:$0xf] %vm2269_vm9, %v2100_v29  ;;  %v7692_v63 = vld [vmem:[%s14048_s0 + $0x7c] sm:$0xf]  ;;  %v10387_v29 = vrot.slane %v2605_v6, 4  ;;  %v2710_v6 = vrot.slane %v2708_v48, 4 }
 0x19e   :  { %3208 = vrot.lane.b32.xlu1 %v2501_v54, %s8428_s21  ;;  %v10356_v54 = vrot.slane %v2557_v37, 4  ;;  %v2656_v13 = vshll.u32 %v7692_v63, 16  ;;  %v2660_v16 = vshrl.u32 %v7692_v63, 16  ;;  %v2666_v37 = vshll.u32 %v7693_v21, 16  ;;  %v7700_v63 = vld [vmem:[%s14048_s0 + $0x9c] sm:$0xf] }
 0x19f   :  { %v2098_v43 = vpop.permute.xlu0 %2097  ;;  %v2611_v55 = vsel %vm8483_vm2, %v10387_v29, %v10339_v45  ;;  %v10433_v45 = vrot.slane %v2680_v2, 5  ;;  %v7704_v3 = vld [vmem:[%s14048_s0 + $0xac] sm:$0xf]  ;;  %v2728_v10 = vshll.u32 %v7701_v62, 16 }
 0x1a0   :  { %2280 = vst.msk [vmem:[#allocation2 + $0x28] sm:$0xf] %vm2269_vm9, %v2098_v43  ;;  %v2104_v49 = vpop.permute.xlu1 %2103  ;;  %v2563_v20 = vsel %vm8483_vm2, %v10356_v54, %v10309_v12  ;;  %v7694_v12 = vld [vmem:[%s14048_s0 + $0x84] sm:$0xf]  ;;  %v10397_v34 = vrot.slane %v2656_v13, 5  ;;  %v2662_v36 = vrot.slane %v2660_v16, 4  ;;  %v2635_v16 = vsel %vm8483_vm2, %v10419_v57, %v10345_v52 }
 0x1a1   :  { %3206 = vrot.lane.b32.xlu0 %v2491_v1, %s8428_s21  ;;  %2283 = vst.msk [vmem:[#allocation2 + $0x34] sm:$0xf] %vm2269_vm9, %v2104_v49  ;;  %v2591_v1 = vor.u32 %v2590_v40, %v10334_v39  ;;  %v2652_v40 = vrot.slane %v2650_v22, 5  ;;  %v2671_v42 = vshrl.u32 %v7694_v12, 16  ;;  %v2674_v43 = vshll.u32 %v7694_v12, 16 }
 0x1a2   :  { %3212 = vrot.lane.b32.xlu1 %v2525_v61, %s8428_s21  ;;  %v2639_v61 = vor.u32 %v2638_v53, %v10345_v52  ;;  %v2621_v53 = vsel %vm8483_vm2, %v10383_v11, %v10385_v27  ;;  %v2663_v59 = vor.u32 %v2662_v36, %v10397_v34  ;;  %v10431_v60 = vrot.slane %v2666_v37, 5  ;;  %v7705_v36 = vld [vmem:[%s14048_s0 + $0xb0] sm:$0x1] }
 0x1a3   :  { %v2102_v4 = vpop.permute.xlu0 %2101  ;;  %v2592_v19 = vrot.slane %v2591_v1, 4  ;;  %v2653_v0 = vor.u32 %v2652_v40, %v2649_v38  ;;  %v2686_v54 = vrot.slane %v2684_v41, 4  ;;  %v2673_v1 = vrot.slane %v2671_v42, 4 }
 0x1a4   :  { %2282 = vst.msk [vmem:[#allocation2 + $0x30] sm:$0xf] %vm2269_vm9, %v2102_v4  ;;  %v2108_v8 = vpop.permute.xlu1 %2107  ;;  %v10393_v31 = vrot.slane %v2639_v61, 4  ;;  %v2676_v28 = vrot.slane %v2674_v43, 5  ;;  %v2732_v13 = vshrl.u32 %v7701_v62, 16  ;;  %v2664_v17 = vrot.slane %v2663_v59, 4 }
 0x1a5   :  { %3210 = vrot.lane.b32.xlu0 %v2515_v30, %s8428_s21  ;;  %2285 = vst.msk [vmem:[#allocation2 + $0x3c] sm:$0xf] %vm2269_vm9, %v2108_v8  ;;  %v2597_v46 = vsel %vm8483_vm2, %v2592_v19, %v2596_v15  ;;  %v2722_v15 = vshll.u32 %v7700_v63, 16  ;;  %v10461_v19 = vrot.slane %v2653_v0, 4  ;;  %v2687_v21 = vor.u32 %v2686_v54, %v10433_v45 }
 0x1a6   :  { %3216 = vrot.lane.b32.xlu1 %v2549_v58, %s8428_s21  ;;  %v7697_v58 = vld [vmem:[%s14048_s0 + $0x90] sm:$0xf]  ;;  %v2645_v39 = vsel %vm8483_vm2, %v10393_v31, %v10395_v32  ;;  %v2690_v22 = vshll.u32 %v7696_v56, 16  ;;  %v2677_v50 = vor.u32 %v2676_v28, %v2673_v1  ;;  %v2711_v11 = vor.u32 %v2710_v6, %v10448_v5 }
 0x1a7   :  { %v2106_v24 = vpop.permute.xlu0 %2105  ;;  %v2695_v7 = vshrl.u32 %v7697_v58, 16  ;;  %v2698_v8 = vshll.u32 %v7697_v58, 16  ;;  %v2714_v27 = vshll.u32 %v7699_v9, 16  ;;  %v10472_v31 = vrot.slane %v2728_v10, 5 }
 0x1a8   :  { %2284 = vst.msk [vmem:[#allocation2 + $0x38] sm:$0xf] %vm2269_vm9, %v2106_v24  ;;  %v2112_v30 = vpop.permute.xlu1 %2111  ;;  %v7703_v24 = vld [vmem:[%s14048_s0 + $0xa8] sm:$0xf]  ;;  %v2734_v32 = vrot.slane %v2732_v13, 4  ;;  %v2724_v35 = vrot.slane %v2722_v15, 5  ;;  %v2669_v41 = vsel %vm8483_vm2, %v2664_v17, %v10431_v60  ;;  %v2659_v42 = vsel %vm8483_vm2, %v10461_v19, %v10397_v34 }
 0x1a9   :  { %3214 = vrot.lane.b32.xlu0 %v2539_v14, %s8428_s21  ;;  %2287 = vst.msk [vmem:[#allocation2 + $0x44] sm:$0xf] %vm2269_vm9, %v2112_v30  ;;  %v2719_v14 = vshrl.u32 %v7700_v63, 16  ;;  %v2697_v52 = vrot.slane %v2695_v7, 4  ;;  %v2700_v29 = vrot.slane %v2698_v8, 5  ;;  %v2743_v2 = vshrl.u32 %v7703_v24, 16 }
 0x1aa   :  { %3220 = vrot.lane.b32.xlu1 %v2573_v18, %s8428_s21  ;;  %v2752_v18 = vshll.u32 %v7704_v3, 16  ;;  %v7702_v30 = vld [vmem:[%s14048_s0 + $0xa4] sm:$0x1]  ;;  %v2746_v40 = vshll.u32 %v7703_v24, 16  ;;  %v2688_v43 = vrot.slane %v2687_v21, 4  ;;  %v2678_v48 = vrot.slane %v2677_v50, 4 }
 0x1ab   :  { %v2110_v44 = vpop.permute.xlu0 %2109  ;;  %v2721_v33 = vrot.slane %v2719_v14, 4  ;;  %v2735_v57 = vor.u32 %v2734_v32, %v10472_v31  ;;  %v2738_v58 = vshll.u32 %v7702_v30, 16  ;;  %v2762_v59 = vshll.u32 %v7705_v36, 16  ;;  %v7710_v60 = vld [vmem:[%s14048_s0 + $0xc4] sm:$0xf] }
 0x1ac   :  { %2286 = vst.msk [vmem:[#allocation2 + $0x40] sm:$0xf] %vm2269_vm9, %v2110_v44  ;;  %v2116_v49 = vpop.permute.xlu1 %2115  ;;  %v10479_v37 = vrot.slane %v2752_v18, 5  ;;  %v2692_v44 = vrot.slane %v2690_v22, 5  ;;  %v2745_v63 = vrot.slane %v2743_v2, 4  ;;  %v2748_v0 = vrot.slane %v2746_v40, 5 }
 0x1ad   :  { %3218 = vrot.lane.b32.xlu0 %v2563_v20, %s8428_s21  ;;  %2289 = vst.msk [vmem:[#allocation2 + $0x4c] sm:$0xf] %vm2269_vm9, %v2116_v49  ;;  %v2756_v20 = vshrl.u32 %v7704_v3, 16  ;;  %v10492_v49 = vrot.slane %v2711_v11, 4  ;;  %v2683_v6 = vsel %vm8483_vm2, %v2678_v48, %v10433_v45  ;;  %v7708_v8 = vld [vmem:[%s14048_s0 + $0xbc] sm:$0x1] }
 0x1ae   :  { %3224 = vrot.lane.b32.xlu1 %v2597_v46, %s8428_s21  ;;  %v7707_v46 = vld [vmem:[%s14048_s0 + $0xb8] sm:$0xf]  ;;  %v2693_v1 = vsel %vm8483_vm2, %v2688_v43, %v2692_v44  ;;  %v2804_v9 = vshrl.u32 %v7710_v60, 16  ;;  %v2736_v14 = vrot.slane %v2735_v57, 4  ;;  %v2740_v15 = vrot.slane %v2738_v58, 5 }
 0x1af   :  { %v2114_v4 = vpop.permute.xlu0 %2113  ;;  %v2758_v38 = vrot.slane %v2756_v20, 4  ;;  %v2776_v54 = vshll.u32 %v7707_v46, 16  ;;  %v2780_v28 = vshrl.u32 %v7707_v46, 16  ;;  %v7709_v45 = vld [vmem:[%s14048_s0 + $0xc0] sm:$0xf]  ;;  %v10530_v18 = vrot.slane %v2762_v59, 5 }
 0x1b0   :  { %2288 = vst.msk [vmem:[#allocation2 + $0x48] sm:$0xf] %vm2269_vm9, %v2114_v4  ;;  %v2120_v61 = vpop.permute.xlu1 %2119  ;;  %v2749_v20 = vor.u32 %v2748_v0, %v2745_v63  ;;  %v7713_v21 = vld [vmem:[%s14048_s0 + $0xe8] sm:$0xf]  ;;  %v2786_v50 = vshll.u32 %v7708_v8, 16 }
 0x1b1   :  { %3222 = vrot.lane.b32.xlu0 %v2587_v51, %s8428_s21  ;;  %2291 = vst.msk [vmem:[#allocation2 + $0x54] sm:$0xf] %vm2269_vm9, %v2120_v61  ;;  %v10494_v51 = vrot.slane %v2714_v27, 5  ;;  %v2759_v62 = vor.u32 %v2758_v38, %v10479_v37  ;;  %v2800_v61 = vshll.u32 %v7710_v60, 16  ;;  %v10532_v19 = vrot.slane %v2776_v54, 5 }
 0x1b2   :  { %3228 = vrot.lane.b32.xlu1 %v2621_v53, %s8428_s21  ;;  %v2701_v53 = vor.u32 %v2700_v29, %v2697_v52  ;;  %v2782_v22 = vrot.slane %v2780_v28, 4  ;;  %v2806_v52 = vrot.slane %v2804_v9, 4  ;;  %v2791_v29 = vshrl.u32 %v7709_v45, 16  ;;  %v7711_v32 = vld [vmem:[%s14048_s0 + $0xc8] sm:$0x1] }
 0x1b3   :  { %v2118_v25 = vpop.permute.xlu0 %2117  ;;  %v2717_v7 = vsel %vm8483_vm2, %v10492_v49, %v10494_v51  ;;  %v10528_v17 = vrot.slane %v2759_v62, 4  ;;  %v10538_v27 = vrot.slane %v2800_v61, 5  ;;  %v2741_v38 = vsel %vm8483_vm2, %v2736_v14, %v2740_v15  ;;  %v7715_v46 = vld [vmem:[%s14048_s0 + $0xf0] sm:$0xf]  ;;  %v7714_v60 = vld [vmem:[%s14048_s0 + $0xec] sm:$0x1] }
 0x1b4   :  { %2290 = vst.msk [vmem:[#allocation2 + $0x50] sm:$0xf] %vm2269_vm9, %v2118_v25  ;;  %v2124_v12 = vpop.permute.xlu1 %2123  ;;  %v2702_v13 = vrot.slane %v2701_v53, 4  ;;  %v10566_v43 = vrot.slane %v2786_v50, 5  ;;  %v2810_v49 = vshll.u32 %v7711_v32, 16  ;;  %v2793_v51 = vrot.slane %v2791_v29, 4 }
 0x1b5   :  { %3226 = vrot.lane.b32.xlu0 %v2611_v55, %s8428_s21  ;;  %2293 = vst.msk [vmem:[#allocation2 + $0x5c] sm:$0xf] %vm2269_vm9, %v2124_v12  ;;  %v7706_v55 = vld [vmem:[%s14048_s0 + $0xb4] sm:$0xf]  ;;  %v2794_v12 = vshll.u32 %v7709_v45, 16  ;;  %v2765_v40 = vsel %vm8483_vm2, %v10528_v17, %v10530_v18  ;;  %v2807_v48 = vor.u32 %v2806_v52, %v10538_v27  ;;  %v2839_v0 = vshrl.u32 %v7715_v46, 16 }
 0x1b6   :  { %3232 = vrot.lane.b32.xlu1 %v2645_v39, %s8428_s21  ;;  %v2725_v39 = vor.u32 %v2724_v35, %v2721_v33  ;;  %v2767_v3 = vshrl.u32 %v7706_v55, 16  ;;  %v2770_v4 = vshll.u32 %v7706_v55, 16  ;;  %v2824_v33 = vshll.u32 %v7713_v21, 16  ;;  %v7719_v55 = vld [vmem:[%s14048_s0 + $0x100] sm:$0xf] }
 0x1b7   :  { %v2122_v47 = vpop.permute.xlu0 %2121  ;;  %v2828_v35 = vshrl.u32 %v7713_v21, 16  ;;  %v2707_v36 = vsel %vm8483_vm2, %v2702_v13, %v10448_v5  ;;  %v10563_v5 = vrot.slane %v2749_v20, 4  ;;  %v2796_v53 = vrot.slane %v2794_v12, 5  ;;  %v7718_v9 = vld [vmem:[%s14048_s0 + $0xfc] sm:$0xf] }
 0x1b8   :  { %2292 = vst.msk [vmem:[#allocation2 + $0x58] sm:$0xf] %vm2269_vm9, %v2122_v47  ;;  %v2128_v34 = vpop.permute.xlu1 %2127  ;;  %v2769_v24 = vrot.slane %v2767_v3, 4  ;;  %v2772_v25 = vrot.slane %v2770_v4, 5  ;;  %v10579_v57 = vrot.slane %v2824_v33, 5  ;;  %v2842_v54 = vshll.u32 %v7715_v46, 16 }
 0x1b9   :  { %3230 = vrot.lane.b32.xlu0 %v2635_v16, %s8428_s21  ;;  %2295 = vst.msk [vmem:[#allocation2 + $0x64] sm:$0xf] %vm2269_vm9, %v2128_v34  ;;  %v10521_v16 = vrot.slane %v2725_v39, 4  ;;  %v2830_v58 = vrot.slane %v2828_v35, 4  ;;  %v2872_v3 = vshll.u32 %v7719_v55, 16  ;;  %v2876_v4 = vshrl.u32 %v7719_v55, 16 }
 0x1ba   :  { %3236 = vrot.lane.b32.xlu1 %v2669_v41, %s8428_s21  ;;  %v7712_v41 = vld [vmem:[%s14048_s0 + $0xe4] sm:$0xf]  ;;  %v2773_v44 = vor.u32 %v2772_v25, %v2769_v24  ;;  %v10593_v8 = vrot.slane %v2810_v49, 5  ;;  %v2797_v61 = vor.u32 %v2796_v53, %v2793_v51  ;;  %v2841_v18 = vrot.slane %v2839_v0, 4  ;;  %v7717_v21 = vld [vmem:[%s14048_s0 + $0xf8] sm:$0x1] }
 0x1bb   :  { %v2126_v56 = vpop.permute.xlu0 %2125  ;;  %v2731_v2 = vsel %vm8483_vm2, %v10521_v16, %v10472_v31  ;;  %v7716_v31 = vld [vmem:[%s14048_s0 + $0xf4] sm:$0xf]  ;;  %v2815_v39 = vshrl.u32 %v7712_v41, 16  ;;  %v2818_v59 = vshll.u32 %v7712_v41, 16  ;;  %v2831_v13 = vor.u32 %v2830_v58, %v10579_v57  ;;  %v7722_v16 = vld [vmem:[%s14048_s0 + $0x10c] sm:$0xf] }
 0x1bc   :  { %2294 = vst.msk [vmem:[#allocation2 + $0x60] sm:$0xf] %vm2269_vm9, %v2126_v56  ;;  %v2132_v10 = vpop.permute.xlu1 %2131  ;;  %v2848_v62 = vshll.u32 %v7716_v31, 16  ;;  %v2852_v63 = vshrl.u32 %v7716_v31, 16  ;;  %v2844_v20 = vrot.slane %v2842_v54, 5  ;;  %v2878_v50 = vrot.slane %v2876_v4, 4 }
 0x1bd   :  { %3234 = vrot.lane.b32.xlu0 %v2659_v42, %s8428_s21  ;;  %2297 = vst.msk [vmem:[#allocation2 + $0x6c] sm:$0xf] %vm2269_vm9, %v2132_v10  ;;  %v2783_v42 = vor.u32 %v2782_v22, %v10532_v19  ;;  %v2817_v14 = vrot.slane %v2815_v39, 4  ;;  %v2820_v15 = vrot.slane %v2818_v59, 5  ;;  %v10611_v22 = vrot.slane %v2872_v3, 5 }
 0x1be   :  { %3240 = vrot.lane.b32.xlu1 %v2693_v1, %s8428_s21  ;;  %v2755_v1 = vsel %vm8483_vm2, %v10563_v5, %v10479_v37  ;;  %v2834_v37 = vshll.u32 %v7714_v60, 16  ;;  %v10605_v45 = vrot.slane %v2848_v62, 5  ;;  %v2854_v17 = vrot.slane %v2852_v63, 4  ;;  %v7720_v12 = vld [vmem:[%s14048_s0 + $0x104] sm:$0x1] }
 0x1bf   :  { %v2130_v11 = vpop.permute.xlu0 %2129  ;;  %v2784_v28 = vrot.slane %v2783_v42, 4  ;;  %v2863_v24 = vshrl.u32 %v7718_v9, 16  ;;  %v2866_v25 = vshll.u32 %v7718_v9, 16  ;;  %v2900_v32 = vshrl.u32 %v7722_v16, 16  ;;  %v7723_v39 = vld [vmem:[%s14048_s0 + $0x110] sm:$0x1] }
 0x1c0   :  { %2296 = vst.msk [vmem:[#allocation2 + $0x68] sm:$0xf] %vm2269_vm9, %v2130_v11  ;;  %v2136_v30 = vpop.permute.xlu1 %2135  ;;  %v2855_v41 = vor.u32 %v2854_v17, %v10605_v45  ;;  %v2858_v5 = vshll.u32 %v7717_v21, 16  ;;  %v2845_v42 = vor.u32 %v2844_v20, %v2841_v18  ;;  %v2882_v31 = vshll.u32 %v7720_v12, 16 }
 0x1c1   :  { %3238 = vrot.lane.b32.xlu0 %v2683_v6, %s8428_s21  ;;  %2299 = vst.msk [vmem:[#allocation2 + $0x74] sm:$0xf] %vm2269_vm9, %v2136_v30  ;;  %v2774_v6 = vrot.slane %v2773_v44, 4  ;;  %v2789_v52 = vsel %vm8483_vm2, %v2784_v28, %v10566_v43  ;;  %v2896_v30 = vshll.u32 %v7722_v16, 16  ;;  %v7725_v43 = vld [vmem:[%s14048_s0 + $0x118] sm:$0xf]  ;;  %v2879_v44 = vor.u32 %v2878_v50, %v10611_v22 }
 0x1c2   :  { %3244 = vrot.lane.b32.xlu1 %v2717_v7, %s8428_s21  ;;  %v10591_v7 = vrot.slane %v2807_v48, 4  ;;  %v2865_v46 = vrot.slane %v2863_v24, 4  ;;  %v2902_v51 = vrot.slane %v2900_v32, 4  ;;  %v2920_v59 = vshll.u32 %v7725_v43, 16  ;;  %v7726_v16 = vld [vmem:[%s14048_s0 + $0x11c] sm:$0x1] }
 0x1c3   :  { %v2134_v47 = vpop.permute.xlu0 %2133  ;;  %v2779_v29 = vsel %vm8483_vm2, %v2774_v6, %v10532_v19  ;;  %v7721_v19 = vld [vmem:[%s14048_s0 + $0x108] sm:$0xf]  ;;  %v10638_v49 = vrot.slane %v2896_v30, 5  ;;  %v2924_v60 = vshrl.u32 %v7725_v43, 16  ;;  %v2856_v0 = vrot.slane %v2855_v41, 4 }
 0x1c4   :  { %2298 = vst.msk [vmem:[#allocation2 + $0x70] sm:$0xf] %vm2269_vm9, %v2134_v47  ;;  %v2140_v34 = vpop.permute.xlu1 %2139  ;;  %v2813_v35 = vsel %vm8483_vm2, %v10591_v7, %v10593_v8  ;;  %v2868_v47 = vrot.slane %v2866_v25, 5  ;;  %v2887_v53 = vshrl.u32 %v7721_v19, 16  ;;  %v2890_v55 = vshll.u32 %v7721_v19, 16 }
 0x1c5   :  { %3242 = vrot.lane.b32.xlu0 %v2707_v36, %s8428_s21  ;;  %2301 = vst.msk [vmem:[#allocation2 + $0x7c] sm:$0xf] %vm2269_vm9, %v2140_v34  ;;  %v2798_v36 = vrot.slane %v2797_v61, 4  ;;  %v2860_v54 = vrot.slane %v2858_v5, 5  ;;  %v10657_v28 = vrot.slane %v2879_v44, 4  ;;  %v10659_v3 = vrot.slane %v2882_v31, 5 }
 0x1c6   :  { %3248 = vrot.lane.b32.xlu1 %v2741_v38, %s8428_s21  ;;  %v2832_v38 = vrot.slane %v2831_v13, 4  ;;  %v2869_v4 = vor.u32 %v2868_v47, %v2865_v46  ;;  %v2903_v7 = vor.u32 %v2902_v51, %v10638_v49  ;;  %v2906_v8 = vshll.u32 %v7723_v39, 16  ;;  %v7727_v25 = vld [vmem:[%s14048_s0 + $0x120] sm:$0xf]  ;;  %v7730_v30 = vld [vmem:[%s14048_s0 + $0x12c] sm:$0xf] }
 0x1c7   :  { %v2138_v56 = vpop.permute.xlu0 %2137  ;;  %v2803_v58 = vsel %vm8483_vm2, %v2798_v36, %v10538_v27  ;;  %v7724_v27 = vld [vmem:[%s14048_s0 + $0x114] sm:$0xf]  ;;  %v2889_v61 = vrot.slane %v2887_v53, 4  ;;  %v2892_v9 = vrot.slane %v2890_v55, 5  ;;  %v10666_v13 = vrot.slane %v2920_v59, 5 }
 0x1c8   :  { %2300 = vst.msk [vmem:[#allocation2 + $0x78] sm:$0xf] %vm2269_vm9, %v2138_v56  ;;  %v2144_v10 = vpop.permute.xlu1 %2143  ;;  %v7728_v56 = vld [vmem:[%s14048_s0 + $0x124] sm:$0xf]  ;;  %v2861_v21 = vsel %vm8483_vm2, %v2856_v0, %v2860_v54  ;;  %v10683_v24 = vrot.slane %v2869_v4, 4  ;;  %v2935_v41 = vshrl.u32 %v7727_v25, 16 }
 0x1c9   :  { %3246 = vrot.lane.b32.xlu0 %v2731_v2, %s8428_s21  ;;  %2303 = vst.msk [vmem:[#allocation2 + $0x84] sm:$0xf] %vm2269_vm9, %v2144_v10  ;;  %v2836_v2 = vrot.slane %v2834_v37, 5  ;;  %v2926_v37 = vrot.slane %v2924_v60, 4  ;;  %v2944_v17 = vshll.u32 %v7728_v56, 16  ;;  %v2948_v18 = vshrl.u32 %v7728_v56, 16 }
 0x1ca   :  { %3252 = vrot.lane.b32.xlu1 %v2765_v40, %s8428_s21  ;;  %v2821_v40 = vor.u32 %v2820_v15, %v2817_v14  ;;  %v2911_v14 = vshrl.u32 %v7724_v27, 16  ;;  %v2914_v15 = vshll.u32 %v7724_v27, 16  ;;  %v2893_v12 = vor.u32 %v2892_v9, %v2889_v61  ;;  %v7737_v27 = vld [vmem:[%s14048_s0 + $0x148] sm:$0xf] }
 0x1cb   :  { %v2142_v11 = vpop.permute.xlu0 %2141  ;;  %v2837_v62 = vsel %vm8483_vm2, %v2832_v38, %v2836_v2  ;;  %v7734_v2 = vld [vmem:[%s14048_s0 + $0x13c] sm:$0xf]  ;;  %v10709_v19 = vrot.slane %v2944_v17, 5  ;;  %v2938_v5 = vshll.u32 %v7727_v25, 16  ;;  %v2959_v31 = vshrl.u32 %v7730_v30, 16 }
 0x1cc   :  { %2302 = vst.msk [vmem:[#allocation2 + $0x80] sm:$0xf] %vm2269_vm9, %v2142_v11  ;;  %v2148_v33 = vpop.permute.xlu1 %2147  ;;  %v2822_v63 = vrot.slane %v2821_v40, 4  ;;  %v2913_v36 = vrot.slane %v2911_v14, 4  ;;  %v2916_v38 = vrot.slane %v2914_v15, 5  ;;  %v2950_v40 = vrot.slane %v2948_v18, 4 }
 0x1cd   :  { %3250 = vrot.lane.b32.xlu0 %v2755_v1, %s8428_s21  ;;  %2305 = vst.msk [vmem:[#allocation2 + $0x8c] sm:$0xf] %vm2269_vm9, %v2148_v33  ;;  %v10655_v1 = vrot.slane %v2845_v42, 4  ;;  %v2927_v33 = vor.u32 %v2926_v37, %v10666_v13  ;;  %v7729_v42 = vld [vmem:[%s14048_s0 + $0x128] sm:$0x1]  ;;  %v2962_v46 = vshll.u32 %v7730_v30, 16 }
 0x1ce   :  { %3256 = vrot.lane.b32.xlu1 %v2789_v52, %s8428_s21  ;;  %v2827_v20 = vsel %vm8483_vm2, %v2822_v63, %v10579_v57  ;;  %v2885_v57 = vsel %vm8483_vm2, %v10657_v28, %v10659_v3  ;;  %v10692_v52 = vrot.slane %v2903_v7, 4  ;;  %v2992_v53 = vshll.u32 %v7734_v2, 16  ;;  %v7735_v14 = vld [vmem:[%s14048_s0 + $0x140] sm:$0x1] }
 0x1cf   :  { %v2146_v48 = vpop.permute.xlu0 %2145  ;;  %v2851_v50 = vsel %vm8483_vm2, %v10655_v1, %v10605_v45  ;;  %v7731_v45 = vld [vmem:[%s14048_s0 + $0x130] sm:$0xf]  ;;  %v2996_v55 = vshrl.u32 %v7734_v2, 16  ;;  %v2928_v39 = vrot.slane %v2927_v33, 4  ;;  %v2917_v60 = vor.u32 %v2916_v38, %v2913_v36 }
 0x1d0   :  { %2304 = vst.msk [vmem:[#allocation2 + $0x88] sm:$0xf] %vm2269_vm9, %v2146_v48  ;;  %v2152_v34 = vpop.permute.xlu1 %2151  ;;  %v2968_v43 = vshll.u32 %v7731_v45, 16  ;;  %v2972_v44 = vshrl.u32 %v7731_v45, 16  ;;  %v2875_v48 = vsel %vm8483_vm2, %v10683_v24, %v10611_v22  ;;  %v2951_v22 = vor.u32 %v2950_v40, %v10709_v19  ;;  %v7738_v40 = vld [vmem:[%s14048_s0 + $0x14c] sm:$0x1] }
 0x1d1   :  { %3254 = vrot.lane.b32.xlu0 %v2779_v29, %s8428_s21  ;;  %2307 = vst.msk [vmem:[#allocation2 + $0x94] sm:$0xf] %vm2269_vm9, %v2152_v34  ;;  %v10694_v29 = vrot.slane %v2906_v8, 5  ;;  %v2954_v63 = vshll.u32 %v7729_v42, 16  ;;  %v2937_v0 = vrot.slane %v2935_v41, 4  ;;  %v2940_v54 = vrot.slane %v2938_v5, 5 }
 0x1d2   :  { %3260 = vrot.lane.b32.xlu1 %v2813_v35, %s8428_s21  ;;  %v2930_v35 = vshll.u32 %v7726_v16, 16  ;;  %v10734_v1 = vrot.slane %v2968_v43, 5  ;;  %v2974_v28 = vrot.slane %v2972_v44, 4  ;;  %v2961_v3 = vrot.slane %v2959_v31, 4 }
 0x1d3   :  { %v2150_v6 = vpop.permute.xlu0 %2149  ;;  %v2909_v51 = vsel %vm8483_vm2, %v10692_v52, %v10694_v29  ;;  %v2964_v4 = vrot.slane %v2962_v46, 5  ;;  %v10739_v7 = vrot.slane %v2992_v53, 5  ;;  %v2998_v8 = vrot.slane %v2996_v55, 4  ;;  %v7739_v46 = vld [vmem:[%s14048_s0 + $0x150] sm:$0xf] }
 0x1d4   :  { %2306 = vst.msk [vmem:[#allocation2 + $0x90] sm:$0xf] %vm2269_vm9, %v2150_v6  ;;  %v2156_v10 = vpop.permute.xlu1 %2155  ;;  %v2932_v59 = vrot.slane %v2930_v35, 5  ;;  %v7732_v6 = vld [vmem:[%s14048_s0 + $0x134] sm:$0x1]  ;;  %v3016_v15 = vshll.u32 %v7737_v27, 16  ;;  %v2975_v24 = vor.u32 %v2974_v28, %v10734_v1 }
 0x1d5   :  { %3258 = vrot.lane.b32.xlu0 %v2803_v58, %s8428_s21  ;;  %2309 = vst.msk [vmem:[#allocation2 + $0x9c] sm:$0xf] %vm2269_vm9, %v2156_v10  ;;  %v2894_v58 = vrot.slane %v2893_v12, 4  ;;  %v3020_v16 = vshrl.u32 %v7737_v27, 16  ;;  %v2918_v18 = vrot.slane %v2917_v60, 4  ;;  %v2978_v25 = vshll.u32 %v7732_v6, 16 }
 0x1d6   :  { %3264 = vrot.lane.b32.xlu1 %v2837_v62, %s8428_s21  ;;  %v7733_v62 = vld [vmem:[%s14048_s0 + $0x138] sm:$0xf]  ;;  %v2933_v17 = vsel %vm8483_vm2, %v2928_v39, %v2932_v59  ;;  %v2999_v29 = vor.u32 %v2998_v8, %v10739_v7  ;;  %v3002_v12 = vshll.u32 %v7735_v14, 16  ;;  %v10762_v33 = vrot.slane %v3016_v15, 5  ;;  %v7743_v60 = vld [vmem:[%s14048_s0 + $0x160] sm:$0xf] }
 0x1d7   :  { %v2154_v11 = vpop.permute.xlu0 %2153  ;;  %v2983_v61 = vshrl.u32 %v7733_v62, 16  ;;  %v2986_v9 = vshll.u32 %v7733_v62, 16  ;;  %v2899_v37 = vsel %vm8483_vm2, %v2894_v58, %v10638_v49  ;;  %v7736_v49 = vld [vmem:[%s14048_s0 + $0x144] sm:$0xf]  ;;  %v3022_v35 = vrot.slane %v3020_v16, 4 }
 0x1d8   :  { %2308 = vst.msk [vmem:[#allocation2 + $0x98] sm:$0xf] %vm2269_vm9, %v2154_v11  ;;  %v2160_v32 = vpop.permute.xlu1 %2159  ;;  %v2965_v11 = vor.u32 %v2964_v4, %v2961_v3  ;;  %v3007_v36 = vshrl.u32 %v7736_v49, 16  ;;  %v3010_v38 = vshll.u32 %v7736_v49, 16  ;;  %v2923_v2 = vsel %vm8483_vm2, %v2918_v18, %v10666_v13  ;;  %v7741_v28 = vld [vmem:[%s14048_s0 + $0x158] sm:$0x1] }
 0x1d9   :  { %3262 = vrot.lane.b32.xlu0 %v2827_v20, %s8428_s21  ;;  %2311 = vst.msk [vmem:[#allocation2 + $0xa4] sm:$0xf] %vm2269_vm9, %v2160_v32  ;;  %v2952_v20 = vrot.slane %v2951_v22, 4  ;;  %v2985_v45 = vrot.slane %v2983_v61, 4  ;;  %v2988_v30 = vrot.slane %v2986_v9, 5  ;;  %v2976_v44 = vrot.slane %v2975_v24, 4 }
 0x1da   :  { %3268 = vrot.lane.b32.xlu1 %v2861_v21, %s8428_s21  ;;  %v2956_v21 = vrot.slane %v2954_v63, 5  ;;  %v2980_v31 = vrot.slane %v2978_v25, 5  ;;  %v2966_v13 = vrot.slane %v2965_v11, 4  ;;  %v3026_v58 = vshll.u32 %v7738_v40, 16  ;;  %v7746_v61 = vld [vmem:[%s14048_s0 + $0x16c] sm:$0xf] }
 0x1db   :  { %v2158_v47 = vpop.permute.xlu0 %2157  ;;  %v2989_v53 = vor.u32 %v2988_v30, %v2985_v45  ;;  %v3009_v39 = vrot.slane %v3007_v36, 4  ;;  %v3012_v59 = vrot.slane %v3010_v38, 5  ;;  %v3031_v63 = vshrl.u32 %v7739_v46, 16  ;;  %v7745_v15 = vld [vmem:[%s14048_s0 + $0x168] sm:$0xf] }
 0x1dc   :  { %2310 = vst.msk [vmem:[#allocation2 + $0xa0] sm:$0xf] %vm2269_vm9, %v2158_v47  ;;  %v2164_v34 = vpop.permute.xlu1 %2163  ;;  %v2957_v42 = vsel %vm8483_vm2, %v2952_v20, %v2956_v21  ;;  %v2981_v27 = vsel %vm8483_vm2, %v2976_v44, %v2980_v31  ;;  %v2971_v4 = vsel %vm8483_vm2, %v2966_v13, %v10734_v1  ;;  %v3064_v6 = vshll.u32 %v7743_v60, 16  ;;  %v7749_v21 = vld [vmem:[%s14048_s0 + $0x178] sm:$0xf] }
 0x1dd   :  { %3266 = vrot.lane.b32.xlu0 %v2851_v50, %s8428_s21  ;;  %2313 = vst.msk [vmem:[#allocation2 + $0xac] sm:$0xf] %vm2269_vm9, %v2164_v34  ;;  %v2941_v50 = vor.u32 %v2940_v54, %v2937_v0  ;;  %v3023_v34 = vor.u32 %v3022_v35, %v10762_v33  ;;  %v3034_v0 = vshll.u32 %v7739_v46, 16  ;;  %v3068_v8 = vshrl.u32 %v7743_v60, 16  ;;  %v7744_v35 = vld [vmem:[%s14048_s0 + $0x164] sm:$0x1] }
 0x1de   :  { %3272 = vrot.lane.b32.xlu1 %v2885_v57, %s8428_s21  ;;  %v7740_v57 = vld [vmem:[%s14048_s0 + $0x154] sm:$0xf]  ;;  %v3013_v14 = vor.u32 %v3012_v59, %v3009_v39  ;;  %v3033_v18 = vrot.slane %v3031_v63, 4  ;;  %v3088_v24 = vshll.u32 %v7746_v61, 16  ;;  %v3092_v25 = vshrl.u32 %v7746_v61, 16 }
 0x1df   :  { %v2162_v56 = vpop.permute.xlu0 %2161  ;;  %v3040_v41 = vshll.u32 %v7740_v57, 16  ;;  %v3044_v5 = vshrl.u32 %v7740_v57, 16  ;;  %v2942_v43 = vrot.slane %v2941_v50, 4  ;;  %v3024_v1 = vrot.slane %v3023_v34, 4  ;;  %v7752_v46 = vld [vmem:[%s14048_s0 + $0x184] sm:$0xf] }
 0x1e0   :  { %2312 = vst.msk [vmem:[#allocation2 + $0xa8] sm:$0xf] %vm2269_vm9, %v2162_v56  ;;  %v2168_v10 = vpop.permute.xlu1 %2167  ;;  %v3036_v20 = vrot.slane %v3034_v0, 5  ;;  %v10824_v57 = vrot.slane %v3064_v6, 5  ;;  %v3112_v36 = vshll.u32 %v7749_v21, 16  ;;  %v3116_v38 = vshrl.u32 %v7749_v21, 16 }
 0x1e1   :  { %3270 = vrot.lane.b32.xlu0 %v2875_v48, %s8428_s21  ;;  %2315 = vst.msk [vmem:[#allocation2 + $0xb4] sm:$0xf] %vm2269_vm9, %v2168_v10  ;;  %v10778_v48 = vrot.slane %v2999_v29, 4  ;;  %v10789_v62 = vrot.slane %v3040_v41, 5  ;;  %v3046_v22 = vrot.slane %v3044_v5, 4  ;;  %v2947_v54 = vsel %vm8483_vm2, %v2942_v43, %v10709_v19 }
 0x1e2   :  { %3276 = vrot.lane.b32.xlu1 %v2909_v51, %s8428_s21  ;;  %v10780_v51 = vrot.slane %v3002_v12, 5  ;;  %v7742_v19 = vld [vmem:[%s14048_s0 + $0x15c] sm:$0xf]  ;;  %v2990_v10 = vrot.slane %v2989_v53, 4  ;;  %v3079_v29 = vshrl.u32 %v7745_v15, 16  ;;  %v3082_v12 = vshll.u32 %v7745_v15, 16 }
 0x1e3   :  { %v2166_v52 = vpop.permute.xlu0 %2165  ;;  %v3047_v16 = vor.u32 %v3046_v22, %v10789_v62  ;;  %v3055_v49 = vshrl.u32 %v7742_v19, 16  ;;  %v3058_v50 = vshll.u32 %v7742_v19, 16  ;;  %v3037_v5 = vor.u32 %v3036_v20, %v3033_v18  ;;  %v7750_v63 = vld [vmem:[%s14048_s0 + $0x17c] sm:$0x1]  ;;  %v7755_v15 = vld [vmem:[%s14048_s0 + $0x190] sm:$0xf] }
 0x1e4   :  { %2314 = vst.msk [vmem:[#allocation2 + $0xb0] sm:$0xf] %vm2269_vm9, %v2166_v52  ;;  %v2172_v32 = vpop.permute.xlu1 %2171  ;;  %v3005_v56 = vsel %vm8483_vm2, %v10778_v48, %v10780_v51  ;;  %v3070_v52 = vrot.slane %v3068_v8, 4  ;;  %v2995_v30 = vsel %vm8483_vm2, %v2990_v10, %v10739_v7  ;;  %v7748_v7 = vld [vmem:[%s14048_s0 + $0x174] sm:$0xf]  ;;  %v10841_v44 = vrot.slane %v3088_v24, 5 }
 0x1e5   :  { %3274 = vrot.lane.b32.xlu0 %v2899_v37, %s8428_s21  ;;  %2317 = vst.msk [vmem:[#allocation2 + $0xbc] sm:$0xf] %vm2269_vm9, %v2172_v32  ;;  %v3028_v37 = vrot.slane %v3026_v58, 5  ;;  %v3048_v40 = vrot.slane %v3047_v16, 4  ;;  %v3060_v43 = vrot.slane %v3058_v50, 5  ;;  %v3094_v31 = vrot.slane %v3092_v25, 4 }
 0x1e6   :  { %3280 = vrot.lane.b32.xlu1 %v2933_v17, %s8428_s21  ;;  %v3050_v17 = vshll.u32 %v7741_v28, 16  ;;  %v3071_v13 = vor.u32 %v3070_v52, %v10824_v57  ;;  %v3074_v48 = vshll.u32 %v7744_v35, 16  ;;  %v7747_v51 = vld [vmem:[%s14048_s0 + $0x170] sm:$0x1]  ;;  %v3081_v53 = vrot.slane %v3079_v29, 4 }
 0x1e7   :  { %v2170_v47 = vpop.permute.xlu0 %2169  ;;  %v3029_v32 = vsel %vm8483_vm2, %v3024_v1, %v3028_v37  ;;  %v10851_v58 = vrot.slane %v3112_v36, 5  ;;  %v3118_v39 = vrot.slane %v3116_v38, 4  ;;  %v3103_v59 = vshrl.u32 %v7748_v7, 16  ;;  %v7753_v25 = vld [vmem:[%s14048_s0 + $0x188] sm:$0x1] }
 0x1e8   :  { %2316 = vst.msk [vmem:[#allocation2 + $0xb8] sm:$0xf] %vm2269_vm9, %v2170_v47  ;;  %v2176_v55 = vpop.permute.xlu1 %2175  ;;  %v3052_v41 = vrot.slane %v3050_v17, 5  ;;  %v3106_v60 = vshll.u32 %v7748_v7, 16  ;;  %v3136_v0 = vshll.u32 %v7752_v46, 16  ;;  %v3072_v8 = vrot.slane %v3071_v13, 4 }
 0x1e9   :  { %3278 = vrot.lane.b32.xlu0 %v2923_v2, %s8428_s21  ;;  %2319 = vst.msk [vmem:[#allocation2 + $0xc4] sm:$0xf] %vm2269_vm9, %v2176_v55  ;;  %v3014_v2 = vrot.slane %v3013_v14, 4  ;;  %v3084_v55 = vrot.slane %v3082_v12, 5  ;;  %v3076_v19 = vrot.slane %v3074_v48, 5  ;;  %v3119_v10 = vor.u32 %v3118_v39, %v10851_v58 }
 0x1ea   :  { %3284 = vrot.lane.b32.xlu1 %v2957_v42, %s8428_s21  ;;  %v3057_v42 = vrot.slane %v3055_v49, 4  ;;  %v3122_v1 = vshll.u32 %v7750_v63, 16  ;;  %v3105_v37 = vrot.slane %v3103_v59, 4  ;;  %v3108_v14 = vrot.slane %v3106_v60, 5  ;;  %v7758_v38 = vld [vmem:[%s14048_s0 + $0x19c] sm:$0xf] }
 0x1eb   :  { %v2174_v3 = vpop.permute.xlu0 %2173  ;;  %v3019_v22 = vsel %vm8483_vm2, %v3014_v2, %v10762_v33  ;;  %v3053_v33 = vsel %vm8483_vm2, %v3048_v40, %v3052_v41  ;;  %v3085_v61 = vor.u32 %v3084_v55, %v3081_v53  ;;  %v10875_v16 = vrot.slane %v3136_v0, 5  ;;  %v7757_v53 = vld [vmem:[%s14048_s0 + $0x198] sm:$0xf]  ;;  %v7756_v39 = vld [vmem:[%s14048_s0 + $0x194] sm:$0x1] }
 0x1ec   :  { %2318 = vst.msk [vmem:[#allocation2 + $0xc0] sm:$0xf] %vm2269_vm9, %v2174_v3  ;;  %v2180_v9 = vpop.permute.xlu1 %2179  ;;  %v3061_v28 = vor.u32 %v3060_v43, %v3057_v42  ;;  %v3095_v3 = vor.u32 %v3094_v31, %v10841_v44  ;;  %v3077_v52 = vsel %vm8483_vm2, %v3072_v8, %v3076_v19  ;;  %v3160_v29 = vshll.u32 %v7755_v15, 16  ;;  %v7759_v8 = vld [vmem:[%s14048_s0 + $0x1a0] sm:$0x1] }
 0x1ed   :  { %3282 = vrot.lane.b32.xlu0 %v2947_v54, %s8428_s21  ;;  %2321 = vst.msk [vmem:[#allocation2 + $0xcc] sm:$0xf] %vm2269_vm9, %v2180_v9  ;;  %v3140_v54 = vshrl.u32 %v7752_v46, 16  ;;  %v3164_v12 = vshrl.u32 %v7755_v15, 16  ;;  %v3124_v35 = vrot.slane %v3122_v1, 5  ;;  %v3109_v36 = vor.u32 %v3108_v14, %v3105_v37 }
 0x1ee   :  { %3288 = vrot.lane.b32.xlu1 %v2981_v27, %s8428_s21  ;;  %v3038_v27 = vrot.slane %v3037_v5, 4  ;;  %v3062_v49 = vrot.slane %v3061_v28, 4  ;;  %v3096_v50 = vrot.slane %v3095_v3, 4  ;;  %v3146_v40 = vshll.u32 %v7753_v25, 16 }
 0x1ef   :  { %v2178_v11 = vpop.permute.xlu0 %2177  ;;  %v3142_v17 = vrot.slane %v3140_v54, 4  ;;  %v3166_v13 = vrot.slane %v3164_v12, 4  ;;  %v3184_v48 = vshll.u32 %v7758_v38, 16  ;;  %v3110_v59 = vrot.slane %v3109_v36, 4 }
 0x1f0   :  { %2320 = vst.msk [vmem:[#allocation2 + $0xc8] sm:$0xf] %vm2269_vm9, %v2178_v11  ;;  %v2184_v45 = vpop.permute.xlu1 %2183  ;;  %v3043_v21 = vsel %vm8483_vm2, %v3038_v27, %v10789_v62  ;;  %v3067_v7 = vsel %vm8483_vm2, %v3062_v49, %v10824_v57  ;;  %v3178_v27 = vshll.u32 %v7757_v53, 16 }
 0x1f1   :  { %3286 = vrot.lane.b32.xlu0 %v2971_v4, %s8428_s21  ;;  %2323 = vst.msk [vmem:[#allocation2 + $0xd4] sm:$0xf] %vm2269_vm9, %v2184_v45  ;;  %v3098_v4 = vshll.u32 %v7747_v51, 16  ;;  %v7754_v45 = vld [vmem:[%s14048_s0 + $0x18c] sm:$0xf]  ;;  %v3143_v2 = vor.u32 %v3142_v17, %v10875_v16  ;;  %v3188_v51 = vshrl.u32 %v7758_v38, 16  ;;  %v3115_v19 = vsel %vm8483_vm2, %v3110_v59, %v10851_v58 }
 0x1f2   :  { %3292 = vrot.lane.b32.xlu1 %v3005_v56, %s8428_s21  ;;  %v7751_v56 = vld [vmem:[%s14048_s0 + $0x180] sm:$0xf]  ;;  %v3151_v43 = vshrl.u32 %v7754_v45, 16  ;;  %v3154_v31 = vshll.u32 %v7754_v45, 16  ;;  %v3180_v37 = vrot.slane %v3178_v27, 5 }
 0x1f3   :  { %v2182_v47 = vpop.permute.xlu0 %2181  ;;  %v3127_v18 = vshrl.u32 %v7751_v56, 16  ;;  %v3130_v20 = vshll.u32 %v7751_v56, 16  ;;  %v3100_v24 = vrot.slane %v3098_v4, 5  ;;  %v3144_v60 = vrot.slane %v3143_v2, 4  ;;  %v7761_v58 = vld [vmem:[%s14048_s0 + $0x10] sm:$0xf] }
 0x1f4   :  { %2322 = vst.msk [vmem:[#allocation2 + $0xd0] sm:$0xf] %vm2269_vm9, %v2182_v47  ;;  %v2188_v34 = vpop.permute.xlu1 %2187  ;;  %v10902_v47 = vrot.slane %v3160_v29, 5  ;;  %v3153_v0 = vrot.slane %v3151_v43, 4  ;;  %v3156_v54 = vrot.slane %v3154_v31, 5  ;;  %v3170_v4 = vshll.u32 %v7756_v39, 16 }
 0x1f5   :  { %3290 = vrot.lane.b32.xlu0 %v2995_v30, %s8428_s21  ;;  %2325 = vst.msk [vmem:[#allocation2 + $0xdc] sm:$0xf] %vm2269_vm9, %v2188_v34  ;;  %v3086_v30 = vrot.slane %v3085_v61, 4  ;;  %v3129_v41 = vrot.slane %v3127_v18, 4  ;;  %v3132_v5 = vrot.slane %v3130_v20, 5  ;;  %v3101_v42 = vsel %vm8483_vm2, %v3096_v50, %v3100_v24 }
 0x1f6   :  { %3296 = vrot.lane.b32.xlu1 %v3029_v32, %s8428_s21  ;;  %v3120_v32 = vrot.slane %v3119_v10, 4  ;;  %v3167_v3 = vor.u32 %v3166_v13, %v10902_v47  ;;  %v10920_v56 = vrot.slane %v3184_v48, 5  ;;  %v3157_v10 = vor.u32 %v3156_v54, %v3153_v0  ;;  %v7766_v54 = vld [vmem:[%s14048_s0 + $0x24] sm:$0xe] }
 0x1f7   :  { %v2186_v6 = vpop.permute.xlu0 %2185  ;;  %v3091_v57 = vsel %vm8483_vm2, %v3086_v30, %v10841_v44  ;;  %v3133_v63 = vor.u32 %v3132_v5, %v3129_v41  ;;  %v3175_v44 = vshrl.u32 %v7757_v53, 16  ;;  %v3172_v17 = vrot.slane %v3170_v4, 5 }
 0x1f8   :  { %2324 = vst.msk [vmem:[#allocation2 + $0xd8] sm:$0xf] %vm2269_vm9, %v2186_v6  ;;  %v2192_v9 = vpop.permute.xlu1 %2191  ;;  %v3125_v34 = vsel %vm8483_vm2, %v3120_v32, %v3124_v35  ;;  %v3190_v6 = vrot.slane %v3188_v51, 4  ;;  %v3168_v15 = vrot.slane %v3167_v3, 4  ;;  %v3194_v20 = vshll.u32 %v7759_v8, 16 }
 0x1f9   :  { %3294 = vrot.lane.b32.xlu0 %v3019_v22, %s8428_s21  ;;  %2327 = vst.msk [vmem:[#allocation2 + $0xe4] sm:$0xf] %vm2269_vm9, %v2192_v9  ;;  %v3148_v22 = vrot.slane %v3146_v40, 5  ;;  %v3134_v9 = vrot.slane %v3133_v63, 4  ;;  %v3177_v1 = vrot.slane %v3175_v44, 4  ;;  %v3158_v50 = vrot.slane %v3157_v10, 4 }
 0x1fa   :  { %3300 = vrot.lane.b32.xlu1 %v3053_v33, %s8428_s21  ;;  %v3191_v18 = vor.u32 %v3190_v6, %v10920_v56  ;;  %v3196_v29 = vrot.slane %v3194_v20, 5  ;;  %v3649_v12 = vrot.slane %v7761_v58, 5  ;;  %v7760_v40 = vld [vmem:[%s14048_s0 + $0xc] sm:$0xe]  ;;  %v7763_v51 = vld [vmem:[%s14048_s0 + $0x18] sm:$0xe] }
 0x1fb   :  { %v2190_v11 = vpop.permute.xlu0 %2189  ;;  %v3149_v61 = vsel %vm8483_vm2, %v3144_v60, %v3148_v22  ;;  %v3139_v49 = vsel %vm8483_vm2, %v3134_v9, %v10875_v16  ;;  %v3181_v24 = vor.u32 %v3180_v37, %v3177_v1  ;;  %v7764_v16 = vld [vmem:[%s14048_s0 + $0x1c] sm:$0xf]  ;;  %v3163_v30 = vsel %vm8483_vm2, %v3158_v50, %v10902_v47  ;;  %v7773_v3 = vld [vmem:[%s14048_s0 + $0x40] sm:$0xf]  ;;  %v7774_v1 = vld [vmem:[%s14048_s0 + $0x44] sm:$0x1] }
 0x1fc   :  { %2326 = vst.msk [vmem:[#allocation2 + $0xe0] sm:$0xf] %vm2269_vm9, %v2190_v11  ;;  %v2196_v62 = vpop.permute.xlu1 %2195  ;;  %v3173_v11 = vsel %vm8483_vm2, %v3168_v15, %v3172_v17  ;;  %v3651_v38 = vrot.slane %v3649_v12, 4  ;;  %v3656_v41 = vrot.slane %v7764_v16, 5  ;;  %v7856_v31 = vrot.slane %v7760_v40, 9 }
 0x1fd   :  { %3298 = vrot.lane.b32.xlu0 %v3043_v21, %s8428_s21  ;;  %2329 = vst.msk [vmem:[#allocation2 + $0xec] sm:$0xf] %vm2269_vm9, %v2196_v62  ;;  %v7762_v62 = vld [vmem:[%s14048_s0 + $0x14] sm:$0x1]  ;;  %v3182_v32 = vrot.slane %v3181_v24, 4  ;;  %v7857_v59 = vrot.slane %v7763_v51, 9 }
 0x1fe   :  { %3304 = vrot.lane.b32.xlu1 %v3077_v52, %s8428_s21  ;;  %v3192_v52 = vrot.slane %v3191_v18, 4  ;;  %v3652_v2 = vrot.slane %v7762_v62, 5  ;;  %v3658_v13 = vrot.slane %v3656_v41, 4  ;;  %v3650_v39 = vsel %vm9171_vm7, %v7856_v31, %v3649_v12  ;;  %v7776_v37 = vld [vmem:[%s14048_s0 + $0x4c] sm:$0xf] }
 0x1ff   :  { %v2194_v46 = vpop.permute.xlu0 %2193  ;;  %v3187_v43 = vsel %vm8483_vm2, %v3182_v32, %v10920_v56  ;;  %v3657_v4 = vsel %vm9171_vm7, %v7857_v59, %v3656_v41  ;;  %v7858_v56 = vrot.slane %v7766_v54, 9  ;;  %v3677_v9 = vrot.slane %v7773_v3, 5  ;;  %v7772_v58 = vld [vmem:[%s14048_s0 + $0x3c] sm:$0xe]  ;;  %v7777_v24 = vld [vmem:[%s14048_s0 + $0x50] sm:$0x1] }
 0x200   :  { %2328 = vst.msk [vmem:[#allocation2 + $0xe8] sm:$0xf] %vm2269_vm9, %v2194_v46  ;;  %v2200_v55 = vpop.permute.xlu1 %2199  ;;  %v3197_v36 = vsel %vm8483_vm2, %v3192_v52, %v3196_v29  ;;  %v3653_v47 = vsel %vm9171_vm7, %v3651_v38, %v3652_v2  ;;  %v7860_v52 = vrot.slane %v7772_v58, 9  ;;  %v3687_v62 = vrot.slane %v7777_v24, 5  ;;  %v7775_v16 = vld [vmem:[%s14048_s0 + $0x48] sm:$0xe] }
 0x201   :  { %3302 = vrot.lane.b32.xlu0 %v3067_v7, %s8428_s21  ;;  %2331 = vst.msk [vmem:[#allocation2 + $0xf4] sm:$0xf] %vm2269_vm9, %v2200_v55  ;;  %v7765_v7 = vld [vmem:[%s14048_s0 + $0x20] sm:$0x1]  ;;  %v3679_v20 = vrot.slane %v3677_v9, 4  ;;  %v7861_v2 = vrot.slane %v7775_v16, 9 }
 0x202   :  { %3308 = vrot.lane.b32.xlu1 %v3101_v42, %s8428_s21  ;;  %v7767_v42 = vld [vmem:[%s14048_s0 + $0x28] sm:$0xf]  ;;  %v3659_v48 = vrot.slane %v7765_v7, 5  ;;  %v3678_v38 = vsel %vm9171_vm7, %v7860_v52, %v3677_v9  ;;  %v7784_v3 = vld [vmem:[%s14048_s0 + $0x6c] sm:$0xe] }
 0x203   :  { %v2198_v28 = vpop.permute.xlu0 %2197  ;;  %v3663_v53 = vrot.slane %v7767_v42, 5  ;;  %v7778_v42 = vld [vmem:[%s14048_s0 + $0x54] sm:$0xe] }
 0x204   :  { %2330 = vst.msk [vmem:[#allocation2 + $0xf0] sm:$0xf] %vm2269_vm9, %v2198_v28  ;;  %v2204_v33 = vpop.permute.xlu1 %2203  ;;  %v3660_v22 = vsel %vm9171_vm7, %v3658_v13, %v3659_v48  ;;  %v7771_v28 = vld [vmem:[%s14048_s0 + $0x38] sm:$0x1]  ;;  %v7862_v48 = vrot.slane %v7778_v42, 9 }
 0x205   :  { %3306 = vrot.lane.b32.xlu0 %v3091_v57, %s8428_s21  ;;  %2333 = vst.msk [vmem:[#allocation2 + $0xfc] sm:$0xf] %vm2269_vm9, %v2204_v33  ;;  %v7768_v57 = vld [vmem:[%s14048_s0 + $0x2c] sm:$0x1]  ;;  %v3665_v63 = vrot.slane %v3663_v53, 4 }
 0x206   :  { %3312 = vrot.lane.b32.xlu1 %v3125_v34, %s8428_s21  ;;  %v7770_v34 = vld [vmem:[%s14048_s0 + $0x34] sm:$0xf]  ;;  %v3666_v0 = vrot.slane %v7768_v57, 5 }
 0x207   :  { %v2202_v14 = vpop.permute.xlu0 %2201  ;;  %v3670_v44 = vrot.slane %v7770_v34, 5  ;;  %v7781_v34 = vld [vmem:[%s14048_s0 + $0x60] sm:$0xe] }
 0x208   :  { %2332 = vst.msk [vmem:[#allocation2 + $0xf8] sm:$0xf] %vm2269_vm9, %v2202_v14  ;;  %v3201_v21 = vpop.permute.xlu1 %3200  ;;  %v3667_v33 = vsel %vm9171_vm7, %v3665_v63, %v3666_v0  ;;  %v3664_v14 = vsel %vm9171_vm7, %v7858_v56, %v3663_v53  ;;  %v7863_v0 = vrot.slane %v7781_v34, 9  ;;  %v7799_v34 = vld [vmem:[%s14048_s0 + $0xa8] sm:$0xe] }
 0x209   :  { %3310 = vrot.lane.b32.xlu0 %v3115_v19, %s8428_s21  ;;  %3392 = vst.msk [vmem:[#allocation2 + $0x4] sm:$0xf] %vm3390_vm10, %v3201_v21  ;;  %v3672_v8 = vrot.slane %v3670_v44, 4  ;;  %v3673_v19 = vrot.slane %v7771_v28, 5  ;;  %v3680_v21 = vrot.slane %v7774_v1, 5 }
 0x20a   :  { %3316 = vrot.lane.b32.xlu1 %v3149_v61, %s8428_s21  ;;  %v7769_v61 = vld [vmem:[%s14048_s0 + $0x30] sm:$0xe] }
 0x20b   :  { %v3199_v25 = vpop.permute.xlu0 %3198  ;;  %v7859_v15 = vrot.slane %v7769_v61, 9  ;;  %v3674_v18 = vsel %vm9171_vm7, %v3672_v8, %v3673_v19  ;;  %v3681_v12 = vsel %vm9171_vm7, %v3679_v20, %v3680_v21  ;;  %v7864_v19 = vrot.slane %v7784_v3, 9 }
 0x20c   :  { %3391 = vst.msk [vmem:[#allocation2] sm:$0xf] %vm3390_vm10, %v3199_v25  ;;  %v3205_v45 = vpop.permute.xlu1 %3204  ;;  %v7779_v25 = vld [vmem:[%s14048_s0 + $0x58] sm:$0xf] }
 0x20d   :  { %3314 = vrot.lane.b32.xlu0 %v3139_v49, %s8428_s21  ;;  %3394 = vst.msk [vmem:[#allocation2 + $0xc] sm:$0xf] %vm3390_vm10, %v3205_v45  ;;  %v3684_v49 = vrot.slane %v7776_v37, 5  ;;  %v7787_v37 = vld [vmem:[%s14048_s0 + $0x78] sm:$0xe] }
 0x20e   :  { %3320 = vrot.lane.b32.xlu1 %v3173_v11, %s8428_s21  ;;  %v3671_v11 = vsel %vm9171_vm7, %v7859_v15, %v3670_v44  ;;  %v7865_v21 = vrot.slane %v7787_v37, 9 }
 0x20f   :  { %v3203_v35 = vpop.permute.xlu0 %3202  ;;  %v3686_v45 = vrot.slane %v3684_v49, 4  ;;  %v3685_v13 = vsel %vm9171_vm7, %v7861_v2, %v3684_v49 }
 0x210   :  { %3393 = vst.msk [vmem:[#allocation2 + $0x8] sm:$0xf] %vm3390_vm10, %v3203_v35  ;;  %v3209_v5 = vpop.permute.xlu1 %3208  ;;  %v7780_v35 = vld [vmem:[%s14048_s0 + $0x5c] sm:$0x1] }
 0x211   :  { %3318 = vrot.lane.b32.xlu0 %v3163_v30, %s8428_s21  ;;  %3396 = vst.msk [vmem:[#allocation2 + $0x14] sm:$0xf] %vm3390_vm10, %v3209_v5  ;;  %v3691_v30 = vrot.slane %v7779_v25, 5  ;;  %v3688_v41 = vsel %vm9171_vm7, %v3686_v45, %v3687_v62  ;;  %v3694_v7 = vrot.slane %v7780_v35, 5  ;;  %v7790_v25 = vld [vmem:[%s14048_s0 + $0x84] sm:$0xe] }
 0x212   :  { %3324 = vrot.lane.b32.xlu1 %v3197_v36, %s8428_s21  ;;  %v7782_v36 = vld [vmem:[%s14048_s0 + $0x64] sm:$0xf]  ;;  %v7866_v62 = vrot.slane %v7790_v25, 9 }
 0x213   :  { %v3207_v46 = vpop.permute.xlu0 %3206  ;;  %v3693_v5 = vrot.slane %v3691_v30, 4  ;;  %v3692_v63 = vsel %vm9171_vm7, %v7862_v48, %v3691_v30 }
 0x214   :  { %3395 = vst.msk [vmem:[#allocation2 + $0x10] sm:$0xf] %vm3390_vm10, %v3207_v46  ;;  %v3213_v55 = vpop.permute.xlu1 %3212  ;;  %v7783_v46 = vld [vmem:[%s14048_s0 + $0x68] sm:$0x1] }
 0x215   :  { %3322 = vrot.lane.b32.xlu0 %v3187_v43, %s8428_s21  ;;  %3398 = vst.msk [vmem:[#allocation2 + $0x1c] sm:$0xf] %vm3390_vm10, %v3213_v55  ;;  %v3698_v43 = vrot.slane %v7782_v36, 5  ;;  %v3695_v53 = vsel %vm9171_vm7, %v3693_v5, %v3694_v7  ;;  %v3701_v57 = vrot.slane %v7783_v46, 5  ;;  %v7793_v36 = vld [vmem:[%s14048_s0 + $0x90] sm:$0xe] }
 0x216   :  { %3873 = vrot.lane.b32.xlu1 %v3653_v47, %s8429_s30  ;;  %v7785_v47 = vld [vmem:[%s14048_s0 + $0x70] sm:$0xf]  ;;  %v7867_v7 = vrot.slane %v7793_v36, 9  ;;  %s8430_s21 = smov 24  }
 0x217   :  { %v3211_v60 = vpop.permute.xlu0 %3210  ;;  %v3700_v55 = vrot.slane %v3698_v43, 4  ;;  %v3699_v8 = vsel %vm9171_vm7, %v7863_v0, %v3698_v43  ;;  %v7806_v0 = vld [vmem:[%s14048_s0 + $0xc4] sm:$0xf] }
 0x218   :  { %3397 = vst.msk [vmem:[#allocation2 + $0x18] sm:$0xf] %vm3390_vm10, %v3211_v60  ;;  %v3217_v27 = vpop.permute.xlu1 %3216  ;;  %v7786_v60 = vld [vmem:[%s14048_s0 + $0x74] sm:$0x1]  ;;  %v3754_v3 = vrot.slane %v7806_v0, 5 }
 0x219   :  { %3871 = vrot.lane.b32.xlu0 %v3650_v39, %s8429_s30  ;;  %3400 = vst.msk [vmem:[#allocation2 + $0x24] sm:$0xf] %vm3390_vm10, %v3217_v27  ;;  %v3705_v39 = vrot.slane %v7785_v47, 5  ;;  %v3702_v44 = vsel %vm9171_vm7, %v3700_v55, %v3701_v57  ;;  %v3708_v28 = vrot.slane %v7786_v60, 5  ;;  %v7796_v47 = vld [vmem:[%s14048_s0 + $0x9c] sm:$0xe] }
 0x21a   :  { %3877 = vrot.lane.b32.xlu1 %v3660_v22, %s8429_s30  ;;  %v7788_v22 = vld [vmem:[%s14048_s0 + $0x7c] sm:$0xf]  ;;  %v7868_v57 = vrot.slane %v7796_v47, 9  ;;  %v3756_v37 = vrot.slane %v3754_v3, 4  ;;  %v7954_v47 = vld [vmem:[%s14048_s0 + $0x20] sm:$0x1] }
 0x21b   :  { %v3215_v6 = vpop.permute.xlu0 %3214  ;;  %v3707_v27 = vrot.slane %v3705_v39, 4  ;;  %v3706_v20 = vsel %vm9171_vm7, %v7864_v19, %v3705_v39  ;;  %v7807_v19 = vld [vmem:[%s14048_s0 + $0xc8] sm:$0x1] }
 0x21c   :  { %3399 = vst.msk [vmem:[#allocation2 + $0x20] sm:$0xf] %vm3390_vm10, %v3215_v6  ;;  %v3221_v10 = vpop.permute.xlu1 %3220  ;;  %v7789_v6 = vld [vmem:[%s14048_s0 + $0x80] sm:$0x1] }
 0x21d   :  { %3875 = vrot.lane.b32.xlu0 %v3657_v4, %s8429_s30  ;;  %3402 = vst.msk [vmem:[#allocation2 + $0x2c] sm:$0xf] %vm3390_vm10, %v3221_v10  ;;  %v3712_v4 = vrot.slane %v7788_v22, 5  ;;  %v3709_v9 = vsel %vm9171_vm7, %v3707_v27, %v3708_v28  ;;  %v3715_v1 = vrot.slane %v7789_v6, 5  ;;  %v7869_v28 = vrot.slane %v7799_v34, 9 }
 0x21e   :  { %3881 = vrot.lane.b32.xlu1 %v3667_v33, %s8429_s30  ;;  %v7791_v33 = vld [vmem:[%s14048_s0 + $0x88] sm:$0xf] }
 0x21f   :  { %v3219_v17 = vpop.permute.xlu0 %3218  ;;  %v3714_v10 = vrot.slane %v3712_v4, 4  ;;  %v3713_v45 = vsel %vm9171_vm7, %v7865_v21, %v3712_v4 }
 0x220   :  { %3401 = vst.msk [vmem:[#allocation2 + $0x28] sm:$0xf] %vm3390_vm10, %v3219_v17  ;;  %v3225_v50 = vpop.permute.xlu1 %3224  ;;  %v7792_v17 = vld [vmem:[%s14048_s0 + $0x8c] sm:$0x1] }
 0x221   :  { %3879 = vrot.lane.b32.xlu0 %v3664_v14, %s8429_s30  ;;  %3404 = vst.msk [vmem:[#allocation2 + $0x34] sm:$0xf] %vm3390_vm10, %v3225_v50  ;;  %v3719_v14 = vrot.slane %v7791_v33, 5  ;;  %v3716_v49 = vsel %vm9171_vm7, %v3714_v10, %v3715_v1  ;;  %v3722_v24 = vrot.slane %v7792_v17, 5 }
 0x222   :  { %3885 = vrot.lane.b32.xlu1 %v3674_v18, %s8429_s30  ;;  %v7794_v18 = vld [vmem:[%s14048_s0 + $0x94] sm:$0xf] }
 0x223   :  { %v3223_v29 = vpop.permute.xlu0 %3222  ;;  %v3721_v50 = vrot.slane %v3719_v14, 4  ;;  %v3720_v5 = vsel %vm9171_vm7, %v7866_v62, %v3719_v14  ;;  %v3757_v14 = vrot.slane %v7807_v19, 5 }
 0x224   :  { %3403 = vst.msk [vmem:[#allocation2 + $0x30] sm:$0xf] %vm3390_vm10, %v3223_v29  ;;  %v3229_v32 = vpop.permute.xlu1 %3228  ;;  %v7795_v29 = vld [vmem:[%s14048_s0 + $0x98] sm:$0x1] }
 0x225   :  { %3883 = vrot.lane.b32.xlu0 %v3671_v11, %s8429_s30  ;;  %3406 = vst.msk [vmem:[#allocation2 + $0x3c] sm:$0xf] %vm3390_vm10, %v3229_v32  ;;  %v3726_v11 = vrot.slane %v7794_v18, 5  ;;  %v3723_v30 = vsel %vm9171_vm7, %v3721_v50, %v3722_v24  ;;  %v3729_v35 = vrot.slane %v7795_v29, 5  ;;  %v7805_v18 = vld [vmem:[%s14048_s0 + $0xc0] sm:$0xe]  ;;  %v3758_v24 = vsel %vm9171_vm7, %v3756_v37, %v3757_v14 }
 0x226   :  { %3889 = vrot.lane.b32.xlu1 %v3681_v12, %s8429_s30  ;;  %v7797_v12 = vld [vmem:[%s14048_s0 + $0xa0] sm:$0xf]  ;;  %v7871_v25 = vrot.slane %v7805_v18, 9 }
 0x227   :  { %v3227_v40 = vpop.permute.xlu0 %3226  ;;  %v3728_v32 = vrot.slane %v3726_v11, 4  ;;  %v3727_v55 = vsel %vm9171_vm7, %v7867_v7, %v3726_v11  ;;  %v7808_v11 = vld [vmem:[%s14048_s0 + $0xe4] sm:$0xe] }
 0x228   :  { %3405 = vst.msk [vmem:[#allocation2 + $0x38] sm:$0xf] %vm3390_vm10, %v3227_v40  ;;  %v3233_v31 = vpop.permute.xlu1 %3232  ;;  %v7798_v40 = vld [vmem:[%s14048_s0 + $0xa4] sm:$0x1] }
 0x229   :  { %3887 = vrot.lane.b32.xlu0 %v3678_v38, %s8429_s30  ;;  %3408 = vst.msk [vmem:[#allocation2 + $0x44] sm:$0xf] %vm3390_vm10, %v3233_v31  ;;  %v3733_v38 = vrot.slane %v7797_v12, 5  ;;  %v3730_v43 = vsel %vm9171_vm7, %v3728_v32, %v3729_v35  ;;  %v3736_v46 = vrot.slane %v7798_v40, 5  ;;  %v7872_v35 = vrot.slane %v7808_v11, 9 }
 0x22a   :  { %3893 = vrot.lane.b32.xlu1 %v3688_v41, %s8429_s30  ;;  %v7800_v41 = vld [vmem:[%s14048_s0 + $0xac] sm:$0xf]  ;;  %v8048_v11 = vld [vmem:[%s14048_s0 + $0x18] sm:$0xe] }
 0x22b   :  { %v3231_v51 = vpop.permute.xlu0 %3230  ;;  %v3735_v31 = vrot.slane %v3733_v38, 4  ;;  %v3734_v27 = vsel %vm9171_vm7, %v7868_v57, %v3733_v38 }
 0x22c   :  { %3407 = vst.msk [vmem:[#allocation2 + $0x40] sm:$0xf] %vm3390_vm10, %v3231_v51  ;;  %v3237_v59 = vpop.permute.xlu1 %3236  ;;  %v7801_v51 = vld [vmem:[%s14048_s0 + $0xb0] sm:$0x1] }
 0x22d   :  { %3891 = vrot.lane.b32.xlu0 %v3685_v13, %s8429_s30  ;;  %3410 = vst.msk [vmem:[#allocation2 + $0x4c] sm:$0xf] %vm3390_vm10, %v3237_v59  ;;  %v3740_v13 = vrot.slane %v7800_v41, 5  ;;  %v3737_v59 = vsel %vm9171_vm7, %v3735_v31, %v3736_v46  ;;  %v3743_v22 = vrot.slane %v7801_v51, 5  ;;  %v7955_v31 = vld [vmem:[%s14048_s0 + $0x24] sm:$0xf] }
 0x22e   :  { %3897 = vrot.lane.b32.xlu1 %v3695_v53, %s8429_s30  ;;  %v7803_v53 = vld [vmem:[%s14048_s0 + $0xb8] sm:$0xf]  ;;  %v4635_v57 = vshrl.u32 %v7955_v31, 16  ;;  %v4638_v34 = vshll.u32 %v7955_v31, 16  ;;  %v7958_v31 = vld [vmem:[%s14048_s0 + $0x30] sm:$0xf] }
 0x22f   :  { %v3235_v54 = vpop.permute.xlu0 %3234  ;;  %v3742_v60 = vrot.slane %v3740_v13, 4  ;;  %v3741_v10 = vsel %vm9171_vm7, %v7869_v28, %v3740_v13 }
 0x230   :  { %3409 = vst.msk [vmem:[#allocation2 + $0x48] sm:$0xf] %vm3390_vm10, %v3235_v54  ;;  %v3241_v56 = vpop.permute.xlu1 %3240 }
 0x231   :  { %3895 = vrot.lane.b32.xlu0 %v3692_v63, %s8429_s30  ;;  %3412 = vst.msk [vmem:[#allocation2 + $0x54] sm:$0xf] %vm3390_vm10, %v3241_v56  ;;  %v3747_v63 = vrot.slane %v7803_v53, 5  ;;  %v3744_v56 = vsel %vm9171_vm7, %v3742_v60, %v3743_v22  ;;  %v4630_v22 = vshll.u32 %v7954_v47, 16 }
 0x232   :  { %3901 = vrot.lane.b32.xlu1 %v3702_v44, %s8429_s30  ;;  %v7804_v44 = vld [vmem:[%s14048_s0 + $0xbc] sm:$0x1] }
 0x233   :  { %v3239_v61 = vpop.permute.xlu0 %3238  ;;  %v3749_v6 = vrot.slane %v3747_v63, 4  ;;  %v3750_v33 = vrot.slane %v7804_v44, 5  ;;  %v7888_v44 = vld [vmem:[%s14048_s0 + $0x18] sm:$0xf] }
 0x234   :  { %3411 = vst.msk [vmem:[#allocation2 + $0x50] sm:$0xf] %vm3390_vm10, %v3239_v61  ;;  %v3245_v15 = vpop.permute.xlu1 %3244 }
 0x235   :  { %3899 = vrot.lane.b32.xlu0 %v3699_v8, %s8429_s30  ;;  %3414 = vst.msk [vmem:[#allocation2 + $0x5c] sm:$0xf] %vm3390_vm10, %v3245_v15  ;;  %v7802_v8 = vld [vmem:[%s14048_s0 + $0xb4] sm:$0xe]  ;;  %v3751_v17 = vsel %vm9171_vm7, %v3749_v6, %v3750_v33  ;;  %v7891_v6 = vld [vmem:[%s14048_s0 + $0x28] sm:$0xf] }
 0x236   :  { %3905 = vrot.lane.b32.xlu1 %v3709_v9, %s8429_s30  ;;  %v7809_v9 = vld [vmem:[%s14048_s0 + $0xe8] sm:$0xf]  ;;  %v7870_v1 = vrot.slane %v7802_v8, 9  ;;  %v4632_v8 = vrot.slane %v4630_v22, 5 }
 0x237   :  { %v3243_v58 = vpop.permute.xlu0 %3242 }
 0x238   :  { %3413 = vst.msk [vmem:[#allocation2 + $0x58] sm:$0xf] %vm3390_vm10, %v3243_v58  ;;  %v3249_v52 = vpop.permute.xlu1 %3248  ;;  %v7810_v58 = vld [vmem:[%s14048_s0 + $0xec] sm:$0x1]  ;;  %v3748_v50 = vsel %vm9171_vm7, %v7870_v1, %v3747_v63 }
 0x239   :  { %3903 = vrot.lane.b32.xlu0 %v3706_v20, %s8429_s30  ;;  %3416 = vst.msk [vmem:[#allocation2 + $0x64] sm:$0xf] %vm3390_vm10, %v3249_v52  ;;  %v3761_v20 = vrot.slane %v7809_v9, 5  ;;  %v7952_v52 = vld [vmem:[%s14048_s0 + $0x18] sm:$0xf] }
 0x23a   :  { %3909 = vrot.lane.b32.xlu1 %v3716_v49, %s8429_s30  ;;  %v7953_v49 = vld [vmem:[%s14048_s0 + $0x1c] sm:$0xf]  ;;  %v4611_v36 = vshrl.u32 %v7952_v52, 16  ;;  %v4614_v38 = vshll.u32 %v7952_v52, 16  ;;  %v7957_v63 = vld [vmem:[%s14048_s0 + $0x2c] sm:$0x1] }
 0x23b   :  { %v3247_v16 = vpop.permute.xlu0 %3246  ;;  %v3763_v12 = vrot.slane %v3761_v20, 4  ;;  %v4620_v62 = vshll.u32 %v7953_v49, 16  ;;  %v3762_v13 = vsel %vm9171_vm7, %v7872_v35, %v3761_v20  ;;  %v4654_v28 = vshll.u32 %v7957_v63, 16  ;;  %v7890_v9 = vld [vmem:[%s14048_s0 + $0x24] sm:$0xf] }
 0x23c   :  { %3415 = vst.msk [vmem:[#allocation2 + $0x60] sm:$0xf] %vm3390_vm10, %v3247_v16  ;;  %v3253_v2 = vpop.permute.xlu1 %3252  ;;  %v4624_v16 = vshrl.u32 %v7953_v49, 16  ;;  %v4616_v51 = vrot.slane %v4614_v38, 5  ;;  %v11304_v20 = vld [vmem:[%s14048_s0 + $0x28] sm:$0xf] }
 0x23d   :  { %3907 = vrot.lane.b32.xlu0 %v3713_v45, %s8429_s30  ;;  %3418 = vst.msk [vmem:[#allocation2 + $0x6c] sm:$0xf] %vm3390_vm10, %v3253_v2  ;;  %v3764_v45 = vrot.slane %v7810_v58, 5  ;;  %v3755_v2 = vsel %vm9171_vm7, %v7871_v25, %v3754_v3  ;;  %v4637_v3 = vrot.slane %v4635_v57, 4  ;;  %v4656_v37 = vrot.slane %v4654_v28, 5 }
 0x23e   :  { %3913 = vrot.lane.b32.xlu1 %v3723_v30, %s8429_s30  ;;  %v7956_v30 = vld [vmem:[%s14048_s0 + $0x28] sm:$0xf]  ;;  %v8050_v49 = vld [vmem:[%s14048_s0 + $0x20] sm:$0x1]  ;;  %v5836_v52 = vrot.slane %v11304_v20, 5  ;;  %v8144_v38 = vrot.slane %v8048_v11, 9 }
 0x23f   :  { %v3251_v42 = vpop.permute.xlu0 %3250  ;;  %v4644_v40 = vshll.u32 %v7956_v30, 16  ;;  %v4648_v41 = vshrl.u32 %v7956_v30, 16  ;;  %v3765_v7 = vsel %vm9171_vm7, %v3763_v12, %v3764_v45  ;;  %v8367_v30 = vld [vmem:[%s14049_s1 + $0x8] sm:$0xff]   ;;  %v7959_v35 = vld [vmem:[%s14048_s0 + $0x34] sm:$0xf]  ;;  %v4662_v57 = vshll.u32 %v7958_v31, 16 }
 0x240   :  { %3417 = vst.msk [vmem:[#allocation2 + $0x68] sm:$0xf] %vm3390_vm10, %v3251_v42  ;;  %v3257_v48 = vpop.permute.xlu1 %3256  ;;  %v11252_v42 = vrot.slane %v4620_v62, 5  ;;  %v5832_v62 = vrot.slane %v8050_v49, 5  ;;  %v7961_v63 = vld [vmem:[%s14048_s0 + $0x3c] sm:$0xf] }
 0x241   :  { %3911 = vrot.lane.b32.xlu0 %v3720_v5, %s8429_s30  ;;  %3420 = vst.msk [vmem:[#allocation2 + $0x74] sm:$0xf] %vm3390_vm10, %v3257_v48  ;;  %v4613_v48 = vrot.slane %v4611_v36, 4  ;;  %v11266_v53 = vrot.slane %v4644_v40, 5  ;;  %v4664_v28 = vrot.slane %v4662_v57, 5 }
 0x242   :  { %3917 = vrot.lane.b32.xlu1 %v3730_v43, %s8429_s30  ;;  %v4626_v43 = vrot.slane %v4624_v16, 4  ;;  %v8053_v16 = vld [vmem:[%s14048_s0 + $0x2c] sm:$0x1] }
 0x243   :  { %v3255_v39 = vpop.permute.xlu0 %3254  ;;  %v5839_v40 = vrot.slane %v8053_v16, 5 }
 0x244   :  { %3419 = vst.msk [vmem:[#allocation2 + $0x70] sm:$0xf] %vm3390_vm10, %v3255_v39  ;;  %v3261_v54 = vpop.permute.xlu1 %3260  ;;  %v4627_v60 = vor.u32 %v4626_v43, %v11252_v42  ;;  %v4672_v43 = vshrl.u32 %v7959_v35, 16 }
 0x245   :  { %3915 = vrot.lane.b32.xlu0 %v3727_v55, %s8429_s30  ;;  %3422 = vst.msk [vmem:[#allocation2 + $0x7c] sm:$0xf] %vm3390_vm10, %v3261_v54  ;;  %v4650_v55 = vrot.slane %v4648_v41, 4  ;;  %v4617_v54 = vor.u32 %v4616_v51, %v4613_v48  ;;  %v8051_v41 = vld [vmem:[%s14048_s0 + $0x24] sm:$0xe] }
 0x246   :  { %3921 = vrot.lane.b32.xlu1 %v3737_v59, %s8429_s30  ;;  %v7889_v59 = vld [vmem:[%s14048_s0 + $0x1c] sm:$0xf]  ;;  %v4628_v33 = vrot.slane %v4627_v60, 4  ;;  %v8145_v48 = vrot.slane %v8051_v41, 9 }
 0x247   :  { %v3259_v4 = vpop.permute.xlu0 %3258 }
 0x248   :  { %3421 = vst.msk [vmem:[#allocation2 + $0x78] sm:$0xf] %vm3390_vm10, %v3259_v4  ;;  %v3265_v61 = vpop.permute.xlu1 %3264  ;;  %v4640_v4 = vrot.slane %v4638_v34, 5 }
 0x249   :  { %3919 = vrot.lane.b32.xlu0 %v3734_v27, %s8429_s30  ;;  %3424 = vst.msk [vmem:[#allocation2 + $0x84] sm:$0xf] %vm3390_vm10, %v3265_v61  ;;  %v4651_v27 = vor.u32 %v4650_v55, %v11266_v53  ;;  %v11290_v61 = vld [vmem:[%s14048_s0 + $0x1c] sm:$0xf]  ;;  %v4659_v55 = vshrl.u32 %v7958_v31, 16 }
 0x24a   :  { %3925 = vrot.lane.b32.xlu1 %v3744_v56, %s8429_s30  ;;  %v4641_v14 = vor.u32 %v4640_v4, %v4637_v3  ;;  %v5829_v18 = vrot.slane %v11290_v61, 5  ;;  %v4683_v3 = vshrl.u32 %v7961_v63, 16  ;;  %v4686_v4 = vshll.u32 %v7961_v63, 16 }
 0x24b   :  { %v3263_v15 = vpop.permute.xlu0 %3262  ;;  %v4652_v1 = vrot.slane %v4651_v27, 4  ;;  %v4661_v27 = vrot.slane %v4659_v55, 4 }
 0x24c   :  { %3423 = vst.msk [vmem:[#allocation2 + $0x80] sm:$0xf] %vm3390_vm10, %v3263_v15  ;;  %v3269_v21 = vpop.permute.xlu1 %3268  ;;  %v4642_v25 = vrot.slane %v4641_v14, 4  ;;  %v5831_v45 = vrot.slane %v5829_v18, 4  ;;  %v5830_v51 = vsel %vm9171_vm7, %v8144_v38, %v5829_v18  ;;  %v4685_v14 = vrot.slane %v4683_v3, 4 }
 0x24d   :  { %3923 = vrot.lane.b32.xlu0 %v3741_v10, %s8429_s30  ;;  %3426 = vst.msk [vmem:[#allocation2 + $0x8c] sm:$0xf] %vm3390_vm10, %v3269_v21  ;;  %v4618_v10 = vrot.slane %v4617_v54, 4  ;;  %v8366_v21 = vld [vmem:[%s14049_s1 + $0x10] ss:$0 sps:$4 sm:$0x33]   ;;  %v4657_v12 = vsel %vm8483_vm2, %v4652_v1, %v4656_v37  ;;  %v4665_v37 = vor.u32 %v4664_v28, %v4661_v27 }
 0x24e   :  { %3929 = vrot.lane.b32.xlu1 %v3751_v17, %s8429_s30  ;;  %v4633_v17 = vsel %vm8483_vm2, %v4628_v33, %v4632_v8  ;;  %8354 = vmatprep.subr.msk.bf16.mxu0 %vm6649_vm11, %v8366_v21  ;;  %v4647_v36 = vsel %vm8483_vm2, %v4642_v25, %v11266_v53  ;;  %v7960_v54 = vld [vmem:[%s14048_s0 + $0x38] sm:$0x1]  ;;  %v7892_v1 = vld [vmem:[%s14048_s0 + $0x30] sm:$0xf]  ;;  %v7895_v18 = vld [vmem:[%s14048_s0 + $0x40] sm:$0xf] }
 0x24f   :  { %v3267_v29 = vpop.permute.xlu0 %3266  ;;  %8355 = vmatprep.subr.msk.bf16.mxu1 %vm6649_vm11, %v8366_v21  ;;  %v4678_v8 = vshll.u32 %v7960_v54, 16  ;;  %v7894_v25 = vld [vmem:[%s14048_s0 + $0x3c] sm:$0xf]  ;;  %v4666_v11 = vrot.slane %v4665_v37, 4 }
 0x250   :  { %3425 = vst.msk [vmem:[#allocation2 + $0x88] sm:$0xf] %vm3390_vm10, %v3267_v29  ;;  %v3273_v32 = vpop.permute.xlu1 %3272 }
 0x251   :  { %3927 = vrot.lane.b32.xlu0 %v3748_v50, %s8429_s30  ;;  %3428 = vst.msk [vmem:[#allocation2 + $0x94] sm:$0xf] %vm3390_vm10, %v3273_v32  ;;  %v6651_v50 = vsel %vm6649_vm11, %v8366_v21, 0  ;;  %v4680_v21 = vrot.slane %v4678_v8, 5 }
 0x252   :  { %3933 = vrot.lane.b32.xlu1 %v3758_v24, %s8429_s30  ;;  %v4623_v24 = vsel %vm8483_vm2, %v4618_v10, %v11252_v42  ;;  %8279 = vmatpush3.bf16.msra.mxu0 %v6651_v50  ;;  %v4668_v42 = vshll.u32 %v7959_v35, 16  ;;  %v7963_v10 = vld [vmem:[%s14048_s0 + $0x44] sm:$0x1]  ;;  %v8056_v35 = vld [vmem:[%s14048_s0 + $0x38] sm:$0x1] }
 0x253   :  { %v3271_v5 = vpop.permute.xlu0 %3270  ;;  %8351 = vmatpush3.bf16.msra.mxu1 %v6651_v50  ;;  %8280 = vmatprep.subr.bf16.mxu0 %v8367_v30  ;;  %v4702_v49 = vshll.u32 %v7963_v10, 16 }
 0x254   :  { %3427 = vst.msk [vmem:[#allocation2 + $0x90] sm:$0xf] %vm3390_vm10, %v3271_v5  ;;  %v3277_v46 = vpop.permute.xlu1 %3276  ;;  %8349 = vmatprep.subr.bf16.mxu1 %v8367_v30 }
 0x255   :  { %3931 = vrot.lane.b32.xlu0 %v3755_v2, %s8429_s30  ;;  %3430 = vst.msk [vmem:[#allocation2 + $0x9c] sm:$0xf] %vm3390_vm10, %v3277_v46  ;;  %v5838_v2 = vrot.slane %v5836_v52, 4  ;;  %v8368_v46 = vld [vmem:[%s14049_s1] sm:$0xff]  }
 0x256   :  { %3937 = vrot.lane.b32.xlu1 %v3765_v7, %s8429_s30  ;;  %8281 = vmatpush3.bf16.msra.mxu0 %v8367_v30  ;;  %v5833_v7 = vsel %vm9171_vm7, %v5831_v45, %v5832_v62  ;;  %v4704_v62 = vrot.slane %v4702_v49, 5  ;;  %v7969_v49 = vld [vmem:[%s14048_s0 + $0x5c] sm:$0x1] }
 0x257   :  { %v3275_v39 = vpop.permute.xlu0 %3274  ;;  %8352 = vmatpush3.bf16.msra.mxu1 %v8367_v30  ;;  %8282 = vmatprep.subr.bf16.mxu0 %v8368_v46  ;;  %v5840_v53 = vsel %vm9171_vm7, %v5838_v2, %v5839_v40  ;;  %v8058_v30 = vld [vmem:[%s14048_s0 + $0x40] sm:$0xf] }
 0x258   :  { %3429 = vst.msk [vmem:[#allocation2 + $0x98] sm:$0xf] %vm3390_vm10, %v3275_v39  ;;  %v3281_v0 = vpop.permute.xlu1 %3280  ;;  %v11366_v39 = vrot.slane %v4668_v42, 5  ;;  %8350 = vmatprep.subr.bf16.mxu1 %v8368_v46  ;;  %v5850_v2 = vrot.slane %v8058_v30, 5  ;;  %v8054_v42 = vld [vmem:[%s14048_s0 + $0x30] sm:$0xe] }
 0x259   :  { %3935 = vrot.lane.b32.xlu0 %v3762_v13, %s8429_s30  ;;  %3432 = vst.msk [vmem:[#allocation2 + $0xa4] sm:$0xf] %vm3390_vm10, %v3281_v0  ;;  %v7962_v13 = vld [vmem:[%s14048_s0 + $0x40] sm:$0xf] }
 0x25a   :  { %4259 = vrot.lane.b32.xlu1 %v7889_v59, %s8430_s21  ;;  %8283 = vmatpush3.bf16.msra.mxu0 %v8368_v46  ;;  %v4674_v59 = vrot.slane %v4672_v43, 4  ;;  %v4692_v60 = vshll.u32 %v7962_v13, 16  ;;  %v4696_v22 = vshrl.u32 %v7962_v13, 16  ;;  %v8059_v43 = vld [vmem:[%s14048_s0 + $0x44] sm:$0x1]  ;;  %v8146_v13 = vrot.slane %v8054_v42, 9 }
 0x25b   :  { %v3279_v56 = vpop.permute.xlu0 %3278  ;;  %8353 = vmatpush3.bf16.msra.mxu1 %v8368_v46  ;;  %v7965_v46 = vld [vmem:[%s14048_s0 + $0x4c] sm:$0xf]  ;;  %v8064_v42 = vld [vmem:[%s14048_s0 + $0x58] sm:$0xf] }
 0x25c   :  { %3431 = vst.msk [vmem:[#allocation2 + $0xa0] sm:$0xf] %vm3390_vm10, %v3279_v56  ;;  %v3285_v19 = vpop.permute.xlu1 %3284  ;;  %v4675_v33 = vor.u32 %v4674_v59, %v11366_v39  ;;  %v4698_v61 = vrot.slane %v4696_v22, 4  ;;  %v7964_v59 = vld [vmem:[%s14048_s0 + $0x48] sm:$0xf] }
 0x25d   :  { %4257 = vrot.lane.b32.xlu0 %v7888_v44, %s8430_s21  ;;  %3434 = vst.msk [vmem:[#allocation2 + $0xac] sm:$0xf] %vm3390_vm10, %v3285_v19  ;;  %v5837_v44 = vsel %vm9171_vm7, %v8145_v48, %v5836_v52  ;;  %v11384_v19 = vrot.slane %v4692_v60, 5  ;;  %v5852_v48 = vrot.slane %v5850_v2, 4  ;;  %v7968_v22 = vld [vmem:[%s14048_s0 + $0x58] sm:$0xf] }
 0x25e   :  { %4263 = vrot.lane.b32.xlu1 %v7891_v6, %s8430_s21  ;;  %v7893_v6 = vld [vmem:[%s14048_s0 + $0x34] sm:$0xf]  ;;  %v4676_v20 = vrot.slane %v4675_v33, 4  ;;  %v4710_v27 = vshll.u32 %v7964_v59, 16 }
 0x25f   :  { %v3283_v15 = vpop.permute.xlu0 %3282  ;;  %v7967_v33 = vld [vmem:[%s14048_s0 + $0x54] sm:$0xf] }
 0x260   :  { %3433 = vst.msk [vmem:[#allocation2 + $0xa8] sm:$0xf] %vm3390_vm10, %v3283_v15  ;;  %v3289_v58 = vpop.permute.xlu1 %3288  ;;  %v4688_v15 = vrot.slane %v4686_v4, 5  ;;  %v4712_v10 = vrot.slane %v4710_v27, 5  ;;  %v4734_v37 = vshll.u32 %v7967_v33, 16 }
 0x261   :  { %4261 = vrot.lane.b32.xlu0 %v7890_v9, %s8430_s21  ;;  %3436 = vst.msk [vmem:[#allocation2 + $0xb4] sm:$0xf] %vm3390_vm10, %v3289_v58  ;;  %v4699_v58 = vor.u32 %v4698_v61, %v11384_v19 }
 0x262   :  { %5380 = vrot.lane.b32.xlu1 %v4633_v17, %s8431_s22  ;;  %v4689_v52 = vor.u32 %v4688_v15, %v4685_v14  ;;  %v7897_v15 = vld [vmem:[%s14048_s0 + $0x4c] sm:$0xf] }
 0x263   :  { %v3287_v29 = vpop.permute.xlu0 %3286  ;;  %v4700_v45 = vrot.slane %v4699_v58, 4 }
 0x264   :  { %3435 = vst.msk [vmem:[#allocation2 + $0xb0] sm:$0xf] %vm3390_vm10, %v3287_v29  ;;  %v3293_v32 = vpop.permute.xlu1 %3292  ;;  %v4690_v38 = vrot.slane %v4689_v52, 4 }
 0x265   :  { %5378 = vrot.lane.b32.xlu0 %v4623_v24, %s8431_s22  ;;  %3438 = vst.msk [vmem:[#allocation2 + $0xbc] sm:$0xf] %vm3390_vm10, %v3293_v32  ;;  %v8055_v24 = vld [vmem:[%s14048_s0 + $0x34] sm:$0xf]  ;;  %v4705_v41 = vsel %vm8483_vm2, %v4700_v45, %v4704_v62 }
 0x266   :  { %5384 = vrot.lane.b32.xlu1 %v4657_v12, %s8431_s22  ;;  %v4681_v12 = vsel %vm8483_vm2, %v4676_v20, %v4680_v21  ;;  %v5843_v16 = vrot.slane %v8055_v24, 5 }
 0x267   :  { %v3291_v5 = vpop.permute.xlu0 %3290 }
 0x268   :  { %3437 = vst.msk [vmem:[#allocation2 + $0xb8] sm:$0xf] %vm3390_vm10, %v3291_v5  ;;  %v3297_v47 = vpop.permute.xlu1 %3296  ;;  %v5845_v5 = vrot.slane %v5843_v16, 4 }
 0x269   :  { %5382 = vrot.lane.b32.xlu0 %v4647_v36, %s8431_s22  ;;  %3440 = vst.msk [vmem:[#allocation2 + $0xc4] sm:$0xf] %vm3390_vm10, %v3297_v47  ;;  %v4671_v36 = vsel %vm8483_vm2, %v4666_v11, %v11366_v39  ;;  %v4695_v47 = vsel %vm8483_vm2, %v4690_v38, %v11384_v19  ;;  %v4720_v39 = vshrl.u32 %v7965_v46, 16  ;;  %v7966_v19 = vld [vmem:[%s14048_s0 + $0x50] sm:$0x1]  ;;  %v4736_v11 = vrot.slane %v4734_v37, 5 }
 0x26a   :  { %6053 = vrot.lane.b32.xlu1 %v5833_v7, %s8432_s16  ;;  %v5846_v7 = vrot.slane %v8056_v35, 5  ;;  %v7898_v35 = vld [vmem:[%s14048_s0 + $0x54] sm:$0xf] }
 0x26b   :  { %v3295_v34 = vpop.permute.xlu0 %3294  ;;  %v4722_v4 = vrot.slane %v4720_v39, 4 }
 0x26c   :  { %3439 = vst.msk [vmem:[#allocation2 + $0xc0] sm:$0xf] %vm3390_vm10, %v3295_v34  ;;  %v3301_v0 = vpop.permute.xlu1 %3300  ;;  %v5847_v57 = vsel %vm9171_vm7, %v5845_v5, %v5846_v7  ;;  %v4716_v34 = vshll.u32 %v7965_v46, 16 }
 0x26d   :  { %6051 = vrot.lane.b32.xlu0 %v5830_v51, %s8432_s16  ;;  %3442 = vst.msk [vmem:[#allocation2 + $0xcc] sm:$0xf] %vm3390_vm10, %v3301_v0  ;;  %v5853_v51 = vrot.slane %v8059_v43, 5  ;;  %v5844_v0 = vsel %vm9171_vm7, %v8146_v13, %v5843_v16  ;;  %v4750_v16 = vshll.u32 %v7969_v49, 16  ;;  %v5864_v13 = vrot.slane %v8064_v42, 5 }
 0x26e   :  { %6057 = vrot.lane.b32.xlu1 %v5840_v53, %s8432_s16  ;;  %v8057_v53 = vld [vmem:[%s14048_s0 + $0x3c] sm:$0xe]  ;;  %v11462_v3 = vrot.slane %v4716_v34, 5  ;;  %v8065_v34 = vld [vmem:[%s14048_s0 + $0x5c] sm:$0x1] }
 0x26f   :  { %v3299_v56 = vpop.permute.xlu0 %3298  ;;  %v8147_v63 = vrot.slane %v8057_v53, 9  ;;  %v5854_v54 = vsel %vm9171_vm7, %v5852_v48, %v5853_v51  ;;  %v4752_v5 = vrot.slane %v4750_v16, 5  ;;  %v7975_v16 = vld [vmem:[%s14048_s0 + $0x74] sm:$0x1] }
 0x270   :  { %3441 = vst.msk [vmem:[#allocation2 + $0xc8] sm:$0xf] %vm3390_vm10, %v3299_v56  ;;  %v3305_v9 = vpop.permute.xlu1 %3304  ;;  %v4740_v56 = vshll.u32 %v7968_v22, 16 }
 0x271   :  { %6055 = vrot.lane.b32.xlu0 %v5837_v44, %s8432_s16  ;;  %3444 = vst.msk [vmem:[#allocation2 + $0xd4] sm:$0xf] %vm3390_vm10, %v3305_v9  ;;  %v4707_v44 = vshrl.u32 %v7964_v59, 16  ;;  %v5851_v61 = vsel %vm9171_vm7, %v8147_v63, %v5850_v2  ;;  %v7971_v59 = vld [vmem:[%s14048_s0 + $0x64] sm:$0xf]  ;;  %v5866_v63 = vrot.slane %v5864_v13, 4 }
 0x272   :  { %4267 = vrot.lane.b32.xlu1 %v7893_v6, %s8430_s21  ;;  %v4744_v6 = vshrl.u32 %v7968_v22, 16  ;;  %v11480_v20 = vrot.slane %v4740_v56, 5 }
 0x273   :  { %v3303_v17 = vpop.permute.xlu0 %3302  ;;  %v4709_v9 = vrot.slane %v4707_v44, 4 }
 0x274   :  { %3443 = vst.msk [vmem:[#allocation2 + $0xd0] sm:$0xf] %vm3390_vm10, %v3303_v17  ;;  %v3309_v50 = vpop.permute.xlu1 %3308  ;;  %v4723_v17 = vor.u32 %v4722_v4, %v11462_v3  ;;  %v4746_v21 = vrot.slane %v4744_v6, 4  ;;  %v7970_v4 = vld [vmem:[%s14048_s0 + $0x60] sm:$0xf] }
 0x275   :  { %4265 = vrot.lane.b32.xlu0 %v7892_v1, %s8430_s21  ;;  %3446 = vst.msk [vmem:[#allocation2 + $0xdc] sm:$0xf] %vm3390_vm10, %v3309_v50  ;;  %v4731_v1 = vshrl.u32 %v7967_v33, 16  ;;  %v7896_v50 = vld [vmem:[%s14048_s0 + $0x48] sm:$0xf]  ;;  %v4713_v24 = vor.u32 %v4712_v10, %v4709_v9  ;;  %v4758_v9 = vshll.u32 %v7970_v4, 16 }
 0x276   :  { %4271 = vrot.lane.b32.xlu1 %v7895_v18, %s8430_s21  ;;  %v4726_v18 = vshll.u32 %v7966_v19, 16  ;;  %v4747_v62 = vor.u32 %v4746_v21, %v11480_v20  ;;  %v7974_v6 = vld [vmem:[%s14048_s0 + $0x70] sm:$0xf] }
 0x277   :  { %v3307_v29 = vpop.permute.xlu0 %3306  ;;  %v4760_v49 = vrot.slane %v4758_v9, 5 }
 0x278   :  { %3445 = vst.msk [vmem:[#allocation2 + $0xd8] sm:$0xf] %vm3390_vm10, %v3307_v29  ;;  %v3313_v32 = vpop.permute.xlu1 %3312  ;;  %v7899_v29 = vld [vmem:[%s14048_s0 + $0x58] sm:$0xf]  ;;  %v4728_v45 = vrot.slane %v4726_v18, 5 }
 0x279   :  { %4269 = vrot.lane.b32.xlu0 %v7894_v25, %s8430_s21  ;;  %3448 = vst.msk [vmem:[#allocation2 + $0xe4] sm:$0xf] %vm3390_vm10, %v3313_v32  ;;  %v4733_v25 = vrot.slane %v4731_v1, 4  ;;  %v8061_v32 = vld [vmem:[%s14048_s0 + $0x4c] sm:$0xf] }
 0x27a   :  { %5388 = vrot.lane.b32.xlu1 %v4681_v12, %s8431_s22  ;;  %v4724_v12 = vrot.slane %v4723_v17, 4  ;;  %v5857_v7 = vrot.slane %v8061_v32, 5  ;;  %v7973_v17 = vld [vmem:[%s14048_s0 + $0x6c] sm:$0xf] }
 0x27b   :  { %v3311_v40 = vpop.permute.xlu0 %3310  ;;  %v4737_v38 = vor.u32 %v4736_v11, %v4733_v25  ;;  %v7901_v11 = vld [vmem:[%s14048_s0 + $0x64] sm:$0xf] }
 0x27c   :  { %3447 = vst.msk [vmem:[#allocation2 + $0xe0] sm:$0xf] %vm3390_vm10, %v3311_v40  ;;  %v3317_v31 = vpop.permute.xlu1 %3316  ;;  %v4729_v40 = vsel %vm8483_vm2, %v4724_v12, %v4728_v45  ;;  %v5859_v53 = vrot.slane %v5857_v7, 4 }
 0x27d   :  { %5386 = vrot.lane.b32.xlu0 %v4671_v36, %s8431_s22  ;;  %3450 = vst.msk [vmem:[#allocation2 + $0xec] sm:$0xf] %vm3390_vm10, %v3317_v31  ;;  %v4714_v36 = vrot.slane %v4713_v24, 4  ;;  %v8062_v31 = vld [vmem:[%s14048_s0 + $0x50] sm:$0x1]  ;;  %v4782_v24 = vshll.u32 %v7973_v17, 16 }
 0x27e   :  { %5392 = vrot.lane.b32.xlu1 %v4705_v41, %s8431_s22  ;;  %v4748_v41 = vrot.slane %v4747_v62, 4 }
 0x27f   :  { %v3315_v55 = vpop.permute.xlu0 %3314  ;;  %v4719_v46 = vsel %vm8483_vm2, %v4714_v36, %v11462_v3  ;;  %v4768_v3 = vshrl.u32 %v7971_v59, 16  ;;  %v4784_v36 = vrot.slane %v4782_v24, 5 }
 0x280   :  { %3449 = vst.msk [vmem:[#allocation2 + $0xe8] sm:$0xf] %vm3390_vm10, %v3315_v55  ;;  %v3321_v60 = vpop.permute.xlu1 %3320  ;;  %v4753_v51 = vsel %vm8483_vm2, %v4748_v41, %v4752_v5  ;;  %v5860_v55 = vrot.slane %v8062_v31, 5  ;;  %v7902_v31 = vld [vmem:[%s14048_s0 + $0x6c] sm:$0xf] }
 0x281   :  { %5390 = vrot.lane.b32.xlu0 %v4695_v47, %s8431_s22  ;;  %3452 = vst.msk [vmem:[#allocation2 + $0xf4] sm:$0xf] %vm3390_vm10, %v3321_v60  ;;  %v4738_v47 = vrot.slane %v4737_v38, 4  ;;  %v4770_v37 = vrot.slane %v4768_v3, 4 }
 0x282   :  { %6061 = vrot.lane.b32.xlu1 %v5847_v57, %s8432_s16  ;;  %v8060_v57 = vld [vmem:[%s14048_s0 + $0x48] sm:$0xe]  ;;  %v5861_v27 = vsel %vm9171_vm7, %v5859_v53, %v5860_v55 }
 0x283   :  { %v3319_v28 = vpop.permute.xlu0 %3318  ;;  %v4743_v60 = vsel %vm8483_vm2, %v4738_v47, %v11480_v20  ;;  %v8148_v22 = vrot.slane %v8060_v57, 9  ;;  %v7972_v20 = vld [vmem:[%s14048_s0 + $0x68] sm:$0x1]  ;;  %v8070_v57 = vld [vmem:[%s14048_s0 + $0x70] sm:$0xf] }
 0x284   :  { %3451 = vst.msk [vmem:[#allocation2 + $0xf0] sm:$0xf] %vm3390_vm10, %v3319_v28  ;;  %v3325_v8 = vpop.permute.xlu1 %3324  ;;  %v4764_v28 = vshll.u32 %v7971_v59, 16 }
 0x285   :  { %6059 = vrot.lane.b32.xlu0 %v5844_v0, %s8432_s16  ;;  %3454 = vst.msk [vmem:[#allocation2 + $0xfc] sm:$0xf] %vm3390_vm10, %v3325_v8  ;;  %v5867_v0 = vrot.slane %v8065_v34, 5  ;;  %v5858_v8 = vsel %vm9171_vm7, %v8148_v22, %v5857_v7  ;;  %v4798_v7 = vshll.u32 %v7975_v16, 16  ;;  %v5878_v22 = vrot.slane %v8070_v57, 5 }
 0x286   :  { %6065 = vrot.lane.b32.xlu1 %v5854_v54, %s8432_s16  ;;  %v8063_v54 = vld [vmem:[%s14048_s0 + $0x54] sm:$0xe]  ;;  %v11558_v1 = vrot.slane %v4764_v28, 5  ;;  %v8071_v28 = vld [vmem:[%s14048_s0 + $0x74] sm:$0x1] }
 0x287   :  { %v3323_v14 = vpop.permute.xlu0 %3322  ;;  %v8149_v33 = vrot.slane %v8063_v54, 9  ;;  %v5868_v19 = vsel %vm9171_vm7, %v5866_v63, %v5867_v0  ;;  %v4800_v53 = vrot.slane %v4798_v7, 5  ;;  %v7981_v7 = vld [vmem:[%s14048_s0 + $0x8c] sm:$0x1] }
 0x288   :  { %3453 = vst.msk [vmem:[#allocation2 + $0xf8] sm:$0xf] %vm3390_vm10, %v3323_v14  ;;  %v3874_v58 = vpop.permute.xlu1 %3873  ;;  %v4788_v14 = vshll.u32 %v7974_v6, 16 }
 0x289   :  { %6063 = vrot.lane.b32.xlu0 %v5851_v61, %s8432_s16  ;;  %4065 = vst.msk [vmem:[#allocation2 + $0x4] sm:$0xf] %vm4063_vm12, %v3874_v58  ;;  %v4755_v61 = vshrl.u32 %v7970_v4, 16  ;;  %v5865_v21 = vsel %vm9171_vm7, %v8149_v33, %v5864_v13  ;;  %v7977_v4 = vld [vmem:[%s14048_s0 + $0x7c] sm:$0xf]  ;;  %v5880_v33 = vrot.slane %v5878_v22, 4 }
 0x28a   :  { %4275 = vrot.lane.b32.xlu1 %v7897_v15, %s8430_s21  ;;  %v4792_v15 = vshrl.u32 %v7974_v6, 16  ;;  %v11576_v12 = vrot.slane %v4788_v14, 5 }
 0x28b   :  { %v3872_v52 = vpop.permute.xlu0 %3871  ;;  %v4757_v58 = vrot.slane %v4755_v61, 4 }
 0x28c   :  { %4064 = vst.msk [vmem:[#allocation2] sm:$0xf] %vm4063_vm12, %v3872_v52  ;;  %v3878_v30 = vpop.permute.xlu1 %3877  ;;  %v4771_v52 = vor.u32 %v4770_v37, %v11558_v1  ;;  %v4794_v45 = vrot.slane %v4792_v15, 4  ;;  %v7976_v37 = vld [vmem:[%s14048_s0 + $0x78] sm:$0xf] }
 0x28d   :  { %4273 = vrot.lane.b32.xlu0 %v7896_v50, %s8430_s21  ;;  %4067 = vst.msk [vmem:[#allocation2 + $0xc] sm:$0xf] %vm4063_vm12, %v3878_v30  ;;  %v4779_v50 = vshrl.u32 %v7973_v17, 16  ;;  %v7900_v30 = vld [vmem:[%s14048_s0 + $0x60] sm:$0xf]  ;;  %v4761_v32 = vor.u32 %v4760_v49, %v4757_v58  ;;  %v4806_v58 = vshll.u32 %v7976_v37, 16 }
 0x28e   :  { %4279 = vrot.lane.b32.xlu1 %v7899_v29, %s8430_s21  ;;  %v4774_v29 = vshll.u32 %v7972_v20, 16  ;;  %v4795_v5 = vor.u32 %v4794_v45, %v11576_v12  ;;  %v7980_v15 = vld [vmem:[%s14048_s0 + $0x88] sm:$0xf] }
 0x28f   :  { %v3876_v2 = vpop.permute.xlu0 %3875  ;;  %v4808_v16 = vrot.slane %v4806_v58, 5 }
 0x290   :  { %4066 = vst.msk [vmem:[#allocation2 + $0x8] sm:$0xf] %vm4063_vm12, %v3876_v2  ;;  %v3882_v43 = vpop.permute.xlu1 %3881  ;;  %v7903_v2 = vld [vmem:[%s14048_s0 + $0x70] sm:$0xf]  ;;  %v4776_v41 = vrot.slane %v4774_v29, 5 }
 0x291   :  { %4277 = vrot.lane.b32.xlu0 %v7898_v35, %s8430_s21  ;;  %4069 = vst.msk [vmem:[#allocation2 + $0x14] sm:$0xf] %vm4063_vm12, %v3882_v43  ;;  %v4781_v35 = vrot.slane %v4779_v50, 4  ;;  %v8067_v43 = vld [vmem:[%s14048_s0 + $0x64] sm:$0xf] }
 0x292   :  { %5396 = vrot.lane.b32.xlu1 %v4729_v40, %s8431_s22  ;;  %v4772_v40 = vrot.slane %v4771_v52, 4  ;;  %v5871_v55 = vrot.slane %v8067_v43, 5  ;;  %v7979_v52 = vld [vmem:[%s14048_s0 + $0x84] sm:$0xf] }
 0x293   :  { %v3880_v48 = vpop.permute.xlu0 %3879  ;;  %v4785_v47 = vor.u32 %v4784_v36, %v4781_v35  ;;  %v7905_v36 = vld [vmem:[%s14048_s0 + $0x7c] sm:$0xf] }
 0x294   :  { %4068 = vst.msk [vmem:[#allocation2 + $0x10] sm:$0xf] %vm4063_vm12, %v3880_v48  ;;  %v3886_v39 = vpop.permute.xlu1 %3885  ;;  %v4777_v48 = vsel %vm8483_vm2, %v4772_v40, %v4776_v41  ;;  %v5873_v54 = vrot.slane %v5871_v55, 4 }
 0x295   :  { %5394 = vrot.lane.b32.xlu0 %v4719_v46, %s8431_s22  ;;  %4071 = vst.msk [vmem:[#allocation2 + $0x1c] sm:$0xf] %vm4063_vm12, %v3886_v39  ;;  %v4762_v46 = vrot.slane %v4761_v32, 4  ;;  %v8068_v39 = vld [vmem:[%s14048_s0 + $0x68] sm:$0x1]  ;;  %v4830_v32 = vshll.u32 %v7979_v52, 16 }
 0x296   :  { %5400 = vrot.lane.b32.xlu1 %v4753_v51, %s8431_s22  ;;  %v4796_v51 = vrot.slane %v4795_v5, 4 }
 0x297   :  { %v3884_v44 = vpop.permute.xlu0 %3883  ;;  %v4767_v59 = vsel %vm8483_vm2, %v4762_v46, %v11558_v1  ;;  %v4816_v1 = vshrl.u32 %v7977_v4, 16  ;;  %v4832_v46 = vrot.slane %v4830_v32, 5 }
 0x298   :  { %4070 = vst.msk [vmem:[#allocation2 + $0x18] sm:$0xf] %vm4063_vm12, %v3884_v44  ;;  %v3890_v56 = vpop.permute.xlu1 %3889  ;;  %v4801_v0 = vsel %vm8483_vm2, %v4796_v51, %v4800_v53  ;;  %v5874_v44 = vrot.slane %v8068_v39, 5  ;;  %v7906_v39 = vld [vmem:[%s14048_s0 + $0x84] sm:$0xf] }
 0x299   :  { %5398 = vrot.lane.b32.xlu0 %v4743_v60, %s8431_s22  ;;  %4073 = vst.msk [vmem:[#allocation2 + $0x24] sm:$0xf] %vm4063_vm12, %v3890_v56  ;;  %v4786_v60 = vrot.slane %v4785_v47, 4  ;;  %v4818_v24 = vrot.slane %v4816_v1, 4 }
 0x29a   :  { %6069 = vrot.lane.b32.xlu1 %v5861_v27, %s8432_s16  ;;  %v8066_v27 = vld [vmem:[%s14048_s0 + $0x60] sm:$0xe]  ;;  %v5875_v9 = vsel %vm9171_vm7, %v5873_v54, %v5874_v44 }
 0x29b   :  { %v3888_v10 = vpop.permute.xlu0 %3887  ;;  %v4791_v56 = vsel %vm8483_vm2, %v4786_v60, %v11576_v12  ;;  %v8150_v6 = vrot.slane %v8066_v27, 9  ;;  %v7978_v12 = vld [vmem:[%s14048_s0 + $0x80] sm:$0x1]  ;;  %v8076_v27 = vld [vmem:[%s14048_s0 + $0x88] sm:$0xf] }
 0x29c   :  { %4072 = vst.msk [vmem:[#allocation2 + $0x20] sm:$0xf] %vm4063_vm12, %v3888_v10  ;;  %v3894_v18 = vpop.permute.xlu1 %3893  ;;  %v4812_v10 = vshll.u32 %v7977_v4, 16 }
 0x29d   :  { %6067 = vrot.lane.b32.xlu0 %v5858_v8, %s8432_s16  ;;  %4075 = vst.msk [vmem:[#allocation2 + $0x2c] sm:$0xf] %vm4063_vm12, %v3894_v18  ;;  %v5881_v8 = vrot.slane %v8071_v28, 5  ;;  %v5872_v18 = vsel %vm9171_vm7, %v8150_v6, %v5871_v55  ;;  %v4846_v55 = vshll.u32 %v7981_v7, 16  ;;  %v8072_v6 = vld [vmem:[%s14048_s0 + $0x78] sm:$0xe] }
 0x29e   :  { %6073 = vrot.lane.b32.xlu1 %v5868_v19, %s8432_s16  ;;  %v8069_v19 = vld [vmem:[%s14048_s0 + $0x6c] sm:$0xe]  ;;  %v11654_v50 = vrot.slane %v4812_v10, 5  ;;  %v8077_v10 = vld [vmem:[%s14048_s0 + $0x8c] sm:$0x1] }
 0x29f   :  { %v3892_v25 = vpop.permute.xlu0 %3891  ;;  %v8151_v17 = vrot.slane %v8069_v19, 9  ;;  %v5882_v20 = vsel %vm9171_vm7, %v5880_v33, %v5881_v8  ;;  %v4848_v54 = vrot.slane %v4846_v55, 5  ;;  %v5892_v33 = vrot.slane %v8076_v27, 5  ;;  %v7987_v55 = vld [vmem:[%s14048_s0 + $0xa4] sm:$0x1] }
 0x2a0   :  { %4074 = vst.msk [vmem:[#allocation2 + $0x28] sm:$0xf] %vm4063_vm12, %v3892_v25  ;;  %v3898_v62 = vpop.permute.xlu1 %3897  ;;  %v4836_v25 = vshll.u32 %v7980_v15, 16 }
 0x2a1   :  { %6071 = vrot.lane.b32.xlu0 %v5865_v21, %s8432_s16  ;;  %4077 = vst.msk [vmem:[#allocation2 + $0x34] sm:$0xf] %vm4063_vm12, %v3898_v62  ;;  %v4803_v21 = vshrl.u32 %v7976_v37, 16  ;;  %v5879_v45 = vsel %vm9171_vm7, %v8151_v17, %v5878_v22  ;;  %v7983_v37 = vld [vmem:[%s14048_s0 + $0x94] sm:$0xf]  ;;  %v5894_v17 = vrot.slane %v5892_v33, 4 }
 0x2a2   :  { %4283 = vrot.lane.b32.xlu1 %v7901_v11, %s8430_s21  ;;  %v4840_v11 = vshrl.u32 %v7980_v15, 16  ;;  %v11672_v40 = vrot.slane %v4836_v25, 5 }
 0x2a3   :  { %v3896_v38 = vpop.permute.xlu0 %3895  ;;  %v4805_v62 = vrot.slane %v4803_v21, 4 }
 0x2a4   :  { %4076 = vst.msk [vmem:[#allocation2 + $0x30] sm:$0xf] %vm4063_vm12, %v3896_v38  ;;  %v3902_v42 = vpop.permute.xlu1 %3901  ;;  %v4819_v38 = vor.u32 %v4818_v24, %v11654_v50  ;;  %v4842_v41 = vrot.slane %v4840_v11, 4  ;;  %v7982_v24 = vld [vmem:[%s14048_s0 + $0x90] sm:$0xf] }
 0x2a5   :  { %4281 = vrot.lane.b32.xlu0 %v7900_v30, %s8430_s21  ;;  %4079 = vst.msk [vmem:[#allocation2 + $0x3c] sm:$0xf] %vm4063_vm12, %v3902_v42  ;;  %v4827_v30 = vshrl.u32 %v7979_v52, 16  ;;  %v7904_v42 = vld [vmem:[%s14048_s0 + $0x78] sm:$0xf]  ;;  %v4809_v43 = vor.u32 %v4808_v16, %v4805_v62  ;;  %v4854_v62 = vshll.u32 %v7982_v24, 16 }
 0x2a6   :  { %4287 = vrot.lane.b32.xlu1 %v7903_v2, %s8430_s21  ;;  %v4822_v2 = vshll.u32 %v7978_v12, 16  ;;  %v4843_v53 = vor.u32 %v4842_v41, %v11672_v40  ;;  %v7986_v11 = vld [vmem:[%s14048_s0 + $0xa0] sm:$0xf] }
 0x2a7   :  { %v3900_v13 = vpop.permute.xlu0 %3899  ;;  %v4856_v7 = vrot.slane %v4854_v62, 5 }
 0x2a8   :  { %4078 = vst.msk [vmem:[#allocation2 + $0x38] sm:$0xf] %vm4063_vm12, %v3900_v13  ;;  %v3906_v34 = vpop.permute.xlu1 %3905  ;;  %v7907_v13 = vld [vmem:[%s14048_s0 + $0x88] sm:$0xf]  ;;  %v4824_v51 = vrot.slane %v4822_v2, 5 }
 0x2a9   :  { %4285 = vrot.lane.b32.xlu0 %v7902_v31, %s8430_s21  ;;  %4081 = vst.msk [vmem:[#allocation2 + $0x44] sm:$0xf] %vm4063_vm12, %v3906_v34  ;;  %v4829_v31 = vrot.slane %v4827_v30, 4  ;;  %v8073_v34 = vld [vmem:[%s14048_s0 + $0x7c] sm:$0xf] }
 0x2aa   :  { %5404 = vrot.lane.b32.xlu1 %v4777_v48, %s8431_s22  ;;  %v4820_v48 = vrot.slane %v4819_v38, 4  ;;  %v5885_v44 = vrot.slane %v8073_v34, 5  ;;  %v7985_v38 = vld [vmem:[%s14048_s0 + $0x9c] sm:$0xf] }
 0x2ab   :  { %v3904_v63 = vpop.permute.xlu0 %3903  ;;  %v4833_v60 = vor.u32 %v4832_v46, %v4829_v31  ;;  %v7909_v46 = vld [vmem:[%s14048_s0 + $0x94] sm:$0xf] }
 0x2ac   :  { %4080 = vst.msk [vmem:[#allocation2 + $0x40] sm:$0xf] %vm4063_vm12, %v3904_v63  ;;  %v3910_v3 = vpop.permute.xlu1 %3909  ;;  %v4825_v63 = vsel %vm8483_vm2, %v4820_v48, %v4824_v51 }
 0x2ad   :  { %5402 = vrot.lane.b32.xlu0 %v4767_v59, %s8431_s22  ;;  %4083 = vst.msk [vmem:[#allocation2 + $0x4c] sm:$0xf] %vm4063_vm12, %v3910_v3  ;;  %v4810_v59 = vrot.slane %v4809_v43, 4  ;;  %v8074_v3 = vld [vmem:[%s14048_s0 + $0x80] sm:$0x1]  ;;  %v4878_v43 = vshll.u32 %v7985_v38, 16 }
 0x2ae   :  { %5408 = vrot.lane.b32.xlu1 %v4801_v0, %s8431_s22  ;;  %v4844_v0 = vrot.slane %v4843_v53, 4 }
 0x2af   :  { %v3908_v61 = vpop.permute.xlu0 %3907  ;;  %v4815_v4 = vsel %vm8483_vm2, %v4810_v59, %v11654_v50  ;;  %v4864_v50 = vshrl.u32 %v7983_v37, 16  ;;  %v4880_v59 = vrot.slane %v4878_v43, 5 }
 0x2b0   :  { %4082 = vst.msk [vmem:[#allocation2 + $0x48] sm:$0xf] %vm4063_vm12, %v3908_v61  ;;  %v3914_v14 = vpop.permute.xlu1 %3913  ;;  %v4849_v19 = vsel %vm8483_vm2, %v4844_v0, %v4848_v54  ;;  %v5887_v61 = vrot.slane %v5885_v44, 4 }
 0x2b1   :  { %5406 = vrot.lane.b32.xlu0 %v4791_v56, %s8431_s22  ;;  %4085 = vst.msk [vmem:[#allocation2 + $0x54] sm:$0xf] %vm4063_vm12, %v3914_v14  ;;  %v4834_v56 = vrot.slane %v4833_v60, 4  ;;  %v8152_v14 = vrot.slane %v8072_v6, 9  ;;  %v4866_v32 = vrot.slane %v4864_v50, 4 }
 0x2b2   :  { %6077 = vrot.lane.b32.xlu1 %v5875_v9, %s8432_s16  ;;  %v5888_v9 = vrot.slane %v8074_v3, 5  ;;  %v7910_v3 = vld [vmem:[%s14048_s0 + $0x9c] sm:$0xf] }
 0x2b3   :  { %v3912_v49 = vpop.permute.xlu0 %3911  ;;  %v4839_v15 = vsel %vm8483_vm2, %v4834_v56, %v11672_v40  ;;  %v5886_v52 = vsel %vm9171_vm7, %v8152_v14, %v5885_v44  ;;  %v7984_v40 = vld [vmem:[%s14048_s0 + $0x98] sm:$0x1]  ;;  %v4894_v44 = vshll.u32 %v7987_v55, 16 }
 0x2b4   :  { %4084 = vst.msk [vmem:[#allocation2 + $0x50] sm:$0xf] %vm4063_vm12, %v3912_v49  ;;  %v3918_v29 = vpop.permute.xlu1 %3917  ;;  %v5889_v58 = vsel %vm9171_vm7, %v5887_v61, %v5888_v9  ;;  %v4860_v49 = vshll.u32 %v7983_v37, 16  ;;  %v8082_v9 = vld [vmem:[%s14048_s0 + $0xa0] sm:$0xf] }
 0x2b5   :  { %6075 = vrot.lane.b32.xlu0 %v5872_v18, %s8432_s16  ;;  %4087 = vst.msk [vmem:[#allocation2 + $0x5c] sm:$0xf] %vm4063_vm12, %v3918_v29  ;;  %v5895_v18 = vrot.slane %v8077_v10, 5 }
 0x2b6   :  { %6081 = vrot.lane.b32.xlu1 %v5882_v20, %s8432_s16  ;;  %v8075_v20 = vld [vmem:[%s14048_s0 + $0x84] sm:$0xe]  ;;  %v11750_v30 = vrot.slane %v4860_v49, 5  ;;  %v8083_v49 = vld [vmem:[%s14048_s0 + $0xa4] sm:$0x1] }
 0x2b7   :  { %v3916_v35 = vpop.permute.xlu0 %3915  ;;  %v8153_v29 = vrot.slane %v8075_v20, 9  ;;  %v5896_v12 = vsel %vm9171_vm7, %v5894_v17, %v5895_v18 }
 0x2b8   :  { %4086 = vst.msk [vmem:[#allocation2 + $0x58] sm:$0xf] %vm4063_vm12, %v3916_v35  ;;  %v3922_v5 = vpop.permute.xlu1 %3921  ;;  %v4884_v35 = vshll.u32 %v7986_v11, 16 }
 0x2b9   :  { %6079 = vrot.lane.b32.xlu0 %v5879_v45, %s8432_s16  ;;  %4089 = vst.msk [vmem:[#allocation2 + $0x64] sm:$0xf] %vm4063_vm12, %v3922_v5  ;;  %v4851_v45 = vshrl.u32 %v7982_v24, 16  ;;  %v5893_v41 = vsel %vm9171_vm7, %v8153_v29, %v5892_v33  ;;  %v7989_v24 = vld [vmem:[%s14048_s0 + $0xac] sm:$0xf]  ;;  %v5909_v29 = vrot.slane %v8083_v49, 5 }
 0x2ba   :  { %4291 = vrot.lane.b32.xlu1 %v7905_v36, %s8430_s21  ;;  %v4888_v36 = vshrl.u32 %v7986_v11, 16  ;;  %v11768_v48 = vrot.slane %v4884_v35, 5 }
 0x2bb   :  { %v3920_v47 = vpop.permute.xlu0 %3919  ;;  %v4853_v5 = vrot.slane %v4851_v45, 4 }
 0x2bc   :  { %4088 = vst.msk [vmem:[#allocation2 + $0x60] sm:$0xf] %vm4063_vm12, %v3920_v47  ;;  %v3926_v57 = vpop.permute.xlu1 %3925  ;;  %v4867_v47 = vor.u32 %v4866_v32, %v11750_v30  ;;  %v4890_v51 = vrot.slane %v4888_v36, 4  ;;  %v7988_v32 = vld [vmem:[%s14048_s0 + $0xa8] sm:$0xf] }
 0x2bd   :  { %4289 = vrot.lane.b32.xlu0 %v7904_v42, %s8430_s21  ;;  %4091 = vst.msk [vmem:[#allocation2 + $0x6c] sm:$0xf] %vm4063_vm12, %v3926_v57  ;;  %v4875_v42 = vshrl.u32 %v7985_v38, 16  ;;  %v7908_v57 = vld [vmem:[%s14048_s0 + $0x90] sm:$0xf]  ;;  %v4857_v34 = vor.u32 %v4856_v7, %v4853_v5  ;;  %v4902_v5 = vshll.u32 %v7988_v32, 16 }
 0x2be   :  { %4295 = vrot.lane.b32.xlu1 %v7907_v13, %s8430_s21  ;;  %v4870_v13 = vshll.u32 %v7984_v40, 16  ;;  %v4891_v54 = vor.u32 %v4890_v51, %v11768_v48  ;;  %v7992_v36 = vld [vmem:[%s14048_s0 + $0xb8] sm:$0xf] }
 0x2bf   :  { %v3924_v22 = vpop.permute.xlu0 %3923 }
 0x2c0   :  { %4090 = vst.msk [vmem:[#allocation2 + $0x68] sm:$0xf] %vm4063_vm12, %v3924_v22  ;;  %v3930_v28 = vpop.permute.xlu1 %3929  ;;  %v7911_v22 = vld [vmem:[%s14048_s0 + $0xa0] sm:$0xf]  ;;  %v4872_v0 = vrot.slane %v4870_v13, 5 }
 0x2c1   :  { %4293 = vrot.lane.b32.xlu0 %v7906_v39, %s8430_s21  ;;  %4093 = vst.msk [vmem:[#allocation2 + $0x74] sm:$0xf] %vm4063_vm12, %v3930_v28  ;;  %v4877_v39 = vrot.slane %v4875_v42, 4  ;;  %v8079_v28 = vld [vmem:[%s14048_s0 + $0x94] sm:$0xf] }
 0x2c2   :  { %5412 = vrot.lane.b32.xlu1 %v4825_v63, %s8431_s22  ;;  %v4868_v63 = vrot.slane %v4867_v47, 4  ;;  %v5899_v61 = vrot.slane %v8079_v28, 5  ;;  %v7991_v47 = vld [vmem:[%s14048_s0 + $0xb4] sm:$0xf]  ;;  %v7912_v28 = vld [vmem:[%s14048_s0 + $0xa8] sm:$0xf] }
 0x2c3   :  { %v3928_v8 = vpop.permute.xlu0 %3927  ;;  %v4881_v56 = vor.u32 %v4880_v59, %v4877_v39  ;;  %v4926_v39 = vshll.u32 %v7991_v47, 16 }
 0x2c4   :  { %4092 = vst.msk [vmem:[#allocation2 + $0x70] sm:$0xf] %vm4063_vm12, %v3928_v8  ;;  %v3934_v1 = vpop.permute.xlu1 %3933  ;;  %v4873_v33 = vsel %vm8483_vm2, %v4868_v63, %v4872_v0  ;;  %v4892_v8 = vrot.slane %v4891_v54, 4  ;;  %v5901_v20 = vrot.slane %v5899_v61, 4 }
 0x2c5   :  { %5410 = vrot.lane.b32.xlu0 %v4815_v4, %s8431_s22  ;;  %4095 = vst.msk [vmem:[#allocation2 + $0x7c] sm:$0xf] %vm4063_vm12, %v3934_v1  ;;  %v4858_v4 = vrot.slane %v4857_v34, 4  ;;  %v8080_v1 = vld [vmem:[%s14048_s0 + $0x98] sm:$0x1]  ;;  %v4882_v14 = vrot.slane %v4881_v56, 4 }
 0x2c6   :  { %5416 = vrot.lane.b32.xlu1 %v4849_v19, %s8431_s22  ;;  %v4896_v19 = vrot.slane %v4894_v44, 5  ;;  %v4923_v34 = vshrl.u32 %v7991_v47, 16 }
 0x2c7   :  { %v3932_v21 = vpop.permute.xlu0 %3931  ;;  %v4863_v37 = vsel %vm8483_vm2, %v4858_v4, %v11750_v30  ;;  %v4912_v30 = vshrl.u32 %v7989_v24, 16 }
 0x2c8   :  { %4094 = vst.msk [vmem:[#allocation2 + $0x78] sm:$0xf] %vm4063_vm12, %v3932_v21  ;;  %v3938_v25 = vpop.permute.xlu1 %3937  ;;  %v4897_v18 = vsel %vm8483_vm2, %v4892_v8, %v4896_v19  ;;  %v5902_v21 = vrot.slane %v8080_v1, 5  ;;  %v4925_v56 = vrot.slane %v4923_v34, 4 }
 0x2c9   :  { %5414 = vrot.lane.b32.xlu0 %v4839_v15, %s8431_s22  ;;  %4097 = vst.msk [vmem:[#allocation2 + $0x84] sm:$0xf] %vm4063_vm12, %v3938_v25  ;;  %v5906_v15 = vrot.slane %v8082_v9, 5  ;;  %v4887_v25 = vsel %vm8483_vm2, %v4882_v14, %v11768_v48  ;;  %v4914_v43 = vrot.slane %v4912_v30, 4  ;;  %v7990_v48 = vld [vmem:[%s14048_s0 + $0xb0] sm:$0x1] }
 0x2ca   :  { %6085 = vrot.lane.b32.xlu1 %v5889_v58, %s8432_s16  ;;  %v8078_v58 = vld [vmem:[%s14048_s0 + $0x90] sm:$0xe]  ;;  %v5903_v62 = vsel %vm9171_vm7, %v5901_v20, %v5902_v21  ;;  %v4918_v63 = vshll.u32 %v7990_v48, 16  ;;  %v7914_v14 = vld [vmem:[%s14048_s0 + $0xb4] sm:$0xf] }
 0x2cb   :  { %v3936_v16 = vpop.permute.xlu0 %3935  ;;  %v8154_v11 = vrot.slane %v8078_v58, 9  ;;  %v8084_v30 = vld [vmem:[%s14048_s0 + $0xa8] sm:$0xe] }
 0x2cc   :  { %4096 = vst.msk [vmem:[#allocation2 + $0x80] sm:$0xf] %vm4063_vm12, %v3936_v16  ;;  %v4260_v2 = vpop.permute.xlu1 %4259  ;;  %v4908_v16 = vshll.u32 %v7989_v24, 16 }
 0x2cd   :  { %6083 = vrot.lane.b32.xlu0 %v5886_v52, %s8432_s16  ;;  %4451 = vst.msk [vmem:[#allocation2 + $0x4] sm:$0xf] %vm4449_vm13, %v4260_v2  ;;  %v5908_v52 = vrot.slane %v5906_v15, 4  ;;  %v5900_v2 = vsel %vm9171_vm7, %v8154_v11, %v5899_v61  ;;  %v4920_v61 = vrot.slane %v4918_v63, 5  ;;  %v7997_v63 = vld [vmem:[%s14048_s0 + $0xcc] sm:$0xf] }
 0x2ce   :  { %6089 = vrot.lane.b32.xlu1 %v5896_v12, %s8432_s16  ;;  %v8081_v12 = vld [vmem:[%s14048_s0 + $0x9c] sm:$0xe]  ;;  %v11846_v42 = vrot.slane %v4908_v16, 5 }
 0x2cf   :  { %v4258_v31 = vpop.permute.xlu0 %4257  ;;  %v8155_v38 = vrot.slane %v8081_v12, 9  ;;  %v5910_v40 = vsel %vm9171_vm7, %v5908_v52, %v5909_v29 }
 0x2d0   :  { %4450 = vst.msk [vmem:[#allocation2] sm:$0xf] %vm4449_vm13, %v4258_v31  ;;  %v4264_v53 = vpop.permute.xlu1 %4263  ;;  %v4932_v31 = vshll.u32 %v7992_v36, 16 }
 0x2d1   :  { %6087 = vrot.lane.b32.xlu0 %v5893_v41, %s8432_s16  ;;  %4453 = vst.msk [vmem:[#allocation2 + $0xc] sm:$0xf] %vm4449_vm13, %v4264_v53  ;;  %v4899_v41 = vshrl.u32 %v7988_v32, 16  ;;  %v5907_v51 = vsel %vm9171_vm7, %v8155_v38, %v5906_v15  ;;  %v7913_v53 = vld [vmem:[%s14048_s0 + $0xac] sm:$0xf] }
 0x2d2   :  { %4299 = vrot.lane.b32.xlu1 %v7909_v46, %s8430_s21  ;;  %v4936_v46 = vshrl.u32 %v7992_v36, 16  ;;  %v11864_v0 = vrot.slane %v4932_v31, 5  ;;  %v8089_v32 = vld [vmem:[%s14048_s0 + $0xbc] sm:$0x1]  ;;  %v7995_v36 = vld [vmem:[%s14048_s0 + $0xc4] sm:$0xf] }
 0x2d3   :  { %v4262_v60 = vpop.permute.xlu0 %4261  ;;  %v4901_v55 = vrot.slane %v4899_v41, 4  ;;  %v5923_v41 = vrot.slane %v8089_v32, 5  ;;  %v4960_v31 = vshrl.u32 %v7995_v36, 16 }
 0x2d4   :  { %4452 = vst.msk [vmem:[#allocation2 + $0x8] sm:$0xf] %vm4449_vm13, %v4262_v60  ;;  %v5381_v27 = vpop.permute.xlu1 %5380  ;;  %v4938_v54 = vrot.slane %v4936_v46, 4  ;;  %v7994_v46 = vld [vmem:[%s14048_s0 + $0xc0] sm:$0xf] }
 0x2d5   :  { %4297 = vrot.lane.b32.xlu0 %v7908_v57, %s8430_s21  ;;  %5572 = vst.msk [vmem:[#allocation2 + $0x4] sm:$0xf] %vm5570_vm14, %v5381_v27  ;;  %v4904_v57 = vrot.slane %v4902_v5, 5  ;;  %v7993_v27 = vld [vmem:[%s14048_s0 + $0xbc] sm:$0x1] }
 0x2d6   :  { %4303 = vrot.lane.b32.xlu1 %v7911_v22, %s8430_s21  ;;  %v4915_v22 = vor.u32 %v4914_v43, %v11846_v42  ;;  %v4939_v9 = vor.u32 %v4938_v54, %v11864_v0  ;;  %v8087_v5 = vld [vmem:[%s14048_s0 + $0xb4] sm:$0xe]  ;;  %v4956_v43 = vshll.u32 %v7995_v36, 16  ;;  %v7996_v54 = vld [vmem:[%s14048_s0 + $0xc8] sm:$0x1] }
 0x2d7   :  { %v5379_v6 = vpop.permute.xlu0 %5378  ;;  %v4905_v4 = vor.u32 %v4904_v57, %v4901_v55  ;;  %v8157_v48 = vrot.slane %v8087_v5, 9  ;;  %v4947_v55 = vshrl.u32 %v7994_v46, 16  ;;  %v4950_v57 = vshll.u32 %v7994_v46, 16  ;;  %v8092_v36 = vld [vmem:[%s14048_s0 + $0xc8] sm:$0x1] }
 0x2d8   :  { %5571 = vst.msk [vmem:[#allocation2] sm:$0xf] %vm5570_vm14, %v5379_v6  ;;  %v5385_v10 = vpop.permute.xlu1 %5384  ;;  %v4928_v6 = vrot.slane %v4926_v39, 5  ;;  %v4916_v19 = vrot.slane %v4915_v22, 4  ;;  %v4940_v21 = vrot.slane %v4939_v9, 4  ;;  %v11944_v39 = vrot.slane %v4956_v43, 5 }
 0x2d9   :  { %4301 = vrot.lane.b32.xlu0 %v7910_v3, %s8430_s21  ;;  %5574 = vst.msk [vmem:[#allocation2 + $0xc] sm:$0xf] %vm5570_vm14, %v5385_v10  ;;  %v7915_v3 = vld [vmem:[%s14048_s0 + $0xb8] sm:$0xf]  ;;  %v4942_v10 = vshll.u32 %v7993_v27, 16  ;;  %v4906_v15 = vrot.slane %v4905_v4, 4 }
 0x2da   :  { %5420 = vrot.lane.b32.xlu1 %v4873_v33, %s8431_s22  ;;  %v4921_v20 = vsel %vm8483_vm2, %v4916_v19, %v4920_v61  ;;  %v7917_v27 = vld [vmem:[%s14048_s0 + $0xc4] sm:$0xf]  ;;  %v4971_v4 = vshrl.u32 %v7997_v63, 16  ;;  %v4966_v19 = vshll.u32 %v7996_v54, 16  ;;  %v8090_v43 = vld [vmem:[%s14048_s0 + $0xc0] sm:$0xe] }
 0x2db   :  { %v5383_v17 = vpop.permute.xlu0 %5382  ;;  %v4944_v58 = vrot.slane %v4942_v10, 5  ;;  %v4911_v11 = vsel %vm8483_vm2, %v4906_v15, %v11846_v42 }
 0x2dc   :  { %5573 = vst.msk [vmem:[#allocation2 + $0x8] sm:$0xf] %vm5570_vm14, %v5383_v17  ;;  %v6054_v50 = vpop.permute.xlu1 %6053  ;;  %v4929_v17 = vor.u32 %v4928_v6, %v4925_v56  ;;  %v4974_v56 = vshll.u32 %v7997_v63, 16  ;;  %v7813_v63 = vld [vmem:[%s14048_s0 + $0xf8] sm:$0x1] }
 0x2dd   :  { %5418 = vrot.lane.b32.xlu0 %v4863_v37, %s8431_s22  ;;  %6245 = vst.msk [vmem:[#allocation2 + $0x4] sm:$0xf] %vm6243_vm15, %v6054_v50  ;;  %v8085_v37 = vld [vmem:[%s14048_s0 + $0xac] sm:$0xf]  ;;  %v8088_v50 = vld [vmem:[%s14048_s0 + $0xb8] sm:$0xf] }
 0x2de   :  { %5424 = vrot.lane.b32.xlu1 %v4897_v18, %s8431_s22  ;;  %v5913_v49 = vrot.slane %v8085_v37, 5  ;;  %v4930_v52 = vrot.slane %v4929_v17, 4  ;;  %v5920_v29 = vrot.slane %v8088_v50, 5  ;;  %v7916_v37 = vld [vmem:[%s14048_s0 + $0xc0] sm:$0xf]  ;;  %v4973_v17 = vrot.slane %v4971_v4, 4 }
 0x2df   :  { %v6052_v45 = vpop.permute.xlu0 %6051 }
 0x2e0   :  { %6244 = vst.msk [vmem:[#allocation2] sm:$0xf] %vm6243_vm15, %v6052_v45  ;;  %v6058_v35 = vpop.permute.xlu1 %6057  ;;  %v4945_v45 = vsel %vm8483_vm2, %v4940_v21, %v4944_v58  ;;  %v4935_v38 = vsel %vm8483_vm2, %v4930_v52, %v11864_v0  ;;  %v7918_v52 = vld [vmem:[%s14048_s0 + $0xcc] sm:$0xf] }
 0x2e1   :  { %5422 = vrot.lane.b32.xlu0 %v4887_v25, %s8431_s22  ;;  %6247 = vst.msk [vmem:[#allocation2 + $0xc] sm:$0xf] %vm6243_vm15, %v6058_v35  ;;  %v8086_v25 = vld [vmem:[%s14048_s0 + $0xb0] sm:$0x1] }
 0x2e2   :  { %6093 = vrot.lane.b32.xlu1 %v5903_v62, %s8432_s16  ;;  %v5915_v62 = vrot.slane %v5913_v49, 4  ;;  %v5916_v16 = vrot.slane %v8086_v25, 5 }
 0x2e3   :  { %v6056_v7 = vpop.permute.xlu0 %6055 }
 0x2e4   :  { %6246 = vst.msk [vmem:[#allocation2 + $0x8] sm:$0xf] %vm6243_vm15, %v6056_v7  ;;  %v4268_v13 = vpop.permute.xlu1 %4267  ;;  %v5917_v42 = vsel %vm9171_vm7, %v5915_v62, %v5916_v16 }
 0x2e5   :  { %6091 = vrot.lane.b32.xlu0 %v5900_v2, %s8432_s16  ;;  %4455 = vst.msk [vmem:[#allocation2 + $0x14] sm:$0xf] %vm4449_vm13, %v4268_v13  ;;  %v8156_v2 = vrot.slane %v8084_v30, 9  ;;  %v7998_v13 = vld [vmem:[%s14048_s0 + $0xd0] sm:$0xf] }
 0x2e6   :  { %6097 = vrot.lane.b32.xlu1 %v5910_v40, %s8432_s16  ;;  %v5922_v40 = vrot.slane %v5920_v29, 4  ;;  %v4984_v22 = vshrl.u32 %v7998_v13, 16 }
 0x2e7   :  { %v4266_v59 = vpop.permute.xlu0 %4265  ;;  %v8369_v60 = vld [vmem:[#allocation2] sm:$0xff]  }
 0x2e8   :  { %4454 = vst.msk [vmem:[#allocation2 + $0x10] sm:$0xf] %vm4449_vm13, %v4266_v59  ;;  %v4272_v44 = vpop.permute.xlu1 %4271  ;;  %8284 = vmatprep.mubr.msk.bf16.mxu0 %vm6552_vm0, %v8369_v60  ;;  %v4962_v59 = vrot.slane %v4960_v31, 4  ;;  %v4980_v60 = vshll.u32 %v7998_v13, 16  ;;  %v4986_v9 = vrot.slane %v4984_v22, 4 }
 0x2e9   :  { %6095 = vrot.lane.b32.xlu0 %v5907_v51, %s8432_s16  ;;  %4457 = vst.msk [vmem:[#allocation2 + $0x1c] sm:$0xf] %vm4449_vm13, %v4272_v44  ;;  %v5914_v51 = vsel %vm9171_vm7, %v8156_v2, %v5913_v49  ;;  %v5921_v44 = vsel %vm9171_vm7, %v8157_v48, %v5920_v29  ;;  %v4968_v49 = vrot.slane %v4966_v19, 5  ;;  %v7812_v13 = vld [vmem:[%s14048_s0 + $0xf4] sm:$0xf] }
 0x2ea   :  { %4307 = vrot.lane.b32.xlu1 %v7913_v53, %s8430_s21  ;;  %v5924_v53 = vsel %vm9171_vm7, %v5922_v40, %v5923_v41  ;;  %v11962_v61 = vrot.slane %v4980_v60, 5  ;;  %v8001_v60 = vld [vmem:[%s14048_s0 + $0xf4] sm:$0xf] }
 0x2eb   :  { %v4270_v33 = vpop.permute.xlu0 %4269  ;;  %v8370_v8 = vld [vmem:[#allocation2 + $0x8] sm:$0xff]  }
 0x2ec   :  { %4456 = vst.msk [vmem:[#allocation2 + $0x18] sm:$0xf] %vm4449_vm13, %v4270_v33  ;;  %v5389_v1 = vpop.permute.xlu1 %5388  ;;  %8285 = vmatmul.mubr.msk.bf16.vlgmr.msra.gmra.mxu0 %vm6552_vm0, %v8370_v8  ;;  %v4963_v8 = vor.u32 %v4962_v59, %v11944_v39  ;;  %v4987_v50 = vor.u32 %v4986_v9, %v11962_v61  ;;  %v3768_v59 = vrot.slane %v7812_v13, 5 }
 0x2ed   :  { %4305 = vrot.lane.b32.xlu0 %v7912_v28, %s8430_s21  ;;  %5576 = vst.msk [vmem:[#allocation2 + $0x14] sm:$0xf] %vm5570_vm14, %v5389_v1  ;;  %v4949_v28 = vrot.slane %v4947_v55, 4  ;;  %v7999_v1 = vld [vmem:[%s14048_s0 + $0xd4] sm:$0x1] }
 0x2ee   :  { %4311 = vrot.lane.b32.xlu1 %v7915_v3, %s8430_s21  ;;  %v4952_v3 = vrot.slane %v4950_v57, 5  ;;  %v4964_v58 = vrot.slane %v4963_v8, 4  ;;  %v4988_v16 = vrot.slane %v4987_v50, 4  ;;  %v8004_v8 = vld [vmem:[%s14048_s0 + $0x100] sm:$0xf] }
 0x2ef   :  { %v5387_v18 = vpop.permute.xlu0 %5386  ;;  %v8002_v50 = vld [vmem:[%s14048_s0 + $0xf8] sm:$0x1] }
 0x2f0   :  { %5575 = vst.msk [vmem:[#allocation2 + $0x10] sm:$0xf] %vm5570_vm14, %v5387_v18  ;;  %v5393_v24 = vpop.permute.xlu1 %5392  ;;  %v4953_v15 = vor.u32 %v4952_v3, %v4949_v28  ;;  %v4976_v18 = vrot.slane %v4974_v56, 5  ;;  %v4969_v62 = vsel %vm8483_vm2, %v4964_v58, %v4968_v49  ;;  %v5008_v28 = vshrl.u32 %v8001_v60, 16  ;;  %v8000_v3 = vld [vmem:[%s14048_s0 + $0xf0] sm:$0xf] }
 0x2f1   :  { %4309 = vrot.lane.b32.xlu0 %v7914_v14, %s8430_s21  ;;  %5578 = vst.msk [vmem:[#allocation2 + $0x1c] sm:$0xf] %vm5570_vm14, %v5393_v24  ;;  %v7919_v14 = vld [vmem:[%s14048_s0 + $0xd0] sm:$0xf]  ;;  %v4990_v24 = vshll.u32 %v7999_v1, 16 }
 0x2f2   :  { %5428 = vrot.lane.b32.xlu1 %v4921_v20, %s8431_s22  ;;  %v4954_v29 = vrot.slane %v4953_v15, 4  ;;  %v5028_v15 = vshll.u32 %v8004_v8, 16  ;;  %v8003_v58 = vld [vmem:[%s14048_s0 + $0xfc] sm:$0xf] }
 0x2f3   :  { %v5391_v12 = vpop.permute.xlu0 %5390  ;;  %v4992_v30 = vrot.slane %v4990_v24, 5 }
 0x2f4   :  { %5577 = vst.msk [vmem:[#allocation2 + $0x18] sm:$0xf] %vm5570_vm14, %v5391_v12  ;;  %v6062_v35 = vpop.permute.xlu1 %6061  ;;  %v4977_v12 = vor.u32 %v4976_v18, %v4973_v17  ;;  %v4959_v2 = vsel %vm8483_vm2, %v4954_v29, %v11944_v39  ;;  %v5019_v29 = vshrl.u32 %v8003_v58, 16 }
 0x2f5   :  { %5426 = vrot.lane.b32.xlu0 %v4911_v11, %s8431_s22  ;;  %6249 = vst.msk [vmem:[#allocation2 + $0x14] sm:$0xf] %vm6243_vm15, %v6062_v35  ;;  %v8091_v11 = vld [vmem:[%s14048_s0 + $0xc4] sm:$0xf]  ;;  %v4993_v5 = vsel %vm8483_vm2, %v4988_v16, %v4992_v30  ;;  %v5014_v30 = vshll.u32 %v8002_v50, 16 }
 0x2f6   :  { %5432 = vrot.lane.b32.xlu1 %v4945_v45, %s8431_s22  ;;  %v5927_v32 = vrot.slane %v8091_v11, 5  ;;  %v4978_v40 = vrot.slane %v4977_v12, 4  ;;  %v5022_v12 = vshll.u32 %v8003_v58, 16 }
 0x2f7   :  { %v6060_v7 = vpop.permute.xlu0 %6059 }
 0x2f8   :  { %6248 = vst.msk [vmem:[#allocation2 + $0x10] sm:$0xf] %vm6243_vm15, %v6060_v7  ;;  %v6066_v47 = vpop.permute.xlu1 %6065  ;;  %v5929_v7 = vrot.slane %v5927_v32, 4  ;;  %v4983_v48 = vsel %vm8483_vm2, %v4978_v40, %v11962_v61 }
 0x2f9   :  { %5430 = vrot.lane.b32.xlu0 %v4935_v38, %s8431_s22  ;;  %6251 = vst.msk [vmem:[#allocation2 + $0x1c] sm:$0xf] %vm6243_vm15, %v6066_v47  ;;  %v8094_v38 = vld [vmem:[%s14048_s0 + $0xd0] sm:$0xf]  ;;  %v8095_v47 = vld [vmem:[%s14048_s0 + $0xd4] sm:$0x1] }
 0x2fa   :  { %6101 = vrot.lane.b32.xlu1 %v5917_v42, %s8432_s16  ;;  %v5930_v42 = vrot.slane %v8092_v36, 5  ;;  %v5934_v31 = vrot.slane %v8094_v38, 5  ;;  %v5937_v39 = vrot.slane %v8095_v47, 5  ;;  %v8005_v38 = vld [vmem:[%s14048_s0 + $0x104] sm:$0x1] }
 0x2fb   :  { %v6064_v34 = vpop.permute.xlu0 %6063  ;;  %v5038_v47 = vshll.u32 %v8005_v38, 16  ;;  %v7817_v38 = vld [vmem:[%s14048_s0 + $0x108] sm:$0xe] }
 0x2fc   :  { %6250 = vst.msk [vmem:[#allocation2 + $0x18] sm:$0xf] %vm6243_vm15, %v6064_v34  ;;  %v4276_v0 = vpop.permute.xlu1 %4275  ;;  %v5931_v57 = vsel %vm9171_vm7, %v5929_v7, %v5930_v42  ;;  %v5936_v34 = vrot.slane %v5934_v31, 4  ;;  %v7923_v42 = vld [vmem:[%s14048_s0 + $0x100] sm:$0xf] }
 0x2fd   :  { %6099 = vrot.lane.b32.xlu0 %v5914_v51, %s8432_s16  ;;  %4459 = vst.msk [vmem:[#allocation2 + $0x24] sm:$0xf] %vm4449_vm13, %v4276_v0  ;;  %v8158_v51 = vrot.slane %v8090_v43, 9 }
 0x2fe   :  { %6105 = vrot.lane.b32.xlu1 %v5924_v53, %s8432_s16  ;;  %v8093_v53 = vld [vmem:[%s14048_s0 + $0xcc] sm:$0xe]  ;;  %v5938_v56 = vsel %vm9171_vm7, %v5936_v34, %v5937_v39 }
 0x2ff   :  { %v4274_v6 = vpop.permute.xlu0 %4273  ;;  %v8371_v33 = vld [vmem:[#allocation2 + $0x10] sm:$0xff]   ;;  %v8159_v0 = vrot.slane %v8093_v53, 9  ;;  %v5928_v54 = vsel %vm9171_vm7, %v8158_v51, %v5927_v32  ;;  %v12078_v32 = vrot.slane %v5028_v15, 5  ;;  %v7922_v51 = vld [vmem:[%s14048_s0 + $0xfc] sm:$0xf] }
 0x300   :  { %4458 = vst.msk [vmem:[#allocation2 + $0x20] sm:$0xf] %vm4449_vm13, %v4274_v6  ;;  %v4280_v10 = vpop.permute.xlu1 %4279  ;;  %8288 = vmatprep.mubr.msk.bf16.mxu0 %vm6552_vm0, %v8371_v33  ;;  %v3770_v6 = vrot.slane %v3768_v59, 4  ;;  %v3771_v33 = vrot.slane %v7813_v63, 5  ;;  %v8098_v63 = vld [vmem:[%s14048_s0 + $0xf8] sm:$0x1] }
 0x301   :  { %6103 = vrot.lane.b32.xlu0 %v5921_v44, %s8432_s16  ;;  %4461 = vst.msk [vmem:[#allocation2 + $0x2c] sm:$0xf] %vm4449_vm13, %v4280_v10  ;;  %v7811_v44 = vld [vmem:[%s14048_s0 + $0xf0] sm:$0xe]  ;;  %v5935_v61 = vsel %vm9171_vm7, %v8159_v0, %v5934_v31  ;;  %v4995_v10 = vshrl.u32 %v8000_v3, 16  ;;  %v5016_v31 = vrot.slane %v5014_v30, 5 }
 0x302   :  { %4315 = vrot.lane.b32.xlu1 %v7917_v27, %s8430_s21  ;;  %v5004_v27 = vshll.u32 %v8001_v60, 16  ;;  %v7873_v9 = vrot.slane %v7811_v44, 9  ;;  %v8100_v0 = vld [vmem:[%s14048_s0 + $0x100] sm:$0xf] }
 0x303   :  { %v4278_v20 = vpop.permute.xlu0 %4277  ;;  %v8372_v21 = vld [vmem:[#allocation2 + $0x18] sm:$0xff]   ;;  %v4997_v11 = vrot.slane %v4995_v10, 4 }
 0x304   :  { %4460 = vst.msk [vmem:[#allocation2 + $0x28] sm:$0xf] %vm4449_vm13, %v4278_v20  ;;  %v5397_v25 = vpop.permute.xlu1 %5396  ;;  %8289 = vmatmul.mubr.msk.bf16.gmra.mxu0 %vm6552_vm0, %v8372_v21  ;;  %v12057_v1 = vrot.slane %v5004_v27, 5  ;;  %v3772_v20 = vsel %vm9171_vm7, %v3770_v6, %v3771_v33  ;;  %v5032_v21 = vshrl.u32 %v8004_v8, 16  ;;  %v3769_v24 = vsel %vm9171_vm7, %v7873_v9, %v3768_v59  ;;  %v8096_v27 = vld [vmem:[%s14048_s0 + $0xf0] sm:$0xe] }
 0x305   :  { %4313 = vrot.lane.b32.xlu0 %v7916_v37, %s8430_s21  ;;  %5580 = vst.msk [vmem:[#allocation2 + $0x24] sm:$0xf] %vm5570_vm14, %v5397_v25  ;;  %v5010_v37 = vrot.slane %v5008_v28, 4  ;;  %v7921_v25 = vld [vmem:[%s14048_s0 + $0xf4] sm:$0xf]  ;;  %v5040_v59 = vrot.slane %v5038_v47, 5 }
 0x306   :  { %4319 = vrot.lane.b32.xlu1 %v7919_v14, %s8430_s21  ;;  %v4998_v14 = vshll.u32 %v8000_v3, 16  ;;  %v5948_v6 = vrot.slane %v8100_v0, 5  ;;  %v7815_v33 = vld [vmem:[%s14048_s0 + $0x100] sm:$0xf]  ;;  %v8160_v9 = vrot.slane %v8096_v27, 9 }
 0x307   :  { %v5395_v45 = vpop.permute.xlu0 %5394  ;;  %v5011_v16 = vor.u32 %v5010_v37, %v12057_v1  ;;  %v3775_v10 = vrot.slane %v7815_v33, 5 }
 0x308   :  { %5579 = vst.msk [vmem:[#allocation2 + $0x20] sm:$0xf] %vm5570_vm14, %v5395_v45  ;;  %v5401_v35 = vpop.permute.xlu1 %5400 }
 0x309   :  { %4317 = vrot.lane.b32.xlu0 %v7918_v52, %s8430_s21  ;;  %5582 = vst.msk [vmem:[#allocation2 + $0x2c] sm:$0xf] %vm5570_vm14, %v5401_v35  ;;  %v5000_v52 = vrot.slane %v4998_v14, 5  ;;  %v5034_v35 = vrot.slane %v5032_v21, 4  ;;  %v5012_v43 = vrot.slane %v5011_v16, 4  ;;  %v5950_v14 = vrot.slane %v5948_v6, 4 }
 0x30a   :  { %5436 = vrot.lane.b32.xlu1 %v4969_v62, %s8431_s22  ;;  %v7816_v21 = vld [vmem:[%s14048_s0 + $0x104] sm:$0x1]  ;;  %v3777_v50 = vrot.slane %v3775_v10, 4  ;;  %v8007_v16 = vld [vmem:[%s14048_s0 + $0x10c] sm:$0xf] }
 0x30b   :  { %v5399_v41 = vpop.permute.xlu0 %5398  ;;  %v5001_v40 = vor.u32 %v5000_v52, %v4997_v11  ;;  %v5017_v34 = vsel %vm8483_vm2, %v5012_v43, %v5016_v31  ;;  %v8010_v31 = vld [vmem:[%s14048_s0 + $0x118] sm:$0xf] }
 0x30c   :  { %5581 = vst.msk [vmem:[#allocation2 + $0x28] sm:$0xf] %vm5570_vm14, %v5399_v41  ;;  %v6070_v46 = vpop.permute.xlu1 %6069  ;;  %v5021_v41 = vrot.slane %v5019_v29, 4 }
 0x30d   :  { %5434 = vrot.lane.b32.xlu0 %v4959_v2, %s8431_s22  ;;  %6253 = vst.msk [vmem:[#allocation2 + $0x24] sm:$0xf] %vm6243_vm15, %v6070_v46  ;;  %v7920_v2 = vld [vmem:[%s14048_s0 + $0xf0] sm:$0xf]  ;;  %v5035_v46 = vor.u32 %v5034_v35, %v12078_v32  ;;  %v5002_v53 = vrot.slane %v5001_v40, 4 }
 0x30e   :  { %5440 = vrot.lane.b32.xlu1 %v4993_v5, %s8431_s22  ;;  %v5024_v5 = vrot.slane %v5022_v12, 5  ;;  %v3778_v12 = vrot.slane %v7816_v21, 5  ;;  %v8103_v21 = vld [vmem:[%s14048_s0 + $0x10c] sm:$0xf] }
 0x30f   :  { %v6068_v55 = vpop.permute.xlu0 %6067  ;;  %v5036_v39 = vrot.slane %v5035_v46, 4  ;;  %v7875_v46 = vrot.slane %v7817_v38, 9 }
 0x310   :  { %6252 = vst.msk [vmem:[#allocation2 + $0x20] sm:$0xf] %vm6243_vm15, %v6068_v55  ;;  %v6074_v22 = vpop.permute.xlu1 %6073  ;;  %v5025_v55 = vor.u32 %v5024_v5, %v5021_v41  ;;  %v3779_v5 = vsel %vm9171_vm7, %v3777_v50, %v3778_v12 }
 0x311   :  { %5438 = vrot.lane.b32.xlu0 %v4983_v48, %s8431_s22  ;;  %6255 = vst.msk [vmem:[#allocation2 + $0x2c] sm:$0xf] %vm6243_vm15, %v6074_v22  ;;  %v8097_v48 = vld [vmem:[%s14048_s0 + $0xf4] sm:$0xf]  ;;  %v5041_v3 = vsel %vm8483_vm2, %v5036_v39, %v5040_v59  ;;  %v5080_v39 = vshrl.u32 %v8010_v31, 16 }
 0x312   :  { %6109 = vrot.lane.b32.xlu1 %v5931_v57, %s8432_s16  ;;  %v5941_v60 = vrot.slane %v8097_v48, 5  ;;  %v5026_v44 = vrot.slane %v5025_v55, 4  ;;  %v8009_v59 = vld [vmem:[%s14048_s0 + $0x114] sm:$0xf] }
 0x313   :  { %v6072_v4 = vpop.permute.xlu0 %6071  ;;  %v5070_v27 = vshll.u32 %v8009_v59, 16  ;;  %v5082_v33 = vrot.slane %v5080_v39, 4 }
 0x314   :  { %6254 = vst.msk [vmem:[#allocation2 + $0x28] sm:$0xf] %vm6243_vm15, %v6072_v4  ;;  %v4284_v19 = vpop.permute.xlu1 %4283  ;;  %v5943_v4 = vrot.slane %v5941_v60, 4  ;;  %v5942_v58 = vsel %vm9171_vm7, %v8160_v9, %v5941_v60  ;;  %v7927_v9 = vld [vmem:[%s14048_s0 + $0x118] sm:$0xf] }
 0x315   :  { %6107 = vrot.lane.b32.xlu0 %v5928_v54, %s8432_s16  ;;  %4463 = vst.msk [vmem:[#allocation2 + $0x34] sm:$0xf] %vm4449_vm13, %v4284_v19  ;;  %v5007_v54 = vsel %vm8483_vm2, %v5002_v53, %v12057_v1  ;;  %v8101_v19 = vld [vmem:[%s14048_s0 + $0x104] sm:$0x1] }
 0x316   :  { %6113 = vrot.lane.b32.xlu1 %v5938_v56, %s8432_s16  ;;  %v5944_v56 = vrot.slane %v8098_v63, 5  ;;  %v5951_v15 = vrot.slane %v8101_v19, 5  ;;  %v8011_v19 = vld [vmem:[%s14048_s0 + $0x11c] sm:$0x1] }
 0x317   :  { %v4282_v17 = vpop.permute.xlu0 %4281  ;;  %v8373_v18 = vld [vmem:[#allocation2 + $0x20] sm:$0xff]  }
 0x318   :  { %4462 = vst.msk [vmem:[#allocation2 + $0x30] sm:$0xf] %vm4449_vm13, %v4282_v17  ;;  %v4288_v49 = vpop.permute.xlu1 %4287  ;;  %8292 = vmatprep.mubr.msk.bf16.mxu0 %vm6552_vm0, %v8373_v18  ;;  %v5945_v37 = vsel %vm9171_vm7, %v5943_v4, %v5944_v56  ;;  %v8099_v17 = vld [vmem:[%s14048_s0 + $0xfc] sm:$0xe]  ;;  %v7818_v18 = vld [vmem:[%s14048_s0 + $0x10c] sm:$0xf]  ;;  %v5952_v29 = vsel %vm9171_vm7, %v5950_v14, %v5951_v15 }
 0x319   :  { %6111 = vrot.lane.b32.xlu0 %v5935_v61, %s8432_s16  ;;  %4465 = vst.msk [vmem:[#allocation2 + $0x3c] sm:$0xf] %vm4449_vm13, %v4288_v49  ;;  %v5031_v61 = vsel %vm8483_vm2, %v5026_v44, %v12078_v32  ;;  %v8161_v49 = vrot.slane %v8099_v17, 9  ;;  %v5067_v44 = vshrl.u32 %v8009_v59, 16  ;;  %v7822_v59 = vld [vmem:[%s14048_s0 + $0x11c] sm:$0x1] }
 0x31a   :  { %3941 = vrot.lane.b32.xlu1 %v3772_v20, %s8429_s30 }
 0x31b   :  { %v4286_v45 = vpop.permute.xlu0 %4285  ;;  %v8374_v62 = vld [vmem:[#allocation2 + $0x28] sm:$0xff]   ;;  %v5949_v32 = vsel %vm9171_vm7, %v8161_v49, %v5948_v6  ;;  %v7926_v49 = vld [vmem:[%s14048_s0 + $0x114] sm:$0xf] }
 0x31c   :  { %4464 = vst.msk [vmem:[#allocation2 + $0x38] sm:$0xf] %vm4449_vm13, %v4286_v45  ;;  %v5405_v36 = vpop.permute.xlu1 %5404  ;;  %8293 = vmatmul.mubr.msk.bf16.gmra.mxu0 %vm6552_vm0, %v8374_v62  ;;  %v7819_v45 = vld [vmem:[%s14048_s0 + $0x110] sm:$0x1] }
 0x31d   :  { %3939 = vrot.lane.b32.xlu0 %v3769_v24, %s8429_s30  ;;  %5584 = vst.msk [vmem:[#allocation2 + $0x34] sm:$0xf] %vm5570_vm14, %v5405_v36  ;;  %v7814_v24 = vld [vmem:[%s14048_s0 + $0xfc] sm:$0xe]  ;;  %v3785_v36 = vrot.slane %v7819_v45, 5 }
 0x31e   :  { %4323 = vrot.lane.b32.xlu1 %v7921_v25, %s8430_s21  ;;  %v3782_v25 = vrot.slane %v7818_v18, 5  ;;  %v7874_v30 = vrot.slane %v7814_v24, 9  ;;  %v8106_v45 = vld [vmem:[%s14048_s0 + $0x118] sm:$0xf] }
 0x31f   :  { %v5403_v7 = vpop.permute.xlu0 %5402  ;;  %v5962_v38 = vrot.slane %v8106_v45, 5  ;;  %v8014_v45 = vld [vmem:[%s14048_s0 + $0x128] sm:$0x1] }
 0x320   :  { %5583 = vst.msk [vmem:[#allocation2 + $0x30] sm:$0xf] %vm5570_vm14, %v5403_v7  ;;  %v5409_v13 = vpop.permute.xlu1 %5408  ;;  %v3784_v35 = vrot.slane %v3782_v25, 4  ;;  %v5052_v7 = vshll.u32 %v8007_v16, 16  ;;  %v3776_v47 = vsel %vm9171_vm7, %v7874_v30, %v3775_v10  ;;  %v3783_v63 = vsel %vm9171_vm7, %v7875_v46, %v3782_v25 }
 0x321   :  { %4321 = vrot.lane.b32.xlu0 %v7920_v2, %s8430_s21  ;;  %5586 = vst.msk [vmem:[#allocation2 + $0x3c] sm:$0xf] %vm5570_vm14, %v5409_v13  ;;  %v8006_v2 = vld [vmem:[%s14048_s0 + $0x108] sm:$0xf]  ;;  %v5955_v25 = vrot.slane %v8103_v21, 5 }
 0x322   :  { %4327 = vrot.lane.b32.xlu1 %v7923_v42, %s8430_s21  ;;  %v5056_v42 = vshrl.u32 %v8007_v16, 16  ;;  %v3786_v13 = vsel %vm9171_vm7, %v3784_v35, %v3785_v36  ;;  %v5043_v48 = vshrl.u32 %v8006_v2, 16  ;;  %v12193_v55 = vrot.slane %v5052_v7, 5  ;;  %v8104_v16 = vld [vmem:[%s14048_s0 + $0x110] sm:$0x1] }
 0x323   :  { %v5407_v57 = vpop.permute.xlu0 %5406  ;;  %v5957_v35 = vrot.slane %v5955_v25, 4  ;;  %v8102_v36 = vld [vmem:[%s14048_s0 + $0x108] sm:$0xe]  ;;  %v8107_v7 = vld [vmem:[%s14048_s0 + $0x11c] sm:$0x1] }
 0x324   :  { %5585 = vst.msk [vmem:[#allocation2 + $0x38] sm:$0xf] %vm5570_vm14, %v5407_v57  ;;  %v6078_v22 = vpop.permute.xlu1 %6077  ;;  %v5058_v57 = vrot.slane %v5056_v42, 4  ;;  %v5045_v0 = vrot.slane %v5043_v48, 4  ;;  %v8162_v46 = vrot.slane %v8102_v36, 9 }
 0x325   :  { %4325 = vrot.lane.b32.xlu0 %v7922_v51, %s8430_s21  ;;  %6257 = vst.msk [vmem:[#allocation2 + $0x34] sm:$0xf] %vm6243_vm15, %v6078_v22  ;;  %v5046_v51 = vshll.u32 %v8006_v2, 16  ;;  %v8008_v22 = vld [vmem:[%s14048_s0 + $0x110] sm:$0x1] }
 0x326   :  { %5444 = vrot.lane.b32.xlu1 %v5017_v34, %s8431_s22  ;;  %v5076_v34 = vshll.u32 %v8010_v31, 16  ;;  %v5059_v4 = vor.u32 %v5058_v57, %v12193_v55  ;;  %v5062_v56 = vshll.u32 %v8008_v22, 16  ;;  %v8105_v48 = vld [vmem:[%s14048_s0 + $0x114] sm:$0xe] }
 0x327   :  { %v6076_v28 = vpop.permute.xlu0 %6075  ;;  %v8163_v22 = vrot.slane %v8105_v48, 9 }
 0x328   :  { %6256 = vst.msk [vmem:[#allocation2 + $0x30] sm:$0xf] %vm6243_vm15, %v6076_v28  ;;  %v6082_v8 = vpop.permute.xlu1 %6081  ;;  %v12211_v6 = vrot.slane %v5076_v34, 5  ;;  %v5060_v15 = vrot.slane %v5059_v4, 4  ;;  %v5064_v17 = vrot.slane %v5062_v56, 5 }
 0x329   :  { %5442 = vrot.lane.b32.xlu0 %v5007_v54, %s8431_s22  ;;  %6259 = vst.msk [vmem:[#allocation2 + $0x3c] sm:$0xf] %vm6243_vm15, %v6082_v8  ;;  %v5048_v54 = vrot.slane %v5046_v51, 5  ;;  %v7824_v34 = vld [vmem:[%s14048_s0 + $0x124] sm:$0xf] }
 0x32a   :  { %5448 = vrot.lane.b32.xlu1 %v5041_v3, %s8431_s22  ;;  %v7925_v3 = vld [vmem:[%s14048_s0 + $0x10c] sm:$0xf]  ;;  %v5083_v18 = vor.u32 %v5082_v33, %v12211_v6  ;;  %v8013_v56 = vld [vmem:[%s14048_s0 + $0x124] sm:$0xf] }
 0x32b   :  { %v6080_v1 = vpop.permute.xlu0 %6079  ;;  %v5049_v10 = vor.u32 %v5048_v54, %v5045_v0 }
 0x32c   :  { %6258 = vst.msk [vmem:[#allocation2 + $0x38] sm:$0xf] %vm6243_vm15, %v6080_v1  ;;  %v4292_v20 = vpop.permute.xlu1 %4291  ;;  %v5069_v1 = vrot.slane %v5067_v44, 4 }
 0x32d   :  { %5446 = vrot.lane.b32.xlu0 %v5031_v61, %s8431_s22  ;;  %4467 = vst.msk [vmem:[#allocation2 + $0x44] sm:$0xf] %vm4449_vm13, %v4292_v20  ;;  %v7924_v61 = vld [vmem:[%s14048_s0 + $0x108] sm:$0xf]  ;;  %v5086_v20 = vshll.u32 %v8011_v19, 16  ;;  %v5050_v50 = vrot.slane %v5049_v10, 4 }
 0x32e   :  { %6117 = vrot.lane.b32.xlu1 %v5945_v37, %s8432_s16  ;;  %v5072_v37 = vrot.slane %v5070_v27, 5  ;;  %v3792_v27 = vrot.slane %v7822_v59, 5  ;;  %v8109_v59 = vld [vmem:[%s14048_s0 + $0x124] sm:$0xf] }
 0x32f   :  { %v4290_v11 = vpop.permute.xlu0 %4289  ;;  %v8375_v52 = vld [vmem:[#allocation2 + $0x30] sm:$0xff]   ;;  %v5088_v12 = vrot.slane %v5086_v20, 5  ;;  %v5055_v30 = vsel %vm8483_vm2, %v5050_v50, %v12193_v55 }
 0x330   :  { %4466 = vst.msk [vmem:[#allocation2 + $0x40] sm:$0xf] %vm4449_vm13, %v4290_v11  ;;  %v4296_v62 = vpop.permute.xlu1 %4295  ;;  %8296 = vmatprep.mubr.msk.bf16.mxu0 %vm6552_vm0, %v8375_v52  ;;  %v5073_v24 = vor.u32 %v5072_v37, %v5069_v1  ;;  %v5065_v52 = vsel %vm8483_vm2, %v5060_v15, %v5064_v17  ;;  %v5100_v1 = vshll.u32 %v8013_v56, 16  ;;  %v5104_v37 = vshrl.u32 %v8013_v56, 16  ;;  %v8016_v17 = vld [vmem:[%s14048_s0 + $0x130] sm:$0xf] }
 0x331   :  { %6115 = vrot.lane.b32.xlu0 %v5942_v58, %s8432_s16  ;;  %4469 = vst.msk [vmem:[#allocation2 + $0x4c] sm:$0xf] %vm4449_vm13, %v4296_v62  ;;  %v8110_v56 = vld [vmem:[%s14048_s0 + $0x128] sm:$0x1] }
 0x332   :  { %6121 = vrot.lane.b32.xlu1 %v5952_v29, %s8432_s16  ;;  %v5084_v29 = vrot.slane %v5083_v18, 4 }
 0x333   :  { %v4294_v40 = vpop.permute.xlu0 %4293  ;;  %v8376_v41 = vld [vmem:[#allocation2 + $0x38] sm:$0xff]  }
 0x334   :  { %4468 = vst.msk [vmem:[#allocation2 + $0x48] sm:$0xf] %vm4449_vm13, %v4294_v40  ;;  %v5413_v43 = vpop.permute.xlu1 %5412  ;;  %8297 = vmatmul.mubr.msk.bf16.gmra.mxu0 %vm6552_vm0, %v8376_v41  ;;  %v5089_v41 = vsel %vm8483_vm2, %v5084_v29, %v5088_v12  ;;  %v8015_v29 = vld [vmem:[%s14048_s0 + $0x12c] sm:$0xf] }
 0x335   :  { %6119 = vrot.lane.b32.xlu0 %v5949_v32, %s8432_s16  ;;  %5588 = vst.msk [vmem:[#allocation2 + $0x44] sm:$0xf] %vm5570_vm14, %v5413_v43  ;;  %v5074_v32 = vrot.slane %v5073_v24, 4  ;;  %v7821_v43 = vld [vmem:[%s14048_s0 + $0x118] sm:$0xf]  ;;  %v12325_v24 = vrot.slane %v5100_v1, 5 }
 0x336   :  { %3945 = vrot.lane.b32.xlu1 %v3779_v5, %s8429_s30  ;;  %v5958_v5 = vrot.slane %v8104_v16, 5  ;;  %v3789_v57 = vrot.slane %v7821_v43, 5  ;;  %v7928_v43 = vld [vmem:[%s14048_s0 + $0x120] sm:$0xf] }
 0x337   :  { %v5411_v53 = vpop.permute.xlu0 %5410  ;;  %v5079_v31 = vsel %vm8483_vm2, %v5074_v32, %v12211_v6  ;;  %v5963_v6 = vsel %vm9171_vm7, %v8163_v22, %v5962_v38  ;;  %v5115_v32 = vshrl.u32 %v8015_v29, 16  ;;  %v8108_v1 = vld [vmem:[%s14048_s0 + $0x120] sm:$0xe] }
 0x338   :  { %5587 = vst.msk [vmem:[#allocation2 + $0x40] sm:$0xf] %vm5570_vm14, %v5411_v53  ;;  %v5417_v60 = vpop.permute.xlu1 %5416  ;;  %v5959_v55 = vsel %vm9171_vm7, %v5957_v35, %v5958_v5  ;;  %v3791_v44 = vrot.slane %v3789_v57, 4  ;;  %v5118_v35 = vshll.u32 %v8015_v29, 16  ;;  %v7830_v29 = vld [vmem:[%s14048_s0 + $0x13c] sm:$0xf] }
 0x339   :  { %3943 = vrot.lane.b32.xlu0 %v3776_v47, %s8429_s30  ;;  %5590 = vst.msk [vmem:[#allocation2 + $0x4c] sm:$0xf] %vm5570_vm14, %v5417_v60  ;;  %v5964_v47 = vrot.slane %v5962_v38, 4  ;;  %v5956_v60 = vsel %vm9171_vm7, %v8162_v46, %v5955_v25  ;;  %v5106_v25 = vrot.slane %v5104_v37, 4  ;;  %v7929_v38 = vld [vmem:[%s14048_s0 + $0x124] sm:$0xf] }
 0x33a   :  { %3949 = vrot.lane.b32.xlu1 %v3786_v13, %s8429_s30  ;;  %v5965_v13 = vrot.slane %v8107_v7, 5  ;;  %v3793_v10 = vsel %vm9171_vm7, %v3791_v44, %v3792_v27 }
 0x33b   :  { %v5415_v28 = vpop.permute.xlu0 %5414 }
 0x33c   :  { %5589 = vst.msk [vmem:[#allocation2 + $0x48] sm:$0xf] %vm5570_vm14, %v5415_v28  ;;  %v6086_v8 = vpop.permute.xlu1 %6085  ;;  %v5966_v54 = vsel %vm9171_vm7, %v5964_v47, %v5965_v13  ;;  %v7820_v28 = vld [vmem:[%s14048_s0 + $0x114] sm:$0xe]  ;;  %v5117_v47 = vrot.slane %v5115_v32, 4  ;;  %v5120_v13 = vrot.slane %v5118_v35, 5 }
 0x33d   :  { %3947 = vrot.lane.b32.xlu0 %v3783_v63, %s8429_s30  ;;  %6261 = vst.msk [vmem:[#allocation2 + $0x44] sm:$0xf] %vm6243_vm15, %v6086_v8  ;;  %v3796_v63 = vrot.slane %v7824_v34, 5  ;;  %v7876_v33 = vrot.slane %v7820_v28, 9 }
 0x33e   :  { %4331 = vrot.lane.b32.xlu1 %v7925_v3, %s8430_s21  ;;  %v7825_v3 = vld [vmem:[%s14048_s0 + $0x128] sm:$0x1] }
 0x33f   :  { %v6084_v14 = vpop.permute.xlu0 %6083  ;;  %v3798_v8 = vrot.slane %v3796_v63, 4  ;;  %v3799_v19 = vrot.slane %v7825_v3, 5  ;;  %v3790_v20 = vsel %vm9171_vm7, %v7876_v33, %v3789_v57  ;;  %v5969_v3 = vrot.slane %v8109_v59, 5 }
 0x340   :  { %6260 = vst.msk [vmem:[#allocation2 + $0x40] sm:$0xf] %vm6243_vm15, %v6084_v14  ;;  %v6090_v58 = vpop.permute.xlu1 %6089  ;;  %v8012_v14 = vld [vmem:[%s14048_s0 + $0x120] sm:$0xf] }
 0x341   :  { %4329 = vrot.lane.b32.xlu0 %v7924_v61, %s8430_s21  ;;  %6263 = vst.msk [vmem:[#allocation2 + $0x4c] sm:$0xf] %vm6243_vm15, %v6090_v58  ;;  %v7823_v61 = vld [vmem:[%s14048_s0 + $0x120] sm:$0xe]  ;;  %v3800_v21 = vsel %vm9171_vm7, %v3798_v8, %v3799_v19  ;;  %v5091_v58 = vshrl.u32 %v8012_v14, 16 }
 0x342   :  { %4335 = vrot.lane.b32.xlu1 %v7927_v9, %s8430_s21  ;;  %v7877_v18 = vrot.slane %v7823_v61, 9 }
 0x343   :  { %v6088_v11 = vpop.permute.xlu0 %6087  ;;  %v5093_v16 = vrot.slane %v5091_v58, 4 }
 0x344   :  { %6262 = vst.msk [vmem:[#allocation2 + $0x48] sm:$0xf] %vm6243_vm15, %v6088_v11  ;;  %v4300_v62 = vpop.permute.xlu1 %4299  ;;  %v5124_v11 = vshll.u32 %v8016_v17, 16 }
 0x345   :  { %4333 = vrot.lane.b32.xlu0 %v7926_v49, %s8430_s21  ;;  %4471 = vst.msk [vmem:[#allocation2 + $0x54] sm:$0xf] %vm4449_vm13, %v4300_v62  ;;  %v5094_v49 = vshll.u32 %v8012_v14, 16  ;;  %v3797_v62 = vsel %vm9171_vm7, %v7877_v18, %v3796_v63  ;;  %v5121_v63 = vor.u32 %v5120_v13, %v5117_v47 }
 0x346   :  { %5452 = vrot.lane.b32.xlu1 %v5065_v52, %s8431_s22  ;;  %v5128_v52 = vshrl.u32 %v8016_v17, 16  ;;  %v7827_v17 = vld [vmem:[%s14048_s0 + $0x130] sm:$0xf] }
 0x347   :  { %v4298_v2 = vpop.permute.xlu0 %4297  ;;  %v8377_v40 = vld [vmem:[#allocation2 + $0x40] sm:$0xff]   ;;  %v5122_v8 = vrot.slane %v5121_v63, 4 }
 0x348   :  { %4470 = vst.msk [vmem:[#allocation2 + $0x50] sm:$0xf] %vm4449_vm13, %v4298_v2  ;;  %v4304_v42 = vpop.permute.xlu1 %4303  ;;  %8300 = vmatprep.mubr.msk.bf16.mxu0 %vm6552_vm0, %v8377_v40  ;;  %v5107_v2 = vor.u32 %v5106_v25, %v12325_v24  ;;  %v5110_v40 = vshll.u32 %v8014_v45, 16  ;;  %v5130_v5 = vrot.slane %v5128_v52, 4  ;;  %v3803_v25 = vrot.slane %v7827_v17, 5 }
 0x349   :  { %5450 = vrot.lane.b32.xlu0 %v5055_v30, %s8431_s22  ;;  %4473 = vst.msk [vmem:[#allocation2 + $0x5c] sm:$0xf] %vm4449_vm13, %v4304_v42  ;;  %v5096_v30 = vrot.slane %v5094_v49, 5  ;;  %v8017_v42 = vld [vmem:[%s14048_s0 + $0x134] sm:$0x1] }
 0x34a   :  { %5456 = vrot.lane.b32.xlu1 %v5089_v41, %s8431_s22  ;;  %v12343_v41 = vrot.slane %v5124_v11, 5  ;;  %v5134_v34 = vshll.u32 %v8017_v42, 16  ;;  %v7828_v52 = vld [vmem:[%s14048_s0 + $0x134] sm:$0x1]  ;;  %v3805_v32 = vrot.slane %v3803_v25, 4 }
 0x34b   :  { %v4302_v51 = vpop.permute.xlu0 %4301  ;;  %v8378_v53 = vld [vmem:[#allocation2 + $0x48] sm:$0xff]   ;;  %v5097_v46 = vor.u32 %v5096_v30, %v5093_v16  ;;  %v3806_v35 = vrot.slane %v7828_v52, 5 }
 0x34c   :  { %4472 = vst.msk [vmem:[#allocation2 + $0x58] sm:$0xf] %vm4449_vm13, %v4302_v51  ;;  %v5421_v39 = vpop.permute.xlu1 %5420  ;;  %8301 = vmatmul.mubr.msk.bf16.gmra.mxu0 %vm6552_vm0, %v8378_v53  ;;  %v5108_v53 = vrot.slane %v5107_v2, 4  ;;  %v5131_v57 = vor.u32 %v5130_v5, %v12343_v41  ;;  %v5136_v28 = vrot.slane %v5134_v34, 5  ;;  %v5127_v18 = vsel %vm8483_vm2, %v5122_v8, %v12343_v41  ;;  %v8023_v17 = vld [vmem:[%s14048_s0 + $0x14c] sm:$0x1] }
 0x34d   :  { %5454 = vrot.lane.b32.xlu0 %v5079_v31, %s8431_s22  ;;  %5592 = vst.msk [vmem:[#allocation2 + $0x54] sm:$0xf] %vm5570_vm14, %v5421_v39  ;;  %v7931_v31 = vld [vmem:[%s14048_s0 + $0x130] sm:$0xf]  ;;  %v5098_v22 = vrot.slane %v5097_v46, 4  ;;  %v5182_v52 = vshll.u32 %v8023_v17, 16 }
 0x34e   :  { %6125 = vrot.lane.b32.xlu1 %v5959_v55, %s8432_s16  ;;  %v5112_v55 = vrot.slane %v5110_v40, 5  ;;  %v5132_v27 = vrot.slane %v5131_v57, 4  ;;  %v7831_v40 = vld [vmem:[%s14048_s0 + $0x140] sm:$0x1]  ;;  %v7835_v17 = vld [vmem:[%s14048_s0 + $0x150] sm:$0xe] }
 0x34f   :  { %v5419_v0 = vpop.permute.xlu0 %5418  ;;  %v5103_v33 = vsel %vm8483_vm2, %v5098_v22, %v12325_v24  ;;  %v8111_v24 = vld [vmem:[%s14048_s0 + $0x12c] sm:$0xe]  ;;  %v3813_v47 = vrot.slane %v7831_v40, 5  ;;  %v8116_v40 = vld [vmem:[%s14048_s0 + $0x140] sm:$0x1] }
 0x350   :  { %5591 = vst.msk [vmem:[#allocation2 + $0x50] sm:$0xf] %vm5570_vm14, %v5419_v0  ;;  %v5425_v4 = vpop.permute.xlu1 %5424  ;;  %v5113_v44 = vsel %vm8483_vm2, %v5108_v53, %v5112_v55  ;;  %v5137_v61 = vsel %vm8483_vm2, %v5132_v27, %v5136_v28  ;;  %v8165_v45 = vrot.slane %v8111_v24, 9  ;;  %v8022_v53 = vld [vmem:[%s14048_s0 + $0x148] sm:$0xf] }
 0x351   :  { %6123 = vrot.lane.b32.xlu0 %v5956_v60, %s8432_s16  ;;  %5594 = vst.msk [vmem:[#allocation2 + $0x5c] sm:$0xf] %vm5570_vm14, %v5425_v4  ;;  %v7930_v60 = vld [vmem:[%s14048_s0 + $0x12c] sm:$0xf]  ;;  %v5176_v27 = vshrl.u32 %v8022_v53, 16 }
 0x352   :  { %6129 = vrot.lane.b32.xlu1 %v5966_v54, %s8432_s16 }
 0x353   :  { %v5423_v9 = vpop.permute.xlu0 %5422 }
 0x354   :  { %5593 = vst.msk [vmem:[#allocation2 + $0x58] sm:$0xf] %vm5570_vm14, %v5423_v9  ;;  %v6094_v15 = vpop.permute.xlu1 %6093  ;;  %v5971_v9 = vrot.slane %v5969_v3, 4 }
 0x355   :  { %6127 = vrot.lane.b32.xlu0 %v5963_v6, %s8432_s16  ;;  %6265 = vst.msk [vmem:[#allocation2 + $0x54] sm:$0xf] %vm6243_vm15, %v6094_v15  ;;  %v8112_v6 = vld [vmem:[%s14048_s0 + $0x130] sm:$0xf]  ;;  %v8113_v15 = vld [vmem:[%s14048_s0 + $0x134] sm:$0x1] }
 0x356   :  { %3953 = vrot.lane.b32.xlu1 %v3793_v10, %s8429_s30  ;;  %v5972_v10 = vrot.slane %v8110_v56, 5  ;;  %v5976_v37 = vrot.slane %v8112_v6, 5  ;;  %v7933_v56 = vld [vmem:[%s14048_s0 + $0x13c] sm:$0xf] }
 0x357   :  { %v6092_v50 = vpop.permute.xlu0 %6091 }
 0x358   :  { %6264 = vst.msk [vmem:[#allocation2 + $0x50] sm:$0xf] %vm6243_vm15, %v6092_v50  ;;  %v6098_v12 = vpop.permute.xlu1 %6097  ;;  %v5973_v58 = vsel %vm9171_vm7, %v5971_v9, %v5972_v10  ;;  %v5978_v49 = vrot.slane %v5976_v37, 4  ;;  %v5979_v50 = vrot.slane %v8113_v15, 5  ;;  %v5977_v41 = vsel %vm9171_vm7, %v8165_v45, %v5976_v37  ;;  %v7934_v45 = vld [vmem:[%s14048_s0 + $0x144] sm:$0xf] }
 0x359   :  { %3951 = vrot.lane.b32.xlu0 %v3790_v20, %s8429_s30  ;;  %6267 = vst.msk [vmem:[#allocation2 + $0x5c] sm:$0xf] %vm6243_vm15, %v6098_v12  ;;  %v8164_v20 = vrot.slane %v8108_v1, 9 }
 0x35a   :  { %3957 = vrot.lane.b32.xlu1 %v3800_v21, %s8429_s30  ;;  %v5980_v30 = vsel %vm9171_vm7, %v5978_v49, %v5979_v50  ;;  %v7935_v50 = vld [vmem:[%s14048_s0 + $0x148] sm:$0xf] }
 0x35b   :  { %v6096_v36 = vpop.permute.xlu0 %6095  ;;  %v5970_v12 = vsel %vm9171_vm7, %v8164_v20, %v5969_v3  ;;  %v8020_v3 = vld [vmem:[%s14048_s0 + $0x140] sm:$0x1] }
 0x35c   :  { %6266 = vst.msk [vmem:[#allocation2 + $0x58] sm:$0xf] %vm6243_vm15, %v6096_v36  ;;  %v4308_v7 = vpop.permute.xlu1 %4307  ;;  %v3810_v36 = vrot.slane %v7830_v29, 5  ;;  %v5158_v1 = vshll.u32 %v8020_v3, 16 }
 0x35d   :  { %3955 = vrot.lane.b32.xlu0 %v3797_v62, %s8429_s30  ;;  %4475 = vst.msk [vmem:[#allocation2 + $0x64] sm:$0xf] %vm4449_vm13, %v4308_v7  ;;  %v7826_v62 = vld [vmem:[%s14048_s0 + $0x12c] sm:$0xe]  ;;  %v7829_v7 = vld [vmem:[%s14048_s0 + $0x138] sm:$0xe] }
 0x35e   :  { %4339 = vrot.lane.b32.xlu1 %v7929_v38, %s8430_s21  ;;  %v8019_v38 = vld [vmem:[%s14048_s0 + $0x13c] sm:$0xf]  ;;  %v7878_v5 = vrot.slane %v7826_v62, 9  ;;  %v3812_v46 = vrot.slane %v3810_v36, 4  ;;  %v7879_v55 = vrot.slane %v7829_v7, 9 }
 0x35f   :  { %v4306_v48 = vpop.permute.xlu0 %4305  ;;  %v8379_v51 = vld [vmem:[#allocation2 + $0x50] sm:$0xff]   ;;  %v5148_v42 = vshll.u32 %v8019_v38, 16  ;;  %v5152_v13 = vshrl.u32 %v8019_v38, 16 }
 0x360   :  { %4474 = vst.msk [vmem:[#allocation2 + $0x60] sm:$0xf] %vm4449_vm13, %v4306_v48  ;;  %v4312_v39 = vpop.permute.xlu1 %4311  ;;  %8304 = vmatprep.mubr.msk.bf16.mxu0 %vm6552_vm0, %v8379_v51  ;;  %v8018_v48 = vld [vmem:[%s14048_s0 + $0x138] sm:$0xf]  ;;  %v3804_v57 = vsel %vm9171_vm7, %v7878_v5, %v3803_v25  ;;  %v5160_v25 = vrot.slane %v5158_v1, 5 }
 0x361   :  { %4337 = vrot.lane.b32.xlu0 %v7928_v43, %s8430_s21  ;;  %4477 = vst.msk [vmem:[#allocation2 + $0x6c] sm:$0xf] %vm4449_vm13, %v4312_v39  ;;  %v12455_v34 = vrot.slane %v5148_v42, 5  ;;  %v5139_v39 = vshrl.u32 %v8018_v48, 16  ;;  %v5142_v59 = vshll.u32 %v8018_v48, 16 }
 0x362   :  { %4343 = vrot.lane.b32.xlu1 %v7931_v31, %s8430_s21  ;;  %v3807_v31 = vsel %vm9171_vm7, %v3805_v32, %v3806_v35  ;;  %v8114_v42 = vld [vmem:[%s14048_s0 + $0x138] sm:$0xe]  ;;  %v7833_v48 = vld [vmem:[%s14048_s0 + $0x148] sm:$0xf] }
 0x363   :  { %v4310_v0 = vpop.permute.xlu0 %4309  ;;  %v8380_v54 = vld [vmem:[#allocation2 + $0x58] sm:$0xff]   ;;  %v5141_v6 = vrot.slane %v5139_v39, 4 }
 0x364   :  { %4476 = vst.msk [vmem:[#allocation2 + $0x68] sm:$0xf] %vm4449_vm13, %v4310_v0  ;;  %v5429_v4 = vpop.permute.xlu1 %5428  ;;  %8305 = vmatmul.mubr.msk.bf16.gmra.mxu0 %vm6552_vm0, %v8380_v54  ;;  %v3814_v0 = vsel %vm9171_vm7, %v3812_v46, %v3813_v47  ;;  %v5154_v54 = vrot.slane %v5152_v13, 4  ;;  %v5986_v47 = vrot.slane %v8116_v40, 5 }
 0x365   :  { %4341 = vrot.lane.b32.xlu0 %v7930_v60, %s8430_s21  ;;  %5596 = vst.msk [vmem:[#allocation2 + $0x64] sm:$0xf] %vm5570_vm14, %v5429_v4  ;;  %v8021_v60 = vld [vmem:[%s14048_s0 + $0x144] sm:$0xf]  ;;  %v3811_v4 = vsel %vm9171_vm7, %v7879_v55, %v3810_v36  ;;  %v5184_v36 = vrot.slane %v5182_v52, 5 }
 0x366   :  { %5460 = vrot.lane.b32.xlu1 %v5113_v44, %s8431_s22  ;;  %v5172_v44 = vshll.u32 %v8022_v53, 16  ;;  %v5163_v8 = vshrl.u32 %v8021_v60, 16  ;;  %v5155_v10 = vor.u32 %v5154_v54, %v12455_v34  ;;  %v8119_v53 = vld [vmem:[%s14048_s0 + $0x14c] sm:$0x1] }
 0x367   :  { %v5427_v19 = vpop.permute.xlu0 %5426 }
 0x368   :  { %5595 = vst.msk [vmem:[#allocation2 + $0x60] sm:$0xf] %vm5570_vm14, %v5427_v19  ;;  %v5433_v14 = vpop.permute.xlu1 %5432  ;;  %v5166_v19 = vshll.u32 %v8021_v60, 16  ;;  %v12476_v37 = vrot.slane %v5172_v44, 5  ;;  %v5156_v24 = vrot.slane %v5155_v10, 4 }
 0x369   :  { %5458 = vrot.lane.b32.xlu0 %v5103_v33, %s8431_s22  ;;  %5598 = vst.msk [vmem:[#allocation2 + $0x6c] sm:$0xf] %vm5570_vm14, %v5433_v14  ;;  %v5144_v33 = vrot.slane %v5142_v59, 5  ;;  %v5178_v14 = vrot.slane %v5176_v27, 4  ;;  %v7834_v44 = vld [vmem:[%s14048_s0 + $0x14c] sm:$0x1] }
 0x36a   :  { %5464 = vrot.lane.b32.xlu1 %v5137_v61, %s8431_s22  ;;  %v5161_v32 = vsel %vm8483_vm2, %v5156_v24, %v5160_v25  ;;  %v8025_v10 = vld [vmem:[%s14048_s0 + $0x154] sm:$0xf]  ;;  %v8028_v25 = vld [vmem:[%s14048_s0 + $0x160] sm:$0xf] }
 0x36b   :  { %v5431_v21 = vpop.permute.xlu0 %5430  ;;  %v5145_v20 = vor.u32 %v5144_v33, %v5141_v6 }
 0x36c   :  { %5597 = vst.msk [vmem:[#allocation2 + $0x68] sm:$0xf] %vm5570_vm14, %v5431_v21  ;;  %v6102_v11 = vpop.permute.xlu1 %6101  ;;  %v5165_v21 = vrot.slane %v5163_v8, 4 }
 0x36d   :  { %5462 = vrot.lane.b32.xlu0 %v5127_v18, %s8431_s22  ;;  %6269 = vst.msk [vmem:[#allocation2 + $0x64] sm:$0xf] %vm6243_vm15, %v6102_v11  ;;  %v7932_v18 = vld [vmem:[%s14048_s0 + $0x138] sm:$0xf]  ;;  %v5179_v11 = vor.u32 %v5178_v14, %v12476_v37  ;;  %v5146_v62 = vrot.slane %v5145_v20, 4 }
 0x36e   :  { %6133 = vrot.lane.b32.xlu1 %v5973_v58, %s8432_s16  ;;  %v5168_v58 = vrot.slane %v5166_v19, 5  ;;  %v3820_v19 = vrot.slane %v7834_v44, 5 }
 0x36f   :  { %v6100_v16 = vpop.permute.xlu0 %6099  ;;  %v5180_v35 = vrot.slane %v5179_v11, 4  ;;  %v5151_v5 = vsel %vm8483_vm2, %v5146_v62, %v12455_v34  ;;  %v3817_v34 = vrot.slane %v7833_v48, 5  ;;  %v7881_v11 = vrot.slane %v7835_v17, 9 }
 0x370   :  { %6268 = vst.msk [vmem:[#allocation2 + $0x60] sm:$0xf] %vm6243_vm15, %v6100_v16  ;;  %v6106_v2 = vpop.permute.xlu1 %6105  ;;  %v5169_v16 = vor.u32 %v5168_v58, %v5165_v21 }
 0x371   :  { %6131 = vrot.lane.b32.xlu0 %v5970_v12, %s8432_s16  ;;  %6271 = vst.msk [vmem:[#allocation2 + $0x6c] sm:$0xf] %vm6243_vm15, %v6106_v2  ;;  %v8115_v12 = vld [vmem:[%s14048_s0 + $0x13c] sm:$0xf]  ;;  %v3819_v3 = vrot.slane %v3817_v34, 4 }
 0x372   :  { %6137 = vrot.lane.b32.xlu1 %v5980_v30, %s8432_s16  ;;  %v5983_v38 = vrot.slane %v8115_v12, 5  ;;  %v5170_v7 = vrot.slane %v5169_v16, 4 }
 0x373   :  { %v6104_v43 = vpop.permute.xlu0 %6103  ;;  %v3821_v58 = vsel %vm9171_vm7, %v3819_v3, %v3820_v19 }
 0x374   :  { %6270 = vst.msk [vmem:[#allocation2 + $0x68] sm:$0xf] %vm6243_vm15, %v6104_v43  ;;  %v4316_v51 = vpop.permute.xlu1 %4315  ;;  %v5985_v46 = vrot.slane %v5983_v38, 4  ;;  %v5175_v55 = vsel %vm8483_vm2, %v5170_v7, %v12476_v37 }
 0x375   :  { %6135 = vrot.lane.b32.xlu0 %v5977_v41, %s8432_s16  ;;  %4479 = vst.msk [vmem:[#allocation2 + $0x74] sm:$0xf] %vm4449_vm13, %v4316_v51  ;;  %v8118_v41 = vld [vmem:[%s14048_s0 + $0x148] sm:$0xf] }
 0x376   :  { %3961 = vrot.lane.b32.xlu1 %v3807_v31, %s8429_s30  ;;  %v5185_v31 = vsel %vm8483_vm2, %v5180_v35, %v5184_v36  ;;  %v5990_v13 = vrot.slane %v8118_v41, 5  ;;  %v5987_v59 = vsel %vm9171_vm7, %v5985_v46, %v5986_v47  ;;  %v5224_v35 = vshrl.u32 %v8028_v25, 16  ;;  %v8027_v36 = vld [vmem:[%s14048_s0 + $0x15c] sm:$0xf] }
 0x377   :  { %v4314_v22 = vpop.permute.xlu0 %4313  ;;  %v8381_v63 = vld [vmem:[#allocation2 + $0x60] sm:$0xff]   ;;  %v5211_v7 = vshrl.u32 %v8027_v36, 16 }
 0x378   :  { %4478 = vst.msk [vmem:[#allocation2 + $0x70] sm:$0xf] %vm4449_vm13, %v4314_v22  ;;  %v4320_v28 = vpop.permute.xlu1 %4319  ;;  %8308 = vmatprep.mubr.msk.bf16.mxu0 %vm6552_vm0, %v8381_v63  ;;  %v5992_v60 = vrot.slane %v5990_v13, 4  ;;  %v5993_v22 = vrot.slane %v8119_v53, 5  ;;  %v8117_v63 = vld [vmem:[%s14048_s0 + $0x144] sm:$0xe] }
 0x379   :  { %3959 = vrot.lane.b32.xlu0 %v3804_v57, %s8429_s30  ;;  %4481 = vst.msk [vmem:[#allocation2 + $0x7c] sm:$0xf] %vm4449_vm13, %v4320_v28  ;;  %v8166_v57 = vrot.slane %v8114_v42, 9  ;;  %v8167_v28 = vrot.slane %v8117_v63, 9  ;;  %v5214_v42 = vshll.u32 %v8027_v36, 16  ;;  %v5226_v48 = vrot.slane %v5224_v35, 4 }
 0x37a   :  { %3965 = vrot.lane.b32.xlu1 %v3814_v0, %s8429_s30  ;;  %v7836_v0 = vld [vmem:[%s14048_s0 + $0x154] sm:$0xf]  ;;  %v5994_v8 = vsel %vm9171_vm7, %v5992_v60, %v5993_v22  ;;  %v8029_v53 = vld [vmem:[%s14048_s0 + $0x164] sm:$0x1]  ;;  %v7939_v60 = vld [vmem:[%s14048_s0 + $0x160] sm:$0xf] }
 0x37b   :  { %v4318_v61 = vpop.permute.xlu0 %4317  ;;  %v8382_v9 = vld [vmem:[#allocation2 + $0x68] sm:$0xff]   ;;  %v5984_v27 = vsel %vm9171_vm7, %v8166_v57, %v5983_v38  ;;  %v5991_v37 = vsel %vm9171_vm7, %v8167_v28, %v5990_v13  ;;  %v7938_v28 = vld [vmem:[%s14048_s0 + $0x15c] sm:$0xf]  ;;  %v7840_v35 = vld [vmem:[%s14048_s0 + $0x164] sm:$0x1] }
 0x37c   :  { %4480 = vst.msk [vmem:[#allocation2 + $0x78] sm:$0xf] %vm4449_vm13, %v4318_v61  ;;  %v5437_v15 = vpop.permute.xlu1 %5436  ;;  %8309 = vmatmul.mubr.msk.bf16.gmra.mxu0 %vm6552_vm0, %v8382_v9  ;;  %v7837_v61 = vld [vmem:[%s14048_s0 + $0x158] sm:$0x1] }
 0x37d   :  { %3963 = vrot.lane.b32.xlu0 %v3811_v4, %s8429_s30  ;;  %5600 = vst.msk [vmem:[#allocation2 + $0x74] sm:$0xf] %vm5570_vm14, %v5437_v15  ;;  %v7832_v4 = vld [vmem:[%s14048_s0 + $0x144] sm:$0xe]  ;;  %v3827_v15 = vrot.slane %v7837_v61, 5 }
 0x37e   :  { %4347 = vrot.lane.b32.xlu1 %v7933_v56, %s8430_s21  ;;  %v3824_v56 = vrot.slane %v7836_v0, 5  ;;  %v7880_v1 = vrot.slane %v7832_v4, 9  ;;  %v8124_v61 = vld [vmem:[%s14048_s0 + $0x160] sm:$0xf] }
 0x37f   :  { %v5435_v49 = vpop.permute.xlu0 %5434 }
 0x380   :  { %5599 = vst.msk [vmem:[#allocation2 + $0x70] sm:$0xf] %vm5570_vm14, %v5435_v49  ;;  %v5441_v29 = vpop.permute.xlu1 %5440  ;;  %v3826_v14 = vrot.slane %v3824_v56, 4  ;;  %v5196_v49 = vshll.u32 %v8025_v10, 16  ;;  %v3818_v52 = vsel %vm9171_vm7, %v7880_v1, %v3817_v34  ;;  %v3825_v40 = vsel %vm9171_vm7, %v7881_v11, %v3824_v56 }
 0x381   :  { %4345 = vrot.lane.b32.xlu0 %v7932_v18, %s8430_s21  ;;  %5602 = vst.msk [vmem:[#allocation2 + $0x7c] sm:$0xf] %vm5570_vm14, %v5441_v29  ;;  %v8024_v18 = vld [vmem:[%s14048_s0 + $0x150] sm:$0xf]  ;;  %v5213_v34 = vrot.slane %v5211_v7, 4 }
 0x382   :  { %4351 = vrot.lane.b32.xlu1 %v7935_v50, %s8430_s21  ;;  %v5200_v50 = vshrl.u32 %v8025_v10, 16  ;;  %v3828_v29 = vsel %vm9171_vm7, %v3826_v14, %v3827_v15  ;;  %v5187_v12 = vshrl.u32 %v8024_v18, 16  ;;  %v12591_v16 = vrot.slane %v5196_v49, 5  ;;  %v8122_v10 = vld [vmem:[%s14048_s0 + $0x158] sm:$0x1] }
 0x383   :  { %v5439_v30 = vpop.permute.xlu0 %5438  ;;  %v6004_v14 = vrot.slane %v8124_v61, 5  ;;  %v8032_v61 = vld [vmem:[%s14048_s0 + $0x170] sm:$0x1] }
 0x384   :  { %5601 = vst.msk [vmem:[#allocation2 + $0x78] sm:$0xf] %vm5570_vm14, %v5439_v30  ;;  %v6110_v2 = vpop.permute.xlu1 %6109  ;;  %v5202_v30 = vrot.slane %v5200_v50, 4  ;;  %v5189_v41 = vrot.slane %v5187_v12, 4  ;;  %v8125_v50 = vld [vmem:[%s14048_s0 + $0x164] sm:$0x1] }
 0x385   :  { %4349 = vrot.lane.b32.xlu0 %v7934_v45, %s8430_s21  ;;  %6273 = vst.msk [vmem:[#allocation2 + $0x74] sm:$0xf] %vm6243_vm15, %v6110_v2  ;;  %v5190_v45 = vshll.u32 %v8024_v18, 16  ;;  %v8026_v2 = vld [vmem:[%s14048_s0 + $0x158] sm:$0x1]  ;;  %v6006_v11 = vrot.slane %v6004_v14, 4 }
 0x386   :  { %5468 = vrot.lane.b32.xlu1 %v5161_v32, %s8431_s22  ;;  %v5220_v32 = vshll.u32 %v8028_v25, 16  ;;  %v5203_v46 = vor.u32 %v5202_v30, %v12591_v16  ;;  %v5206_v47 = vshll.u32 %v8026_v2, 16  ;;  %v7842_v30 = vld [vmem:[%s14048_s0 + $0x16c] sm:$0xf] }
 0x387   :  { %v6108_v43 = vpop.permute.xlu0 %6107 }
 0x388   :  { %6272 = vst.msk [vmem:[#allocation2 + $0x70] sm:$0xf] %vm6243_vm15, %v6108_v43  ;;  %v6114_v51 = vpop.permute.xlu1 %6113  ;;  %v12609_v13 = vrot.slane %v5220_v32, 5  ;;  %v5204_v22 = vrot.slane %v5203_v46, 4  ;;  %v5208_v63 = vrot.slane %v5206_v47, 5 }
 0x389   :  { %5466 = vrot.lane.b32.xlu0 %v5151_v5, %s8431_s22  ;;  %6275 = vst.msk [vmem:[#allocation2 + $0x7c] sm:$0xf] %vm6243_vm15, %v6114_v51  ;;  %v5192_v5 = vrot.slane %v5190_v45, 5  ;;  %v8031_v47 = vld [vmem:[%s14048_s0 + $0x16c] sm:$0xf] }
 0x38a   :  { %5472 = vrot.lane.b32.xlu1 %v5185_v31, %s8431_s22  ;;  %v7937_v31 = vld [vmem:[%s14048_s0 + $0x154] sm:$0xf]  ;;  %v5227_v0 = vor.u32 %v5226_v48, %v12609_v13 }
 0x38b   :  { %v6112_v39 = vpop.permute.xlu0 %6111  ;;  %v5193_v57 = vor.u32 %v5192_v5, %v5189_v41  ;;  %v3838_v41 = vrot.slane %v7842_v30, 5 }
 0x38c   :  { %6274 = vst.msk [vmem:[#allocation2 + $0x78] sm:$0xf] %vm6243_vm15, %v6112_v39  ;;  %v3942_v54 = vpop.permute.xlu1 %3941  ;;  %v5216_v39 = vrot.slane %v5214_v42, 5 }
 0x38d   :  { %5470 = vrot.lane.b32.xlu0 %v5175_v55, %s8431_s22  ;;  %4099 = vst.msk [vmem:[#allocation2 + $0x8c] sm:$0xf] %vm4063_vm12, %v3942_v54  ;;  %v7936_v55 = vld [vmem:[%s14048_s0 + $0x150] sm:$0xf]  ;;  %v5230_v54 = vshll.u32 %v8029_v53, 16  ;;  %v5194_v3 = vrot.slane %v5193_v57, 4 }
 0x38e   :  { %6141 = vrot.lane.b32.xlu1 %v5987_v59, %s8432_s16  ;;  %v5217_v4 = vor.u32 %v5216_v39, %v5213_v34  ;;  %v5244_v39 = vshll.u32 %v8031_v47, 16 }
 0x38f   :  { %v3940_v6 = vpop.permute.xlu0 %3939  ;;  %v8383_v33 = vld [vmem:[#allocation2 + $0x70] sm:$0xff]   ;;  %v5199_v1 = vsel %vm8483_vm2, %v5194_v3, %v12591_v16  ;;  %v6007_v16 = vrot.slane %v8125_v50, 5  ;;  %v8035_v50 = vld [vmem:[%s14048_s0 + $0x17c] sm:$0x1] }
 0x390   :  { %4098 = vst.msk [vmem:[#allocation2 + $0x88] sm:$0xf] %vm4063_vm12, %v3940_v6  ;;  %v4324_v9 = vpop.permute.xlu1 %4323  ;;  %8312 = vmatprep.mubr.msk.bf16.mxu0 %vm6552_vm0, %v8383_v33  ;;  %v5209_v6 = vsel %vm8483_vm2, %v5204_v22, %v5208_v63  ;;  %v5228_v33 = vrot.slane %v5227_v0, 4  ;;  %v8034_v63 = vld [vmem:[%s14048_s0 + $0x178] sm:$0xf]  ;;  %v5278_v30 = vshll.u32 %v8035_v50, 16 }
 0x391   :  { %6139 = vrot.lane.b32.xlu0 %v5984_v27, %s8432_s16  ;;  %4483 = vst.msk [vmem:[#allocation2 + $0x84] sm:$0xf] %vm4449_vm13, %v4324_v9  ;;  %v8121_v27 = vld [vmem:[%s14048_s0 + $0x154] sm:$0xf]  ;;  %v6008_v42 = vsel %vm9171_vm7, %v6006_v11, %v6007_v16 }
 0x392   :  { %6145 = vrot.lane.b32.xlu1 %v5994_v8, %s8432_s16  ;;  %v5232_v8 = vrot.slane %v5230_v54, 5  ;;  %v5997_v19 = vrot.slane %v8121_v27, 5 }
 0x393   :  { %v4322_v20 = vpop.permute.xlu0 %4321  ;;  %v8384_v21 = vld [vmem:[#allocation2 + $0x78] sm:$0xff]  }
 0x394   :  { %4482 = vst.msk [vmem:[#allocation2 + $0x80] sm:$0xf] %vm4449_vm13, %v4322_v20  ;;  %v4328_v24 = vpop.permute.xlu1 %4327  ;;  %8313 = vmatmul.mubr.msk.bf16.gmra.mxu0 %vm6552_vm0, %v8384_v21  ;;  %v5233_v17 = vsel %vm8483_vm2, %v5228_v33, %v5232_v8  ;;  %v5999_v18 = vrot.slane %v5997_v19, 4  ;;  %v6000_v20 = vrot.slane %v8122_v10, 5  ;;  %v8120_v21 = vld [vmem:[%s14048_s0 + $0x150] sm:$0xe] }
 0x395   :  { %6143 = vrot.lane.b32.xlu0 %v5991_v37, %s8432_s16  ;;  %4485 = vst.msk [vmem:[#allocation2 + $0x8c] sm:$0xf] %vm4449_vm13, %v4328_v24  ;;  %v5218_v37 = vrot.slane %v5217_v4, 4  ;;  %v8168_v25 = vrot.slane %v8120_v21, 9  ;;  %v12723_v4 = vrot.slane %v5244_v39, 5  ;;  %v5272_v33 = vshrl.u32 %v8034_v63, 16 }
 0x396   :  { %3969 = vrot.lane.b32.xlu1 %v3821_v58, %s8429_s30  ;;  %v7839_v58 = vld [vmem:[%s14048_s0 + $0x160] sm:$0xf]  ;;  %v8033_v8 = vld [vmem:[%s14048_s0 + $0x174] sm:$0xf]  ;;  %v7845_v39 = vld [vmem:[%s14048_s0 + $0x178] sm:$0xf] }
 0x397   :  { %v4326_v62 = vpop.permute.xlu0 %4325  ;;  %v5223_v24 = vsel %vm8483_vm2, %v5218_v37, %v12609_v13  ;;  %v5998_v36 = vsel %vm9171_vm7, %v8168_v25, %v5997_v19  ;;  %v5259_v37 = vshrl.u32 %v8033_v8, 16 }
 0x398   :  { %4484 = vst.msk [vmem:[#allocation2 + $0x88] sm:$0xf] %vm4449_vm13, %v4326_v62  ;;  %v5445_v38 = vpop.permute.xlu1 %5444  ;;  %v6001_v62 = vsel %vm9171_vm7, %v5999_v18, %v6000_v20  ;;  %v5254_v20 = vshll.u32 %v8032_v61, 16 }
 0x399   :  { %3967 = vrot.lane.b32.xlu0 %v3818_v52, %s8429_s30  ;;  %5604 = vst.msk [vmem:[#allocation2 + $0x84] sm:$0xf] %vm5570_vm14, %v5445_v38  ;;  %v8123_v52 = vld [vmem:[%s14048_s0 + $0x15c] sm:$0xe]  ;;  %v5261_v11 = vrot.slane %v5259_v37, 4 }
 0x39a   :  { %3973 = vrot.lane.b32.xlu1 %v3828_v29, %s8429_s30  ;;  %v3831_v29 = vrot.slane %v7839_v58, 5  ;;  %v8169_v38 = vrot.slane %v8123_v52, 9  ;;  %v5274_v58 = vrot.slane %v5272_v33, 4  ;;  %v7846_v33 = vld [vmem:[%s14048_s0 + $0x17c] sm:$0x1] }
 0x39b   :  { %v5443_v43 = vpop.permute.xlu0 %5442 }
 0x39c   :  { %5603 = vst.msk [vmem:[#allocation2 + $0x80] sm:$0xf] %vm5570_vm14, %v5443_v43  ;;  %v5449_v51 = vpop.permute.xlu1 %5448  ;;  %v3833_v2 = vrot.slane %v3831_v29, 4  ;;  %v3834_v43 = vrot.slane %v7840_v35, 5  ;;  %v6005_v13 = vsel %vm9171_vm7, %v8169_v38, %v6004_v14  ;;  %v5262_v14 = vshll.u32 %v8033_v8, 16 }
 0x39d   :  { %3971 = vrot.lane.b32.xlu0 %v3825_v40, %s8429_s30  ;;  %5606 = vst.msk [vmem:[#allocation2 + $0x8c] sm:$0xf] %vm5570_vm14, %v5449_v51  ;;  %v7838_v40 = vld [vmem:[%s14048_s0 + $0x15c] sm:$0xe]  ;;  %v3840_v51 = vrot.slane %v3838_v41, 4 }
 0x39e   :  { %4355 = vrot.lane.b32.xlu1 %v7937_v31, %s8430_s21  ;;  %v7843_v31 = vld [vmem:[%s14048_s0 + $0x170] sm:$0x1]  ;;  %v7882_v48 = vrot.slane %v7838_v40, 9  ;;  %v3835_v34 = vsel %vm9171_vm7, %v3833_v2, %v3834_v43  ;;  %v5264_v52 = vrot.slane %v5262_v14, 5  ;;  %v8127_v35 = vld [vmem:[%s14048_s0 + $0x16c] sm:$0xf] }
 0x39f   :  { %v5447_v59 = vpop.permute.xlu0 %5446  ;;  %v3841_v53 = vrot.slane %v7843_v31, 5  ;;  %v8130_v43 = vld [vmem:[%s14048_s0 + $0x178] sm:$0xf] }
 0x3a0   :  { %5605 = vst.msk [vmem:[#allocation2 + $0x88] sm:$0xf] %vm5570_vm14, %v5447_v59  ;;  %v6118_v44 = vpop.permute.xlu1 %6117  ;;  %v5248_v59 = vshrl.u32 %v8031_v47, 16  ;;  %v3832_v54 = vsel %vm9171_vm7, %v7882_v48, %v3831_v29  ;;  %v5265_v2 = vor.u32 %v5264_v52, %v5261_v11  ;;  %v6018_v48 = vrot.slane %v8130_v43, 5  ;;  %v8038_v43 = vld [vmem:[%s14048_s0 + $0x188] sm:$0x1] }
 0x3a1   :  { %4353 = vrot.lane.b32.xlu0 %v7936_v55, %s8430_s21  ;;  %6277 = vst.msk [vmem:[#allocation2 + $0x84] sm:$0xf] %vm6243_vm15, %v6118_v44  ;;  %v7841_v55 = vld [vmem:[%s14048_s0 + $0x168] sm:$0xe]  ;;  %v3842_v44 = vsel %vm9171_vm7, %v3840_v51, %v3841_v53 }
 0x3a2   :  { %4359 = vrot.lane.b32.xlu1 %v7939_v60, %s8430_s21  ;;  %v8030_v60 = vld [vmem:[%s14048_s0 + $0x168] sm:$0xf]  ;;  %v7883_v0 = vrot.slane %v7841_v55, 9 }
 0x3a3   :  { %v6116_v56 = vpop.permute.xlu0 %6115  ;;  %v5235_v27 = vshrl.u32 %v8030_v60, 16 }
 0x3a4   :  { %6276 = vst.msk [vmem:[#allocation2 + $0x80] sm:$0xf] %vm6243_vm15, %v6116_v56  ;;  %v6122_v9 = vpop.permute.xlu1 %6121  ;;  %v5250_v56 = vrot.slane %v5248_v59, 4 }
 0x3a5   :  { %4357 = vrot.lane.b32.xlu0 %v7938_v28, %s8430_s21  ;;  %6279 = vst.msk [vmem:[#allocation2 + $0x8c] sm:$0xf] %vm6243_vm15, %v6122_v9  ;;  %v5238_v28 = vshll.u32 %v8030_v60, 16  ;;  %v3839_v9 = vsel %vm9171_vm7, %v7883_v0, %v3838_v41  ;;  %v5237_v10 = vrot.slane %v5235_v27, 4  ;;  %v8131_v60 = vld [vmem:[%s14048_s0 + $0x17c] sm:$0x1] }
 0x3a6   :  { %5476 = vrot.lane.b32.xlu1 %v5209_v6, %s8431_s22  ;;  %v5268_v6 = vshll.u32 %v8034_v63, 16  ;;  %v5251_v18 = vor.u32 %v5250_v56, %v12723_v4  ;;  %v6020_v0 = vrot.slane %v6018_v48, 4  ;;  %v7848_v56 = vld [vmem:[%s14048_s0 + $0x184] sm:$0xf] }
 0x3a7   :  { %v6120_v15 = vpop.permute.xlu0 %6119 }
 0x3a8   :  { %6278 = vst.msk [vmem:[#allocation2 + $0x88] sm:$0xf] %vm6243_vm15, %v6120_v15  ;;  %v3946_v49 = vpop.permute.xlu1 %3945  ;;  %v12741_v21 = vrot.slane %v5268_v6, 5 }
 0x3a9   :  { %5474 = vrot.lane.b32.xlu0 %v5199_v1, %s8431_s22  ;;  %4101 = vst.msk [vmem:[#allocation2 + $0x94] sm:$0xf] %vm4063_vm12, %v3946_v49  ;;  %v5240_v1 = vrot.slane %v5238_v28, 5 }
 0x3aa   :  { %5480 = vrot.lane.b32.xlu1 %v5233_v17, %s8431_s22  ;;  %v7941_v17 = vld [vmem:[%s14048_s0 + $0x16c] sm:$0xf]  ;;  %v5275_v16 = vor.u32 %v5274_v58, %v12741_v21 }
 0x3ab   :  { %v3944_v12 = vpop.permute.xlu0 %3943  ;;  %v8385_v45 = vld [vmem:[#allocation2 + $0x80] sm:$0xff]   ;;  %v5241_v25 = vor.u32 %v5240_v1, %v5237_v10  ;;  %v3852_v10 = vrot.slane %v7848_v56, 5 }
 0x3ac   :  { %4100 = vst.msk [vmem:[#allocation2 + $0x90] sm:$0xf] %vm4063_vm12, %v3944_v12  ;;  %v3950_v32 = vpop.permute.xlu1 %3949  ;;  %8316 = vmatprep.mubr.msk.bf16.mxu1 %vm6552_vm0, %v8385_v45  ;;  %v7943_v12 = vld [vmem:[%s14048_s0 + $0x178] sm:$0xf]  ;;  %v5252_v45 = vrot.slane %v5251_v18, 4 }
 0x3ad   :  { %5478 = vrot.lane.b32.xlu0 %v5223_v24, %s8431_s22  ;;  %4103 = vst.msk [vmem:[#allocation2 + $0x9c] sm:$0xf] %vm4063_vm12, %v3950_v32  ;;  %v7940_v24 = vld [vmem:[%s14048_s0 + $0x168] sm:$0xf]  ;;  %v5242_v38 = vrot.slane %v5241_v25, 4 }
 0x3ae   :  { %6149 = vrot.lane.b32.xlu1 %v6001_v62, %s8432_s16  ;;  %v5256_v62 = vrot.slane %v5254_v20, 5  ;;  %v8037_v20 = vld [vmem:[%s14048_s0 + $0x184] sm:$0xf] }
 0x3af   :  { %v3948_v5 = vpop.permute.xlu0 %3947  ;;  %v8386_v7 = vld [vmem:[#allocation2 + $0x88] sm:$0xff]   ;;  %v5247_v47 = vsel %vm8483_vm2, %v5242_v38, %v12723_v4  ;;  %v6021_v4 = vrot.slane %v8131_v60, 5  ;;  %v5292_v52 = vshll.u32 %v8037_v20, 16  ;;  %v8041_v60 = vld [vmem:[%s14048_s0 + $0x194] sm:$0x1] }
 0x3b0   :  { %4102 = vst.msk [vmem:[#allocation2 + $0x98] sm:$0xf] %vm4063_vm12, %v3948_v5  ;;  %v4332_v46 = vpop.permute.xlu1 %4331  ;;  %8317 = vmatmul.mubr.msk.bf16.vlgmr.msra.gmra.mxu1 %vm6552_vm0, %v8386_v7  ;;  %v5257_v41 = vsel %vm8483_vm2, %v5252_v45, %v5256_v62  ;;  %v5276_v5 = vrot.slane %v5275_v16, 4  ;;  %v5280_v7 = vrot.slane %v5278_v30, 5  ;;  %v8040_v62 = vld [vmem:[%s14048_s0 + $0x190] sm:$0xf] }
 0x3b1   :  { %6147 = vrot.lane.b32.xlu0 %v5998_v36, %s8432_s16  ;;  %4487 = vst.msk [vmem:[#allocation2 + $0x94] sm:$0xf] %vm4449_vm13, %v4332_v46  ;;  %v7942_v36 = vld [vmem:[%s14048_s0 + $0x174] sm:$0xf]  ;;  %v8128_v46 = vld [vmem:[%s14048_s0 + $0x170] sm:$0x1]  ;;  %v6022_v14 = vsel %vm9171_vm7, %v6020_v0, %v6021_v4 }
 0x3b2   :  { %6153 = vrot.lane.b32.xlu1 %v6008_v42, %s8432_s16  ;;  %v6011_v42 = vrot.slane %v8127_v35, 5  ;;  %v5281_v53 = vsel %vm8483_vm2, %v5276_v5, %v5280_v7  ;;  %v5320_v5 = vshrl.u32 %v8040_v62, 16  ;;  %v8039_v7 = vld [vmem:[%s14048_s0 + $0x18c] sm:$0xf]  ;;  %v5326_v56 = vshll.u32 %v8041_v60, 16 }
 0x3b3   :  { %v4330_v57 = vpop.permute.xlu0 %4329 }
 0x3b4   :  { %4486 = vst.msk [vmem:[#allocation2 + $0x90] sm:$0xf] %vm4449_vm13, %v4330_v57  ;;  %v4336_v22 = vpop.permute.xlu1 %4335  ;;  %v6013_v55 = vrot.slane %v6011_v42, 4  ;;  %v6014_v57 = vrot.slane %v8128_v46, 5 }
 0x3b5   :  { %6151 = vrot.lane.b32.xlu0 %v6005_v13, %s8432_s16  ;;  %4489 = vst.msk [vmem:[#allocation2 + $0x9c] sm:$0xf] %vm4449_vm13, %v4336_v22  ;;  %v5266_v13 = vrot.slane %v5265_v2, 4  ;;  %v12855_v2 = vrot.slane %v5292_v52, 5  ;;  %v7851_v52 = vld [vmem:[%s14048_s0 + $0x190] sm:$0xf] }
 0x3b6   :  { %3977 = vrot.lane.b32.xlu1 %v3835_v34, %s8429_s30  ;;  %v8126_v34 = vld [vmem:[%s14048_s0 + $0x168] sm:$0xe] }
 0x3b7   :  { %v4334_v3 = vpop.permute.xlu0 %4333  ;;  %v5271_v22 = vsel %vm8483_vm2, %v5266_v13, %v12741_v21  ;;  %v8170_v63 = vrot.slane %v8126_v34, 9  ;;  %v5307_v13 = vshrl.u32 %v8039_v7, 16 }
 0x3b8   :  { %4488 = vst.msk [vmem:[#allocation2 + $0x98] sm:$0xf] %vm4449_vm13, %v4334_v3  ;;  %v5453_v19 = vpop.permute.xlu1 %5452  ;;  %v6015_v3 = vsel %vm9171_vm7, %v6013_v55, %v6014_v57  ;;  %v5302_v57 = vshll.u32 %v8038_v43, 16 }
 0x3b9   :  { %3975 = vrot.lane.b32.xlu0 %v3832_v54, %s8429_s30  ;;  %5608 = vst.msk [vmem:[#allocation2 + $0x94] sm:$0xf] %vm5570_vm14, %v5453_v19  ;;  %v8129_v54 = vld [vmem:[%s14048_s0 + $0x174] sm:$0xe]  ;;  %v6012_v8 = vsel %vm9171_vm7, %v8170_v63, %v6011_v42  ;;  %v5309_v0 = vrot.slane %v5307_v13, 4 }
 0x3ba   :  { %3981 = vrot.lane.b32.xlu1 %v3842_v44, %s8429_s30  ;;  %v3845_v44 = vrot.slane %v7845_v39, 5  ;;  %v8171_v19 = vrot.slane %v8129_v54, 9  ;;  %v5322_v39 = vrot.slane %v5320_v5, 4  ;;  %v7852_v5 = vld [vmem:[%s14048_s0 + $0x194] sm:$0x1] }
 0x3bb   :  { %v5451_v15 = vpop.permute.xlu0 %5450 }
 0x3bc   :  { %5607 = vst.msk [vmem:[#allocation2 + $0x90] sm:$0xf] %vm5570_vm14, %v5451_v15  ;;  %v5457_v49 = vpop.permute.xlu1 %5456  ;;  %v3847_v61 = vrot.slane %v3845_v44, 4  ;;  %v3848_v15 = vrot.slane %v7846_v33, 5  ;;  %v6019_v21 = vsel %vm9171_vm7, %v8171_v19, %v6018_v48  ;;  %v5310_v48 = vshll.u32 %v8039_v7, 16 }
 0x3bd   :  { %3979 = vrot.lane.b32.xlu0 %v3839_v9, %s8429_s30  ;;  %5610 = vst.msk [vmem:[#allocation2 + $0x9c] sm:$0xf] %vm5570_vm14, %v5457_v49  ;;  %v7844_v9 = vld [vmem:[%s14048_s0 + $0x174] sm:$0xe]  ;;  %v3854_v49 = vrot.slane %v3852_v10, 4 }
 0x3be   :  { %4363 = vrot.lane.b32.xlu1 %v7941_v17, %s8430_s21  ;;  %v7849_v17 = vld [vmem:[%s14048_s0 + $0x188] sm:$0x1]  ;;  %v7884_v58 = vrot.slane %v7844_v9, 9  ;;  %v3849_v11 = vsel %vm9171_vm7, %v3847_v61, %v3848_v15  ;;  %v5312_v54 = vrot.slane %v5310_v48, 5  ;;  %v8133_v33 = vld [vmem:[%s14048_s0 + $0x184] sm:$0xf] }
 0x3bf   :  { %v5455_v29 = vpop.permute.xlu0 %5454  ;;  %v3855_v50 = vrot.slane %v7849_v17, 5  ;;  %v8136_v15 = vld [vmem:[%s14048_s0 + $0x190] sm:$0xf] }
 0x3c0   :  { %5609 = vst.msk [vmem:[#allocation2 + $0x98] sm:$0xf] %vm5570_vm14, %v5455_v29  ;;  %v6126_v32 = vpop.permute.xlu1 %6125  ;;  %v5296_v29 = vshrl.u32 %v8037_v20, 16  ;;  %v3846_v30 = vsel %vm9171_vm7, %v7884_v58, %v3845_v44  ;;  %v5313_v61 = vor.u32 %v5312_v54, %v5309_v0  ;;  %v6032_v58 = vrot.slane %v8136_v15, 5  ;;  %v8044_v15 = vld [vmem:[%s14048_s0 + $0x1a0] sm:$0x1] }
 0x3c1   :  { %4361 = vrot.lane.b32.xlu0 %v7940_v24, %s8430_s21  ;;  %6281 = vst.msk [vmem:[#allocation2 + $0x94] sm:$0xf] %vm6243_vm15, %v6126_v32  ;;  %v7847_v24 = vld [vmem:[%s14048_s0 + $0x180] sm:$0xe]  ;;  %v3856_v32 = vsel %vm9171_vm7, %v3854_v49, %v3855_v50 }
 0x3c2   :  { %4367 = vrot.lane.b32.xlu1 %v7943_v12, %s8430_s21  ;;  %v8036_v12 = vld [vmem:[%s14048_s0 + $0x180] sm:$0xf]  ;;  %v7885_v16 = vrot.slane %v7847_v24, 9 }
 0x3c3   :  { %v6124_v40 = vpop.permute.xlu0 %6123  ;;  %v5283_v35 = vshrl.u32 %v8036_v12, 16 }
 0x3c4   :  { %6280 = vst.msk [vmem:[#allocation2 + $0x90] sm:$0xf] %vm6243_vm15, %v6124_v40  ;;  %v6130_v31 = vpop.permute.xlu1 %6129  ;;  %v5298_v40 = vrot.slane %v5296_v29, 4 }
 0x3c5   :  { %4365 = vrot.lane.b32.xlu0 %v7942_v36, %s8430_s21  ;;  %6283 = vst.msk [vmem:[#allocation2 + $0x9c] sm:$0xf] %vm6243_vm15, %v6130_v31  ;;  %v5286_v36 = vshll.u32 %v8036_v12, 16  ;;  %v3853_v31 = vsel %vm9171_vm7, %v7885_v16, %v3852_v10  ;;  %v5285_v46 = vrot.slane %v5283_v35, 4  ;;  %v8137_v12 = vld [vmem:[%s14048_s0 + $0x194] sm:$0x1] }
 0x3c6   :  { %5484 = vrot.lane.b32.xlu1 %v5257_v41, %s8431_s22  ;;  %v5316_v41 = vshll.u32 %v8040_v62, 16  ;;  %v5299_v55 = vor.u32 %v5298_v40, %v12855_v2  ;;  %v6034_v16 = vrot.slane %v6032_v58, 4  ;;  %v7854_v40 = vld [vmem:[%s14048_s0 + $0x19c] sm:$0xf] }
 0x3c7   :  { %v6128_v51 = vpop.permute.xlu0 %6127 }
 0x3c8   :  { %6282 = vst.msk [vmem:[#allocation2 + $0x98] sm:$0xf] %vm6243_vm15, %v6128_v51  ;;  %v3954_v59 = vpop.permute.xlu1 %3953  ;;  %v12873_v34 = vrot.slane %v5316_v41, 5 }
 0x3c9   :  { %5482 = vrot.lane.b32.xlu0 %v5247_v47, %s8431_s22  ;;  %4105 = vst.msk [vmem:[#allocation2 + $0xa4] sm:$0xf] %vm4063_vm12, %v3954_v59  ;;  %v5288_v47 = vrot.slane %v5286_v36, 5 }
 0x3ca   :  { %5488 = vrot.lane.b32.xlu1 %v5281_v53, %s8431_s22  ;;  %v7945_v53 = vld [vmem:[%s14048_s0 + $0x184] sm:$0xf]  ;;  %v5323_v4 = vor.u32 %v5322_v39, %v12873_v34 }
 0x3cb   :  { %v3952_v27 = vpop.permute.xlu0 %3951  ;;  %v8387_v28 = vld [vmem:[#allocation2 + $0x90] sm:$0xff]   ;;  %v5289_v63 = vor.u32 %v5288_v47, %v5285_v46  ;;  %v3866_v46 = vrot.slane %v7854_v40, 5 }
 0x3cc   :  { %4104 = vst.msk [vmem:[#allocation2 + $0xa0] sm:$0xf] %vm4063_vm12, %v3952_v27  ;;  %v3958_v6 = vpop.permute.xlu1 %3957  ;;  %8320 = vmatprep.mubr.msk.bf16.mxu1 %vm6552_vm0, %v8387_v28  ;;  %v7947_v27 = vld [vmem:[%s14048_s0 + $0x190] sm:$0xf]  ;;  %v5300_v28 = vrot.slane %v5299_v55, 4 }
 0x3cd   :  { %5486 = vrot.lane.b32.xlu0 %v5271_v22, %s8431_s22  ;;  %4107 = vst.msk [vmem:[#allocation2 + $0xac] sm:$0xf] %vm4063_vm12, %v3958_v6  ;;  %v7944_v22 = vld [vmem:[%s14048_s0 + $0x180] sm:$0xf]  ;;  %v5290_v19 = vrot.slane %v5289_v63, 4 }
 0x3ce   :  { %6157 = vrot.lane.b32.xlu1 %v6015_v3, %s8432_s16  ;;  %v5304_v3 = vrot.slane %v5302_v57, 5  ;;  %v8043_v57 = vld [vmem:[%s14048_s0 + $0x19c] sm:$0xf] }
 0x3cf   :  { %v3956_v1 = vpop.permute.xlu0 %3955  ;;  %v8388_v37 = vld [vmem:[#allocation2 + $0x98] sm:$0xff]   ;;  %v5295_v20 = vsel %vm8483_vm2, %v5290_v19, %v12855_v2  ;;  %v6035_v2 = vrot.slane %v8137_v12, 5  ;;  %v5340_v54 = vshll.u32 %v8043_v57, 16  ;;  %v8047_v12 = vld [vmem:[%s14048_s0 + $0x1ac] sm:$0x1] }
 0x3d0   :  { %4106 = vst.msk [vmem:[#allocation2 + $0xa8] sm:$0xf] %vm4063_vm12, %v3956_v1  ;;  %v4340_v18 = vpop.permute.xlu1 %4339  ;;  %8321 = vmatmul.mubr.msk.bf16.gmra.mxu1 %vm6552_vm0, %v8388_v37  ;;  %v5305_v10 = vsel %vm8483_vm2, %v5300_v28, %v5304_v3  ;;  %v5324_v1 = vrot.slane %v5323_v4, 4  ;;  %v5328_v37 = vrot.slane %v5326_v56, 5  ;;  %v8046_v3 = vld [vmem:[%s14048_s0 + $0x1a8] sm:$0xf] }
 0x3d1   :  { %6155 = vrot.lane.b32.xlu0 %v6012_v8, %s8432_s16  ;;  %4491 = vst.msk [vmem:[#allocation2 + $0xa4] sm:$0xf] %vm4449_vm13, %v4340_v18  ;;  %v7946_v8 = vld [vmem:[%s14048_s0 + $0x18c] sm:$0xf]  ;;  %v8134_v18 = vld [vmem:[%s14048_s0 + $0x188] sm:$0x1]  ;;  %v6036_v48 = vsel %vm9171_vm7, %v6034_v16, %v6035_v2 }
 0x3d2   :  { %6161 = vrot.lane.b32.xlu1 %v6022_v14, %s8432_s16  ;;  %v6025_v14 = vrot.slane %v8133_v33, 5  ;;  %v5329_v50 = vsel %vm8483_vm2, %v5324_v1, %v5328_v37  ;;  %v5368_v1 = vshrl.u32 %v8046_v3, 16  ;;  %v8045_v37 = vld [vmem:[%s14048_s0 + $0x1a4] sm:$0xf]  ;;  %v5374_v40 = vshll.u32 %v8047_v12, 16 }
 0x3d3   :  { %v4338_v25 = vpop.permute.xlu0 %4337 }
 0x3d4   :  { %4490 = vst.msk [vmem:[#allocation2 + $0xa0] sm:$0xf] %vm4449_vm13, %v4338_v25  ;;  %v4344_v45 = vpop.permute.xlu1 %4343  ;;  %v6027_v24 = vrot.slane %v6025_v14, 4  ;;  %v6028_v25 = vrot.slane %v8134_v18, 5 }
 0x3d5   :  { %6159 = vrot.lane.b32.xlu0 %v6019_v21, %s8432_s16  ;;  %4493 = vst.msk [vmem:[#allocation2 + $0xac] sm:$0xf] %vm4449_vm13, %v4344_v45  ;;  %v5314_v21 = vrot.slane %v5313_v61, 4  ;;  %v12987_v61 = vrot.slane %v5340_v54, 5 }
 0x3d6   :  { %3985 = vrot.lane.b32.xlu1 %v3849_v11, %s8429_s30  ;;  %v8132_v11 = vld [vmem:[%s14048_s0 + $0x180] sm:$0xe] }
 0x3d7   :  { %v4342_v38 = vpop.permute.xlu0 %4341  ;;  %v5319_v45 = vsel %vm8483_vm2, %v5314_v21, %v12873_v34  ;;  %v8172_v62 = vrot.slane %v8132_v11, 9  ;;  %v5355_v21 = vshrl.u32 %v8045_v37, 16 }
 0x3d8   :  { %4492 = vst.msk [vmem:[#allocation2 + $0xa8] sm:$0xf] %vm4449_vm13, %v4342_v38  ;;  %v5461_v42 = vpop.permute.xlu1 %5460  ;;  %v6029_v38 = vsel %vm9171_vm7, %v6027_v24, %v6028_v25  ;;  %v5350_v25 = vshll.u32 %v8044_v15, 16 }
 0x3d9   :  { %3983 = vrot.lane.b32.xlu0 %v3846_v30, %s8429_s30  ;;  %5612 = vst.msk [vmem:[#allocation2 + $0xa4] sm:$0xf] %vm5570_vm14, %v5461_v42  ;;  %v8135_v30 = vld [vmem:[%s14048_s0 + $0x18c] sm:$0xe]  ;;  %v6026_v7 = vsel %vm9171_vm7, %v8172_v62, %v6025_v14  ;;  %v5357_v16 = vrot.slane %v5355_v21, 4 }
 0x3da   :  { %3989 = vrot.lane.b32.xlu1 %v3856_v32, %s8429_s30  ;;  %v3859_v32 = vrot.slane %v7851_v52, 5  ;;  %v8173_v42 = vrot.slane %v8135_v30, 9  ;;  %v5370_v52 = vrot.slane %v5368_v1, 4 }
 0x3db   :  { %v5459_v51 = vpop.permute.xlu0 %5458 }
 0x3dc   :  { %5611 = vst.msk [vmem:[#allocation2 + $0xa0] sm:$0xf] %vm5570_vm14, %v5459_v51  ;;  %v5465_v59 = vpop.permute.xlu1 %5464  ;;  %v3861_v43 = vrot.slane %v3859_v32, 4  ;;  %v3862_v51 = vrot.slane %v7852_v5, 5  ;;  %v6033_v34 = vsel %vm9171_vm7, %v8173_v42, %v6032_v58  ;;  %v5358_v58 = vshll.u32 %v8045_v37, 16 }
 0x3dd   :  { %3987 = vrot.lane.b32.xlu0 %v3853_v31, %s8429_s30  ;;  %5614 = vst.msk [vmem:[#allocation2 + $0xac] sm:$0xf] %vm5570_vm14, %v5465_v59  ;;  %v7850_v31 = vld [vmem:[%s14048_s0 + $0x18c] sm:$0xe]  ;;  %v3868_v59 = vrot.slane %v3866_v46, 4 }
 0x3de   :  { %4371 = vrot.lane.b32.xlu1 %v7945_v53, %s8430_s21  ;;  %v7855_v53 = vld [vmem:[%s14048_s0 + $0x1a0] sm:$0x1]  ;;  %v7886_v39 = vrot.slane %v7850_v31, 9  ;;  %v3863_v0 = vsel %vm9171_vm7, %v3861_v43, %v3862_v51  ;;  %v5360_v30 = vrot.slane %v5358_v58, 5  ;;  %v8139_v5 = vld [vmem:[%s14048_s0 + $0x19c] sm:$0xf] }
 0x3df   :  { %v5463_v44 = vpop.permute.xlu0 %5462  ;;  %v3869_v60 = vrot.slane %v7855_v53, 5  ;;  %v8140_v53 = vld [vmem:[%s14048_s0 + $0x1a0] sm:$0x1] }
 0x3e0   :  { %5613 = vst.msk [vmem:[#allocation2 + $0xa8] sm:$0xf] %vm5570_vm14, %v5463_v44  ;;  %v6134_v6 = vpop.permute.xlu1 %6133  ;;  %v5344_v44 = vshrl.u32 %v8043_v57, 16  ;;  %v3860_v56 = vsel %vm9171_vm7, %v7886_v39, %v3859_v32  ;;  %v5361_v43 = vor.u32 %v5360_v30, %v5357_v16 }
 0x3e1   :  { %4369 = vrot.lane.b32.xlu0 %v7944_v22, %s8430_s21  ;;  %6285 = vst.msk [vmem:[#allocation2 + $0xa4] sm:$0xf] %vm6243_vm15, %v6134_v6  ;;  %v7853_v22 = vld [vmem:[%s14048_s0 + $0x198] sm:$0xe]  ;;  %v3870_v6 = vsel %vm9171_vm7, %v3868_v59, %v3869_v60 }
 0x3e2   :  { %4375 = vrot.lane.b32.xlu1 %v7947_v27, %s8430_s21  ;;  %v8042_v27 = vld [vmem:[%s14048_s0 + $0x198] sm:$0xf]  ;;  %v7887_v4 = vrot.slane %v7853_v22, 9  ;;  %v6042_v22 = vrot.slane %v8140_v53, 5 }
 0x3e3   :  { %v6132_v9 = vpop.permute.xlu0 %6131  ;;  %v5331_v33 = vshrl.u32 %v8042_v27, 16 }
 0x3e4   :  { %6284 = vst.msk [vmem:[#allocation2 + $0xa0] sm:$0xf] %vm6243_vm15, %v6132_v9  ;;  %v6138_v17 = vpop.permute.xlu1 %6137  ;;  %v5346_v9 = vrot.slane %v5344_v44, 4  ;;  %v8143_v44 = vld [vmem:[%s14048_s0 + $0x1ac] sm:$0x1] }
 0x3e5   :  { %4373 = vrot.lane.b32.xlu0 %v7946_v8, %s8430_s21  ;;  %6287 = vst.msk [vmem:[#allocation2 + $0xac] sm:$0xf] %vm6243_vm15, %v6138_v17  ;;  %v5334_v8 = vshll.u32 %v8042_v27, 16  ;;  %v3867_v17 = vsel %vm9171_vm7, %v7887_v4, %v3866_v46  ;;  %v5333_v18 = vrot.slane %v5331_v33, 4 }
 0x3e6   :  { %5492 = vrot.lane.b32.xlu1 %v5305_v10, %s8431_s22  ;;  %v5364_v10 = vshll.u32 %v8046_v3, 16  ;;  %v5347_v24 = vor.u32 %v5346_v9, %v12987_v61  ;;  %v8141_v3 = vld [vmem:[%s14048_s0 + $0x1a4] sm:$0xe] }
 0x3e7   :  { %v6136_v49 = vpop.permute.xlu0 %6135 }
 0x3e8   :  { %6286 = vst.msk [vmem:[#allocation2 + $0xa8] sm:$0xf] %vm6243_vm15, %v6136_v49  ;;  %v3962_v29 = vpop.permute.xlu1 %3961  ;;  %v13005_v11 = vrot.slane %v5364_v10, 5 }
 0x3e9   :  { %5490 = vrot.lane.b32.xlu0 %v5295_v20, %s8431_s22  ;;  %4109 = vst.msk [vmem:[#allocation2 + $0xb4] sm:$0xf] %vm4063_vm12, %v3962_v29  ;;  %v5336_v20 = vrot.slane %v5334_v8, 5  ;;  %v6049_v8 = vrot.slane %v8143_v44, 5 }
 0x3ea   :  { %5496 = vrot.lane.b32.xlu1 %v5329_v50, %s8431_s22  ;;  %v7949_v50 = vld [vmem:[%s14048_s0 + $0x19c] sm:$0xf]  ;;  %v5371_v2 = vor.u32 %v5370_v52, %v13005_v11 }
 0x3eb   :  { %v3960_v35 = vpop.permute.xlu0 %3959  ;;  %v8389_v36 = vld [vmem:[#allocation2 + $0xa0] sm:$0xff]   ;;  %v5337_v62 = vor.u32 %v5336_v20, %v5333_v18 }
 0x3ec   :  { %4108 = vst.msk [vmem:[#allocation2 + $0xb0] sm:$0xf] %vm4063_vm12, %v3960_v35  ;;  %v3966_v41 = vpop.permute.xlu1 %3965  ;;  %8324 = vmatprep.mubr.msk.bf16.mxu1 %vm6552_vm0, %v8389_v36  ;;  %v7951_v35 = vld [vmem:[%s14048_s0 + $0x1a8] sm:$0xf]  ;;  %v5348_v36 = vrot.slane %v5347_v24, 4 }
 0x3ed   :  { %5494 = vrot.lane.b32.xlu0 %v5319_v45, %s8431_s22  ;;  %4111 = vst.msk [vmem:[#allocation2 + $0xbc] sm:$0xf] %vm4063_vm12, %v3966_v41  ;;  %v7948_v45 = vld [vmem:[%s14048_s0 + $0x198] sm:$0xf]  ;;  %v5338_v42 = vrot.slane %v5337_v62, 4 }
 0x3ee   :  { %6165 = vrot.lane.b32.xlu1 %v6029_v38, %s8432_s16  ;;  %v5352_v38 = vrot.slane %v5350_v25, 5 }
 0x3ef   :  { %v3964_v47 = vpop.permute.xlu0 %3963  ;;  %v8390_v13 = vld [vmem:[#allocation2 + $0xa8] sm:$0xff]   ;;  %v5343_v57 = vsel %vm8483_vm2, %v5338_v42, %v12987_v61  ;;  %v8175_v61 = vrot.slane %v8141_v3, 9 }
 0x3f0   :  { %4110 = vst.msk [vmem:[#allocation2 + $0xb8] sm:$0xf] %vm4063_vm12, %v3964_v47  ;;  %v4348_v55 = vpop.permute.xlu1 %4347  ;;  %8325 = vmatmul.mubr.msk.bf16.gmra.mxu1 %vm6552_vm0, %v8390_v13  ;;  %v5353_v46 = vsel %vm8483_vm2, %v5348_v36, %v5352_v38  ;;  %v5372_v47 = vrot.slane %v5371_v2, 4  ;;  %v5376_v13 = vrot.slane %v5374_v40, 5 }
 0x3f1   :  { %6163 = vrot.lane.b32.xlu0 %v6026_v7, %s8432_s16  ;;  %4495 = vst.msk [vmem:[#allocation2 + $0xb4] sm:$0xf] %vm4449_vm13, %v4348_v55  ;;  %v7950_v7 = vld [vmem:[%s14048_s0 + $0x1a4] sm:$0xf]  ;;  %v8142_v55 = vld [vmem:[%s14048_s0 + $0x1a8] sm:$0xf] }
 0x3f2   :  { %6169 = vrot.lane.b32.xlu1 %v6036_v48, %s8432_s16  ;;  %v6039_v48 = vrot.slane %v8139_v5, 5  ;;  %v5377_v59 = vsel %vm8483_vm2, %v5372_v47, %v5376_v13 }
 0x3f3   :  { %v4346_v63 = vpop.permute.xlu0 %4345 }
 0x3f4   :  { %4494 = vst.msk [vmem:[#allocation2 + $0xb0] sm:$0xf] %vm4449_vm13, %v4346_v63  ;;  %v4352_v28 = vpop.permute.xlu1 %4351  ;;  %v6041_v60 = vrot.slane %v6039_v48, 4  ;;  %v8138_v63 = vld [vmem:[%s14048_s0 + $0x198] sm:$0xe] }
 0x3f5   :  { %6167 = vrot.lane.b32.xlu0 %v6033_v34, %s8432_s16  ;;  %4497 = vst.msk [vmem:[#allocation2 + $0xbc] sm:$0xf] %vm4449_vm13, %v4352_v28  ;;  %v5362_v34 = vrot.slane %v5361_v43, 4  ;;  %v8174_v28 = vrot.slane %v8138_v63, 9 }
 0x3f6   :  { %3993 = vrot.lane.b32.xlu1 %v3863_v0, %s8429_s30  ;;  %v6046_v0 = vrot.slane %v8142_v55, 5 }
 0x3f7   :  { %v4350_v19 = vpop.permute.xlu0 %4349  ;;  %v5367_v27 = vsel %vm8483_vm2, %v5362_v34, %v13005_v11  ;;  %v6040_v23 = vsel %vm9171_vm7, %v8174_v28, %v6039_v48 }
 0x3f8   :  { %4496 = vst.msk [vmem:[#allocation2 + $0xb8] sm:$0xf] %vm4449_vm13, %v4350_v19  ;;  %v5469_v14 = vpop.permute.xlu1 %5468  ;;  %v6048_v33 = vrot.slane %v6046_v0, 4 }
 0x3f9   :  { %3991 = vrot.lane.b32.xlu0 %v3860_v56, %s8429_s30  ;;  %5616 = vst.msk [vmem:[#allocation2 + $0xb4] sm:$0xf] %vm5570_vm14, %v5469_v14  ;;  %v6047_v14 = vsel %vm9171_vm7, %v8175_v61, %v6046_v0 }
 0x3fa   :  { %3997 = vrot.lane.b32.xlu1 %v3870_v6, %s8429_s30  ;;  %v6043_v6 = vsel %vm9171_vm7, %v6041_v60, %v6042_v22  ;;  %v6050_v1 = vsel %vm9171_vm7, %v6048_v33, %v6049_v8 }
 0x3fb   :  { %v5467_v49 = vpop.permute.xlu0 %5466 }
 0x3fc   :  { %5615 = vst.msk [vmem:[#allocation2 + $0xb0] sm:$0xf] %vm5570_vm14, %v5467_v49  ;;  %v5473_v29 = vpop.permute.xlu1 %5472 }
 0x3fd   :  { %3995 = vrot.lane.b32.xlu0 %v3867_v17, %s8429_s30  ;;  %5618 = vst.msk [vmem:[#allocation2 + $0xbc] sm:$0xf] %vm5570_vm14, %v5473_v29 }
 0x3fe   :  { %4379 = vrot.lane.b32.xlu1 %v7949_v50, %s8430_s21 }
 0x3ff   :  { %v5471_v32 = vpop.permute.xlu0 %5470 }
 0x400   :  { %5617 = vst.msk [vmem:[#allocation2 + $0xb8] sm:$0xf] %vm5570_vm14, %v5471_v32  ;;  %v6142_v41 = vpop.permute.xlu1 %6141 }
 0x401   :  { %4377 = vrot.lane.b32.xlu0 %v7948_v45, %s8430_s21  ;;  %6289 = vst.msk [vmem:[#allocation2 + $0xb4] sm:$0xf] %vm6243_vm15, %v6142_v41 }
 0x402   :  { %4383 = vrot.lane.b32.xlu1 %v7951_v35, %s8430_s21 }
 0x403   :  { %v6140_v31 = vpop.permute.xlu0 %6139 }
 0x404   :  { %6288 = vst.msk [vmem:[#allocation2 + $0xb0] sm:$0xf] %vm6243_vm15, %v6140_v31  ;;  %v6146_v51 = vpop.permute.xlu1 %6145 }
 0x405   :  { %4381 = vrot.lane.b32.xlu0 %v7950_v7, %s8430_s21  ;;  %6291 = vst.msk [vmem:[#allocation2 + $0xbc] sm:$0xf] %vm6243_vm15, %v6146_v51 }
 0x406   :  { %5500 = vrot.lane.b32.xlu1 %v5353_v46, %s8431_s22 }
 0x407   :  { %v6144_v39 = vpop.permute.xlu0 %6143 }
 0x408   :  { %6290 = vst.msk [vmem:[#allocation2 + $0xb8] sm:$0xf] %vm6243_vm15, %v6144_v39  ;;  %v3970_v54 = vpop.permute.xlu1 %3969 }
 0x409   :  { %5498 = vrot.lane.b32.xlu0 %v5343_v57, %s8431_s22  ;;  %4113 = vst.msk [vmem:[#allocation2 + $0xc4] sm:$0xf] %vm4063_vm12, %v3970_v54 }
 0x40a   :  { %5504 = vrot.lane.b32.xlu1 %v5377_v59, %s8431_s22 }
 0x40b   :  { %v3968_v4 = vpop.permute.xlu0 %3967  ;;  %v8391_v56 = vld [vmem:[#allocation2 + $0xb0] sm:$0xff]  }
 0x40c   :  { %4112 = vst.msk [vmem:[#allocation2 + $0xc0] sm:$0xf] %vm4063_vm12, %v3968_v4  ;;  %v3974_v19 = vpop.permute.xlu1 %3973  ;;  %8328 = vmatprep.mubr.msk.bf16.mxu1 %vm6552_vm0, %v8391_v56 }
 0x40d   :  { %5502 = vrot.lane.b32.xlu0 %v5367_v27, %s8431_s22  ;;  %4115 = vst.msk [vmem:[#allocation2 + $0xcc] sm:$0xf] %vm4063_vm12, %v3974_v19 }
 0x40e   :  { %6173 = vrot.lane.b32.xlu1 %v6043_v6, %s8432_s16 }
 0x40f   :  { %v3972_v9 = vpop.permute.xlu0 %3971  ;;  %v8392_v10 = vld [vmem:[#allocation2 + $0xb8] sm:$0xff]  }
 0x410   :  { %4114 = vst.msk [vmem:[#allocation2 + $0xc8] sm:$0xf] %vm4063_vm12, %v3972_v9  ;;  %v4356_v37 = vpop.permute.xlu1 %4355  ;;  %8329 = vmatmul.mubr.msk.bf16.gmra.mxu1 %vm6552_vm0, %v8392_v10 }
 0x411   :  { %6171 = vrot.lane.b32.xlu0 %v6040_v23, %s8432_s16  ;;  %4499 = vst.msk [vmem:[#allocation2 + $0xc4] sm:$0xf] %vm4449_vm13, %v4356_v37 }
 0x412   :  { %6177 = vrot.lane.b32.xlu1 %v6050_v1, %s8432_s16 }
 0x413   :  { %v4354_v15 = vpop.permute.xlu0 %4353 }
 0x414   :  { %4498 = vst.msk [vmem:[#allocation2 + $0xc0] sm:$0xf] %vm4449_vm13, %v4354_v15  ;;  %v4360_v17 = vpop.permute.xlu1 %4359  ;;  %v13146_v15 = vpop.f32.mrf.mxu0 }
 0x415   :  { %6175 = vrot.lane.b32.xlu0 %v6047_v14, %s8432_s16  ;;  %4501 = vst.msk [vmem:[#allocation2 + $0xcc] sm:$0xf] %vm4449_vm13, %v4360_v17 }
 0x417   :  { %v4358_v18 = vpop.permute.xlu0 %4357 }
 0x418   :  { %4500 = vst.msk [vmem:[#allocation2 + $0xc8] sm:$0xf] %vm4449_vm13, %v4358_v18  ;;  %v5477_v20 = vpop.permute.xlu1 %5476  ;;  %v13150_v18 = vpop.f32.mrf.mxu0 }
 0x419   :  { %5620 = vst.msk [vmem:[#allocation2 + $0xc4] sm:$0xf] %vm5570_vm14, %v5477_v20 }
 0x41b   :  { %v5475_v21 = vpop.permute.xlu0 %5474 }
 0x41c   :  { %5619 = vst.msk [vmem:[#allocation2 + $0xc0] sm:$0xf] %vm5570_vm14, %v5475_v21  ;;  %v5481_v58 = vpop.permute.xlu1 %5480  ;;  %v13152_v21 = vpop.f32.mrf.mxu0 }
 0x41d   :  { %5622 = vst.msk [vmem:[#allocation2 + $0xcc] sm:$0xf] %vm5570_vm14, %v5481_v58 }
 0x41f   :  { %v5479_v26 = vpop.permute.xlu0 %5478 }
 0x420   :  { %5621 = vst.msk [vmem:[#allocation2 + $0xc8] sm:$0xf] %vm5570_vm14, %v5479_v26  ;;  %v6150_v49 = vpop.permute.xlu1 %6149  ;;  %v13155_v26 = vpop.f32.mrf.mxu0 }
 0x421   :  { %6293 = vst.msk [vmem:[#allocation2 + $0xc4] sm:$0xf] %vm6243_vm15, %v6150_v49 }
 0x422   :  { %v13158_v49 = vpop.f32.mrf.mxu0 }
 0x423   :  { %v6148_v50 = vpop.permute.xlu0 %6147 }
 0x424   :  { %6292 = vst.msk [vmem:[#allocation2 + $0xc0] sm:$0xf] %vm6243_vm15, %v6148_v50  ;;  %v6154_v24 = vpop.permute.xlu1 %6153  ;;  %v13160_v50 = vpop.f32.mrf.mxu0 }
 0x425   :  { %6295 = vst.msk [vmem:[#allocation2 + $0xcc] sm:$0xf] %vm6243_vm15, %v6154_v24 }
 0x426   :  { %v13162_v24 = vpop.f32.mrf.mxu0 }
 0x427   :  { %v6152_v25 = vpop.permute.xlu0 %6151 }
 0x428   :  { %6294 = vst.msk [vmem:[#allocation2 + $0xc8] sm:$0xf] %vm6243_vm15, %v6152_v25  ;;  %v3978_v11 = vpop.permute.xlu1 %3977  ;;  %v13164_v25 = vpop.f32.mrf.mxu0 }
 0x429   :  { %4117 = vst.msk [vmem:[#allocation2 + $0xd4] sm:$0xf] %vm4063_vm12, %v3978_v11 }
 0x42a   :  { %v13166_v11 = vpop.f32.mrf.mxu0 }
 0x42b   :  { %v3976_v52 = vpop.permute.xlu0 %3975  ;;  %v8393_v29 = vld [vmem:[#allocation2 + $0xc0] sm:$0xff]  }
 0x42c   :  { %4116 = vst.msk [vmem:[#allocation2 + $0xd0] sm:$0xf] %vm4063_vm12, %v3976_v52  ;;  %v3982_v12 = vpop.permute.xlu1 %3981  ;;  %8332 = vmatprep.mubr.msk.bf16.mxu1 %vm6552_vm0, %v8393_v29  ;;  %v7140_v52 = vmul.f32 %v13155_v26, %v13155_v26  ;;  %v7139_v29 = vmul.f32 %v13150_v18, %v13150_v18 }
 0x42d   :  { %4119 = vst.msk [vmem:[#allocation2 + $0xdc] sm:$0xf] %vm4063_vm12, %v3982_v12  ;;  %v7070_v12 = vadd.f32 %v13155_v26, %v13150_v18 }
 0x42f   :  { %v3980_v45 = vpop.permute.xlu0 %3979  ;;  %v8394_v62 = vld [vmem:[#allocation2 + $0xc8] sm:$0xff]  }
 0x430   :  { %4118 = vst.msk [vmem:[#allocation2 + $0xd8] sm:$0xf] %vm4063_vm12, %v3980_v45  ;;  %v4364_v16 = vpop.permute.xlu1 %4363  ;;  %8333 = vmatmul.mubr.msk.bf16.gmra.mxu1 %vm6552_vm0, %v8394_v62  ;;  %v13174_v45 = vpop.f32.mrf.mxu0  ;;  %v7203_v62 = vadd.f32 %v7140_v52, %v7139_v29 }
 0x431   :  { %4503 = vst.msk [vmem:[#allocation2 + $0xd4] sm:$0xf] %vm4449_vm13, %v4364_v16  ;;  %v7141_v16 = vmul.f32 %v13146_v15, %v13146_v15 }
 0x433   :  { %v4362_v30 = vpop.permute.xlu0 %4361 }
 0x434   :  { %4502 = vst.msk [vmem:[#allocation2 + $0xd0] sm:$0xf] %vm4449_vm13, %v4362_v30  ;;  %v4368_v32 = vpop.permute.xlu1 %4367  ;;  %v7071_v30 = vadd.f32 %v13146_v15, %v7070_v12 }
 0x435   :  { %4505 = vst.msk [vmem:[#allocation2 + $0xdc] sm:$0xf] %vm4449_vm13, %v4368_v32  ;;  %v13179_v32 = vpop.f32.mrf.mxu0 }
 0x437   :  { %v4366_v35 = vpop.permute.xlu0 %4365 }
 0x438   :  { %4504 = vst.msk [vmem:[#allocation2 + $0xd8] sm:$0xf] %vm4449_vm13, %v4366_v35  ;;  %v5485_v36 = vpop.permute.xlu1 %5484  ;;  %v7204_v35 = vadd.f32 %v7203_v62, %v7141_v16 }
 0x439   :  { %5624 = vst.msk [vmem:[#allocation2 + $0xd4] sm:$0xf] %vm5570_vm14, %v5485_v36  ;;  %v7142_v36 = vmul.f32 %v13152_v21, %v13152_v21 }
 0x43b   :  { %v5483_v38 = vpop.permute.xlu0 %5482 }
 0x43c   :  { %5623 = vst.msk [vmem:[#allocation2 + $0xd0] sm:$0xf] %vm5570_vm14, %v5483_v38  ;;  %v5489_v2 = vpop.permute.xlu1 %5488  ;;  %v7072_v38 = vadd.f32 %v13152_v21, %v7071_v30 }
 0x43d   :  { %5626 = vst.msk [vmem:[#allocation2 + $0xdc] sm:$0xf] %vm5570_vm14, %v5489_v2  ;;  %v7143_v2 = vmul.f32 %v13160_v50, %v13160_v50 }
 0x43f   :  { %v5487_v40 = vpop.permute.xlu0 %5486 }
 0x440   :  { %5625 = vst.msk [vmem:[#allocation2 + $0xd8] sm:$0xf] %vm5570_vm14, %v5487_v40  ;;  %v6158_v41 = vpop.permute.xlu1 %6157  ;;  %v13186_v40 = vpop.f32.mrf.mxu0 }
 0x441   :  { %6297 = vst.msk [vmem:[#allocation2 + $0xd4] sm:$0xf] %vm6243_vm15, %v6158_v41  ;;  %v7073_v41 = vadd.f32 %v7072_v38, %v13160_v50 }
 0x443   :  { %v6156_v5 = vpop.permute.xlu0 %6155 }
 0x444   :  { %6296 = vst.msk [vmem:[#allocation2 + $0xd0] sm:$0xf] %vm6243_vm15, %v6156_v5  ;;  %v6162_v7 = vpop.permute.xlu1 %6161  ;;  %v7205_v5 = vadd.f32 %v7204_v35, %v7142_v36 }
 0x445   :  { %6299 = vst.msk [vmem:[#allocation2 + $0xdc] sm:$0xf] %vm6243_vm15, %v6162_v7  ;;  %v7144_v7 = vmul.f32 %v13164_v25, %v13164_v25 }
 0x447   :  { %v6160_v42 = vpop.permute.xlu0 %6159 }
 0x448   :  { %6298 = vst.msk [vmem:[#allocation2 + $0xd8] sm:$0xf] %vm6243_vm15, %v6160_v42  ;;  %v3986_v43 = vpop.permute.xlu1 %3985  ;;  %v13191_v42 = vpop.f32.mrf.mxu0 }
 0x449   :  { %4121 = vst.msk [vmem:[#allocation2 + $0xe4] sm:$0xf] %vm4063_vm12, %v3986_v43  ;;  %v7206_v43 = vadd.f32 %v7205_v5, %v7143_v2 }
 0x44b   :  { %v3984_v31 = vpop.permute.xlu0 %3983  ;;  %v8395_v46 = vld [vmem:[#allocation2 + $0xd0] sm:$0xff]  }
 0x44c   :  { %4120 = vst.msk [vmem:[#allocation2 + $0xe0] sm:$0xf] %vm4063_vm12, %v3984_v31  ;;  %v3990_v47 = vpop.permute.xlu1 %3989  ;;  %8336 = vmatprep.mubr.msk.bf16.mxu1 %vm6552_vm0, %v8395_v46  ;;  %v7074_v31 = vadd.f32 %v7073_v41, %v13164_v25  ;;  %v7207_v46 = vadd.f32 %v7206_v43, %v7144_v7 }
 0x44d   :  { %4123 = vst.msk [vmem:[#allocation2 + $0xec] sm:$0xf] %vm4063_vm12, %v3990_v47  ;;  %v13194_v47 = vpop.f32.mrf.mxu0 }
 0x44f   :  { %v3988_v13 = vpop.permute.xlu0 %3987  ;;  %v8396_v48 = vld [vmem:[#allocation2 + $0xd8] sm:$0xff]  }
 0x450   :  { %4122 = vst.msk [vmem:[#allocation2 + $0xe8] sm:$0xf] %vm4063_vm12, %v3988_v13  ;;  %v4372_v51 = vpop.permute.xlu1 %4371  ;;  %8337 = vmatmul.mubr.msk.bf16.gmra.mxu1 %vm6552_vm0, %v8396_v48  ;;  %v7145_v13 = vmul.f32 %v13158_v49, %v13158_v49  ;;  %v7075_v48 = vadd.f32 %v13158_v49, %v7074_v31 }
 0x451   :  { %4507 = vst.msk [vmem:[#allocation2 + $0xe4] sm:$0xf] %vm4449_vm13, %v4372_v51 }
 0x452   :  { %v7208_v51 = vadd.f32 %v7207_v46, %v7145_v13 }
 0x453   :  { %v4370_v53 = vpop.permute.xlu0 %4369 }
 0x454   :  { %4506 = vst.msk [vmem:[#allocation2 + $0xe0] sm:$0xf] %vm4449_vm13, %v4370_v53  ;;  %v4376_v55 = vpop.permute.xlu1 %4375  ;;  %v13199_v53 = vpop.f32.mrf.mxu0 }
 0x455   :  { %4509 = vst.msk [vmem:[#allocation2 + $0xec] sm:$0xf] %vm4449_vm13, %v4376_v55  ;;  %v7146_v55 = vmul.f32 %v13162_v24, %v13162_v24  ;;  %v7154_v29 = vmul.f32 %v13199_v53, %v13199_v53 }
 0x457   :  { %v4374_v57 = vpop.permute.xlu0 %4373 }
 0x458   :  { %4508 = vst.msk [vmem:[#allocation2 + $0xe8] sm:$0xf] %vm4449_vm13, %v4374_v57  ;;  %v5493_v34 = vpop.permute.xlu1 %5492  ;;  %v7076_v57 = vadd.f32 %v13162_v24, %v7075_v48 }
 0x459   :  { %5628 = vst.msk [vmem:[#allocation2 + $0xe4] sm:$0xf] %vm5570_vm14, %v5493_v34  ;;  %v7147_v34 = vmul.f32 %v13174_v45, %v13174_v45 }
 0x45b   :  { %v5491_v39 = vpop.permute.xlu0 %5490 }
 0x45c   :  { %5627 = vst.msk [vmem:[#allocation2 + $0xe0] sm:$0xf] %vm5570_vm14, %v5491_v39  ;;  %v5497_v59 = vpop.permute.xlu1 %5496  ;;  %v7077_v39 = vadd.f32 %v7076_v57, %v13174_v45 }
 0x45d   :  { %5630 = vst.msk [vmem:[#allocation2 + $0xec] sm:$0xf] %vm5570_vm14, %v5497_v59  ;;  %v7209_v59 = vadd.f32 %v7208_v51, %v7146_v55 }
 0x45f   :  { %v5495_v60 = vpop.permute.xlu0 %5494 }
 0x460   :  { %5629 = vst.msk [vmem:[#allocation2 + $0xe8] sm:$0xf] %vm5570_vm14, %v5495_v60  ;;  %v6166_v22 = vpop.permute.xlu1 %6165  ;;  %v7148_v60 = vmul.f32 %v13186_v40, %v13186_v40 }
 0x461   :  { %6301 = vst.msk [vmem:[#allocation2 + $0xe4] sm:$0xf] %vm6243_vm15, %v6166_v22  ;;  %v13209_v22 = vpop.f32.mrf.mxu0 }
 0x463   :  { %v6164_v63 = vpop.permute.xlu0 %6163 }
 0x464   :  { %6300 = vst.msk [vmem:[#allocation2 + $0xe0] sm:$0xf] %vm6243_vm15, %v6164_v63  ;;  %v6170_v0 = vpop.permute.xlu1 %6169  ;;  %v7210_v63 = vadd.f32 %v7209_v59, %v7147_v34 }
 0x465   :  { %6303 = vst.msk [vmem:[#allocation2 + $0xec] sm:$0xf] %vm6243_vm15, %v6170_v0  ;;  %v7078_v0 = vadd.f32 %v7077_v39, %v13186_v40 }
 0x467   :  { %v6168_v54 = vpop.permute.xlu0 %6167 }
 0x468   :  { %6302 = vst.msk [vmem:[#allocation2 + $0xe8] sm:$0xf] %vm6243_vm15, %v6168_v54  ;;  %v3994_v44 = vpop.permute.xlu1 %3993  ;;  %v13212_v54 = vpop.f32.mrf.mxu0 }
 0x469   :  { %4125 = vst.msk [vmem:[#allocation2 + $0xf4] sm:$0xf] %vm4063_vm12, %v3994_v44  ;;  %v7211_v44 = vadd.f32 %v7210_v63, %v7148_v60  ;;  %v7157_v7 = vmul.f32 %v13212_v54, %v13212_v54 }
 0x46b   :  { %v3992_v27 = vpop.permute.xlu0 %3991  ;;  %v8397_v28 = vld [vmem:[#allocation2 + $0xe0] sm:$0xff]  }
 0x46c   :  { %4124 = vst.msk [vmem:[#allocation2 + $0xf0] sm:$0xf] %vm4063_vm12, %v3992_v27  ;;  %v3998_v3 = vpop.permute.xlu1 %3997  ;;  %8340 = vmatprep.mubr.msk.bf16.mxu1 %vm6552_vm0, %v8397_v28  ;;  %v7149_v27 = vmul.f32 %v13166_v11, %v13166_v11  ;;  %v7079_v28 = vadd.f32 %v13166_v11, %v7078_v0 }
 0x46d   :  { %4127 = vst.msk [vmem:[#allocation2 + $0xfc] sm:$0xf] %vm4063_vm12, %v3998_v3  ;;  %v13217_v3 = vpop.f32.mrf.mxu0 }
 0x46e   :  { %v7155_v62 = vmul.f32 %v13217_v3, %v13217_v3 }
 0x46f   :  { %v3996_v4 = vpop.permute.xlu0 %3995  ;;  %v8398_v56 = vld [vmem:[#allocation2 + $0xe8] sm:$0xff]  }
 0x470   :  { %4126 = vst.msk [vmem:[#allocation2 + $0xf8] sm:$0xf] %vm4063_vm12, %v3996_v4  ;;  %v4380_v6 = vpop.permute.xlu1 %4379  ;;  %8341 = vmatmul.mubr.msk.bf16.gmra.mxu1 %vm6552_vm0, %v8398_v56  ;;  %v7212_v4 = vadd.f32 %v7211_v44, %v7149_v27  ;;  %v7150_v56 = vmul.f32 %v13179_v32, %v13179_v32 }
 0x471   :  { %4511 = vst.msk [vmem:[#allocation2 + $0xf4] sm:$0xf] %vm4449_vm13, %v4380_v6  ;;  %v7080_v6 = vadd.f32 %v13179_v32, %v7079_v28 }
 0x473   :  { %v4378_v33 = vpop.permute.xlu0 %4377 }
 0x474   :  { %4510 = vst.msk [vmem:[#allocation2 + $0xf0] sm:$0xf] %vm4449_vm13, %v4378_v33  ;;  %v4384_v8 = vpop.permute.xlu1 %4383  ;;  %v7151_v33 = vmul.f32 %v13194_v47, %v13194_v47 }
 0x475   :  { %4513 = vst.msk [vmem:[#allocation2 + $0xfc] sm:$0xf] %vm4449_vm13, %v4384_v8  ;;  %v13224_v8 = vpop.f32.mrf.mxu0 }
 0x476   :  { %v7158_v13 = vmul.f32 %v13224_v8, %v13224_v8 }
 0x477   :  { %v4382_v19 = vpop.permute.xlu0 %4381 }
 0x478   :  { %4512 = vst.msk [vmem:[#allocation2 + $0xf8] sm:$0xf] %vm4449_vm13, %v4382_v19  ;;  %v5501_v23 = vpop.permute.xlu1 %5500  ;;  %v7081_v19 = vadd.f32 %v7080_v6, %v13194_v47  ;;  %v13277_v6 = vpop.f32.mrf.mxu1 }
 0x479   :  { %5632 = vst.msk [vmem:[#allocation2 + $0xf4] sm:$0xf] %vm5570_vm14, %v5501_v23  ;;  %v7213_v23 = vadd.f32 %v7212_v4, %v7150_v56 }
 0x47b   :  { %v5499_v61 = vpop.permute.xlu0 %5498 }
 0x47c   :  { %5631 = vst.msk [vmem:[#allocation2 + $0xf0] sm:$0xf] %vm5570_vm14, %v5499_v61  ;;  %v5505_v9 = vpop.permute.xlu1 %5504  ;;  %v7152_v61 = vmul.f32 %v13209_v22, %v13209_v22 }
 0x47d   :  { %5634 = vst.msk [vmem:[#allocation2 + $0xfc] sm:$0xf] %vm5570_vm14, %v5505_v9  ;;  %v7214_v9 = vadd.f32 %v7213_v23, %v7151_v33 }
 0x47f   :  { %v5503_v10 = vpop.permute.xlu0 %5502 }
 0x480   :  { %5633 = vst.msk [vmem:[#allocation2 + $0xf8] sm:$0xf] %vm5570_vm14, %v5503_v10  ;;  %v6174_v1 = vpop.permute.xlu1 %6173  ;;  %v7082_v10 = vadd.f32 %v7081_v19, %v13209_v22 }
 0x481   :  { %6305 = vst.msk [vmem:[#allocation2 + $0xf4] sm:$0xf] %vm6243_vm15, %v6174_v1  ;;  %v13230_v1 = vpop.f32.mrf.mxu0 }
 0x482   :  { %v7156_v35 = vmul.f32 %v13230_v1, %v13230_v1 }
 0x483   :  { %v6172_v37 = vpop.permute.xlu0 %6171 }
 0x484   :  { %6304 = vst.msk [vmem:[#allocation2 + $0xf0] sm:$0xf] %vm6243_vm15, %v6172_v37  ;;  %v6178_v14 = vpop.permute.xlu1 %6177  ;;  %v7215_v37 = vadd.f32 %v7214_v9, %v7152_v61 }
 0x485   :  { %6307 = vst.msk [vmem:[#allocation2 + $0xfc] sm:$0xf] %vm6243_vm15, %v6178_v14  ;;  %v13232_v14 = vpop.f32.mrf.mxu0 }
 0x486   :  { %v7161_v44 = vmul.f32 %v13232_v14, %v13232_v14 }
 0x487   :  { %v6176_v17 = vpop.permute.xlu0 %6175  ;;  %v13237_v52 = vpop.f32.mrf.mxu0 }
 0x488   :  { %6306 = vst.msk [vmem:[#allocation2 + $0xf8] sm:$0xf] %vm6243_vm15, %v6176_v17  ;;  %v7153_v17 = vmul.f32 %v13191_v42, %v13191_v42  ;;  %v7159_v51 = vmul.f32 %v13237_v52, %v13237_v52 }
 0x489   :  { %v13247_v36 = vpop.f32.mrf.mxu0 }
 0x48a   :  { %v7162_v33 = vmul.f32 %v13247_v36, %v13247_v36 }
 0x48b   :  { %v8399_v20 = vld [vmem:[#allocation2 + $0xf0] sm:$0xff]   ;;  %v13250_v5 = vpop.f32.mrf.mxu0 }
 0x48c   :  { %8344 = vmatprep.mubr.msk.bf16.mxu1 %vm6552_vm0, %v8399_v20  ;;  %v7083_v20 = vadd.f32 %v13191_v42, %v7082_v10  ;;  %v7160_v39 = vmul.f32 %v13250_v5, %v13250_v5 }
 0x48d   :  { %v13255_v31 = vpop.f32.mrf.mxu0 }
 0x48e   :  { %v7084_v12 = vadd.f32 %v13199_v53, %v7083_v20 }
 0x48f   :  { %v8400_v58 = vld [vmem:[#allocation2 + $0xf8] sm:$0xff]   ;;  %v13262_v55 = vpop.f32.mrf.mxu0 }
 0x490   :  { %8345 = vmatmul.mubr.msk.bf16.gmra.mxu1 %vm6552_vm0, %v8400_v58  ;;  %v7216_v58 = vadd.f32 %v7215_v37, %v7153_v17  ;;  %v7085_v16 = vadd.f32 %v7084_v12, %v13217_v3  ;;  %v7163_v23 = vmul.f32 %v13262_v55, %v13262_v55  ;;  %v13289_v17 = vpop.f32.mrf.mxu1 }
 0x491   :  { %v13268_v63 = vpop.f32.mrf.mxu0 }
 0x492   :  { %v7217_v30 = vadd.f32 %v7216_v58, %v7154_v29  ;;  %v7086_v2 = vadd.f32 %v7085_v16, %v13230_v1  ;;  %v7165_v16 = vmul.f32 %v13255_v31, %v13255_v31 }
 0x493   :  { %v13273_v28 = vpop.f32.mrf.mxu0 }
 0x494   :  { %v7218_v38 = vadd.f32 %v7217_v30, %v7155_v62  ;;  %v7087_v43 = vadd.f32 %v13212_v54, %v7086_v2  ;;  %v7164_v10 = vmul.f32 %v13273_v28, %v13273_v28  ;;  %v13294_v62 = vpop.f32.mrf.mxu1 }
 0x495   :  { %v13275_v56 = vpop.f32.mrf.mxu0 }
 0x496   :  { %v7219_v41 = vadd.f32 %v7218_v38, %v7156_v35  ;;  %v7088_v48 = vadd.f32 %v13224_v8, %v7087_v43  ;;  %v13301_v2 = vpop.f32.mrf.mxu1 }
 0x497   :  { %v13287_v37 = vpop.f32.mrf.mxu0 }
 0x498   :  { %v7220_v46 = vadd.f32 %v7219_v41, %v7157_v7  ;;  %v7089_v57 = vadd.f32 %v7088_v48, %v13237_v52  ;;  %v7166_v41 = vmul.f32 %v13268_v63, %v13268_v63  ;;  %v7167_v43 = vmul.f32 %v13287_v37, %v13287_v37 }
 0x499   :  { %v13292_v12 = vpop.f32.mrf.mxu0 }
 0x49a   :  { %v7221_v34 = vadd.f32 %v7220_v46, %v7158_v13  ;;  %v7090_v60 = vadd.f32 %v7089_v57, %v13250_v5  ;;  %v13308_v46 = vpop.f32.mrf.mxu1 }
 0x49b   :  { %v13299_v38 = vpop.f32.mrf.mxu0  ;;  %14081 = vst [vmem:[#allocation7_spill] sm:$0xff] %v13308_v46 }
 0x49c   :  { %v7222_v59 = vadd.f32 %v7221_v34, %v7159_v51  ;;  %v7091_v27 = vadd.f32 %v13232_v14, %v7090_v60  ;;  %v7168_v51 = vmul.f32 %v13299_v38, %v13299_v38  ;;  %v7169_v60 = vmul.f32 %v13275_v56, %v13275_v56 }
 0x49e   :  { %v7223_v0 = vadd.f32 %v7222_v59, %v7160_v39  ;;  %v7092_v19 = vadd.f32 %v13247_v36, %v7091_v27  ;;  %v13314_v39 = vpop.f32.mrf.mxu1 }
 0x4a0   :  { %v7224_v4 = vadd.f32 %v7223_v0, %v7161_v44  ;;  %v7093_v61 = vadd.f32 %v7092_v19, %v13262_v55  ;;  %v13319_v44 = vpop.f32.mrf.mxu1  ;;  %v7171_v19 = vmul.f32 %v13289_v17, %v13289_v17 }
 0x4a1   :  { %14082 = vst [vmem:[#allocation8_spill] sm:$0xff] %v13319_v44 }
 0x4a2   :  { %v7225_v9 = vadd.f32 %v7224_v4, %v7162_v33  ;;  %v7094_v58 = vadd.f32 %v7093_v61, %v13273_v28  ;;  %v7170_v4 = vmul.f32 %v13292_v12, %v13292_v12 }
 0x4a4   :  { %v7226_v20 = vadd.f32 %v7225_v9, %v7163_v23  ;;  %v7095_v30 = vadd.f32 %v13255_v31, %v7094_v58  ;;  %v13326_v23 = vpop.f32.mrf.mxu1 }
 0x4a6   :  { %v7227_v29 = vadd.f32 %v7226_v20, %v7164_v10  ;;  %v7096_v7 = vadd.f32 %v13268_v63, %v7095_v30  ;;  %v7172_v10 = vmul.f32 %v13301_v2, %v13301_v2 }
 0x4a8   :  { %v7228_v35 = vadd.f32 %v7227_v29, %v7165_v16  ;;  %v7097_v13 = vadd.f32 %v7096_v7, %v13287_v37 }
 0x4aa   :  { %v7229_v48 = vadd.f32 %v7228_v35, %v7166_v41  ;;  %v7098_v34 = vadd.f32 %v7097_v13, %v13299_v38  ;;  %v7173_v35 = vmul.f32 %v13277_v6, %v13277_v6  ;;  %v7174_v13 = vmul.f32 %v13294_v62, %v13294_v62 }
 0x4ac   :  { %v7230_v57 = vadd.f32 %v7229_v48, %v7167_v43  ;;  %v7099_v0 = vadd.f32 %v13275_v56, %v7098_v34 }
 0x4ae   :  { %v7231_v59 = vadd.f32 %v7230_v57, %v7168_v51  ;;  %v7100_v33 = vadd.f32 %v13292_v12, %v7099_v0  ;;  %v7175_v51 = vmul.f32 %v13314_v39, %v13314_v39 }
 0x4b0   :  { %v7232_v27 = vadd.f32 %v7231_v59, %v7169_v60  ;;  %v7101_v61 = vadd.f32 %v7100_v33, %v13289_v17  ;;  %v13331_v20 = vpop.f32.mrf.mxu1  ;;  %v7176_v59 = vmul.f32 %v13326_v23, %v13326_v23 }
 0x4b1   :  { %14083 = vst [vmem:[#allocation9_spill] sm:$0xff] %v13331_v20 }
 0x4b2   :  { %v7233_v9 = vadd.f32 %v7232_v27, %v7170_v4  ;;  %v7102_v29 = vadd.f32 %v7101_v61, %v13301_v2  ;;  %v13334_v30 = vpop.f32.mrf.mxu1 }
 0x4b3   :  { %14084 = vst [vmem:[#allocation10_spill] sm:$0xff] %v13334_v30 }
 0x4b4   :  { %v7234_v58 = vadd.f32 %v7233_v9, %v7171_v19  ;;  %v7103_v41 = vadd.f32 %v13277_v6, %v7102_v29  ;;  %v13339_v43 = vpop.f32.mrf.mxu1  ;;  %v7177_v19 = vmul.f32 %v13308_v46, %v13308_v46 }
 0x4b5   :  { %14085 = vst [vmem:[#allocation11_spill] sm:$0xff] %v13339_v43 }
 0x4b6   :  { %v7235_v16 = vadd.f32 %v7234_v58, %v7172_v10  ;;  %v7104_v48 = vadd.f32 %v13294_v62, %v7103_v41  ;;  %v13349_v60 = vpop.f32.mrf.mxu1  ;;  %v7178_v58 = vmul.f32 %v13319_v44, %v13319_v44 }
 0x4b7   :  { %14086 = vst [vmem:[#allocation12_spill] sm:$0xff] %v13349_v60 }
 0x4b8   :  { %v7236_v7 = vadd.f32 %v7235_v16, %v7173_v35  ;;  %v7105_v57 = vadd.f32 %v7104_v48, %v13314_v39  ;;  %v7179_v16 = vmul.f32 %v13334_v30, %v13334_v30 }
 0x4ba   :  { %v7237_v34 = vadd.f32 %v7236_v7, %v7174_v13  ;;  %v7106_v27 = vadd.f32 %v7105_v57, %v13326_v23  ;;  %v7180_v13 = vmul.f32 %v13349_v60, %v13349_v60 }
 0x4bc   :  { %v7238_v0 = vadd.f32 %v7237_v34, %v7175_v51  ;;  %v7107_v61 = vadd.f32 %v13308_v46, %v7106_v27 }
 0x4be   :  { %v7239_v33 = vadd.f32 %v7238_v0, %v7176_v59  ;;  %v7108_v29 = vadd.f32 %v13319_v44, %v7107_v61  ;;  %v7181_v0 = vmul.f32 %v13331_v20, %v13331_v20  ;;  %v7182_v61 = vmul.f32 %v13339_v43, %v13339_v43 }
 0x4c0   :  { %v7240_v10 = vadd.f32 %v7239_v33, %v7177_v19  ;;  %v7109_v41 = vadd.f32 %v7108_v29, %v13334_v30 }
 0x4c2   :  { %v7241_v7 = vadd.f32 %v7240_v10, %v7178_v58  ;;  %v7110_v51 = vadd.f32 %v7109_v41, %v13349_v60 }
 0x4c4   :  { %v7242_v48 = vadd.f32 %v7241_v7, %v7179_v16  ;;  %v7111_v27 = vadd.f32 %v13331_v20, %v7110_v51 }
 0x4c6   :  { %v7243_v34 = vadd.f32 %v7242_v48, %v7180_v13  ;;  %v7112_v10 = vadd.f32 %v13339_v43, %v7111_v27 }
 0x4c8   :  { %v7244_v33 = vadd.f32 %v7243_v34, %v7181_v0 }
 0x4ca   :  { %v7245_v16 = vadd.f32 %v7244_v33, %v7182_v61 }
 0x4d0   :  { %v13352_v4 = vpop.f32.mrf.mxu1 }
 0x4d1   :  { %14087 = vst [vmem:[#allocation13_spill] sm:$0xff] %v13352_v4  ;;  %v7185_v0 = vmul.f32 %v13352_v4, %v13352_v4 }
 0x4d2   :  { %v13357_v9 = vpop.f32.mrf.mxu1 }
 0x4d3   :  { %14088 = vst [vmem:[#allocation14_spill] sm:$0xff] %v13357_v9  ;;  %v7183_v58 = vmul.f32 %v13357_v9, %v13357_v9  ;;  %v7113_v29 = vadd.f32 %v7112_v10, %v13357_v9 }
 0x4d4   :  { %v13364_v35 = vpop.f32.mrf.mxu1 }
 0x4d5   :  { %14089 = vst [vmem:[#allocation15_spill] sm:$0xff] %v13364_v35  ;;  %v7246_v13 = vadd.f32 %v7245_v16, %v7183_v58  ;;  %v7186_v33 = vmul.f32 %v13364_v35, %v13364_v35 }
 0x4d6   :  { %v13370_v57 = vpop.f32.mrf.mxu1 }
 0x4d7   :  { %14090 = vst [vmem:[#allocation16_spill] sm:$0xff] %v13370_v57  ;;  %v7184_v41 = vmul.f32 %v13370_v57, %v13370_v57  ;;  %v7114_v48 = vadd.f32 %v7113_v29, %v13370_v57 }
 0x4d9   :  { %v7247_v51 = vadd.f32 %v7246_v13, %v7184_v41  ;;  %v7115_v27 = vadd.f32 %v13352_v4, %v7114_v48 }
 0x4db   :  { %v7248_v10 = vadd.f32 %v7247_v51, %v7185_v0  ;;  %v7116_v61 = vadd.f32 %v13364_v35, %v7115_v27 }
 0x4dd   :  { %v7249_v41 = vadd.f32 %v7248_v10, %v7186_v33 }
 0x4f0   :  { %v13372_v59 = vpop.f32.mrf.mxu1 }
 0x4f1   :  { %14091 = vst [vmem:[#allocation17_spill] sm:$0xff] %v13372_v59  ;;  %v7189_v27 = vmul.f32 %v13372_v59, %v13372_v59 }
 0x4f2   :  { %v13377_v19 = vpop.f32.mrf.mxu1 }
 0x4f3   :  { %14092 = vst [vmem:[#allocation18_spill] sm:$0xff] %v13377_v19  ;;  %v7187_v58 = vmul.f32 %v13377_v19, %v13377_v19  ;;  %v7117_v16 = vadd.f32 %v7116_v61, %v13377_v19 }
 0x4f4   :  { %v13387_v7 = vpop.f32.mrf.mxu1 }
 0x4f5   :  { %14093 = vst [vmem:[#allocation19_spill] sm:$0xff] %v13387_v7  ;;  %v7250_v48 = vadd.f32 %v7249_v41, %v7187_v58  ;;  %v7190_v10 = vmul.f32 %v13387_v7, %v13387_v7 }
 0x4f6   :  { %v13390_v34 = vpop.f32.mrf.mxu1 }
 0x4f7   :  { %14094 = vst [vmem:[#allocation20_spill] sm:$0xff] %v13390_v34  ;;  %v7188_v13 = vmul.f32 %v13390_v34, %v13390_v34  ;;  %v7118_v4 = vadd.f32 %v7117_v16, %v13390_v34 }
 0x4f9   :  { %v7251_v0 = vadd.f32 %v7250_v48, %v7188_v13  ;;  %v7119_v35 = vadd.f32 %v13372_v59, %v7118_v4 }
 0x4fb   :  { %v7252_v9 = vadd.f32 %v7251_v0, %v7189_v27  ;;  %v7120_v33 = vadd.f32 %v13387_v7, %v7119_v35 }
 0x4fd   :  { %v7253_v16 = vadd.f32 %v7252_v9, %v7190_v10 }
 0x510   :  { %v13395_v43 = vpop.f32.mrf.mxu1 }
 0x511   :  { %14095 = vst [vmem:[#allocation21_spill] sm:$0xff] %v13395_v43  ;;  %v7193_v35 = vmul.f32 %v13395_v43, %v13395_v43 }
 0x512   :  { %v13402_v29 = vpop.f32.mrf.mxu1 }
 0x513   :  { %14096 = vst [vmem:[#allocation22_spill] sm:$0xff] %v13402_v29  ;;  %v7191_v61 = vmul.f32 %v13402_v29, %v13402_v29  ;;  %v7121_v58 = vadd.f32 %v7120_v33, %v13402_v29 }
 0x514   :  { %v13408_v51 = vpop.f32.mrf.mxu1 }
 0x515   :  { %14097 = vst [vmem:[#allocation23_spill] sm:$0xff] %v13408_v51  ;;  %v7254_v13 = vadd.f32 %v7253_v16, %v7191_v61  ;;  %v7194_v9 = vmul.f32 %v13408_v51, %v13408_v51 }
 0x516   :  { %v13413_v57 = vpop.f32.mrf.mxu1 }
 0x517   :  { %14098 = vst [vmem:[#allocation24_spill] sm:$0xff] %v13413_v57  ;;  %v7192_v41 = vmul.f32 %v13413_v57, %v13413_v57  ;;  %v7122_v48 = vadd.f32 %v7121_v58, %v13413_v57 }
 0x519   :  { %v7255_v0 = vadd.f32 %v7254_v13, %v7192_v41  ;;  %v7123_v7 = vadd.f32 %v13395_v43, %v7122_v48 }
 0x51b   :  { %v7256_v59 = vadd.f32 %v7255_v0, %v7193_v35  ;;  %v7124_v10 = vadd.f32 %v13408_v51, %v7123_v7 }
 0x51d   :  { %v7257_v58 = vadd.f32 %v7256_v59, %v7194_v9 }
 0x530   :  { %v13415_v20 = vpop.f32.mrf.mxu1 }
 0x531   :  { %14099 = vst [vmem:[#allocation25_spill] sm:$0xff] %v13415_v20  ;;  %v7197_v0 = vmul.f32 %v13415_v20, %v13415_v20 }
 0x532   :  { %v13425_v4 = vpop.f32.mrf.mxu1 }
 0x533   :  { %14100 = vst [vmem:[#allocation26_spill] sm:$0xff] %v13425_v4  ;;  %v7195_v33 = vmul.f32 %v13425_v4, %v13425_v4  ;;  %v7125_v61 = vadd.f32 %v7124_v10, %v13425_v4 }
 0x534   :  { %v13428_v27 = vpop.f32.mrf.mxu1 }
 0x535   :  { %14101 = vst [vmem:[#allocation27_spill] sm:$0xff] %v13428_v27  ;;  %v7258_v41 = vadd.f32 %v7257_v58, %v7195_v33  ;;  %v7198_v59 = vmul.f32 %v13428_v27, %v13428_v27 }
 0x536   :  { %v13433_v34 = vpop.f32.mrf.mxu1 }
 0x537   :  { %14102 = vst [vmem:[#allocation28_spill] sm:$0xff] %v13433_v34  ;;  %v7196_v16 = vmul.f32 %v13433_v34, %v13433_v34  ;;  %v7126_v13 = vadd.f32 %v7125_v61, %v13433_v34 }
 0x539   :  { %v7259_v48 = vadd.f32 %v7258_v41, %v7196_v16  ;;  %v7127_v35 = vadd.f32 %v13415_v20, %v7126_v13 }
 0x53b   :  { %v7260_v7 = vadd.f32 %v7259_v48, %v7197_v0  ;;  %v7128_v9 = vadd.f32 %v13428_v27, %v7127_v35 }
 0x53d   :  { %v7261_v58 = vadd.f32 %v7260_v7, %v7198_v59 }
 0x550   :  { %v13447_v43 = vpop.f32.mrf.mxu1 }
 0x551   :  { %14103 = vst [vmem:[#allocation29_spill] sm:$0xff] %v13447_v43  ;;  %v7201_v48 = vmul.f32 %v13447_v43, %v13447_v43 }
 0x552   :  { %v13449_v51 = vpop.f32.mrf.mxu1 }
 0x553   :  { %14104 = vst [vmem:[#allocation30_spill] sm:$0xff] %v13449_v51  ;;  %v7199_v10 = vmul.f32 %v13449_v51, %v13449_v51  ;;  %v7129_v61 = vadd.f32 %v7128_v9, %v13449_v51 }
 0x554   :  { %v13456_v33 = vpop.f32.mrf.mxu1 }
 0x555   :  { %v7262_v41 = vadd.f32 %v7261_v58, %v7199_v10  ;;  %v7202_v35 = vmul.f32 %v13456_v33, %v13456_v33 }
 0x556   :  { %v6930_v16 = vpop.f32.mrf.mxu1 }
 0x557   :  { %v7130_v13 = vadd.f32 %v7129_v61, %v6930_v16  ;;  %v7200_v20 = vmul.f32 %v6930_v16, %v6930_v16 }
 0x559   :  { %v7131_v0 = vadd.f32 %v13447_v43, %v7130_v13  ;;  %v7263_v34 = vadd.f32 %v7262_v41, %v7200_v20 }
 0x55b   :  { %v7132_v27 = vadd.f32 %v13456_v33, %v7131_v0  ;;  %v7264_v4 = vadd.f32 %v7263_v34, %v7201_v48  ;;  %v7285_v34 = vlaneseq }
 0x55d   :  { %v7133_v57 = vrot.slane %v7132_v27, 4  ;;  %v7265_v29 = vadd.f32 %v7264_v4, %v7202_v35  ;;  %v7286_v4 = vshrl.u32 %v7285_v34, 7 }
 0x55f   :  { %v7134_v9 = vadd.f32 %v7133_v57, %v7132_v27  ;;  %v7266_v7 = vrot.slane %v7265_v29, 4  ;;  %v7277_v57 = vld [vmem:[%s14050_s2] sm:$0x1]  ;;  %s8433_s2 = smov [#allocation4]  }
 0x561   :  { %v7135_v59 = vrot.slane %v7134_v9, 2  ;;  %v7267_v10 = vadd.f32 %v7266_v7, %v7265_v29  ;;  %v7287_v29 = vsub.s32 0, %v7286_v4  ;;  %v14111_v4 = vld [vmem:[#allocation14_spill] sm:$0xff] }
 0x563   :  { %v7136_v61 = vadd.f32 %v7135_v59, %v7134_v9  ;;  %v7268_v58 = vrot.slane %v7267_v10, 2 }
 0x565   :  { %v7137_v51 = vrot.slane %v7136_v61, 1  ;;  %v7269_v19 = vadd.f32 %v7268_v58, %v7267_v10  ;;  %v14106_v58 = vld [vmem:[#allocation8_spill] sm:$0xff] }
 0x567   :  { %v7138_v60 = vadd.f32 %v7137_v51, %v7136_v61  ;;  %v7270_v30 = vrot.slane %v7269_v19, 1  ;;  %v14105_v61 = vld [vmem:[#allocation7_spill] sm:$0xff] }
 0x569   :  { %v7271_v13 = vadd.f32 %v7270_v30, %v7269_v19  ;;  %v7272_v20 = vmul.f32 0.001953125, %v7138_v60  ;;  %v7281_v30 = vld [vmem:[%s14051_s3] sm:$0x1]  ;;  %s7557_s3 = sshll.u32 %s8433_s2, 4  ;;  %s7558_s3 = int_to_ptr.vmem [resolvable:$true] %s7557_s3 }
 0x56a   :  { %s8403_s6 = scalar_lea.vmem %s7558_s3, 8192  ;;  %p8408_p1 = scmp.lt.s32.totalorder %s7558_s3, %s7558_s3 }
 0x56b   :  { %v7273_v41 = vmul.f32 0.001953125, %v7271_v13  ;;  %v7274_v43 = vmul.f32 %v7272_v20, %v7272_v20  ;;  %v14107_v13 = vld [vmem:[#allocation10_spill] sm:$0xff]  ;;  %p8404_p0 = scmp.ne.s32.totalorder %s7558_s3, %s8403_s6  ;;  %p8409_p2 = scmp.lt.s32.totalorder %s8403_s6, %s8403_s6 }
 0x56d   :  { %v7275_v44 = vsub.f32 %v7273_v41, %v7274_v43  ;;  %v14109_v41 = vld [vmem:[#allocation9_spill] sm:$0xff]  ;;  %p8410_p3 = por %p8409_p2, %p8408_p1 }
 0x56f   :  { %v7276_v46 = vmax.f32 %v7275_v44, 0.0  ;;  %p8411_p4 = pnand %p8410_p3, %p8404_p0 }
 0x571   :  { %v7278_v0 = vadd.f32 1e-05, %v7276_v46 }
 0x573   :  { %8401 = vrsqrt.f32 %v7278_v0  ;;  %v14110_v0 = vld [vmem:[#allocation11_spill] sm:$0xff] }
 0x580   :  { %v8402_v27 = vpop.eup %8401 }
 0x581   :  { %v7280_v48 = vmul.f32 %v8402_v27, %v7277_v57 }
 0x583   :  { %v7282_v60 = vmul.f32 %v7280_v48, %v7272_v20  ;;  %v13471_v19 = vrot.slane %v7280_v48, %v7287_v29  ;;  %v14108_v20 = vld [vmem:[#allocation12_spill] sm:$0xff]  ;;  %v14113_v48 = vld [vmem:[#allocation13_spill] sm:$0xff] }
 0x585   :  { %v7283_v43 = vsub.f32 %v7281_v30, %v7282_v60  ;;  %v7351_v46 = vmul.f32 %v13471_v19, %v6930_v16  ;;  %v13476_v44 = vmul.f32 %v13471_v19, %v13150_v18  ;;  %v13480_v51 = vmul.f32 %v13471_v19, %v13155_v26  ;;  %v14114_v60 = vld [vmem:[#allocation15_spill] sm:$0xff] }
 0x586   :  { %v13484_v35 = vmul.f32 %v13146_v15, %v13471_v19  ;;  %v13488_v9 = vmul.f32 %v13152_v21, %v13471_v19  ;;  %v13492_v7 = vmul.f32 %v13471_v19, %v13160_v50  ;;  %v13496_v18 = vmul.f32 %v13471_v19, %v13164_v25 }
 0x587   :  { %v13498_v16 = vrot.slane %v7283_v43, %v7287_v29  ;;  %v13502_v26 = vmul.f32 %v13158_v49, %v13471_v19  ;;  %v13506_v15 = vmul.f32 %v13162_v24, %v13471_v19  ;;  %v13510_v21 = vmul.f32 %v13471_v19, %v13174_v45  ;;  %v14112_v29 = vld [vmem:[#allocation16_spill] sm:$0xff] }
 0x588   :  { %v13514_v50 = vmul.f32 %v13471_v19, %v13186_v40  ;;  %v13518_v25 = vmul.f32 %v13166_v11, %v13471_v19  ;;  %v13522_v49 = vmul.f32 %v13179_v32, %v13471_v19  ;;  %v13526_v24 = vmul.f32 %v13471_v19, %v13194_v47 }
 0x589   :  { %v7421_v59 = vadd.f32 %v13498_v16, %v7351_v46  ;;  %v13531_v45 = vmul.f32 %v13471_v19, %v13209_v22  ;;  %v13535_v40 = vmul.f32 %v13191_v42, %v13471_v19  ;;  %v13539_v11 = vmul.f32 %v13199_v53, %v13471_v19  ;;  %v14115_v46 = vld [vmem:[#allocation18_spill] sm:$0xff] }
 0x58a   :  { %v13543_v32 = vmul.f32 %v13471_v19, %v13217_v3  ;;  %v13547_v47 = vmul.f32 %v13471_v19, %v13230_v1  ;;  %v13551_v22 = vmul.f32 %v13212_v54, %v13471_v19  ;;  %v13555_v42 = vmul.f32 %v13224_v8, %v13471_v19 }
 0x58b   :  { %v7485_v10 = vmax.f32 %v7421_v59, 0.0  ;;  %v13559_v53 = vmul.f32 %v13471_v19, %v13237_v52  ;;  %v13563_v3 = vmul.f32 %v13471_v19, %v13250_v5  ;;  %v13567_v1 = vmul.f32 %v13232_v14, %v13471_v19 }
 0x58c   :  { %v13571_v54 = vmul.f32 %v13247_v36, %v13471_v19  ;;  %v13575_v8 = vmul.f32 %v13471_v19, %v13262_v55  ;;  %v13579_v52 = vmul.f32 %v13471_v19, %v13273_v28  ;;  %v13583_v5 = vmul.f32 %v13255_v31, %v13471_v19 }
 0x58d   :  { %7549 = vst [vmem:[#allocation4 + $0x1e8] sm:$0xff] %v7485_v10  ;;  %v13587_v14 = vmul.f32 %v13268_v63, %v13471_v19  ;;  %v13591_v36 = vmul.f32 %v13471_v19, %v13287_v37  ;;  %v13595_v55 = vmul.f32 %v13471_v19, %v13299_v38  ;;  %v13599_v28 = vmul.f32 %v13275_v56, %v13471_v19  ;;  %v14116_v10 = vld [vmem:[#allocation20_spill] sm:$0xff] }
 0x58e   :  { %v13603_v31 = vmul.f32 %v13292_v12, %v13471_v19  ;;  %v13607_v63 = vmul.f32 %v13471_v19, %v13289_v17  ;;  %v13611_v37 = vmul.f32 %v13471_v19, %v13301_v2  ;;  %v13615_v38 = vmul.f32 %v13277_v6, %v13471_v19 }
 0x58f   :  { %v13619_v56 = vmul.f32 %v13294_v62, %v13471_v19  ;;  %v13623_v12 = vmul.f32 %v13471_v19, %v13314_v39  ;;  %v13627_v17 = vmul.f32 %v13471_v19, %v13326_v23  ;;  %v13631_v2 = vmul.f32 %v14105_v61, %v13471_v19 }
 0x590   :  { %v13635_v6 = vmul.f32 %v14106_v58, %v13471_v19  ;;  %v13639_v62 = vmul.f32 %v13471_v19, %v14107_v13  ;;  %v13643_v39 = vmul.f32 %v13471_v19, %v14108_v20  ;;  %v13647_v23 = vmul.f32 %v14109_v41, %v13471_v19  ;;  %v14117_v58 = vld [vmem:[#allocation17_spill] sm:$0xff]  ;;  %v14119_v20 = vld [vmem:[#allocation19_spill] sm:$0xff] }
 0x591   :  { %v13651_v34 = vmul.f32 %v14110_v0, %v13471_v19  ;;  %v13655_v57 = vmul.f32 %v13471_v19, %v14111_v4  ;;  %v13659_v27 = vmul.f32 %v13471_v19, %v14112_v29  ;;  %v13663_v30 = vmul.f32 %v14113_v48, %v13471_v19  ;;  %v14121_v0 = vld [vmem:[#allocation22_spill] sm:$0xff]  ;;  %v14123_v29 = vld [vmem:[#allocation24_spill] sm:$0xff] }
 0x592   :  { %v13667_v43 = vmul.f32 %v14114_v60, %v13471_v19  ;;  %v13671_v59 = vmul.f32 %v13471_v19, %v14115_v46  ;;  %v13675_v61 = vmul.f32 %v13471_v19, %v14116_v10  ;;  %v13679_v13 = vmul.f32 %v14117_v58, %v13471_v19  ;;  %v14125_v60 = vld [vmem:[#allocation21_spill] sm:$0xff]  ;;  %v14127_v10 = vld [vmem:[#allocation23_spill] sm:$0xff] }
 0x593   :  { %v13683_v41 = vmul.f32 %v14119_v20, %v13471_v19  ;;  %v13687_v4 = vmul.f32 %v13471_v19, %v14121_v0  ;;  %v13691_v48 = vmul.f32 %v13471_v19, %v14123_v29  ;;  %v13695_v46 = vmul.f32 %v14125_v60, %v13471_v19 }
 0x594   :  { %14118 = vst [vmem:[#allocation7_spill] sm:$0xff] %v13679_v13  ;;  %v13699_v58 = vmul.f32 %v14127_v10, %v13471_v19  ;;  %v14129_v13 = vld [vmem:[#allocation26_spill] sm:$0xff] }
 0x595   :  { %14120 = vst [vmem:[#allocation8_spill] sm:$0xff] %v13683_v41  ;;  %14122 = vst [vmem:[#allocation10_spill] sm:$0xff] %v13687_v4  ;;  %v13703_v20 = vmul.f32 %v13471_v19, %v14129_v13  ;;  %v14130_v41 = vld [vmem:[#allocation28_spill] sm:$0xff]  ;;  %v14131_v4 = vld [vmem:[#allocation25_spill] sm:$0xff] }
 0x596   :  { %14124 = vst [vmem:[#allocation12_spill] sm:$0xff] %v13691_v48  ;;  %14126 = vst [vmem:[#allocation9_spill] sm:$0xff] %v13695_v46  ;;  %v13707_v0 = vmul.f32 %v13471_v19, %v14130_v41  ;;  %v13711_v29 = vmul.f32 %v14131_v4, %v13471_v19  ;;  %v14132_v48 = vld [vmem:[#allocation27_spill] sm:$0xff]  ;;  %v14133_v46 = vld [vmem:[#allocation30_spill] sm:$0xff]  ;;  %v13727_v41 = vmul.f32 %v13456_v33, %v13471_v19 }
 0x597   :  { %14128 = vst [vmem:[#allocation11_spill] sm:$0xff] %v13699_v58  ;;  %v13715_v60 = vmul.f32 %v14132_v48, %v13471_v19  ;;  %v13719_v10 = vmul.f32 %v13471_v19, %v14133_v46  ;;  %v14134_v58 = vld [vmem:[#allocation29_spill] sm:$0xff]  ;;  %v13731_v4 = vadd.f32 %v13498_v16, %v13476_v44  ;;  %v13735_v48 = vadd.f32 %v13498_v16, %v13480_v51 }
 0x598   :  { %v13723_v13 = vmul.f32 %v14134_v58, %v13471_v19  ;;  %v13739_v46 = vadd.f32 %v13498_v16, %v13484_v35  ;;  %v13743_v58 = vadd.f32 %v13498_v16, %v13488_v9  ;;  %v13747_v33 = vadd.f32 %v13498_v16, %v13492_v7 }
 0x599   :  { %v13751_v19 = vadd.f32 %v13498_v16, %v13496_v18  ;;  %v13755_v44 = vadd.f32 %v13498_v16, %v13502_v26  ;;  %v13759_v51 = vadd.f32 %v13498_v16, %v13506_v15  ;;  %v13763_v35 = vadd.f32 %v13498_v16, %v13510_v21 }
 0x59a   :  { %v13767_v9 = vadd.f32 %v13498_v16, %v13514_v50  ;;  %v13771_v7 = vadd.f32 %v13498_v16, %v13518_v25  ;;  %v13775_v18 = vadd.f32 %v13498_v16, %v13522_v49  ;;  %v13779_v26 = vadd.f32 %v13498_v16, %v13526_v24 }
 0x59b   :  { %v13783_v15 = vadd.f32 %v13498_v16, %v13531_v45  ;;  %v13787_v21 = vadd.f32 %v13498_v16, %v13535_v40  ;;  %v13791_v50 = vadd.f32 %v13498_v16, %v13539_v11  ;;  %v13795_v25 = vadd.f32 %v13498_v16, %v13543_v32 }
 0x59c   :  { %v13799_v49 = vadd.f32 %v13498_v16, %v13547_v47  ;;  %v13803_v24 = vadd.f32 %v13498_v16, %v13551_v22  ;;  %v13807_v45 = vadd.f32 %v13498_v16, %v13555_v42  ;;  %v13811_v40 = vadd.f32 %v13498_v16, %v13559_v53 }
 0x59d   :  { %v13815_v11 = vadd.f32 %v13498_v16, %v13563_v3  ;;  %v13819_v32 = vadd.f32 %v13498_v16, %v13567_v1  ;;  %v13823_v47 = vadd.f32 %v13498_v16, %v13571_v54  ;;  %v13827_v22 = vadd.f32 %v13498_v16, %v13575_v8 }
 0x59e   :  { %v13831_v42 = vadd.f32 %v13498_v16, %v13579_v52  ;;  %v13835_v53 = vadd.f32 %v13498_v16, %v13583_v5  ;;  %v13839_v3 = vadd.f32 %v13498_v16, %v13587_v14  ;;  %v13843_v1 = vadd.f32 %v13498_v16, %v13591_v36 }
 0x59f   :  { %v13847_v54 = vadd.f32 %v13498_v16, %v13595_v55  ;;  %v13851_v8 = vadd.f32 %v13498_v16, %v13599_v28  ;;  %v13855_v52 = vadd.f32 %v13498_v16, %v13603_v31  ;;  %v13859_v5 = vadd.f32 %v13498_v16, %v13607_v63 }
 0x5a0   :  { %v13863_v14 = vadd.f32 %v13498_v16, %v13611_v37  ;;  %v13867_v36 = vadd.f32 %v13498_v16, %v13615_v38  ;;  %v13871_v55 = vadd.f32 %v13498_v16, %v13619_v56  ;;  %v13875_v28 = vadd.f32 %v13498_v16, %v13623_v12 }
 0x5a1   :  { %v13879_v31 = vadd.f32 %v13498_v16, %v13627_v17  ;;  %v13883_v63 = vadd.f32 %v13498_v16, %v13631_v2  ;;  %v13887_v37 = vadd.f32 %v13498_v16, %v13635_v6  ;;  %v13891_v38 = vadd.f32 %v13498_v16, %v13639_v62 }
 0x5a2   :  { %v13895_v56 = vadd.f32 %v13498_v16, %v13643_v39  ;;  %v13899_v12 = vadd.f32 %v13498_v16, %v13647_v23  ;;  %v13903_v17 = vadd.f32 %v13498_v16, %v13651_v34  ;;  %v13907_v2 = vadd.f32 %v13498_v16, %v13655_v57  ;;  %v14140_v57 = vld [vmem:[#allocation7_spill] sm:$0xff] }
 0x5a3   :  { %v13911_v6 = vadd.f32 %v13498_v16, %v13659_v27  ;;  %v13915_v62 = vadd.f32 %v13498_v16, %v13663_v30  ;;  %v13919_v39 = vadd.f32 %v13498_v16, %v13667_v43  ;;  %v13923_v23 = vadd.f32 %v13498_v16, %v13671_v59 }
 0x5a4   :  { %v13927_v34 = vadd.f32 %v13498_v16, %v13675_v61  ;;  %v13931_v27 = vadd.f32 %v13498_v16, %v14140_v57 }
 0x5a5   :  { %14135 = vst [vmem:[#allocation14_spill] sm:$0xff] %v13911_v6  ;;  %14136 = vst [vmem:[#allocation16_spill] sm:$0xff] %v13915_v62  ;;  %v14141_v6 = vld [vmem:[#allocation8_spill] sm:$0xff]  ;;  %v14142_v62 = vld [vmem:[#allocation10_spill] sm:$0xff] }
 0x5a6   :  { %14137 = vst [vmem:[#allocation13_spill] sm:$0xff] %v13919_v39  ;;  %14138 = vst [vmem:[#allocation15_spill] sm:$0xff] %v13923_v23  ;;  %v13935_v30 = vadd.f32 %v13498_v16, %v14141_v6  ;;  %v13939_v43 = vadd.f32 %v13498_v16, %v14142_v62  ;;  %v14143_v39 = vld [vmem:[#allocation12_spill] sm:$0xff]  ;;  %v14144_v23 = vld [vmem:[#allocation9_spill] sm:$0xff]  ;;  %v13955_v6 = vadd.f32 %v13498_v16, %v13703_v20 }
 0x5a7   :  { %14139 = vst [vmem:[#allocation18_spill] sm:$0xff] %v13927_v34  ;;  %v13943_v59 = vadd.f32 %v13498_v16, %v14143_v39  ;;  %v13947_v61 = vadd.f32 %v13498_v16, %v14144_v23  ;;  %v14145_v34 = vld [vmem:[#allocation11_spill] sm:$0xff]  ;;  %v13959_v62 = vadd.f32 %v13498_v16, %v13707_v0  ;;  %v13963_v39 = vadd.f32 %v13498_v16, %v13711_v29 }
 0x5a8   :  { %v13951_v57 = vadd.f32 %v13498_v16, %v14145_v34  ;;  %v13967_v23 = vadd.f32 %v13498_v16, %v13715_v60  ;;  %v13971_v34 = vadd.f32 %v13498_v16, %v13719_v10  ;;  %v13975_v20 = vadd.f32 %v13498_v16, %v13723_v13 }
 0x5a9   :  { %14146 = vst [vmem:[#allocation20_spill] sm:$0xff] %v13959_v62  ;;  %14147 = vst [vmem:[#allocation17_spill] sm:$0xff] %v13963_v39  ;;  %v13979_v0 = vadd.f32 %v13498_v16, %v13727_v41  ;;  %v7424_v62 = vmax.f32 %v13731_v4, 0.0  ;;  %v7425_v29 = vmax.f32 %v13735_v48, 0.0  ;;  %v7426_v39 = vmax.f32 %v13739_v46, 0.0 }
 0x5aa   :  { %14148 = vst [vmem:[#allocation19_spill] sm:$0xff] %v13967_v23  ;;  %14149 = vst [vmem:[#allocation22_spill] sm:$0xff] %v13971_v34  ;;  %v7427_v60 = vmax.f32 %v13743_v58, 0.0  ;;  %v7428_v23 = vmax.f32 %v13747_v33, 0.0  ;;  %v7429_v10 = vmax.f32 %v13751_v19, 0.0  ;;  %v7430_v34 = vmax.f32 %v13755_v44, 0.0 }
 0x5ab   :  { %14150 = vst [vmem:[#allocation24_spill] sm:$0xff] %v13975_v20  ;;  %v7431_v13 = vmax.f32 %v13759_v51, 0.0  ;;  %v7432_v20 = vmax.f32 %v13763_v35, 0.0  ;;  %7488 = vst [vmem:[#allocation4] sm:$0xff] %v7424_v62  ;;  %v7433_v16 = vmax.f32 %v13767_v9, 0.0  ;;  %v7434_v41 = vmax.f32 %v13771_v7, 0.0 }
 0x5ac   :  { %v7435_v4 = vmax.f32 %v13775_v18, 0.0  ;;  %v7436_v48 = vmax.f32 %v13779_v26, 0.0  ;;  %7489 = vst [vmem:[#allocation4 + $0x8] sm:$0xff] %v7425_v29  ;;  %7490 = vst [vmem:[#allocation4 + $0x10] sm:$0xff] %v7426_v39  ;;  %v7437_v46 = vmax.f32 %v13783_v15, 0.0  ;;  %v7438_v58 = vmax.f32 %v13787_v21, 0.0 }
 0x5ad   :  { %7491 = vst [vmem:[#allocation4 + $0x18] sm:$0xff] %v7427_v60  ;;  %7492 = vst [vmem:[#allocation4 + $0x20] sm:$0xff] %v7428_v23  ;;  %v7439_v33 = vmax.f32 %v13791_v50, 0.0  ;;  %v7440_v19 = vmax.f32 %v13795_v25, 0.0  ;;  %v7441_v44 = vmax.f32 %v13799_v49, 0.0  ;;  %v7442_v51 = vmax.f32 %v13803_v24, 0.0 }
 0x5ae   :  { %7493 = vst [vmem:[#allocation4 + $0x28] sm:$0xff] %v7429_v10  ;;  %7494 = vst [vmem:[#allocation4 + $0x30] sm:$0xff] %v7430_v34  ;;  %v7443_v35 = vmax.f32 %v13807_v45, 0.0  ;;  %v7444_v9 = vmax.f32 %v13811_v40, 0.0  ;;  %v7445_v7 = vmax.f32 %v13815_v11, 0.0  ;;  %v7446_v18 = vmax.f32 %v13819_v32, 0.0 }
 0x5af   :  { %7495 = vst [vmem:[#allocation4 + $0x38] sm:$0xff] %v7431_v13  ;;  %7496 = vst [vmem:[#allocation4 + $0x40] sm:$0xff] %v7432_v20  ;;  %v7447_v26 = vmax.f32 %v13823_v47, 0.0  ;;  %v7448_v15 = vmax.f32 %v13827_v22, 0.0  ;;  %v7449_v21 = vmax.f32 %v13831_v42, 0.0  ;;  %v7450_v50 = vmax.f32 %v13835_v53, 0.0 }
 0x5b0   :  { %7497 = vst [vmem:[#allocation4 + $0x48] sm:$0xff] %v7433_v16  ;;  %7498 = vst [vmem:[#allocation4 + $0x50] sm:$0xff] %v7434_v41  ;;  %v7451_v25 = vmax.f32 %v13839_v3, 0.0  ;;  %v7452_v49 = vmax.f32 %v13843_v1, 0.0  ;;  %v7453_v24 = vmax.f32 %v13847_v54, 0.0  ;;  %v7454_v45 = vmax.f32 %v13851_v8, 0.0 }
 0x5b1   :  { %7499 = vst [vmem:[#allocation4 + $0x58] sm:$0xff] %v7435_v4  ;;  %7500 = vst [vmem:[#allocation4 + $0x60] sm:$0xff] %v7436_v48  ;;  %v7455_v40 = vmax.f32 %v13855_v52, 0.0  ;;  %v7456_v11 = vmax.f32 %v13859_v5, 0.0  ;;  %v7457_v32 = vmax.f32 %v13863_v14, 0.0  ;;  %v7458_v47 = vmax.f32 %v13867_v36, 0.0 }
 0x5b2   :  { %7501 = vst [vmem:[#allocation4 + $0x68] sm:$0xff] %v7437_v46  ;;  %7502 = vst [vmem:[#allocation4 + $0x70] sm:$0xff] %v7438_v58  ;;  %v7459_v22 = vmax.f32 %v13871_v55, 0.0  ;;  %v7460_v42 = vmax.f32 %v13875_v28, 0.0  ;;  %v7461_v53 = vmax.f32 %v13879_v31, 0.0  ;;  %v7462_v3 = vmax.f32 %v13883_v63, 0.0 }
 0x5b3   :  { %7503 = vst [vmem:[#allocation4 + $0x78] sm:$0xff] %v7439_v33  ;;  %7504 = vst [vmem:[#allocation4 + $0x80] sm:$0xff] %v7440_v19  ;;  %v7463_v1 = vmax.f32 %v13887_v37, 0.0  ;;  %v7464_v54 = vmax.f32 %v13891_v38, 0.0  ;;  %v7465_v8 = vmax.f32 %v13895_v56, 0.0  ;;  %v7466_v52 = vmax.f32 %v13899_v12, 0.0 }
 0x5b4   :  { %7505 = vst [vmem:[#allocation4 + $0x88] sm:$0xff] %v7441_v44  ;;  %7506 = vst [vmem:[#allocation4 + $0x90] sm:$0xff] %v7442_v51  ;;  %v7467_v5 = vmax.f32 %v13903_v17, 0.0  ;;  %v7468_v14 = vmax.f32 %v13907_v2, 0.0  ;;  %v14151_v36 = vld [vmem:[#allocation14_spill] sm:$0xff]  ;;  %v14152_v28 = vld [vmem:[#allocation16_spill] sm:$0xff] }
 0x5b5   :  { %7507 = vst [vmem:[#allocation4 + $0x98] sm:$0xff] %v7443_v35  ;;  %7508 = vst [vmem:[#allocation4 + $0xa0] sm:$0xff] %v7444_v9  ;;  %v7469_v55 = vmax.f32 %v14151_v36, 0.0  ;;  %v7470_v31 = vmax.f32 %v14152_v28, 0.0  ;;  %v14153_v63 = vld [vmem:[#allocation13_spill] sm:$0xff]  ;;  %v14154_v38 = vld [vmem:[#allocation15_spill] sm:$0xff] }
 0x5b6   :  { %7509 = vst [vmem:[#allocation4 + $0xa8] sm:$0xff] %v7445_v7  ;;  %7510 = vst [vmem:[#allocation4 + $0xb0] sm:$0xff] %v7446_v18  ;;  %v7471_v37 = vmax.f32 %v14153_v63, 0.0  ;;  %v7472_v62 = vmax.f32 %v14154_v38, 0.0  ;;  %v14155_v56 = vld [vmem:[#allocation18_spill] sm:$0xff]  ;;  %v7474_v17 = vmax.f32 %v13931_v27, 0.0 }
 0x5b7   :  { %7511 = vst [vmem:[#allocation4 + $0xb8] sm:$0xff] %v7447_v26  ;;  %7512 = vst [vmem:[#allocation4 + $0xc0] sm:$0xff] %v7448_v15  ;;  %v7473_v12 = vmax.f32 %v14155_v56, 0.0  ;;  %v7475_v2 = vmax.f32 %v13935_v30, 0.0  ;;  %v7476_v39 = vmax.f32 %v13939_v43, 0.0  ;;  %v7477_v23 = vmax.f32 %v13943_v59, 0.0 }
 0x5b8   :  { %7513 = vst [vmem:[#allocation4 + $0xc8] sm:$0xff] %v7449_v21  ;;  %7514 = vst [vmem:[#allocation4 + $0xd0] sm:$0xff] %v7450_v50  ;;  %v7478_v34 = vmax.f32 %v13947_v61, 0.0  ;;  %v7479_v20 = vmax.f32 %v13951_v57, 0.0  ;;  %v7480_v29 = vmax.f32 %v13955_v6, 0.0  ;;  %v14156_v27 = vld [vmem:[#allocation20_spill] sm:$0xff] }
 0x5b9   :  { %7515 = vst [vmem:[#allocation4 + $0xd8] sm:$0xff] %v7451_v25  ;;  %7516 = vst [vmem:[#allocation4 + $0xe0] sm:$0xff] %v7452_v49  ;;  %v7481_v30 = vmax.f32 %v14156_v27, 0.0  ;;  %v14157_v43 = vld [vmem:[#allocation17_spill] sm:$0xff]  ;;  %v14158_v10 = vld [vmem:[#allocation19_spill] sm:$0xff]  ;;  %v7487_v57 = vmax.f32 %v13979_v0, 0.0 }
 0x5ba   :  { %7517 = vst [vmem:[#allocation4 + $0xe8] sm:$0xff] %v7453_v24  ;;  %7518 = vst [vmem:[#allocation4 + $0xf0] sm:$0xff] %v7454_v45  ;;  %v7482_v60 = vmax.f32 %v14157_v43, 0.0  ;;  %v7483_v13 = vmax.f32 %v14158_v10, 0.0  ;;  %v14159_v16 = vld [vmem:[#allocation22_spill] sm:$0xff]  ;;  %v14160_v59 = vld [vmem:[#allocation24_spill] sm:$0xff] }
 0x5bb   :  { %7519 = vst [vmem:[#allocation4 + $0xf8] sm:$0xff] %v7455_v40  ;;  %7520 = vst [vmem:[#allocation4 + $0x100] sm:$0xff] %v7456_v11  ;;  %v7484_v41 = vmax.f32 %v14159_v16, 0.0  ;;  %v7486_v61 = vmax.f32 %v14160_v59, 0.0 }
 0x5bc   :  { %7521 = vst [vmem:[#allocation4 + $0x108] sm:$0xff] %v7457_v32  ;;  %7522 = vst [vmem:[#allocation4 + $0x110] sm:$0xff] %v7458_v47 }
 0x5bd   :  { %7523 = vst [vmem:[#allocation4 + $0x118] sm:$0xff] %v7459_v22  ;;  %7524 = vst [vmem:[#allocation4 + $0x120] sm:$0xff] %v7460_v42 }
 0x5be   :  { %7525 = vst [vmem:[#allocation4 + $0x128] sm:$0xff] %v7461_v53  ;;  %7526 = vst [vmem:[#allocation4 + $0x130] sm:$0xff] %v7462_v3 }
 0x5bf   :  { %7527 = vst [vmem:[#allocation4 + $0x138] sm:$0xff] %v7463_v1  ;;  %7528 = vst [vmem:[#allocation4 + $0x140] sm:$0xff] %v7464_v54 }
 0x5c0   :  { %7529 = vst [vmem:[#allocation4 + $0x148] sm:$0xff] %v7465_v8  ;;  %7530 = vst [vmem:[#allocation4 + $0x150] sm:$0xff] %v7466_v52 }
 0x5c1   :  { %7531 = vst [vmem:[#allocation4 + $0x158] sm:$0xff] %v7467_v5  ;;  %7532 = vst [vmem:[#allocation4 + $0x160] sm:$0xff] %v7468_v14 }
 0x5c2   :  { %7533 = vst [vmem:[#allocation4 + $0x168] sm:$0xff] %v7469_v55  ;;  %7534 = vst [vmem:[#allocation4 + $0x170] sm:$0xff] %v7470_v31 }
 0x5c3   :  { %7535 = vst [vmem:[#allocation4 + $0x178] sm:$0xff] %v7471_v37  ;;  %7536 = vst [vmem:[#allocation4 + $0x180] sm:$0xff] %v7472_v62 }
 0x5c4   :  { %7537 = vst [vmem:[#allocation4 + $0x188] sm:$0xff] %v7473_v12  ;;  %7538 = vst [vmem:[#allocation4 + $0x190] sm:$0xff] %v7474_v17 }
 0x5c5   :  { %7539 = vst [vmem:[#allocation4 + $0x198] sm:$0xff] %v7475_v2  ;;  %7540 = vst [vmem:[#allocation4 + $0x1a0] sm:$0xff] %v7476_v39 }
 0x5c6   :  { %7541 = vst [vmem:[#allocation4 + $0x1a8] sm:$0xff] %v7477_v23  ;;  %7542 = vst [vmem:[#allocation4 + $0x1b0] sm:$0xff] %v7478_v34 }
 0x5c7   :  { %7543 = vst [vmem:[#allocation4 + $0x1b8] sm:$0xff] %v7479_v20  ;;  %7544 = vst [vmem:[#allocation4 + $0x1c0] sm:$0xff] %v7480_v29 }
 0x5c8   :  { %7545 = vst [vmem:[#allocation4 + $0x1c8] sm:$0xff] %v7481_v30  ;;  %7546 = vst [vmem:[#allocation4 + $0x1d0] sm:$0xff] %v7482_v60 }
 0x5c9   :  { %7547 = vst [vmem:[#allocation4 + $0x1d8] sm:$0xff] %v7483_v13  ;;  %7548 = vst [vmem:[#allocation4 + $0x1e0] sm:$0xff] %v7484_v41 }
 0x5ca   :  { %7550 = vst [vmem:[#allocation4 + $0x1f0] sm:$0xff] %v7486_v61  ;;  %7551 = vst [vmem:[#allocation4 + $0x1f8] sm:$0xff] %v7487_v57 }
 0x5cb   :  { %8414 = shalt.err (!%p8411_p4)
}
 0x5cc   :  { %s8434_s7 = smov 128  }
 0x5cd   :  { %7563 = dma.vmem_to_hbm [thread:$0]  %s7558_s3, 8192, %s14052_s4, [#allocation5], %s8434_s7, %s8434_s7, %s8426_s26  }
 0x5ce   :  { %8423 = dma.done.wait [#allocation5], 8192  }
 0x5cf   :  { %8424 = vsyncadd [#allocation5], 4294959104 }
 0x5d0   :  { %7567 = vsyncpa [#allocation5], 1 }

</bundles_post_ra>
